<compile_context>
chip_gen: v6e
topology: v6e:2x2x1
jax: 0.10.0
libtpu: 0.0.40
codegen_flags: <defaults>
</compile_context>

<pallas_src>
import numpy as np
import jax
import jax.numpy as jnp
from jax.experimental import pallas as pl
from jax.experimental.pallas import tpu as pltpu

# ----------------------- model hyper-parameters (LSTMModel defaults) ----------
N_IN, N_OUT, N_HIST, N_TARGET = 2, 3, 3, 1
N_SENS = 20
NF1 = 20                     # hipnn1 n_features
NF0 = 2 * NF1                # hipnn0 n_features (doubled in __init__)
NF_IN0 = 2 + N_HIST          # one-hot([1, 8]) concat with x_h history
NF_IN1 = 1                   # raw per-step scalar input to hipnn1
NF_IN1_PAD = 8               # zero-padded input width used inside the kernel
DIST_SOFT_MIN, DIST_SOFT_MAX, DIST_HARD_MAX = 0.7, 5.0, 7.5
N_ATOM_LAYERS = 3


def _softplus(y):
    return jnp.maximum(y, 0.0) + jnp.log(1.0 + jnp.exp(-jnp.abs(y)))


def _sigmoid(y):
    # tanh form: one EUP op, no divide on the VALU.
    return 0.5 * (jnp.tanh(0.5 * y) + 1.0)


# ------------------------------ fused Pallas kernel ---------------------------
def _fused_lstm_kernel(
    pos_ref, molc_ref, atomr_ref, indf_ref, xraw_ref,
    mu_ref, isig_ref,
    h0_w_ref, h0_b_ref, h0_aw_ref, h0_ab_ref,
    h1_w_ref, h1_b_ref, h1_aw_ref, h1_ab_ref,
    w_w_ref, w_b_ref,
    p_w0_ref, p_w1_ref, p_b1_ref,
    out_ref,
):
    f32, bf16 = jnp.float32, jnp.bfloat16
    n = pos_ref.shape[0]

    # ---- pair distances / cutoff / inverse-distance Gaussian sensitivities ----
    pos = pos_ref[...]                              # (n, 3) column layout
    atom_r = atomr_ref[...]                         # (8, n) row layout: [x;y;z;mol;0..]
    post, mol_r = atom_r[0:3, :], atom_r[3:4, :]    # (3, n), (1, n)
    mol_c = molc_ref[...]                           # (n, 1)

    gram = jnp.dot(pos, post, preferred_element_type=f32)             # (n, n)
    sq_i = jnp.sum(pos * pos, axis=1, keepdims=True)                  # (n, 1)
    sq_j = jnp.sum(post * post, axis=0, keepdims=True)                # (1, n)
    d2 = jnp.maximum(sq_i + sq_j - 2.0 * gram, 0.0)

    invd = jax.lax.rsqrt(jnp.maximum(d2, 1e-12))                      # EUP, no divide
    dist = d2 * invd

    # pair mask built in-kernel: same molecule, off-diagonal, within hard cutoff.
    # (blank / padded atoms carry unique negative molecule ids -> never pair.)
    row = jax.lax.broadcasted_iota(jnp.int32, (n, n), 0)
    col = jax.lax.broadcasted_iota(jnp.int32, (n, n), 1)
    pair_ok = jnp.logical_and(mol_c == mol_r, row != col)
    pair_ok = jnp.logical_and(pair_ok, dist < DIST_HARD_MAX)

    # TODO(synk): smoothstep envelope stands in for hippynn's exact cutoff function.
    xcut = jnp.clip(dist * (1.0 / DIST_HARD_MAX), 0.0, 1.0)
    cm = jnp.where(pair_ok, 1.0 - xcut * xcut * (3.0 - 2.0 * xcut), 0.0)

    z = (invd[None, :, :] - mu_ref[...]) * isig_ref[...]              # (S, n, n), f32
    sens = jnp.exp(-0.5 * z * z) * cm[None, :, :]
    sens2d = sens.reshape(N_SENS * n, n).astype(bf16)                 # bf16, resident for all steps

    # ---- interaction = two GEMMs: env assembly (K=n) then flattened-weight GEMM
    #      (K = N_SENS*nf_in + nf_in, self-interaction rows folded into the weights).
    def interact(feat_bf, w_ref, b_ref):
        env_rows = jnp.dot(sens2d, feat_bf, preferred_element_type=f32).astype(bf16)   # (S*n, F)
        env = jnp.concatenate(
            [env_rows[s * n:(s + 1) * n, :] for s in range(N_SENS)] + [feat_bf], axis=1)
        return jnp.dot(env, w_ref[...], preferred_element_type=f32) + b_ref[...]

    def hipnn(feat_bf, w_ref, b_ref, aw_ref, ab_ref):
        # TODO(synk): hippynn wraps these layers in ResNet blocks; plain softplus MLP used here.
        f = _softplus(interact(feat_bf, w_ref, b_ref))
        for l in range(N_ATOM_LAYERS):
            f = _softplus(jnp.dot(f.astype(bf16), aw_ref[l], preferred_element_type=f32)
                          + ab_ref[l])
        return f

    indf = indf_ref[...]
    xraw = xraw_ref[...]

    # ---- hipnn0 on [one-hot || history] -> initial (c, h) ----
    f0 = hipnn(indf.astype(bf16), h0_w_ref, h0_b_ref, h0_aw_ref, h0_ab_ref)   # (n, NF0)
    c_t, h_t = f0[:, : NF0 // 2], f0[:, NF0 // 2:]

    # hoisted rollout invariants
    pad0 = jnp.zeros((n, NF_IN1_PAD - N_TARGET), f32)
    pred_base = jnp.dot(indf, p_w0_ref[...], preferred_element_type=f32) + p_b1_ref[...]
    p_w1 = p_w1_ref[...]                                                       # (1, NF1)

    def onestep(x_enc, h_t, c_t):
        x_in = jnp.concatenate([x_enc, pad0], axis=1).astype(bf16)             # (n, 8)
        x_t = hipnn(x_in, h1_w_ref, h1_b_ref, h1_aw_ref, h1_ab_ref)            # (n, NF1) f32
        gates = interact(jnp.concatenate([x_t, h_t], axis=1).astype(bf16),
                         w_w_ref, w_b_ref)                                     # (n, 4*NF1) [i|f|o|z]
        sg = _sigmoid(gates[:, : 3 * NF1])      # one sigmoid over i, f, o
        gz = jnp.tanh(gates[:, 3 * NF1:])       # one tanh over z
        gi, gf, go = sg[:, :NF1], sg[:, NF1:2 * NF1], sg[:, 2 * NF1:]
        c_new = gf * c_t + gi * gz
        h_new = go * jnp.tanh(c_new)
        return go, h_new, c_new

    def predict(o_t):
        # o_t @ p_w1 as a lane-broadcast multiply + reduce (no N=1 MXU call).
        return pred_base + jnp.sum(o_t * p_w1, axis=1, keepdims=True)

    # ---- few-to-many LSTM rollout, fully in-kernel (short fixed trip count -> unrolled) ----
    o_t = None
    for t in range(N_IN):
        o_t, h_t, c_t = onestep(xraw[:, t:t + 1], h_t, c_t)
    pred = predict(o_t)
    preds = []
    for _ in range(N_OUT):
        o_t, h_t, c_t = onestep(pred, h_t, c_t)
        pred = predict(o_t)
        preds.append(pred)
    out_ref[...] = jnp.concatenate(preds, axis=1)


# --------------------------- parameter initialization -------------------------
def _uniform(key, shape, scale):
    return jax.random.uniform(key, shape, jnp.float32, -scale, scale)


def init_interact(key, nf_in, nf_out, n_sens):
    k1, k2, k3 = jax.random.split(key, 3)
    s_int = (nf_in * n_sens) ** -0.5
    s_self = nf_in ** -0.5
    return dict(
        int_w=_uniform(k1, (n_sens, nf_in, nf_out), s_int),
        self_w=_uniform(k2, (nf_in, nf_out), s_self),
        self_b=_uniform(k3, (nf_out,), s_self),
    )


def init_hipnn(key, nf_in, nf, n_sens, n_atom_layers):
    keys = jax.random.split(key, 1 + 2 * n_atom_layers)
    atom = []
    s = nf ** -0.5
    for i in range(n_atom_layers):
        atom.append((_uniform(keys[1 + 2 * i], (nf, nf), s),
                     _uniform(keys[2 + 2 * i], (nf,), s)))
    return dict(interact=init_interact(keys[0], nf_in, nf, n_sens), atom=atom)


def init_params(key):
    k0, k1, kw, kp0, kp1, kpb = jax.random.split(key, 6)
    mu = jnp.linspace(1.0 / DIST_SOFT_MAX, 1.0 / DIST_SOFT_MIN, N_SENS, dtype=jnp.float32)
    sigma = jnp.full((N_SENS,), (1.0 / DIST_SOFT_MIN - 1.0 / DIST_SOFT_MAX) / N_SENS,
                     dtype=jnp.float32)
    return dict(
        mu=mu, sigma=sigma,
        hipnn0=init_hipnn(k0, NF_IN0, NF0, N_SENS, N_ATOM_LAYERS),
        hipnn1=init_hipnn(k1, NF_IN1, NF1, N_SENS, N_ATOM_LAYERS),
        W=init_interact(kw, 2 * NF1, 4 * NF1, N_SENS),
        # PredictAtom: first Linear has bias=False, second has bias=True
        pred_w0=_uniform(kp0, (NF_IN0, N_TARGET), NF_IN0 ** -0.5),
        pred_w1=_uniform(kp1, (NF1, N_TARGET), NF1 ** -0.5),
        pred_b1=_uniform(kpb, (N_TARGET,), NF1 ** -0.5),
    )


# Column permutation turning the reference's gate-interleaved 4*NF1 interact output
# (tmp.reshape(n, NF1, 4)[..., g]) into contiguous NF1-wide blocks [i | f | o | z]
# so one sigmoid covers the first 3 gate blocks and one tanh covers z.
_GATE_PERM = np.concatenate([np.arange(NF1) * 4 + g for g in (0, 1, 3, 2)])


def _flatten_interact_weights(int_w, self_w, pad_in=None, col_perm=None):
    """(S, F_in, F_out) + (F_in, F_out) -> single bf16 (S*F_in + F_in, F_out) GEMM weight."""
    f32 = jnp.float32
    int_w = jnp.asarray(int_w, f32)
    self_w = jnp.asarray(self_w, f32)
    if col_perm is not None:
        int_w = int_w[:, :, col_perm]
        self_w = self_w[:, col_perm]
    s, f_in, f_out = int_w.shape
    if pad_in is not None and pad_in > f_in:
        int_w = jnp.zeros((s, pad_in, f_out), f32).at[:, :f_in, :].set(int_w)
        self_w = jnp.zeros((pad_in, f_out), f32).at[:f_in, :].set(self_w)
        f_in = pad_in
    w = jnp.concatenate([int_w.reshape(s * f_in, f_out), self_w], axis=0)
    return w.astype(jnp.bfloat16)


def _prepare_kernel_params(params):
    f32, bf16 = jnp.float32, jnp.bfloat16

    def stack_atom(atom):
        aw = jnp.stack([w for w, _ in atom]).astype(bf16)
        ab = jnp.stack([b.reshape(1, -1) for _, b in atom]).astype(f32)
        return aw, ab

    h0, h1, W = params["hipnn0"], params["hipnn1"], params["W"]
    h0_aw, h0_ab = stack_atom(h0["atom"])
    h1_aw, h1_ab = stack_atom(h1["atom"])

    h0_w = _flatten_interact_weights(h0["interact"]["int_w"], h0["interact"]["self_w"])
    # hipnn1 has a single raw input feature; zero-pad its input width (identical math).
    h1_w = _flatten_interact_weights(h1["interact"]["int_w"], h1["interact"]["self_w"],
                                     pad_in=NF_IN1_PAD)
    w_w = _flatten_interact_weights(W["int_w"], W["self_w"], col_perm=_GATE_PERM)
    w_b = W["self_b"][_GATE_PERM].reshape(1, -1).astype(f32)

    return (
        params["mu"].reshape(N_SENS, 1, 1).astype(f32),
        (1.0 / params["sigma"]).reshape(N_SENS, 1, 1).astype(f32),   # 1/sigma pre-folded
        h0_w, h0["interact"]["self_b"].reshape(1, -1).astype(f32), h0_aw, h0_ab,
        h1_w, h1["interact"]["self_b"].reshape(1, -1).astype(f32), h1_aw, h1_ab,
        w_w, w_b,
        params["pred_w0"].astype(f32),
        params["pred_w1"].reshape(1, -1).astype(f32),   # row layout for the VPU reduce
        params["pred_b1"].reshape(1, 1).astype(f32),
    )


# ------------------------------- forward pass ---------------------------------
def _round_up(x, m):
    return ((x + m - 1) // m) * m


def lstm_model_forward(params, species, coordinates, x_h, x_raw, *, mols_per_block=None):
    """Jit-friendly forward. Returns (outputs for all atom slots, nonblank mask)."""
    f32 = jnp.float32
    n_mol, n_atom = species.shape

    if mols_per_block is None:
        # target ~128-atom blocks (good lane fill / MXU contraction depth); clip to batch.
        mols_per_block = max(1, min(n_mol, 128 // max(n_atom, 1)))
    n_blocks = -(-n_mol // mols_per_block)
    n_mol_pad = n_blocks * mols_per_block
    rows_per_block = mols_per_block * n_atom
    blk_atoms = _round_up(rows_per_block, 8)     # sublane-aligned block atom count
    # TODO(synk): for production-sized systems choose mols_per_block so blk_atoms is a
    # multiple of 128 (full lane tiles / full MXU contraction depth).

    def pad_mol(a):
        return jnp.pad(a, [(0, n_mol_pad - n_mol)] + [(0, 0)] * (a.ndim - 1))

    sp = pad_mol(species).reshape(-1)
    nonblank_all = sp != 0
    nb_f = nonblank_all.astype(f32)[:, None]

    # OneHotSpecies([1, 8]) + history; blank rows zeroed (they never feed real atoms).
    encoding = jnp.stack([sp == 1, sp == 8], axis=1).astype(f32)
    ind_f = jnp.concatenate([encoding, pad_mol(x_h).reshape(-1, N_HIST).astype(f32) * nb_f],
                            axis=1)
    x_raw_f = pad_mol(x_raw).reshape(-1, N_IN).astype(f32) * nb_f
    pos = pad_mol(coordinates).reshape(-1, 3).astype(f32) * nb_f

    # Per-atom molecule id; blank atoms get unique negative sentinels so the in-kernel
    # pair mask (same id, off-diagonal, < hard cutoff) can never include them.
    gidx = jnp.arange(n_mol_pad * n_atom, dtype=jnp.int32)
    mol_id = jnp.where(nonblank_all, gidx // n_atom, -(gidx + 1)).astype(f32)[:, None]
    pad_sentinel = -(float(n_mol_pad * n_atom) + 1.0)

    def to_blocks(a, fill=0.0):
        a = a.reshape(n_blocks, rows_per_block, a.shape[-1])
        return jnp.pad(a, ((0, 0), (0, blk_atoms - rows_per_block), (0, 0)),
                       constant_values=fill)

    pos_b = to_blocks(pos)                                   # (n_blocks, B, 3)
    mol_b = to_blocks(mol_id, fill=pad_sentinel)             # (n_blocks, B, 1)
    indf_b = to_blocks(ind_f)                                # (n_blocks, B, NF_IN0)
    xraw_b = to_blocks(x_raw_f)                              # (n_blocks, B, N_IN)

    # row-layout per-block meta: rows [x, y, z, mol_id, 0, 0, 0, 0]
    atom_r = jnp.concatenate(
        [jnp.swapaxes(pos_b, 1, 2), jnp.swapaxes(mol_b, 1, 2),
         jnp.zeros((n_blocks, 4, blk_atoms), f32)], axis=1)  # (n_blocks, 8, B)

    def flat(a):
        return a.reshape(n_blocks * a.shape[1], a.shape[2])

    kparams = _prepare_kernel_params(params)
    args = (flat(pos_b), flat(mol_b), flat(atom_r), flat(indf_b), flat(xraw_b)) + kparams

    def blk(tail):
        return pl.BlockSpec((blk_atoms,) + tuple(tail),
                            lambda i, _t=len(tail): (i,) + (0,) * _t)

    def shared(shape):
        return pl.BlockSpec(shape, lambda i, _n=len(shape): (0,) * _n)

    in_specs = [blk((3,)), blk((1,)),
                pl.BlockSpec((8, blk_atoms), lambda i: (i, 0)),
                blk((NF_IN0,)), blk((N_IN,))] + [shared(a.shape) for a in kparams]

    out_pad = pl.pallas_call(
        _fused_lstm_kernel,
        out_shape=jax.ShapeDtypeStruct((n_blocks * blk_atoms, N_OUT), f32),
        grid=(n_blocks,),
        in_specs=in_specs,
        out_specs=pl.BlockSpec((blk_atoms, N_OUT), lambda i: (i, 0)),
        compiler_params=pltpu.CompilerParams(
            dimension_semantics=("parallel",),            # blocks are independent -> megacore
            vmem_limit_bytes=48 * 1024 * 1024),           # safe on v5e/v6e (128 MiB) & v7x (64 MiB)
    )(*args)

    out = out_pad.reshape(n_blocks, blk_atoms, N_OUT)[:, :rows_per_block, :]
    out = out.reshape(n_mol_pad, n_atom, N_OUT)[:n_mol].reshape(n_mol * n_atom, N_OUT)
    nonblank = nonblank_all.reshape(n_mol_pad, n_atom)[:n_mol]
    return out, nonblank


# ----------------------------------- main -------------------------------------
if __name__ == "__main__":
    key = jax.random.PRNGKey(0)
    kp, kc, kh, kr = jax.random.split(key, 4)
    params = init_params(kp)

    n_mol, n_atom = 2, 4
    species = jnp.array([[1, 8, 1, 1], [8, 1, 1, 0]], dtype=jnp.int32)   # 0 = blank atom
    coordinates = jax.random.uniform(kc, (n_mol, n_atom, 3), jnp.float32, 0.0, 4.0)
    x_h = jax.random.normal(kh, (n_mol, n_atom, N_HIST), dtype=jnp.float32)
    x_raw = jax.random.normal(kr, (n_mol, n_atom, N_IN), dtype=jnp.float32)

    forward = jax.jit(lstm_model_forward, static_argnames=("mols_per_block",))
    # one molecule per block -> grid=(2,), exercising the block tiling / parallel grid
    out_all, nonblank = forward(params, species, coordinates, x_h, x_raw, mols_per_block=1)
    out_all = jax.block_until_ready(out_all)

    mask = np.asarray(nonblank).reshape(-1)
    out_real = np.asarray(out_all)[mask]        # rows for real atoms, matches reference layout
    n_real = int(mask.sum())
    assert out_real.shape == (n_real, N_OUT), out_real.shape
    assert np.all(np.isfinite(out_real))
    print("KERNEL_OK")
</pallas_src>

<mosaic_0001>
module attributes {stable_mosaic.version = 11 : i64} {
  func.func @_fused_lstm_kernel(%arg0: i32, %arg1: memref<8x3xf32, #tpu.memory_space<vmem>>, %arg2: memref<8x1xf32, #tpu.memory_space<vmem>>, %arg3: memref<8x8xf32, #tpu.memory_space<vmem>>, %arg4: memref<8x5xf32, #tpu.memory_space<vmem>>, %arg5: memref<8x2xf32, #tpu.memory_space<vmem>>, %arg6: memref<20x1x1xf32, #tpu.memory_space<vmem>>, %arg7: memref<20x1x1xf32, #tpu.memory_space<vmem>>, %arg8: memref<105x40xbf16, #tpu.memory_space<vmem>>, %arg9: memref<1x40xf32, #tpu.memory_space<vmem>>, %arg10: memref<3x40x40xbf16, #tpu.memory_space<vmem>>, %arg11: memref<3x1x40xf32, #tpu.memory_space<vmem>>, %arg12: memref<168x20xbf16, #tpu.memory_space<vmem>>, %arg13: memref<1x20xf32, #tpu.memory_space<vmem>>, %arg14: memref<3x20x20xbf16, #tpu.memory_space<vmem>>, %arg15: memref<3x1x20xf32, #tpu.memory_space<vmem>>, %arg16: memref<840x80xbf16, #tpu.memory_space<vmem>>, %arg17: memref<1x80xf32, #tpu.memory_space<vmem>>, %arg18: memref<5x1xf32, #tpu.memory_space<vmem>>, %arg19: memref<1x20xf32, #tpu.memory_space<vmem>>, %arg20: memref<1x1xf32, #tpu.memory_space<vmem>>, %arg21: memref<8x3xf32, #tpu.memory_space<vmem>>) attributes {dimension_semantics = [#tpu.dimension_semantics<parallel>], iteration_bounds = array<i64: 2>, scalar_prefetch = 0 : i64, scratch_operands = 0 : i64, tpu.core_type = #tpu.core_type<tc>, window_params = [{transform_indices = @transform_0, window_bounds = array<i64: 8, 3>}, {transform_indices = @transform_1, window_bounds = array<i64: 8, 1>}, {transform_indices = @transform_2, window_bounds = array<i64: 8, 8>}, {transform_indices = @transform_3, window_bounds = array<i64: 8, 5>}, {transform_indices = @transform_4, window_bounds = array<i64: 8, 2>}, {pipeline_mode = #tpu.pipeline_mode<synchronous>, transform_indices = @transform_5, window_bounds = array<i64: 20, 1, 1>}, {pipeline_mode = #tpu.pipeline_mode<synchronous>, transform_indices = @transform_6, window_bounds = array<i64: 20, 1, 1>}, {pipeline_mode = #tpu.pipeline_mode<synchronous>, transform_indices = @transform_7, window_bounds = array<i64: 105, 40>}, {pipeline_mode = #tpu.pipeline_mode<synchronous>, transform_indices = @transform_8, window_bounds = array<i64: 1, 40>}, {pipeline_mode = #tpu.pipeline_mode<synchronous>, transform_indices = @transform_9, window_bounds = array<i64: 3, 40, 40>}, {pipeline_mode = #tpu.pipeline_mode<synchronous>, transform_indices = @transform_10, window_bounds = array<i64: 3, 1, 40>}, {pipeline_mode = #tpu.pipeline_mode<synchronous>, transform_indices = @transform_11, window_bounds = array<i64: 168, 20>}, {pipeline_mode = #tpu.pipeline_mode<synchronous>, transform_indices = @transform_12, window_bounds = array<i64: 1, 20>}, {pipeline_mode = #tpu.pipeline_mode<synchronous>, transform_indices = @transform_13, window_bounds = array<i64: 3, 20, 20>}, {pipeline_mode = #tpu.pipeline_mode<synchronous>, transform_indices = @transform_14, window_bounds = array<i64: 3, 1, 20>}, {pipeline_mode = #tpu.pipeline_mode<synchronous>, transform_indices = @transform_15, window_bounds = array<i64: 840, 80>}, {pipeline_mode = #tpu.pipeline_mode<synchronous>, transform_indices = @transform_16, window_bounds = array<i64: 1, 80>}, {pipeline_mode = #tpu.pipeline_mode<synchronous>, transform_indices = @transform_17, window_bounds = array<i64: 5, 1>}, {pipeline_mode = #tpu.pipeline_mode<synchronous>, transform_indices = @transform_18, window_bounds = array<i64: 1, 20>}, {pipeline_mode = #tpu.pipeline_mode<synchronous>, transform_indices = @transform_19, window_bounds = array<i64: 1, 1>}, {transform_indices = @transform_20, window_bounds = array<i64: 8, 3>}]} {
    %c0 = arith.constant 0 : index
    %c0_0 = arith.constant 0 : index
    %0 = vector.load %arg1[%c0, %c0_0] : memref<8x3xf32, #tpu.memory_space<vmem>>, vector<8x3xf32>
    %c0_1 = arith.constant 0 : index
    %c0_2 = arith.constant 0 : index
    %1 = vector.load %arg3[%c0_1, %c0_2] : memref<8x8xf32, #tpu.memory_space<vmem>>, vector<8x8xf32>
    %2 = vector.extract_strided_slice %1 {offsets = [0, 0], sizes = [3, 8], strides = [1, 1]} : vector<8x8xf32> to vector<3x8xf32>
    %3 = vector.extract_strided_slice %1 {offsets = [3, 0], sizes = [1, 8], strides = [1, 1]} : vector<8x8xf32> to vector<1x8xf32>
    %c0_3 = arith.constant 0 : index
    %c0_4 = arith.constant 0 : index
    %4 = vector.load %arg2[%c0_3, %c0_4] : memref<8x1xf32, #tpu.memory_space<vmem>>, vector<8x1xf32>
    %cst = arith.constant dense<0.000000e+00> : vector<8x8xf32>
    %5 = tpu.matmul %0, %2, %cst {dimension_numbers = #tpu.dot_dimension_numbers<[1], [0], [0], [1], [0, 0, 1, 1], [], []>} : vector<8x3xf32>, vector<3x8xf32>, vector<8x8xf32> -> vector<8x8xf32>
    %6 = arith.mulf %0, %0 : vector<8x3xf32>
    %cst_5 = arith.constant dense<0.000000e+00> : vector<8xf32>
    %7 = vector.multi_reduction <add>, %6, %cst_5 [1] : vector<8x3xf32> to vector<8xf32>
    %8 = vector.shape_cast %7 : vector<8xf32> to vector<8x1xf32>
    %9 = arith.mulf %2, %2 : vector<3x8xf32>
    %cst_6 = arith.constant dense<0.000000e+00> : vector<8xf32>
    %10 = vector.multi_reduction <add>, %9, %cst_6 [0] : vector<3x8xf32> to vector<8xf32>
    %11 = vector.shape_cast %10 : vector<8xf32> to vector<1x8xf32>
    %12 = vector.broadcast %8 : vector<8x1xf32> to vector<8x8xf32>
    %13 = vector.broadcast %11 : vector<1x8xf32> to vector<8x8xf32>
    %14 = arith.addf %12, %13 : vector<8x8xf32>
    %cst_7 = arith.constant 2.000000e+00 : f32
    %15 = vector.broadcast %cst_7 : f32 to vector<8x8xf32>
    %16 = arith.mulf %15, %5 : vector<8x8xf32>
    %17 = arith.subf %14, %16 : vector<8x8xf32>
    %cst_8 = arith.constant 0.000000e+00 : f32
    %18 = vector.broadcast %cst_8 : f32 to vector<8x8xf32>
    %19 = arith.maximumf %17, %18 : vector<8x8xf32>
    %cst_9 = arith.constant 9.99999996E-13 : f32
    %20 = vector.broadcast %cst_9 : f32 to vector<8x8xf32>
    %21 = arith.maximumf %19, %20 : vector<8x8xf32>
    %22 = math.rsqrt %21 : vector<8x8xf32>
    %23 = arith.mulf %19, %22 : vector<8x8xf32>
    %24 = tpu.iota {dimensions = array<i32: 0>} : vector<8x8xi32>
    %25 = tpu.iota {dimensions = array<i32: 1>} : vector<8x8xi32>
    %26 = vector.broadcast %4 : vector<8x1xf32> to vector<8x8xf32>
    %27 = vector.broadcast %3 : vector<1x8xf32> to vector<8x8xf32>
    %28 = arith.cmpf oeq, %26, %27 : vector<8x8xf32>
    %29 = arith.cmpi ne, %24, %25 : vector<8x8xi32>
    %30 = arith.andi %28, %29 : vector<8x8xi1>
    %cst_10 = arith.constant 7.500000e+00 : f32
    %31 = vector.broadcast %cst_10 : f32 to vector<8x8xf32>
    %32 = arith.cmpf olt, %23, %31 : vector<8x8xf32>
    %33 = arith.andi %30, %32 : vector<8x8xi1>
    %cst_11 = arith.constant 0.13333334 : f32
    %34 = vector.broadcast %cst_11 : f32 to vector<8x8xf32>
    %35 = arith.mulf %23, %34 : vector<8x8xf32>
    %cst_12 = arith.constant 0.000000e+00 : f32
    %cst_13 = arith.constant 1.000000e+00 : f32
    %36 = vector.broadcast %cst_12 : f32 to vector<8x8xf32>
    %37 = arith.maximumf %36, %35 : vector<8x8xf32>
    %38 = vector.broadcast %cst_13 : f32 to vector<8x8xf32>
    %39 = arith.minimumf %38, %37 : vector<8x8xf32>
    %40 = arith.mulf %39, %39 : vector<8x8xf32>
    %cst_14 = arith.constant 2.000000e+00 : f32
    %41 = vector.broadcast %cst_14 : f32 to vector<8x8xf32>
    %42 = arith.mulf %41, %39 : vector<8x8xf32>
    %cst_15 = arith.constant 3.000000e+00 : f32
    %43 = vector.broadcast %cst_15 : f32 to vector<8x8xf32>
    %44 = arith.subf %43, %42 : vector<8x8xf32>
    %45 = arith.mulf %40, %44 : vector<8x8xf32>
    %cst_16 = arith.constant 1.000000e+00 : f32
    %46 = vector.broadcast %cst_16 : f32 to vector<8x8xf32>
    %47 = arith.subf %46, %45 : vector<8x8xf32>
    %cst_17 = arith.constant 0.000000e+00 : f32
    %48 = vector.broadcast %cst_17 : f32 to vector<8x8xf32>
    %49 = arith.select %33, %47, %48 : vector<8x8xi1>, vector<8x8xf32>
    %50 = vector.shape_cast %22 : vector<8x8xf32> to vector<1x8x8xf32>
    %c0_18 = arith.constant 0 : index
    %c0_19 = arith.constant 0 : index
    %c0_20 = arith.constant 0 : index
    %51 = vector.load %arg6[%c0_18, %c0_19, %c0_20] : memref<20x1x1xf32, #tpu.memory_space<vmem>>, vector<20x1x1xf32>
    %52 = vector.broadcast %50 : vector<1x8x8xf32> to vector<20x8x8xf32>
    %53 = vector.broadcast %51 : vector<20x1x1xf32> to vector<20x8x8xf32>
    %54 = arith.subf %52, %53 : vector<20x8x8xf32>
    %c0_21 = arith.constant 0 : index
    %c0_22 = arith.constant 0 : index
    %c0_23 = arith.constant 0 : index
    %55 = vector.load %arg7[%c0_21, %c0_22, %c0_23] : memref<20x1x1xf32, #tpu.memory_space<vmem>>, vector<20x1x1xf32>
    %56 = vector.broadcast %55 : vector<20x1x1xf32> to vector<20x8x8xf32>
    %57 = arith.mulf %54, %56 : vector<20x8x8xf32>
    %cst_24 = arith.constant -5.000000e-01 : f32
    %58 = vector.broadcast %cst_24 : f32 to vector<20x8x8xf32>
    %59 = arith.mulf %58, %57 : vector<20x8x8xf32>
    %60 = arith.mulf %59, %57 : vector<20x8x8xf32>
    %61 = math.exp %60 : vector<20x8x8xf32>
    %62 = vector.shape_cast %49 : vector<8x8xf32> to vector<1x8x8xf32>
    %63 = vector.broadcast %62 : vector<1x8x8xf32> to vector<20x8x8xf32>
    %64 = arith.mulf %61, %63 : vector<20x8x8xf32>
    %65 = vector.shape_cast %64 : vector<20x8x8xf32> to vector<160x8xf32>
    %66 = arith.truncf %65 : vector<160x8xf32> to vector<160x8xbf16>
    %c0_25 = arith.constant 0 : index
    %c0_26 = arith.constant 0 : index
    %67 = vector.load %arg4[%c0_25, %c0_26] : memref<8x5xf32, #tpu.memory_space<vmem>>, vector<8x5xf32>
    %c0_27 = arith.constant 0 : index
    %c0_28 = arith.constant 0 : index
    %68 = vector.load %arg5[%c0_27, %c0_28] : memref<8x2xf32, #tpu.memory_space<vmem>>, vector<8x2xf32>
    %69 = arith.truncf %67 : vector<8x5xf32> to vector<8x5xbf16>
    %cst_29 = arith.constant dense<0.000000e+00> : vector<160x5xf32>
    %70 = tpu.matmul %66, %69, %cst_29 {dimension_numbers = #tpu.dot_dimension_numbers<[1], [0], [0], [1], [0, 0, 1, 1], [], []>} : vector<160x8xbf16>, vector<8x5xbf16>, vector<160x5xf32> -> vector<160x5xf32>
    %71 = arith.truncf %70 : vector<160x5xf32> to vector<160x5xbf16>
    %72 = vector.extract_strided_slice %71 {offsets = [0, 0], sizes = [8, 5], strides = [1, 1]} : vector<160x5xbf16> to vector<8x5xbf16>
    %73 = vector.extract_strided_slice %71 {offsets = [8, 0], sizes = [8, 5], strides = [1, 1]} : vector<160x5xbf16> to vector<8x5xbf16>
    %74 = vector.extract_strided_slice %71 {offsets = [16, 0], sizes = [8, 5], strides = [1, 1]} : vector<160x5xbf16> to vector<8x5xbf16>
    %75 = vector.extract_strided_slice %71 {offsets = [24, 0], sizes = [8, 5], strides = [1, 1]} : vector<160x5xbf16> to vector<8x5xbf16>
    %76 = vector.extract_strided_slice %71 {offsets = [32, 0], sizes = [8, 5], strides = [1, 1]} : vector<160x5xbf16> to vector<8x5xbf16>
    %77 = vector.extract_strided_slice %71 {offsets = [40, 0], sizes = [8, 5], strides = [1, 1]} : vector<160x5xbf16> to vector<8x5xbf16>
    %78 = vector.extract_strided_slice %71 {offsets = [48, 0], sizes = [8, 5], strides = [1, 1]} : vector<160x5xbf16> to vector<8x5xbf16>
    %79 = vector.extract_strided_slice %71 {offsets = [56, 0], sizes = [8, 5], strides = [1, 1]} : vector<160x5xbf16> to vector<8x5xbf16>
    %80 = vector.extract_strided_slice %71 {offsets = [64, 0], sizes = [8, 5], strides = [1, 1]} : vector<160x5xbf16> to vector<8x5xbf16>
    %81 = vector.extract_strided_slice %71 {offsets = [72, 0], sizes = [8, 5], strides = [1, 1]} : vector<160x5xbf16> to vector<8x5xbf16>
    %82 = vector.extract_strided_slice %71 {offsets = [80, 0], sizes = [8, 5], strides = [1, 1]} : vector<160x5xbf16> to vector<8x5xbf16>
    %83 = vector.extract_strided_slice %71 {offsets = [88, 0], sizes = [8, 5], strides = [1, 1]} : vector<160x5xbf16> to vector<8x5xbf16>
    %84 = vector.extract_strided_slice %71 {offsets = [96, 0], sizes = [8, 5], strides = [1, 1]} : vector<160x5xbf16> to vector<8x5xbf16>
    %85 = vector.extract_strided_slice %71 {offsets = [104, 0], sizes = [8, 5], strides = [1, 1]} : vector<160x5xbf16> to vector<8x5xbf16>
    %86 = vector.extract_strided_slice %71 {offsets = [112, 0], sizes = [8, 5], strides = [1, 1]} : vector<160x5xbf16> to vector<8x5xbf16>
    %87 = vector.extract_strided_slice %71 {offsets = [120, 0], sizes = [8, 5], strides = [1, 1]} : vector<160x5xbf16> to vector<8x5xbf16>
    %88 = vector.extract_strided_slice %71 {offsets = [128, 0], sizes = [8, 5], strides = [1, 1]} : vector<160x5xbf16> to vector<8x5xbf16>
    %89 = vector.extract_strided_slice %71 {offsets = [136, 0], sizes = [8, 5], strides = [1, 1]} : vector<160x5xbf16> to vector<8x5xbf16>
    %90 = vector.extract_strided_slice %71 {offsets = [144, 0], sizes = [8, 5], strides = [1, 1]} : vector<160x5xbf16> to vector<8x5xbf16>
    %91 = vector.extract_strided_slice %71 {offsets = [152, 0], sizes = [8, 5], strides = [1, 1]} : vector<160x5xbf16> to vector<8x5xbf16>
    %92 = tpu.concatenate %72, %73, %74, %75, %76, %77, %78, %79, %80, %81, %82, %83, %84, %85, %86, %87 in 1 : vector<8x5xbf16>, vector<8x5xbf16>, vector<8x5xbf16>, vector<8x5xbf16>, vector<8x5xbf16>, vector<8x5xbf16>, vector<8x5xbf16>, vector<8x5xbf16>, vector<8x5xbf16>, vector<8x5xbf16>, vector<8x5xbf16>, vector<8x5xbf16>, vector<8x5xbf16>, vector<8x5xbf16>, vector<8x5xbf16>, vector<8x5xbf16> -> vector<8x80xbf16>
    %93 = tpu.concatenate %88, %89, %90, %91, %69 in 1 : vector<8x5xbf16>, vector<8x5xbf16>, vector<8x5xbf16>, vector<8x5xbf16>, vector<8x5xbf16> -> vector<8x25xbf16>
    %94 = tpu.concatenate %92, %93 in 1 : vector<8x80xbf16>, vector<8x25xbf16> -> vector<8x105xbf16>
    %c0_30 = arith.constant 0 : index
    %c0_31 = arith.constant 0 : index
    %95 = vector.load %arg8[%c0_30, %c0_31] : memref<105x40xbf16, #tpu.memory_space<vmem>>, vector<105x40xbf16>
    %cst_32 = arith.constant dense<0.000000e+00> : vector<8x40xf32>
    %96 = tpu.matmul %94, %95, %cst_32 {dimension_numbers = #tpu.dot_dimension_numbers<[1], [0], [0], [1], [0, 0, 1, 1], [], []>} : vector<8x105xbf16>, vector<105x40xbf16>, vector<8x40xf32> -> vector<8x40xf32>
    %c0_33 = arith.constant 0 : index
    %c0_34 = arith.constant 0 : index
    %97 = vector.load %arg9[%c0_33, %c0_34] : memref<1x40xf32, #tpu.memory_space<vmem>>, vector<1x40xf32>
    %98 = vector.broadcast %97 : vector<1x40xf32> to vector<8x40xf32>
    %99 = arith.addf %96, %98 : vector<8x40xf32>
    %cst_35 = arith.constant 0.000000e+00 : f32
    %100 = vector.broadcast %cst_35 : f32 to vector<8x40xf32>
    %101 = arith.maximumf %99, %100 : vector<8x40xf32>
    %102 = math.absf %99 : vector<8x40xf32>
    %cst_36 = arith.constant 0.000000e+00 : f32
    %103 = vector.broadcast %cst_36 : f32 to vector<8x40xf32>
    %104 = arith.subf %103, %102 : vector<8x40xf32>
    %105 = math.exp %104 : vector<8x40xf32>
    %cst_37 = arith.constant 1.000000e+00 : f32
    %106 = vector.broadcast %cst_37 : f32 to vector<8x40xf32>
    %107 = arith.addf %106, %105 : vector<8x40xf32>
    %108 = math.log %107 : vector<8x40xf32>
    %109 = arith.addf %101, %108 : vector<8x40xf32>
    %110 = arith.truncf %109 : vector<8x40xf32> to vector<8x40xbf16>
    %c0_38 = arith.constant 0 : index
    %c0_39 = arith.constant 0 : index
    %c0_40 = arith.constant 0 : index
    %111 = vector.load %arg10[%c0_38, %c0_39, %c0_40] : memref<3x40x40xbf16, #tpu.memory_space<vmem>>, vector<1x40x40xbf16>
    %112 = vector.shape_cast %111 : vector<1x40x40xbf16> to vector<40x40xbf16>
    %cst_41 = arith.constant dense<0.000000e+00> : vector<8x40xf32>
    %113 = tpu.matmul %110, %112, %cst_41 {dimension_numbers = #tpu.dot_dimension_numbers<[1], [0], [0], [1], [0, 0, 1, 1], [], []>} : vector<8x40xbf16>, vector<40x40xbf16>, vector<8x40xf32> -> vector<8x40xf32>
    %c0_42 = arith.constant 0 : index
    %c0_43 = arith.constant 0 : index
    %c0_44 = arith.constant 0 : index
    %114 = vector.load %arg11[%c0_42, %c0_43, %c0_44] : memref<3x1x40xf32, #tpu.memory_space<vmem>>, vector<1x1x40xf32>
    %115 = vector.shape_cast %114 : vector<1x1x40xf32> to vector<1x40xf32>
    %116 = vector.broadcast %115 : vector<1x40xf32> to vector<8x40xf32>
    %117 = arith.addf %113, %116 : vector<8x40xf32>
    %cst_45 = arith.constant 0.000000e+00 : f32
    %118 = vector.broadcast %cst_45 : f32 to vector<8x40xf32>
    %119 = arith.maximumf %117, %118 : vector<8x40xf32>
    %120 = math.absf %117 : vector<8x40xf32>
    %cst_46 = arith.constant 0.000000e+00 : f32
    %121 = vector.broadcast %cst_46 : f32 to vector<8x40xf32>
    %122 = arith.subf %121, %120 : vector<8x40xf32>
    %123 = math.exp %122 : vector<8x40xf32>
    %cst_47 = arith.constant 1.000000e+00 : f32
    %124 = vector.broadcast %cst_47 : f32 to vector<8x40xf32>
    %125 = arith.addf %124, %123 : vector<8x40xf32>
    %126 = math.log %125 : vector<8x40xf32>
    %127 = arith.addf %119, %126 : vector<8x40xf32>
    %128 = arith.truncf %127 : vector<8x40xf32> to vector<8x40xbf16>
    %c1 = arith.constant 1 : index
    %c0_48 = arith.constant 0 : index
    %c0_49 = arith.constant 0 : index
    %129 = vector.load %arg10[%c1, %c0_48, %c0_49] : memref<3x40x40xbf16, #tpu.memory_space<vmem>>, vector<1x40x40xbf16>
    %130 = vector.shape_cast %129 : vector<1x40x40xbf16> to vector<40x40xbf16>
    %cst_50 = arith.constant dense<0.000000e+00> : vector<8x40xf32>
    %131 = tpu.matmul %128, %130, %cst_50 {dimension_numbers = #tpu.dot_dimension_numbers<[1], [0], [0], [1], [0, 0, 1, 1], [], []>} : vector<8x40xbf16>, vector<40x40xbf16>, vector<8x40xf32> -> vector<8x40xf32>
    %c1_51 = arith.constant 1 : index
    %c0_52 = arith.constant 0 : index
    %c0_53 = arith.constant 0 : index
    %132 = vector.load %arg11[%c1_51, %c0_52, %c0_53] : memref<3x1x40xf32, #tpu.memory_space<vmem>>, vector<1x1x40xf32>
    %133 = vector.shape_cast %132 : vector<1x1x40xf32> to vector<1x40xf32>
    %134 = vector.broadcast %133 : vector<1x40xf32> to vector<8x40xf32>
    %135 = arith.addf %131, %134 : vector<8x40xf32>
    %cst_54 = arith.constant 0.000000e+00 : f32
    %136 = vector.broadcast %cst_54 : f32 to vector<8x40xf32>
    %137 = arith.maximumf %135, %136 : vector<8x40xf32>
    %138 = math.absf %135 : vector<8x40xf32>
    %cst_55 = arith.constant 0.000000e+00 : f32
    %139 = vector.broadcast %cst_55 : f32 to vector<8x40xf32>
    %140 = arith.subf %139, %138 : vector<8x40xf32>
    %141 = math.exp %140 : vector<8x40xf32>
    %cst_56 = arith.constant 1.000000e+00 : f32
    %142 = vector.broadcast %cst_56 : f32 to vector<8x40xf32>
    %143 = arith.addf %142, %141 : vector<8x40xf32>
    %144 = math.log %143 : vector<8x40xf32>
    %145 = arith.addf %137, %144 : vector<8x40xf32>
    %146 = arith.truncf %145 : vector<8x40xf32> to vector<8x40xbf16>
    %c2 = arith.constant 2 : index
    %c0_57 = arith.constant 0 : index
    %c0_58 = arith.constant 0 : index
    %147 = vector.load %arg10[%c2, %c0_57, %c0_58] : memref<3x40x40xbf16, #tpu.memory_space<vmem>>, vector<1x40x40xbf16>
    %148 = vector.shape_cast %147 : vector<1x40x40xbf16> to vector<40x40xbf16>
    %cst_59 = arith.constant dense<0.000000e+00> : vector<8x40xf32>
    %149 = tpu.matmul %146, %148, %cst_59 {dimension_numbers = #tpu.dot_dimension_numbers<[1], [0], [0], [1], [0, 0, 1, 1], [], []>} : vector<8x40xbf16>, vector<40x40xbf16>, vector<8x40xf32> -> vector<8x40xf32>
    %c2_60 = arith.constant 2 : index
    %c0_61 = arith.constant 0 : index
    %c0_62 = arith.constant 0 : index
    %150 = vector.load %arg11[%c2_60, %c0_61, %c0_62] : memref<3x1x40xf32, #tpu.memory_space<vmem>>, vector<1x1x40xf32>
    %151 = vector.shape_cast %150 : vector<1x1x40xf32> to vector<1x40xf32>
    %152 = vector.broadcast %151 : vector<1x40xf32> to vector<8x40xf32>
    %153 = arith.addf %149, %152 : vector<8x40xf32>
    %cst_63 = arith.constant 0.000000e+00 : f32
    %154 = vector.broadcast %cst_63 : f32 to vector<8x40xf32>
    %155 = arith.maximumf %153, %154 : vector<8x40xf32>
    %156 = math.absf %153 : vector<8x40xf32>
    %cst_64 = arith.constant 0.000000e+00 : f32
    %157 = vector.broadcast %cst_64 : f32 to vector<8x40xf32>
    %158 = arith.subf %157, %156 : vector<8x40xf32>
    %159 = math.exp %158 : vector<8x40xf32>
    %cst_65 = arith.constant 1.000000e+00 : f32
    %160 = vector.broadcast %cst_65 : f32 to vector<8x40xf32>
    %161 = arith.addf %160, %159 : vector<8x40xf32>
    %162 = math.log %161 : vector<8x40xf32>
    %163 = arith.addf %155, %162 : vector<8x40xf32>
    %164 = vector.extract_strided_slice %163 {offsets = [0, 0], sizes = [8, 20], strides = [1, 1]} : vector<8x40xf32> to vector<8x20xf32>
    %165 = vector.extract_strided_slice %163 {offsets = [0, 20], sizes = [8, 20], strides = [1, 1]} : vector<8x40xf32> to vector<8x20xf32>
    %cst_66 = arith.constant 0.000000e+00 : f32
    %166 = vector.broadcast %cst_66 : f32 to vector<8x7xf32>
    %c0_67 = arith.constant 0 : index
    %c0_68 = arith.constant 0 : index
    %167 = vector.load %arg18[%c0_67, %c0_68] : memref<5x1xf32, #tpu.memory_space<vmem>>, vector<5x1xf32>
    %cst_69 = arith.constant dense<0.000000e+00> : vector<8x1xf32>
    %168 = tpu.matmul %67, %167, %cst_69 {dimension_numbers = #tpu.dot_dimension_numbers<[1], [0], [0], [1], [0, 0, 1, 1], [], []>} : vector<8x5xf32>, vector<5x1xf32>, vector<8x1xf32> -> vector<8x1xf32>
    %c0_70 = arith.constant 0 : index
    %c0_71 = arith.constant 0 : index
    %169 = vector.load %arg20[%c0_70, %c0_71] : memref<1x1xf32, #tpu.memory_space<vmem>>, vector<1x1xf32>
    %170 = vector.broadcast %169 : vector<1x1xf32> to vector<8x1xf32>
    %171 = arith.addf %168, %170 : vector<8x1xf32>
    %c0_72 = arith.constant 0 : index
    %c0_73 = arith.constant 0 : index
    %172 = vector.load %arg19[%c0_72, %c0_73] : memref<1x20xf32, #tpu.memory_space<vmem>>, vector<1x20xf32>
    %173 = vector.extract_strided_slice %68 {offsets = [0, 0], sizes = [8, 1], strides = [1, 1]} : vector<8x2xf32> to vector<8x1xf32>
    %174 = tpu.concatenate %173, %166 in 1 : vector<8x1xf32>, vector<8x7xf32> -> vector<8x8xf32>
    %175 = arith.truncf %174 : vector<8x8xf32> to vector<8x8xbf16>
    %cst_74 = arith.constant dense<0.000000e+00> : vector<160x8xf32>
    %176 = tpu.matmul %66, %175, %cst_74 {dimension_numbers = #tpu.dot_dimension_numbers<[1], [0], [0], [1], [0, 0, 1, 1], [], []>} : vector<160x8xbf16>, vector<8x8xbf16>, vector<160x8xf32> -> vector<160x8xf32>
    %177 = arith.truncf %176 : vector<160x8xf32> to vector<160x8xbf16>
    %178 = vector.extract_strided_slice %177 {offsets = [0, 0], sizes = [8, 8], strides = [1, 1]} : vector<160x8xbf16> to vector<8x8xbf16>
    %179 = vector.extract_strided_slice %177 {offsets = [8, 0], sizes = [8, 8], strides = [1, 1]} : vector<160x8xbf16> to vector<8x8xbf16>
    %180 = vector.extract_strided_slice %177 {offsets = [16, 0], sizes = [8, 8], strides = [1, 1]} : vector<160x8xbf16> to vector<8x8xbf16>
    %181 = vector.extract_strided_slice %177 {offsets = [24, 0], sizes = [8, 8], strides = [1, 1]} : vector<160x8xbf16> to vector<8x8xbf16>
    %182 = vector.extract_strided_slice %177 {offsets = [32, 0], sizes = [8, 8], strides = [1, 1]} : vector<160x8xbf16> to vector<8x8xbf16>
    %183 = vector.extract_strided_slice %177 {offsets = [40, 0], sizes = [8, 8], strides = [1, 1]} : vector<160x8xbf16> to vector<8x8xbf16>
    %184 = vector.extract_strided_slice %177 {offsets = [48, 0], sizes = [8, 8], strides = [1, 1]} : vector<160x8xbf16> to vector<8x8xbf16>
    %185 = vector.extract_strided_slice %177 {offsets = [56, 0], sizes = [8, 8], strides = [1, 1]} : vector<160x8xbf16> to vector<8x8xbf16>
    %186 = vector.extract_strided_slice %177 {offsets = [64, 0], sizes = [8, 8], strides = [1, 1]} : vector<160x8xbf16> to vector<8x8xbf16>
    %187 = vector.extract_strided_slice %177 {offsets = [72, 0], sizes = [8, 8], strides = [1, 1]} : vector<160x8xbf16> to vector<8x8xbf16>
    %188 = vector.extract_strided_slice %177 {offsets = [80, 0], sizes = [8, 8], strides = [1, 1]} : vector<160x8xbf16> to vector<8x8xbf16>
    %189 = vector.extract_strided_slice %177 {offsets = [88, 0], sizes = [8, 8], strides = [1, 1]} : vector<160x8xbf16> to vector<8x8xbf16>
    %190 = vector.extract_strided_slice %177 {offsets = [96, 0], sizes = [8, 8], strides = [1, 1]} : vector<160x8xbf16> to vector<8x8xbf16>
    %191 = vector.extract_strided_slice %177 {offsets = [104, 0], sizes = [8, 8], strides = [1, 1]} : vector<160x8xbf16> to vector<8x8xbf16>
    %192 = vector.extract_strided_slice %177 {offsets = [112, 0], sizes = [8, 8], strides = [1, 1]} : vector<160x8xbf16> to vector<8x8xbf16>
    %193 = vector.extract_strided_slice %177 {offsets = [120, 0], sizes = [8, 8], strides = [1, 1]} : vector<160x8xbf16> to vector<8x8xbf16>
    %194 = vector.extract_strided_slice %177 {offsets = [128, 0], sizes = [8, 8], strides = [1, 1]} : vector<160x8xbf16> to vector<8x8xbf16>
    %195 = vector.extract_strided_slice %177 {offsets = [136, 0], sizes = [8, 8], strides = [1, 1]} : vector<160x8xbf16> to vector<8x8xbf16>
    %196 = vector.extract_strided_slice %177 {offsets = [144, 0], sizes = [8, 8], strides = [1, 1]} : vector<160x8xbf16> to vector<8x8xbf16>
    %197 = vector.extract_strided_slice %177 {offsets = [152, 0], sizes = [8, 8], strides = [1, 1]} : vector<160x8xbf16> to vector<8x8xbf16>
    %198 = tpu.concatenate %178, %179, %180, %181, %182, %183, %184, %185, %186, %187, %188, %189, %190, %191, %192, %193 in 1 : vector<8x8xbf16>, vector<8x8xbf16>, vector<8x8xbf16>, vector<8x8xbf16>, vector<8x8xbf16>, vector<8x8xbf16>, vector<8x8xbf16>, vector<8x8xbf16>, vector<8x8xbf16>, vector<8x8xbf16>, vector<8x8xbf16>, vector<8x8xbf16>, vector<8x8xbf16>, vector<8x8xbf16>, vector<8x8xbf16>, vector<8x8xbf16> -> vector<8x128xbf16>
    %199 = tpu.concatenate %194, %195, %196, %197, %175 in 1 : vector<8x8xbf16>, vector<8x8xbf16>, vector<8x8xbf16>, vector<8x8xbf16>, vector<8x8xbf16> -> vector<8x40xbf16>
    %200 = tpu.concatenate %198, %199 in 1 : vector<8x128xbf16>, vector<8x40xbf16> -> vector<8x168xbf16>
    %c0_75 = arith.constant 0 : index
    %c0_76 = arith.constant 0 : index
    %201 = vector.load %arg12[%c0_75, %c0_76] : memref<168x20xbf16, #tpu.memory_space<vmem>>, vector<168x20xbf16>
    %cst_77 = arith.constant dense<0.000000e+00> : vector<8x20xf32>
    %202 = tpu.matmul %200, %201, %cst_77 {dimension_numbers = #tpu.dot_dimension_numbers<[1], [0], [0], [1], [0, 0, 1, 1], [], []>} : vector<8x168xbf16>, vector<168x20xbf16>, vector<8x20xf32> -> vector<8x20xf32>
    %c0_78 = arith.constant 0 : index
    %c0_79 = arith.constant 0 : index
    %203 = vector.load %arg13[%c0_78, %c0_79] : memref<1x20xf32, #tpu.memory_space<vmem>>, vector<1x20xf32>
    %204 = vector.broadcast %203 : vector<1x20xf32> to vector<8x20xf32>
    %205 = arith.addf %202, %204 : vector<8x20xf32>
    %cst_80 = arith.constant 0.000000e+00 : f32
    %206 = vector.broadcast %cst_80 : f32 to vector<8x20xf32>
    %207 = arith.maximumf %205, %206 : vector<8x20xf32>
    %208 = math.absf %205 : vector<8x20xf32>
    %cst_81 = arith.constant 0.000000e+00 : f32
    %209 = vector.broadcast %cst_81 : f32 to vector<8x20xf32>
    %210 = arith.subf %209, %208 : vector<8x20xf32>
    %211 = math.exp %210 : vector<8x20xf32>
    %cst_82 = arith.constant 1.000000e+00 : f32
    %212 = vector.broadcast %cst_82 : f32 to vector<8x20xf32>
    %213 = arith.addf %212, %211 : vector<8x20xf32>
    %214 = math.log %213 : vector<8x20xf32>
    %215 = arith.addf %207, %214 : vector<8x20xf32>
    %216 = arith.truncf %215 : vector<8x20xf32> to vector<8x20xbf16>
    %c0_83 = arith.constant 0 : index
    %c0_84 = arith.constant 0 : index
    %c0_85 = arith.constant 0 : index
    %217 = vector.load %arg14[%c0_83, %c0_84, %c0_85] : memref<3x20x20xbf16, #tpu.memory_space<vmem>>, vector<1x20x20xbf16>
    %218 = vector.shape_cast %217 : vector<1x20x20xbf16> to vector<20x20xbf16>
    %cst_86 = arith.constant dense<0.000000e+00> : vector<8x20xf32>
    %219 = tpu.matmul %216, %218, %cst_86 {dimension_numbers = #tpu.dot_dimension_numbers<[1], [0], [0], [1], [0, 0, 1, 1], [], []>} : vector<8x20xbf16>, vector<20x20xbf16>, vector<8x20xf32> -> vector<8x20xf32>
    %c0_87 = arith.constant 0 : index
    %c0_88 = arith.constant 0 : index
    %c0_89 = arith.constant 0 : index
    %220 = vector.load %arg15[%c0_87, %c0_88, %c0_89] : memref<3x1x20xf32, #tpu.memory_space<vmem>>, vector<1x1x20xf32>
    %221 = vector.shape_cast %220 : vector<1x1x20xf32> to vector<1x20xf32>
    %222 = vector.broadcast %221 : vector<1x20xf32> to vector<8x20xf32>
    %223 = arith.addf %219, %222 : vector<8x20xf32>
    %cst_90 = arith.constant 0.000000e+00 : f32
    %224 = vector.broadcast %cst_90 : f32 to vector<8x20xf32>
    %225 = arith.maximumf %223, %224 : vector<8x20xf32>
    %226 = math.absf %223 : vector<8x20xf32>
    %cst_91 = arith.constant 0.000000e+00 : f32
    %227 = vector.broadcast %cst_91 : f32 to vector<8x20xf32>
    %228 = arith.subf %227, %226 : vector<8x20xf32>
    %229 = math.exp %228 : vector<8x20xf32>
    %cst_92 = arith.constant 1.000000e+00 : f32
    %230 = vector.broadcast %cst_92 : f32 to vector<8x20xf32>
    %231 = arith.addf %230, %229 : vector<8x20xf32>
    %232 = math.log %231 : vector<8x20xf32>
    %233 = arith.addf %225, %232 : vector<8x20xf32>
    %234 = arith.truncf %233 : vector<8x20xf32> to vector<8x20xbf16>
    %c1_93 = arith.constant 1 : index
    %c0_94 = arith.constant 0 : index
    %c0_95 = arith.constant 0 : index
    %235 = vector.load %arg14[%c1_93, %c0_94, %c0_95] : memref<3x20x20xbf16, #tpu.memory_space<vmem>>, vector<1x20x20xbf16>
    %236 = vector.shape_cast %235 : vector<1x20x20xbf16> to vector<20x20xbf16>
    %cst_96 = arith.constant dense<0.000000e+00> : vector<8x20xf32>
    %237 = tpu.matmul %234, %236, %cst_96 {dimension_numbers = #tpu.dot_dimension_numbers<[1], [0], [0], [1], [0, 0, 1, 1], [], []>} : vector<8x20xbf16>, vector<20x20xbf16>, vector<8x20xf32> -> vector<8x20xf32>
    %c1_97 = arith.constant 1 : index
    %c0_98 = arith.constant 0 : index
    %c0_99 = arith.constant 0 : index
    %238 = vector.load %arg15[%c1_97, %c0_98, %c0_99] : memref<3x1x20xf32, #tpu.memory_space<vmem>>, vector<1x1x20xf32>
    %239 = vector.shape_cast %238 : vector<1x1x20xf32> to vector<1x20xf32>
    %240 = vector.broadcast %239 : vector<1x20xf32> to vector<8x20xf32>
    %241 = arith.addf %237, %240 : vector<8x20xf32>
    %cst_100 = arith.constant 0.000000e+00 : f32
    %242 = vector.broadcast %cst_100 : f32 to vector<8x20xf32>
    %243 = arith.maximumf %241, %242 : vector<8x20xf32>
    %244 = math.absf %241 : vector<8x20xf32>
    %cst_101 = arith.constant 0.000000e+00 : f32
    %245 = vector.broadcast %cst_101 : f32 to vector<8x20xf32>
    %246 = arith.subf %245, %244 : vector<8x20xf32>
    %247 = math.exp %246 : vector<8x20xf32>
    %cst_102 = arith.constant 1.000000e+00 : f32
    %248 = vector.broadcast %cst_102 : f32 to vector<8x20xf32>
    %249 = arith.addf %248, %247 : vector<8x20xf32>
    %250 = math.log %249 : vector<8x20xf32>
    %251 = arith.addf %243, %250 : vector<8x20xf32>
    %252 = arith.truncf %251 : vector<8x20xf32> to vector<8x20xbf16>
    %c2_103 = arith.constant 2 : index
    %c0_104 = arith.constant 0 : index
    %c0_105 = arith.constant 0 : index
    %253 = vector.load %arg14[%c2_103, %c0_104, %c0_105] : memref<3x20x20xbf16, #tpu.memory_space<vmem>>, vector<1x20x20xbf16>
    %254 = vector.shape_cast %253 : vector<1x20x20xbf16> to vector<20x20xbf16>
    %cst_106 = arith.constant dense<0.000000e+00> : vector<8x20xf32>
    %255 = tpu.matmul %252, %254, %cst_106 {dimension_numbers = #tpu.dot_dimension_numbers<[1], [0], [0], [1], [0, 0, 1, 1], [], []>} : vector<8x20xbf16>, vector<20x20xbf16>, vector<8x20xf32> -> vector<8x20xf32>
    %c2_107 = arith.constant 2 : index
    %c0_108 = arith.constant 0 : index
    %c0_109 = arith.constant 0 : index
    %256 = vector.load %arg15[%c2_107, %c0_108, %c0_109] : memref<3x1x20xf32, #tpu.memory_space<vmem>>, vector<1x1x20xf32>
    %257 = vector.shape_cast %256 : vector<1x1x20xf32> to vector<1x20xf32>
    %258 = vector.broadcast %257 : vector<1x20xf32> to vector<8x20xf32>
    %259 = arith.addf %255, %258 : vector<8x20xf32>
    %cst_110 = arith.constant 0.000000e+00 : f32
    %260 = vector.broadcast %cst_110 : f32 to vector<8x20xf32>
    %261 = arith.maximumf %259, %260 : vector<8x20xf32>
    %262 = math.absf %259 : vector<8x20xf32>
    %cst_111 = arith.constant 0.000000e+00 : f32
    %263 = vector.broadcast %cst_111 : f32 to vector<8x20xf32>
    %264 = arith.subf %263, %262 : vector<8x20xf32>
    %265 = math.exp %264 : vector<8x20xf32>
    %cst_112 = arith.constant 1.000000e+00 : f32
    %266 = vector.broadcast %cst_112 : f32 to vector<8x20xf32>
    %267 = arith.addf %266, %265 : vector<8x20xf32>
    %268 = math.log %267 : vector<8x20xf32>
    %269 = arith.addf %261, %268 : vector<8x20xf32>
    %270 = tpu.concatenate %269, %165 in 1 : vector<8x20xf32>, vector<8x20xf32> -> vector<8x40xf32>
    %271 = arith.truncf %270 : vector<8x40xf32> to vector<8x40xbf16>
    %cst_113 = arith.constant dense<0.000000e+00> : vector<160x40xf32>
    %272 = tpu.matmul %66, %271, %cst_113 {dimension_numbers = #tpu.dot_dimension_numbers<[1], [0], [0], [1], [0, 0, 1, 1], [], []>} : vector<160x8xbf16>, vector<8x40xbf16>, vector<160x40xf32> -> vector<160x40xf32>
    %273 = arith.truncf %272 : vector<160x40xf32> to vector<160x40xbf16>
    %274 = vector.extract_strided_slice %273 {offsets = [0, 0], sizes = [8, 40], strides = [1, 1]} : vector<160x40xbf16> to vector<8x40xbf16>
    %275 = vector.extract_strided_slice %273 {offsets = [8, 0], sizes = [8, 40], strides = [1, 1]} : vector<160x40xbf16> to vector<8x40xbf16>
    %276 = vector.extract_strided_slice %273 {offsets = [16, 0], sizes = [8, 40], strides = [1, 1]} : vector<160x40xbf16> to vector<8x40xbf16>
    %277 = vector.extract_strided_slice %273 {offsets = [24, 0], sizes = [8, 40], strides = [1, 1]} : vector<160x40xbf16> to vector<8x40xbf16>
    %278 = vector.extract_strided_slice %273 {offsets = [32, 0], sizes = [8, 40], strides = [1, 1]} : vector<160x40xbf16> to vector<8x40xbf16>
    %279 = vector.extract_strided_slice %273 {offsets = [40, 0], sizes = [8, 40], strides = [1, 1]} : vector<160x40xbf16> to vector<8x40xbf16>
    %280 = vector.extract_strided_slice %273 {offsets = [48, 0], sizes = [8, 40], strides = [1, 1]} : vector<160x40xbf16> to vector<8x40xbf16>
    %281 = vector.extract_strided_slice %273 {offsets = [56, 0], sizes = [8, 40], strides = [1, 1]} : vector<160x40xbf16> to vector<8x40xbf16>
    %282 = vector.extract_strided_slice %273 {offsets = [64, 0], sizes = [8, 40], strides = [1, 1]} : vector<160x40xbf16> to vector<8x40xbf16>
    %283 = vector.extract_strided_slice %273 {offsets = [72, 0], sizes = [8, 40], strides = [1, 1]} : vector<160x40xbf16> to vector<8x40xbf16>
    %284 = vector.extract_strided_slice %273 {offsets = [80, 0], sizes = [8, 40], strides = [1, 1]} : vector<160x40xbf16> to vector<8x40xbf16>
    %285 = vector.extract_strided_slice %273 {offsets = [88, 0], sizes = [8, 40], strides = [1, 1]} : vector<160x40xbf16> to vector<8x40xbf16>
    %286 = vector.extract_strided_slice %273 {offsets = [96, 0], sizes = [8, 40], strides = [1, 1]} : vector<160x40xbf16> to vector<8x40xbf16>
    %287 = vector.extract_strided_slice %273 {offsets = [104, 0], sizes = [8, 40], strides = [1, 1]} : vector<160x40xbf16> to vector<8x40xbf16>
    %288 = vector.extract_strided_slice %273 {offsets = [112, 0], sizes = [8, 40], strides = [1, 1]} : vector<160x40xbf16> to vector<8x40xbf16>
    %289 = vector.extract_strided_slice %273 {offsets = [120, 0], sizes = [8, 40], strides = [1, 1]} : vector<160x40xbf16> to vector<8x40xbf16>
    %290 = vector.extract_strided_slice %273 {offsets = [128, 0], sizes = [8, 40], strides = [1, 1]} : vector<160x40xbf16> to vector<8x40xbf16>
    %291 = vector.extract_strided_slice %273 {offsets = [136, 0], sizes = [8, 40], strides = [1, 1]} : vector<160x40xbf16> to vector<8x40xbf16>
    %292 = vector.extract_strided_slice %273 {offsets = [144, 0], sizes = [8, 40], strides = [1, 1]} : vector<160x40xbf16> to vector<8x40xbf16>
    %293 = vector.extract_strided_slice %273 {offsets = [152, 0], sizes = [8, 40], strides = [1, 1]} : vector<160x40xbf16> to vector<8x40xbf16>
    %294 = tpu.concatenate %274, %275, %276, %277, %278, %279, %280, %281, %282, %283, %284, %285, %286, %287, %288, %289 in 1 : vector<8x40xbf16>, vector<8x40xbf16>, vector<8x40xbf16>, vector<8x40xbf16>, vector<8x40xbf16>, vector<8x40xbf16>, vector<8x40xbf16>, vector<8x40xbf16>, vector<8x40xbf16>, vector<8x40xbf16>, vector<8x40xbf16>, vector<8x40xbf16>, vector<8x40xbf16>, vector<8x40xbf16>, vector<8x40xbf16>, vector<8x40xbf16> -> vector<8x640xbf16>
    %295 = tpu.concatenate %290, %291, %292, %293, %271 in 1 : vector<8x40xbf16>, vector<8x40xbf16>, vector<8x40xbf16>, vector<8x40xbf16>, vector<8x40xbf16> -> vector<8x200xbf16>
    %296 = tpu.concatenate %294, %295 in 1 : vector<8x640xbf16>, vector<8x200xbf16> -> vector<8x840xbf16>
    %c0_114 = arith.constant 0 : index
    %c0_115 = arith.constant 0 : index
    %297 = vector.load %arg16[%c0_114, %c0_115] : memref<840x80xbf16, #tpu.memory_space<vmem>>, vector<840x80xbf16>
    %cst_116 = arith.constant dense<0.000000e+00> : vector<8x80xf32>
    %298 = tpu.matmul %296, %297, %cst_116 {dimension_numbers = #tpu.dot_dimension_numbers<[1], [0], [0], [1], [0, 0, 1, 1], [], []>} : vector<8x840xbf16>, vector<840x80xbf16>, vector<8x80xf32> -> vector<8x80xf32>
    %c0_117 = arith.constant 0 : index
    %c0_118 = arith.constant 0 : index
    %299 = vector.load %arg17[%c0_117, %c0_118] : memref<1x80xf32, #tpu.memory_space<vmem>>, vector<1x80xf32>
    %300 = vector.broadcast %299 : vector<1x80xf32> to vector<8x80xf32>
    %301 = arith.addf %298, %300 : vector<8x80xf32>
    %302 = vector.extract_strided_slice %301 {offsets = [0, 0], sizes = [8, 60], strides = [1, 1]} : vector<8x80xf32> to vector<8x60xf32>
    %cst_119 = arith.constant 5.000000e-01 : f32
    %303 = vector.broadcast %cst_119 : f32 to vector<8x60xf32>
    %304 = arith.mulf %303, %302 : vector<8x60xf32>
    %305 = math.tanh %304 : vector<8x60xf32>
    %cst_120 = arith.constant 1.000000e+00 : f32
    %306 = vector.broadcast %cst_120 : f32 to vector<8x60xf32>
    %307 = arith.addf %305, %306 : vector<8x60xf32>
    %cst_121 = arith.constant 5.000000e-01 : f32
    %308 = vector.broadcast %cst_121 : f32 to vector<8x60xf32>
    %309 = arith.mulf %308, %307 : vector<8x60xf32>
    %310 = vector.extract_strided_slice %301 {offsets = [0, 60], sizes = [8, 20], strides = [1, 1]} : vector<8x80xf32> to vector<8x20xf32>
    %311 = math.tanh %310 : vector<8x20xf32>
    %312 = vector.extract_strided_slice %309 {offsets = [0, 0], sizes = [8, 20], strides = [1, 1]} : vector<8x60xf32> to vector<8x20xf32>
    %313 = vector.extract_strided_slice %309 {offsets = [0, 20], sizes = [8, 20], strides = [1, 1]} : vector<8x60xf32> to vector<8x20xf32>
    %314 = vector.extract_strided_slice %309 {offsets = [0, 40], sizes = [8, 20], strides = [1, 1]} : vector<8x60xf32> to vector<8x20xf32>
    %315 = arith.mulf %313, %164 : vector<8x20xf32>
    %316 = arith.mulf %312, %311 : vector<8x20xf32>
    %317 = arith.addf %315, %316 : vector<8x20xf32>
    %318 = math.tanh %317 : vector<8x20xf32>
    %319 = arith.mulf %314, %318 : vector<8x20xf32>
    %320 = vector.extract_strided_slice %68 {offsets = [0, 1], sizes = [8, 1], strides = [1, 1]} : vector<8x2xf32> to vector<8x1xf32>
    %321 = tpu.concatenate %320, %166 in 1 : vector<8x1xf32>, vector<8x7xf32> -> vector<8x8xf32>
    %322 = arith.truncf %321 : vector<8x8xf32> to vector<8x8xbf16>
    %cst_122 = arith.constant dense<0.000000e+00> : vector<160x8xf32>
    %323 = tpu.matmul %66, %322, %cst_122 {dimension_numbers = #tpu.dot_dimension_numbers<[1], [0], [0], [1], [0, 0, 1, 1], [], []>} : vector<160x8xbf16>, vector<8x8xbf16>, vector<160x8xf32> -> vector<160x8xf32>
    %324 = arith.truncf %323 : vector<160x8xf32> to vector<160x8xbf16>
    %325 = vector.extract_strided_slice %324 {offsets = [0, 0], sizes = [8, 8], strides = [1, 1]} : vector<160x8xbf16> to vector<8x8xbf16>
    %326 = vector.extract_strided_slice %324 {offsets = [8, 0], sizes = [8, 8], strides = [1, 1]} : vector<160x8xbf16> to vector<8x8xbf16>
    %327 = vector.extract_strided_slice %324 {offsets = [16, 0], sizes = [8, 8], strides = [1, 1]} : vector<160x8xbf16> to vector<8x8xbf16>
    %328 = vector.extract_strided_slice %324 {offsets = [24, 0], sizes = [8, 8], strides = [1, 1]} : vector<160x8xbf16> to vector<8x8xbf16>
    %329 = vector.extract_strided_slice %324 {offsets = [32, 0], sizes = [8, 8], strides = [1, 1]} : vector<160x8xbf16> to vector<8x8xbf16>
    %330 = vector.extract_strided_slice %324 {offsets = [40, 0], sizes = [8, 8], strides = [1, 1]} : vector<160x8xbf16> to vector<8x8xbf16>
    %331 = vector.extract_strided_slice %324 {offsets = [48, 0], sizes = [8, 8], strides = [1, 1]} : vector<160x8xbf16> to vector<8x8xbf16>
    %332 = vector.extract_strided_slice %324 {offsets = [56, 0], sizes = [8, 8], strides = [1, 1]} : vector<160x8xbf16> to vector<8x8xbf16>
    %333 = vector.extract_strided_slice %324 {offsets = [64, 0], sizes = [8, 8], strides = [1, 1]} : vector<160x8xbf16> to vector<8x8xbf16>
    %334 = vector.extract_strided_slice %324 {offsets = [72, 0], sizes = [8, 8], strides = [1, 1]} : vector<160x8xbf16> to vector<8x8xbf16>
    %335 = vector.extract_strided_slice %324 {offsets = [80, 0], sizes = [8, 8], strides = [1, 1]} : vector<160x8xbf16> to vector<8x8xbf16>
    %336 = vector.extract_strided_slice %324 {offsets = [88, 0], sizes = [8, 8], strides = [1, 1]} : vector<160x8xbf16> to vector<8x8xbf16>
    %337 = vector.extract_strided_slice %324 {offsets = [96, 0], sizes = [8, 8], strides = [1, 1]} : vector<160x8xbf16> to vector<8x8xbf16>
    %338 = vector.extract_strided_slice %324 {offsets = [104, 0], sizes = [8, 8], strides = [1, 1]} : vector<160x8xbf16> to vector<8x8xbf16>
    %339 = vector.extract_strided_slice %324 {offsets = [112, 0], sizes = [8, 8], strides = [1, 1]} : vector<160x8xbf16> to vector<8x8xbf16>
    %340 = vector.extract_strided_slice %324 {offsets = [120, 0], sizes = [8, 8], strides = [1, 1]} : vector<160x8xbf16> to vector<8x8xbf16>
    %341 = vector.extract_strided_slice %324 {offsets = [128, 0], sizes = [8, 8], strides = [1, 1]} : vector<160x8xbf16> to vector<8x8xbf16>
    %342 = vector.extract_strided_slice %324 {offsets = [136, 0], sizes = [8, 8], strides = [1, 1]} : vector<160x8xbf16> to vector<8x8xbf16>
    %343 = vector.extract_strided_slice %324 {offsets = [144, 0], sizes = [8, 8], strides = [1, 1]} : vector<160x8xbf16> to vector<8x8xbf16>
    %344 = vector.extract_strided_slice %324 {offsets = [152, 0], sizes = [8, 8], strides = [1, 1]} : vector<160x8xbf16> to vector<8x8xbf16>
    %345 = tpu.concatenate %325, %326, %327, %328, %329, %330, %331, %332, %333, %334, %335, %336, %337, %338, %339, %340 in 1 : vector<8x8xbf16>, vector<8x8xbf16>, vector<8x8xbf16>, vector<8x8xbf16>, vector<8x8xbf16>, vector<8x8xbf16>, vector<8x8xbf16>, vector<8x8xbf16>, vector<8x8xbf16>, vector<8x8xbf16>, vector<8x8xbf16>, vector<8x8xbf16>, vector<8x8xbf16>, vector<8x8xbf16>, vector<8x8xbf16>, vector<8x8xbf16> -> vector<8x128xbf16>
    %346 = tpu.concatenate %341, %342, %343, %344, %322 in 1 : vector<8x8xbf16>, vector<8x8xbf16>, vector<8x8xbf16>, vector<8x8xbf16>, vector<8x8xbf16> -> vector<8x40xbf16>
    %347 = tpu.concatenate %345, %346 in 1 : vector<8x128xbf16>, vector<8x40xbf16> -> vector<8x168xbf16>
    %c0_123 = arith.constant 0 : index
    %c0_124 = arith.constant 0 : index
    %348 = vector.load %arg12[%c0_123, %c0_124] : memref<168x20xbf16, #tpu.memory_space<vmem>>, vector<168x20xbf16>
    %cst_125 = arith.constant dense<0.000000e+00> : vector<8x20xf32>
    %349 = tpu.matmul %347, %348, %cst_125 {dimension_numbers = #tpu.dot_dimension_numbers<[1], [0], [0], [1], [0, 0, 1, 1], [], []>} : vector<8x168xbf16>, vector<168x20xbf16>, vector<8x20xf32> -> vector<8x20xf32>
    %c0_126 = arith.constant 0 : index
    %c0_127 = arith.constant 0 : index
    %350 = vector.load %arg13[%c0_126, %c0_127] : memref<1x20xf32, #tpu.memory_space<vmem>>, vector<1x20xf32>
    %351 = vector.broadcast %350 : vector<1x20xf32> to vector<8x20xf32>
    %352 = arith.addf %349, %351 : vector<8x20xf32>
    %cst_128 = arith.constant 0.000000e+00 : f32
    %353 = vector.broadcast %cst_128 : f32 to vector<8x20xf32>
    %354 = arith.maximumf %352, %353 : vector<8x20xf32>
    %355 = math.absf %352 : vector<8x20xf32>
    %cst_129 = arith.constant 0.000000e+00 : f32
    %356 = vector.broadcast %cst_129 : f32 to vector<8x20xf32>
    %357 = arith.subf %356, %355 : vector<8x20xf32>
    %358 = math.exp %357 : vector<8x20xf32>
    %cst_130 = arith.constant 1.000000e+00 : f32
    %359 = vector.broadcast %cst_130 : f32 to vector<8x20xf32>
    %360 = arith.addf %359, %358 : vector<8x20xf32>
    %361 = math.log %360 : vector<8x20xf32>
    %362 = arith.addf %354, %361 : vector<8x20xf32>
    %363 = arith.truncf %362 : vector<8x20xf32> to vector<8x20xbf16>
    %c0_131 = arith.constant 0 : index
    %c0_132 = arith.constant 0 : index
    %c0_133 = arith.constant 0 : index
    %364 = vector.load %arg14[%c0_131, %c0_132, %c0_133] : memref<3x20x20xbf16, #tpu.memory_space<vmem>>, vector<1x20x20xbf16>
    %365 = vector.shape_cast %364 : vector<1x20x20xbf16> to vector<20x20xbf16>
    %cst_134 = arith.constant dense<0.000000e+00> : vector<8x20xf32>
    %366 = tpu.matmul %363, %365, %cst_134 {dimension_numbers = #tpu.dot_dimension_numbers<[1], [0], [0], [1], [0, 0, 1, 1], [], []>} : vector<8x20xbf16>, vector<20x20xbf16>, vector<8x20xf32> -> vector<8x20xf32>
    %c0_135 = arith.constant 0 : index
    %c0_136 = arith.constant 0 : index
    %c0_137 = arith.constant 0 : index
    %367 = vector.load %arg15[%c0_135, %c0_136, %c0_137] : memref<3x1x20xf32, #tpu.memory_space<vmem>>, vector<1x1x20xf32>
    %368 = vector.shape_cast %367 : vector<1x1x20xf32> to vector<1x20xf32>
    %369 = vector.broadcast %368 : vector<1x20xf32> to vector<8x20xf32>
    %370 = arith.addf %366, %369 : vector<8x20xf32>
    %cst_138 = arith.constant 0.000000e+00 : f32
    %371 = vector.broadcast %cst_138 : f32 to vector<8x20xf32>
    %372 = arith.maximumf %370, %371 : vector<8x20xf32>
    %373 = math.absf %370 : vector<8x20xf32>
    %cst_139 = arith.constant 0.000000e+00 : f32
    %374 = vector.broadcast %cst_139 : f32 to vector<8x20xf32>
    %375 = arith.subf %374, %373 : vector<8x20xf32>
    %376 = math.exp %375 : vector<8x20xf32>
    %cst_140 = arith.constant 1.000000e+00 : f32
    %377 = vector.broadcast %cst_140 : f32 to vector<8x20xf32>
    %378 = arith.addf %377, %376 : vector<8x20xf32>
    %379 = math.log %378 : vector<8x20xf32>
    %380 = arith.addf %372, %379 : vector<8x20xf32>
    %381 = arith.truncf %380 : vector<8x20xf32> to vector<8x20xbf16>
    %c1_141 = arith.constant 1 : index
    %c0_142 = arith.constant 0 : index
    %c0_143 = arith.constant 0 : index
    %382 = vector.load %arg14[%c1_141, %c0_142, %c0_143] : memref<3x20x20xbf16, #tpu.memory_space<vmem>>, vector<1x20x20xbf16>
    %383 = vector.shape_cast %382 : vector<1x20x20xbf16> to vector<20x20xbf16>
    %cst_144 = arith.constant dense<0.000000e+00> : vector<8x20xf32>
    %384 = tpu.matmul %381, %383, %cst_144 {dimension_numbers = #tpu.dot_dimension_numbers<[1], [0], [0], [1], [0, 0, 1, 1], [], []>} : vector<8x20xbf16>, vector<20x20xbf16>, vector<8x20xf32> -> vector<8x20xf32>
    %c1_145 = arith.constant 1 : index
    %c0_146 = arith.constant 0 : index
    %c0_147 = arith.constant 0 : index
    %385 = vector.load %arg15[%c1_145, %c0_146, %c0_147] : memref<3x1x20xf32, #tpu.memory_space<vmem>>, vector<1x1x20xf32>
    %386 = vector.shape_cast %385 : vector<1x1x20xf32> to vector<1x20xf32>
    %387 = vector.broadcast %386 : vector<1x20xf32> to vector<8x20xf32>
    %388 = arith.addf %384, %387 : vector<8x20xf32>
    %cst_148 = arith.constant 0.000000e+00 : f32
    %389 = vector.broadcast %cst_148 : f32 to vector<8x20xf32>
    %390 = arith.maximumf %388, %389 : vector<8x20xf32>
    %391 = math.absf %388 : vector<8x20xf32>
    %cst_149 = arith.constant 0.000000e+00 : f32
    %392 = vector.broadcast %cst_149 : f32 to vector<8x20xf32>
    %393 = arith.subf %392, %391 : vector<8x20xf32>
    %394 = math.exp %393 : vector<8x20xf32>
    %cst_150 = arith.constant 1.000000e+00 : f32
    %395 = vector.broadcast %cst_150 : f32 to vector<8x20xf32>
    %396 = arith.addf %395, %394 : vector<8x20xf32>
    %397 = math.log %396 : vector<8x20xf32>
    %398 = arith.addf %390, %397 : vector<8x20xf32>
    %399 = arith.truncf %398 : vector<8x20xf32> to vector<8x20xbf16>
    %c2_151 = arith.constant 2 : index
    %c0_152 = arith.constant 0 : index
    %c0_153 = arith.constant 0 : index
    %400 = vector.load %arg14[%c2_151, %c0_152, %c0_153] : memref<3x20x20xbf16, #tpu.memory_space<vmem>>, vector<1x20x20xbf16>
    %401 = vector.shape_cast %400 : vector<1x20x20xbf16> to vector<20x20xbf16>
    %cst_154 = arith.constant dense<0.000000e+00> : vector<8x20xf32>
    %402 = tpu.matmul %399, %401, %cst_154 {dimension_numbers = #tpu.dot_dimension_numbers<[1], [0], [0], [1], [0, 0, 1, 1], [], []>} : vector<8x20xbf16>, vector<20x20xbf16>, vector<8x20xf32> -> vector<8x20xf32>
    %c2_155 = arith.constant 2 : index
    %c0_156 = arith.constant 0 : index
    %c0_157 = arith.constant 0 : index
    %403 = vector.load %arg15[%c2_155, %c0_156, %c0_157] : memref<3x1x20xf32, #tpu.memory_space<vmem>>, vector<1x1x20xf32>
    %404 = vector.shape_cast %403 : vector<1x1x20xf32> to vector<1x20xf32>
    %405 = vector.broadcast %404 : vector<1x20xf32> to vector<8x20xf32>
    %406 = arith.addf %402, %405 : vector<8x20xf32>
    %cst_158 = arith.constant 0.000000e+00 : f32
    %407 = vector.broadcast %cst_158 : f32 to vector<8x20xf32>
    %408 = arith.maximumf %406, %407 : vector<8x20xf32>
    %409 = math.absf %406 : vector<8x20xf32>
    %cst_159 = arith.constant 0.000000e+00 : f32
    %410 = vector.broadcast %cst_159 : f32 to vector<8x20xf32>
    %411 = arith.subf %410, %409 : vector<8x20xf32>
    %412 = math.exp %411 : vector<8x20xf32>
    %cst_160 = arith.constant 1.000000e+00 : f32
    %413 = vector.broadcast %cst_160 : f32 to vector<8x20xf32>
    %414 = arith.addf %413, %412 : vector<8x20xf32>
    %415 = math.log %414 : vector<8x20xf32>
    %416 = arith.addf %408, %415 : vector<8x20xf32>
    %417 = tpu.concatenate %416, %319 in 1 : vector<8x20xf32>, vector<8x20xf32> -> vector<8x40xf32>
    %418 = arith.truncf %417 : vector<8x40xf32> to vector<8x40xbf16>
    %cst_161 = arith.constant dense<0.000000e+00> : vector<160x40xf32>
    %419 = tpu.matmul %66, %418, %cst_161 {dimension_numbers = #tpu.dot_dimension_numbers<[1], [0], [0], [1], [0, 0, 1, 1], [], []>} : vector<160x8xbf16>, vector<8x40xbf16>, vector<160x40xf32> -> vector<160x40xf32>
    %420 = arith.truncf %419 : vector<160x40xf32> to vector<160x40xbf16>
    %421 = vector.extract_strided_slice %420 {offsets = [0, 0], sizes = [8, 40], strides = [1, 1]} : vector<160x40xbf16> to vector<8x40xbf16>
    %422 = vector.extract_strided_slice %420 {offsets = [8, 0], sizes = [8, 40], strides = [1, 1]} : vector<160x40xbf16> to vector<8x40xbf16>
    %423 = vector.extract_strided_slice %420 {offsets = [16, 0], sizes = [8, 40], strides = [1, 1]} : vector<160x40xbf16> to vector<8x40xbf16>
    %424 = vector.extract_strided_slice %420 {offsets = [24, 0], sizes = [8, 40], strides = [1, 1]} : vector<160x40xbf16> to vector<8x40xbf16>
    %425 = vector.extract_strided_slice %420 {offsets = [32, 0], sizes = [8, 40], strides = [1, 1]} : vector<160x40xbf16> to vector<8x40xbf16>
    %426 = vector.extract_strided_slice %420 {offsets = [40, 0], sizes = [8, 40], strides = [1, 1]} : vector<160x40xbf16> to vector<8x40xbf16>
    %427 = vector.extract_strided_slice %420 {offsets = [48, 0], sizes = [8, 40], strides = [1, 1]} : vector<160x40xbf16> to vector<8x40xbf16>
    %428 = vector.extract_strided_slice %420 {offsets = [56, 0], sizes = [8, 40], strides = [1, 1]} : vector<160x40xbf16> to vector<8x40xbf16>
    %429 = vector.extract_strided_slice %420 {offsets = [64, 0], sizes = [8, 40], strides = [1, 1]} : vector<160x40xbf16> to vector<8x40xbf16>
    %430 = vector.extract_strided_slice %420 {offsets = [72, 0], sizes = [8, 40], strides = [1, 1]} : vector<160x40xbf16> to vector<8x40xbf16>
    %431 = vector.extract_strided_slice %420 {offsets = [80, 0], sizes = [8, 40], strides = [1, 1]} : vector<160x40xbf16> to vector<8x40xbf16>
    %432 = vector.extract_strided_slice %420 {offsets = [88, 0], sizes = [8, 40], strides = [1, 1]} : vector<160x40xbf16> to vector<8x40xbf16>
    %433 = vector.extract_strided_slice %420 {offsets = [96, 0], sizes = [8, 40], strides = [1, 1]} : vector<160x40xbf16> to vector<8x40xbf16>
    %434 = vector.extract_strided_slice %420 {offsets = [104, 0], sizes = [8, 40], strides = [1, 1]} : vector<160x40xbf16> to vector<8x40xbf16>
    %435 = vector.extract_strided_slice %420 {offsets = [112, 0], sizes = [8, 40], strides = [1, 1]} : vector<160x40xbf16> to vector<8x40xbf16>
    %436 = vector.extract_strided_slice %420 {offsets = [120, 0], sizes = [8, 40], strides = [1, 1]} : vector<160x40xbf16> to vector<8x40xbf16>
    %437 = vector.extract_strided_slice %420 {offsets = [128, 0], sizes = [8, 40], strides = [1, 1]} : vector<160x40xbf16> to vector<8x40xbf16>
    %438 = vector.extract_strided_slice %420 {offsets = [136, 0], sizes = [8, 40], strides = [1, 1]} : vector<160x40xbf16> to vector<8x40xbf16>
    %439 = vector.extract_strided_slice %420 {offsets = [144, 0], sizes = [8, 40], strides = [1, 1]} : vector<160x40xbf16> to vector<8x40xbf16>
    %440 = vector.extract_strided_slice %420 {offsets = [152, 0], sizes = [8, 40], strides = [1, 1]} : vector<160x40xbf16> to vector<8x40xbf16>
    %441 = tpu.concatenate %421, %422, %423, %424, %425, %426, %427, %428, %429, %430, %431, %432, %433, %434, %435, %436 in 1 : vector<8x40xbf16>, vector<8x40xbf16>, vector<8x40xbf16>, vector<8x40xbf16>, vector<8x40xbf16>, vector<8x40xbf16>, vector<8x40xbf16>, vector<8x40xbf16>, vector<8x40xbf16>, vector<8x40xbf16>, vector<8x40xbf16>, vector<8x40xbf16>, vector<8x40xbf16>, vector<8x40xbf16>, vector<8x40xbf16>, vector<8x40xbf16> -> vector<8x640xbf16>
    %442 = tpu.concatenate %437, %438, %439, %440, %418 in 1 : vector<8x40xbf16>, vector<8x40xbf16>, vector<8x40xbf16>, vector<8x40xbf16>, vector<8x40xbf16> -> vector<8x200xbf16>
    %443 = tpu.concatenate %441, %442 in 1 : vector<8x640xbf16>, vector<8x200xbf16> -> vector<8x840xbf16>
    %c0_162 = arith.constant 0 : index
    %c0_163 = arith.constant 0 : index
    %444 = vector.load %arg16[%c0_162, %c0_163] : memref<840x80xbf16, #tpu.memory_space<vmem>>, vector<840x80xbf16>
    %cst_164 = arith.constant dense<0.000000e+00> : vector<8x80xf32>
    %445 = tpu.matmul %443, %444, %cst_164 {dimension_numbers = #tpu.dot_dimension_numbers<[1], [0], [0], [1], [0, 0, 1, 1], [], []>} : vector<8x840xbf16>, vector<840x80xbf16>, vector<8x80xf32> -> vector<8x80xf32>
    %c0_165 = arith.constant 0 : index
    %c0_166 = arith.constant 0 : index
    %446 = vector.load %arg17[%c0_165, %c0_166] : memref<1x80xf32, #tpu.memory_space<vmem>>, vector<1x80xf32>
    %447 = vector.broadcast %446 : vector<1x80xf32> to vector<8x80xf32>
    %448 = arith.addf %445, %447 : vector<8x80xf32>
    %449 = vector.extract_strided_slice %448 {offsets = [0, 0], sizes = [8, 60], strides = [1, 1]} : vector<8x80xf32> to vector<8x60xf32>
    %cst_167 = arith.constant 5.000000e-01 : f32
    %450 = vector.broadcast %cst_167 : f32 to vector<8x60xf32>
    %451 = arith.mulf %450, %449 : vector<8x60xf32>
    %452 = math.tanh %451 : vector<8x60xf32>
    %cst_168 = arith.constant 1.000000e+00 : f32
    %453 = vector.broadcast %cst_168 : f32 to vector<8x60xf32>
    %454 = arith.addf %452, %453 : vector<8x60xf32>
    %cst_169 = arith.constant 5.000000e-01 : f32
    %455 = vector.broadcast %cst_169 : f32 to vector<8x60xf32>
    %456 = arith.mulf %455, %454 : vector<8x60xf32>
    %457 = vector.extract_strided_slice %448 {offsets = [0, 60], sizes = [8, 20], strides = [1, 1]} : vector<8x80xf32> to vector<8x20xf32>
    %458 = math.tanh %457 : vector<8x20xf32>
    %459 = vector.extract_strided_slice %456 {offsets = [0, 0], sizes = [8, 20], strides = [1, 1]} : vector<8x60xf32> to vector<8x20xf32>
    %460 = vector.extract_strided_slice %456 {offsets = [0, 20], sizes = [8, 20], strides = [1, 1]} : vector<8x60xf32> to vector<8x20xf32>
    %461 = vector.extract_strided_slice %456 {offsets = [0, 40], sizes = [8, 20], strides = [1, 1]} : vector<8x60xf32> to vector<8x20xf32>
    %462 = arith.mulf %460, %317 : vector<8x20xf32>
    %463 = arith.mulf %459, %458 : vector<8x20xf32>
    %464 = arith.addf %462, %463 : vector<8x20xf32>
    %465 = math.tanh %464 : vector<8x20xf32>
    %466 = arith.mulf %461, %465 : vector<8x20xf32>
    %467 = vector.broadcast %172 : vector<1x20xf32> to vector<8x20xf32>
    %468 = arith.mulf %461, %467 : vector<8x20xf32>
    %cst_170 = arith.constant dense<0.000000e+00> : vector<8xf32>
    %469 = vector.multi_reduction <add>, %468, %cst_170 [1] : vector<8x20xf32> to vector<8xf32>
    %470 = vector.shape_cast %469 : vector<8xf32> to vector<8x1xf32>
    %471 = arith.addf %171, %470 : vector<8x1xf32>
    %472 = tpu.concatenate %471, %166 in 1 : vector<8x1xf32>, vector<8x7xf32> -> vector<8x8xf32>
    %473 = arith.truncf %472 : vector<8x8xf32> to vector<8x8xbf16>
    %cst_171 = arith.constant dense<0.000000e+00> : vector<160x8xf32>
    %474 = tpu.matmul %66, %473, %cst_171 {dimension_numbers = #tpu.dot_dimension_numbers<[1], [0], [0], [1], [0, 0, 1, 1], [], []>} : vector<160x8xbf16>, vector<8x8xbf16>, vector<160x8xf32> -> vector<160x8xf32>
    %475 = arith.truncf %474 : vector<160x8xf32> to vector<160x8xbf16>
    %476 = vector.extract_strided_slice %475 {offsets = [0, 0], sizes = [8, 8], strides = [1, 1]} : vector<160x8xbf16> to vector<8x8xbf16>
    %477 = vector.extract_strided_slice %475 {offsets = [8, 0], sizes = [8, 8], strides = [1, 1]} : vector<160x8xbf16> to vector<8x8xbf16>
    %478 = vector.extract_strided_slice %475 {offsets = [16, 0], sizes = [8, 8], strides = [1, 1]} : vector<160x8xbf16> to vector<8x8xbf16>
    %479 = vector.extract_strided_slice %475 {offsets = [24, 0], sizes = [8, 8], strides = [1, 1]} : vector<160x8xbf16> to vector<8x8xbf16>
    %480 = vector.extract_strided_slice %475 {offsets = [32, 0], sizes = [8, 8], strides = [1, 1]} : vector<160x8xbf16> to vector<8x8xbf16>
    %481 = vector.extract_strided_slice %475 {offsets = [40, 0], sizes = [8, 8], strides = [1, 1]} : vector<160x8xbf16> to vector<8x8xbf16>
    %482 = vector.extract_strided_slice %475 {offsets = [48, 0], sizes = [8, 8], strides = [1, 1]} : vector<160x8xbf16> to vector<8x8xbf16>
    %483 = vector.extract_strided_slice %475 {offsets = [56, 0], sizes = [8, 8], strides = [1, 1]} : vector<160x8xbf16> to vector<8x8xbf16>
    %484 = vector.extract_strided_slice %475 {offsets = [64, 0], sizes = [8, 8], strides = [1, 1]} : vector<160x8xbf16> to vector<8x8xbf16>
    %485 = vector.extract_strided_slice %475 {offsets = [72, 0], sizes = [8, 8], strides = [1, 1]} : vector<160x8xbf16> to vector<8x8xbf16>
    %486 = vector.extract_strided_slice %475 {offsets = [80, 0], sizes = [8, 8], strides = [1, 1]} : vector<160x8xbf16> to vector<8x8xbf16>
    %487 = vector.extract_strided_slice %475 {offsets = [88, 0], sizes = [8, 8], strides = [1, 1]} : vector<160x8xbf16> to vector<8x8xbf16>
    %488 = vector.extract_strided_slice %475 {offsets = [96, 0], sizes = [8, 8], strides = [1, 1]} : vector<160x8xbf16> to vector<8x8xbf16>
    %489 = vector.extract_strided_slice %475 {offsets = [104, 0], sizes = [8, 8], strides = [1, 1]} : vector<160x8xbf16> to vector<8x8xbf16>
    %490 = vector.extract_strided_slice %475 {offsets = [112, 0], sizes = [8, 8], strides = [1, 1]} : vector<160x8xbf16> to vector<8x8xbf16>
    %491 = vector.extract_strided_slice %475 {offsets = [120, 0], sizes = [8, 8], strides = [1, 1]} : vector<160x8xbf16> to vector<8x8xbf16>
    %492 = vector.extract_strided_slice %475 {offsets = [128, 0], sizes = [8, 8], strides = [1, 1]} : vector<160x8xbf16> to vector<8x8xbf16>
    %493 = vector.extract_strided_slice %475 {offsets = [136, 0], sizes = [8, 8], strides = [1, 1]} : vector<160x8xbf16> to vector<8x8xbf16>
    %494 = vector.extract_strided_slice %475 {offsets = [144, 0], sizes = [8, 8], strides = [1, 1]} : vector<160x8xbf16> to vector<8x8xbf16>
    %495 = vector.extract_strided_slice %475 {offsets = [152, 0], sizes = [8, 8], strides = [1, 1]} : vector<160x8xbf16> to vector<8x8xbf16>
    %496 = tpu.concatenate %476, %477, %478, %479, %480, %481, %482, %483, %484, %485, %486, %487, %488, %489, %490, %491 in 1 : vector<8x8xbf16>, vector<8x8xbf16>, vector<8x8xbf16>, vector<8x8xbf16>, vector<8x8xbf16>, vector<8x8xbf16>, vector<8x8xbf16>, vector<8x8xbf16>, vector<8x8xbf16>, vector<8x8xbf16>, vector<8x8xbf16>, vector<8x8xbf16>, vector<8x8xbf16>, vector<8x8xbf16>, vector<8x8xbf16>, vector<8x8xbf16> -> vector<8x128xbf16>
    %497 = tpu.concatenate %492, %493, %494, %495, %473 in 1 : vector<8x8xbf16>, vector<8x8xbf16>, vector<8x8xbf16>, vector<8x8xbf16>, vector<8x8xbf16> -> vector<8x40xbf16>
    %498 = tpu.concatenate %496, %497 in 1 : vector<8x128xbf16>, vector<8x40xbf16> -> vector<8x168xbf16>
    %c0_172 = arith.constant 0 : index
    %c0_173 = arith.constant 0 : index
    %499 = vector.load %arg12[%c0_172, %c0_173] : memref<168x20xbf16, #tpu.memory_space<vmem>>, vector<168x20xbf16>
    %cst_174 = arith.constant dense<0.000000e+00> : vector<8x20xf32>
    %500 = tpu.matmul %498, %499, %cst_174 {dimension_numbers = #tpu.dot_dimension_numbers<[1], [0], [0], [1], [0, 0, 1, 1], [], []>} : vector<8x168xbf16>, vector<168x20xbf16>, vector<8x20xf32> -> vector<8x20xf32>
    %c0_175 = arith.constant 0 : index
    %c0_176 = arith.constant 0 : index
    %501 = vector.load %arg13[%c0_175, %c0_176] : memref<1x20xf32, #tpu.memory_space<vmem>>, vector<1x20xf32>
    %502 = vector.broadcast %501 : vector<1x20xf32> to vector<8x20xf32>
    %503 = arith.addf %500, %502 : vector<8x20xf32>
    %cst_177 = arith.constant 0.000000e+00 : f32
    %504 = vector.broadcast %cst_177 : f32 to vector<8x20xf32>
    %505 = arith.maximumf %503, %504 : vector<8x20xf32>
    %506 = math.absf %503 : vector<8x20xf32>
    %cst_178 = arith.constant 0.000000e+00 : f32
    %507 = vector.broadcast %cst_178 : f32 to vector<8x20xf32>
    %508 = arith.subf %507, %506 : vector<8x20xf32>
    %509 = math.exp %508 : vector<8x20xf32>
    %cst_179 = arith.constant 1.000000e+00 : f32
    %510 = vector.broadcast %cst_179 : f32 to vector<8x20xf32>
    %511 = arith.addf %510, %509 : vector<8x20xf32>
    %512 = math.log %511 : vector<8x20xf32>
    %513 = arith.addf %505, %512 : vector<8x20xf32>
    %514 = arith.truncf %513 : vector<8x20xf32> to vector<8x20xbf16>
    %c0_180 = arith.constant 0 : index
    %c0_181 = arith.constant 0 : index
    %c0_182 = arith.constant 0 : index
    %515 = vector.load %arg14[%c0_180, %c0_181, %c0_182] : memref<3x20x20xbf16, #tpu.memory_space<vmem>>, vector<1x20x20xbf16>
    %516 = vector.shape_cast %515 : vector<1x20x20xbf16> to vector<20x20xbf16>
    %cst_183 = arith.constant dense<0.000000e+00> : vector<8x20xf32>
    %517 = tpu.matmul %514, %516, %cst_183 {dimension_numbers = #tpu.dot_dimension_numbers<[1], [0], [0], [1], [0, 0, 1, 1], [], []>} : vector<8x20xbf16>, vector<20x20xbf16>, vector<8x20xf32> -> vector<8x20xf32>
    %c0_184 = arith.constant 0 : index
    %c0_185 = arith.constant 0 : index
    %c0_186 = arith.constant 0 : index
    %518 = vector.load %arg15[%c0_184, %c0_185, %c0_186] : memref<3x1x20xf32, #tpu.memory_space<vmem>>, vector<1x1x20xf32>
    %519 = vector.shape_cast %518 : vector<1x1x20xf32> to vector<1x20xf32>
    %520 = vector.broadcast %519 : vector<1x20xf32> to vector<8x20xf32>
    %521 = arith.addf %517, %520 : vector<8x20xf32>
    %cst_187 = arith.constant 0.000000e+00 : f32
    %522 = vector.broadcast %cst_187 : f32 to vector<8x20xf32>
    %523 = arith.maximumf %521, %522 : vector<8x20xf32>
    %524 = math.absf %521 : vector<8x20xf32>
    %cst_188 = arith.constant 0.000000e+00 : f32
    %525 = vector.broadcast %cst_188 : f32 to vector<8x20xf32>
    %526 = arith.subf %525, %524 : vector<8x20xf32>
    %527 = math.exp %526 : vector<8x20xf32>
    %cst_189 = arith.constant 1.000000e+00 : f32
    %528 = vector.broadcast %cst_189 : f32 to vector<8x20xf32>
    %529 = arith.addf %528, %527 : vector<8x20xf32>
    %530 = math.log %529 : vector<8x20xf32>
    %531 = arith.addf %523, %530 : vector<8x20xf32>
    %532 = arith.truncf %531 : vector<8x20xf32> to vector<8x20xbf16>
    %c1_190 = arith.constant 1 : index
    %c0_191 = arith.constant 0 : index
    %c0_192 = arith.constant 0 : index
    %533 = vector.load %arg14[%c1_190, %c0_191, %c0_192] : memref<3x20x20xbf16, #tpu.memory_space<vmem>>, vector<1x20x20xbf16>
    %534 = vector.shape_cast %533 : vector<1x20x20xbf16> to vector<20x20xbf16>
    %cst_193 = arith.constant dense<0.000000e+00> : vector<8x20xf32>
    %535 = tpu.matmul %532, %534, %cst_193 {dimension_numbers = #tpu.dot_dimension_numbers<[1], [0], [0], [1], [0, 0, 1, 1], [], []>} : vector<8x20xbf16>, vector<20x20xbf16>, vector<8x20xf32> -> vector<8x20xf32>
    %c1_194 = arith.constant 1 : index
    %c0_195 = arith.constant 0 : index
    %c0_196 = arith.constant 0 : index
    %536 = vector.load %arg15[%c1_194, %c0_195, %c0_196] : memref<3x1x20xf32, #tpu.memory_space<vmem>>, vector<1x1x20xf32>
    %537 = vector.shape_cast %536 : vector<1x1x20xf32> to vector<1x20xf32>
    %538 = vector.broadcast %537 : vector<1x20xf32> to vector<8x20xf32>
    %539 = arith.addf %535, %538 : vector<8x20xf32>
    %cst_197 = arith.constant 0.000000e+00 : f32
    %540 = vector.broadcast %cst_197 : f32 to vector<8x20xf32>
    %541 = arith.maximumf %539, %540 : vector<8x20xf32>
    %542 = math.absf %539 : vector<8x20xf32>
    %cst_198 = arith.constant 0.000000e+00 : f32
    %543 = vector.broadcast %cst_198 : f32 to vector<8x20xf32>
    %544 = arith.subf %543, %542 : vector<8x20xf32>
    %545 = math.exp %544 : vector<8x20xf32>
    %cst_199 = arith.constant 1.000000e+00 : f32
    %546 = vector.broadcast %cst_199 : f32 to vector<8x20xf32>
    %547 = arith.addf %546, %545 : vector<8x20xf32>
    %548 = math.log %547 : vector<8x20xf32>
    %549 = arith.addf %541, %548 : vector<8x20xf32>
    %550 = arith.truncf %549 : vector<8x20xf32> to vector<8x20xbf16>
    %c2_200 = arith.constant 2 : index
    %c0_201 = arith.constant 0 : index
    %c0_202 = arith.constant 0 : index
    %551 = vector.load %arg14[%c2_200, %c0_201, %c0_202] : memref<3x20x20xbf16, #tpu.memory_space<vmem>>, vector<1x20x20xbf16>
    %552 = vector.shape_cast %551 : vector<1x20x20xbf16> to vector<20x20xbf16>
    %cst_203 = arith.constant dense<0.000000e+00> : vector<8x20xf32>
    %553 = tpu.matmul %550, %552, %cst_203 {dimension_numbers = #tpu.dot_dimension_numbers<[1], [0], [0], [1], [0, 0, 1, 1], [], []>} : vector<8x20xbf16>, vector<20x20xbf16>, vector<8x20xf32> -> vector<8x20xf32>
    %c2_204 = arith.constant 2 : index
    %c0_205 = arith.constant 0 : index
    %c0_206 = arith.constant 0 : index
    %554 = vector.load %arg15[%c2_204, %c0_205, %c0_206] : memref<3x1x20xf32, #tpu.memory_space<vmem>>, vector<1x1x20xf32>
    %555 = vector.shape_cast %554 : vector<1x1x20xf32> to vector<1x20xf32>
    %556 = vector.broadcast %555 : vector<1x20xf32> to vector<8x20xf32>
    %557 = arith.addf %553, %556 : vector<8x20xf32>
    %cst_207 = arith.constant 0.000000e+00 : f32
    %558 = vector.broadcast %cst_207 : f32 to vector<8x20xf32>
    %559 = arith.maximumf %557, %558 : vector<8x20xf32>
    %560 = math.absf %557 : vector<8x20xf32>
    %cst_208 = arith.constant 0.000000e+00 : f32
    %561 = vector.broadcast %cst_208 : f32 to vector<8x20xf32>
    %562 = arith.subf %561, %560 : vector<8x20xf32>
    %563 = math.exp %562 : vector<8x20xf32>
    %cst_209 = arith.constant 1.000000e+00 : f32
    %564 = vector.broadcast %cst_209 : f32 to vector<8x20xf32>
    %565 = arith.addf %564, %563 : vector<8x20xf32>
    %566 = math.log %565 : vector<8x20xf32>
    %567 = arith.addf %559, %566 : vector<8x20xf32>
    %568 = tpu.concatenate %567, %466 in 1 : vector<8x20xf32>, vector<8x20xf32> -> vector<8x40xf32>
    %569 = arith.truncf %568 : vector<8x40xf32> to vector<8x40xbf16>
    %cst_210 = arith.constant dense<0.000000e+00> : vector<160x40xf32>
    %570 = tpu.matmul %66, %569, %cst_210 {dimension_numbers = #tpu.dot_dimension_numbers<[1], [0], [0], [1], [0, 0, 1, 1], [], []>} : vector<160x8xbf16>, vector<8x40xbf16>, vector<160x40xf32> -> vector<160x40xf32>
    %571 = arith.truncf %570 : vector<160x40xf32> to vector<160x40xbf16>
    %572 = vector.extract_strided_slice %571 {offsets = [0, 0], sizes = [8, 40], strides = [1, 1]} : vector<160x40xbf16> to vector<8x40xbf16>
    %573 = vector.extract_strided_slice %571 {offsets = [8, 0], sizes = [8, 40], strides = [1, 1]} : vector<160x40xbf16> to vector<8x40xbf16>
    %574 = vector.extract_strided_slice %571 {offsets = [16, 0], sizes = [8, 40], strides = [1, 1]} : vector<160x40xbf16> to vector<8x40xbf16>
    %575 = vector.extract_strided_slice %571 {offsets = [24, 0], sizes = [8, 40], strides = [1, 1]} : vector<160x40xbf16> to vector<8x40xbf16>
    %576 = vector.extract_strided_slice %571 {offsets = [32, 0], sizes = [8, 40], strides = [1, 1]} : vector<160x40xbf16> to vector<8x40xbf16>
    %577 = vector.extract_strided_slice %571 {offsets = [40, 0], sizes = [8, 40], strides = [1, 1]} : vector<160x40xbf16> to vector<8x40xbf16>
    %578 = vector.extract_strided_slice %571 {offsets = [48, 0], sizes = [8, 40], strides = [1, 1]} : vector<160x40xbf16> to vector<8x40xbf16>
    %579 = vector.extract_strided_slice %571 {offsets = [56, 0], sizes = [8, 40], strides = [1, 1]} : vector<160x40xbf16> to vector<8x40xbf16>
    %580 = vector.extract_strided_slice %571 {offsets = [64, 0], sizes = [8, 40], strides = [1, 1]} : vector<160x40xbf16> to vector<8x40xbf16>
    %581 = vector.extract_strided_slice %571 {offsets = [72, 0], sizes = [8, 40], strides = [1, 1]} : vector<160x40xbf16> to vector<8x40xbf16>
    %582 = vector.extract_strided_slice %571 {offsets = [80, 0], sizes = [8, 40], strides = [1, 1]} : vector<160x40xbf16> to vector<8x40xbf16>
    %583 = vector.extract_strided_slice %571 {offsets = [88, 0], sizes = [8, 40], strides = [1, 1]} : vector<160x40xbf16> to vector<8x40xbf16>
    %584 = vector.extract_strided_slice %571 {offsets = [96, 0], sizes = [8, 40], strides = [1, 1]} : vector<160x40xbf16> to vector<8x40xbf16>
    %585 = vector.extract_strided_slice %571 {offsets = [104, 0], sizes = [8, 40], strides = [1, 1]} : vector<160x40xbf16> to vector<8x40xbf16>
    %586 = vector.extract_strided_slice %571 {offsets = [112, 0], sizes = [8, 40], strides = [1, 1]} : vector<160x40xbf16> to vector<8x40xbf16>
    %587 = vector.extract_strided_slice %571 {offsets = [120, 0], sizes = [8, 40], strides = [1, 1]} : vector<160x40xbf16> to vector<8x40xbf16>
    %588 = vector.extract_strided_slice %571 {offsets = [128, 0], sizes = [8, 40], strides = [1, 1]} : vector<160x40xbf16> to vector<8x40xbf16>
    %589 = vector.extract_strided_slice %571 {offsets = [136, 0], sizes = [8, 40], strides = [1, 1]} : vector<160x40xbf16> to vector<8x40xbf16>
    %590 = vector.extract_strided_slice %571 {offsets = [144, 0], sizes = [8, 40], strides = [1, 1]} : vector<160x40xbf16> to vector<8x40xbf16>
    %591 = vector.extract_strided_slice %571 {offsets = [152, 0], sizes = [8, 40], strides = [1, 1]} : vector<160x40xbf16> to vector<8x40xbf16>
    %592 = tpu.concatenate %572, %573, %574, %575, %576, %577, %578, %579, %580, %581, %582, %583, %584, %585, %586, %587 in 1 : vector<8x40xbf16>, vector<8x40xbf16>, vector<8x40xbf16>, vector<8x40xbf16>, vector<8x40xbf16>, vector<8x40xbf16>, vector<8x40xbf16>, vector<8x40xbf16>, vector<8x40xbf16>, vector<8x40xbf16>, vector<8x40xbf16>, vector<8x40xbf16>, vector<8x40xbf16>, vector<8x40xbf16>, vector<8x40xbf16>, vector<8x40xbf16> -> vector<8x640xbf16>
    %593 = tpu.concatenate %588, %589, %590, %591, %569 in 1 : vector<8x40xbf16>, vector<8x40xbf16>, vector<8x40xbf16>, vector<8x40xbf16>, vector<8x40xbf16> -> vector<8x200xbf16>
    %594 = tpu.concatenate %592, %593 in 1 : vector<8x640xbf16>, vector<8x200xbf16> -> vector<8x840xbf16>
    %c0_211 = arith.constant 0 : index
    %c0_212 = arith.constant 0 : index
    %595 = vector.load %arg16[%c0_211, %c0_212] : memref<840x80xbf16, #tpu.memory_space<vmem>>, vector<840x80xbf16>
    %cst_213 = arith.constant dense<0.000000e+00> : vector<8x80xf32>
    %596 = tpu.matmul %594, %595, %cst_213 {dimension_numbers = #tpu.dot_dimension_numbers<[1], [0], [0], [1], [0, 0, 1, 1], [], []>} : vector<8x840xbf16>, vector<840x80xbf16>, vector<8x80xf32> -> vector<8x80xf32>
    %c0_214 = arith.constant 0 : index
    %c0_215 = arith.constant 0 : index
    %597 = vector.load %arg17[%c0_214, %c0_215] : memref<1x80xf32, #tpu.memory_space<vmem>>, vector<1x80xf32>
    %598 = vector.broadcast %597 : vector<1x80xf32> to vector<8x80xf32>
    %599 = arith.addf %596, %598 : vector<8x80xf32>
    %600 = vector.extract_strided_slice %599 {offsets = [0, 0], sizes = [8, 60], strides = [1, 1]} : vector<8x80xf32> to vector<8x60xf32>
    %cst_216 = arith.constant 5.000000e-01 : f32
    %601 = vector.broadcast %cst_216 : f32 to vector<8x60xf32>
    %602 = arith.mulf %601, %600 : vector<8x60xf32>
    %603 = math.tanh %602 : vector<8x60xf32>
    %cst_217 = arith.constant 1.000000e+00 : f32
    %604 = vector.broadcast %cst_217 : f32 to vector<8x60xf32>
    %605 = arith.addf %603, %604 : vector<8x60xf32>
    %cst_218 = arith.constant 5.000000e-01 : f32
    %606 = vector.broadcast %cst_218 : f32 to vector<8x60xf32>
    %607 = arith.mulf %606, %605 : vector<8x60xf32>
    %608 = vector.extract_strided_slice %599 {offsets = [0, 60], sizes = [8, 20], strides = [1, 1]} : vector<8x80xf32> to vector<8x20xf32>
    %609 = math.tanh %608 : vector<8x20xf32>
    %610 = vector.extract_strided_slice %607 {offsets = [0, 0], sizes = [8, 20], strides = [1, 1]} : vector<8x60xf32> to vector<8x20xf32>
    %611 = vector.extract_strided_slice %607 {offsets = [0, 20], sizes = [8, 20], strides = [1, 1]} : vector<8x60xf32> to vector<8x20xf32>
    %612 = vector.extract_strided_slice %607 {offsets = [0, 40], sizes = [8, 20], strides = [1, 1]} : vector<8x60xf32> to vector<8x20xf32>
    %613 = arith.mulf %611, %464 : vector<8x20xf32>
    %614 = arith.mulf %610, %609 : vector<8x20xf32>
    %615 = arith.addf %613, %614 : vector<8x20xf32>
    %616 = math.tanh %615 : vector<8x20xf32>
    %617 = arith.mulf %612, %616 : vector<8x20xf32>
    %618 = vector.broadcast %172 : vector<1x20xf32> to vector<8x20xf32>
    %619 = arith.mulf %612, %618 : vector<8x20xf32>
    %cst_219 = arith.constant dense<0.000000e+00> : vector<8xf32>
    %620 = vector.multi_reduction <add>, %619, %cst_219 [1] : vector<8x20xf32> to vector<8xf32>
    %621 = vector.shape_cast %620 : vector<8xf32> to vector<8x1xf32>
    %622 = arith.addf %171, %621 : vector<8x1xf32>
    %623 = tpu.concatenate %622, %166 in 1 : vector<8x1xf32>, vector<8x7xf32> -> vector<8x8xf32>
    %624 = arith.truncf %623 : vector<8x8xf32> to vector<8x8xbf16>
    %cst_220 = arith.constant dense<0.000000e+00> : vector<160x8xf32>
    %625 = tpu.matmul %66, %624, %cst_220 {dimension_numbers = #tpu.dot_dimension_numbers<[1], [0], [0], [1], [0, 0, 1, 1], [], []>} : vector<160x8xbf16>, vector<8x8xbf16>, vector<160x8xf32> -> vector<160x8xf32>
    %626 = arith.truncf %625 : vector<160x8xf32> to vector<160x8xbf16>
    %627 = vector.extract_strided_slice %626 {offsets = [0, 0], sizes = [8, 8], strides = [1, 1]} : vector<160x8xbf16> to vector<8x8xbf16>
    %628 = vector.extract_strided_slice %626 {offsets = [8, 0], sizes = [8, 8], strides = [1, 1]} : vector<160x8xbf16> to vector<8x8xbf16>
    %629 = vector.extract_strided_slice %626 {offsets = [16, 0], sizes = [8, 8], strides = [1, 1]} : vector<160x8xbf16> to vector<8x8xbf16>
    %630 = vector.extract_strided_slice %626 {offsets = [24, 0], sizes = [8, 8], strides = [1, 1]} : vector<160x8xbf16> to vector<8x8xbf16>
    %631 = vector.extract_strided_slice %626 {offsets = [32, 0], sizes = [8, 8], strides = [1, 1]} : vector<160x8xbf16> to vector<8x8xbf16>
    %632 = vector.extract_strided_slice %626 {offsets = [40, 0], sizes = [8, 8], strides = [1, 1]} : vector<160x8xbf16> to vector<8x8xbf16>
    %633 = vector.extract_strided_slice %626 {offsets = [48, 0], sizes = [8, 8], strides = [1, 1]} : vector<160x8xbf16> to vector<8x8xbf16>
    %634 = vector.extract_strided_slice %626 {offsets = [56, 0], sizes = [8, 8], strides = [1, 1]} : vector<160x8xbf16> to vector<8x8xbf16>
    %635 = vector.extract_strided_slice %626 {offsets = [64, 0], sizes = [8, 8], strides = [1, 1]} : vector<160x8xbf16> to vector<8x8xbf16>
    %636 = vector.extract_strided_slice %626 {offsets = [72, 0], sizes = [8, 8], strides = [1, 1]} : vector<160x8xbf16> to vector<8x8xbf16>
    %637 = vector.extract_strided_slice %626 {offsets = [80, 0], sizes = [8, 8], strides = [1, 1]} : vector<160x8xbf16> to vector<8x8xbf16>
    %638 = vector.extract_strided_slice %626 {offsets = [88, 0], sizes = [8, 8], strides = [1, 1]} : vector<160x8xbf16> to vector<8x8xbf16>
    %639 = vector.extract_strided_slice %626 {offsets = [96, 0], sizes = [8, 8], strides = [1, 1]} : vector<160x8xbf16> to vector<8x8xbf16>
    %640 = vector.extract_strided_slice %626 {offsets = [104, 0], sizes = [8, 8], strides = [1, 1]} : vector<160x8xbf16> to vector<8x8xbf16>
    %641 = vector.extract_strided_slice %626 {offsets = [112, 0], sizes = [8, 8], strides = [1, 1]} : vector<160x8xbf16> to vector<8x8xbf16>
    %642 = vector.extract_strided_slice %626 {offsets = [120, 0], sizes = [8, 8], strides = [1, 1]} : vector<160x8xbf16> to vector<8x8xbf16>
    %643 = vector.extract_strided_slice %626 {offsets = [128, 0], sizes = [8, 8], strides = [1, 1]} : vector<160x8xbf16> to vector<8x8xbf16>
    %644 = vector.extract_strided_slice %626 {offsets = [136, 0], sizes = [8, 8], strides = [1, 1]} : vector<160x8xbf16> to vector<8x8xbf16>
    %645 = vector.extract_strided_slice %626 {offsets = [144, 0], sizes = [8, 8], strides = [1, 1]} : vector<160x8xbf16> to vector<8x8xbf16>
    %646 = vector.extract_strided_slice %626 {offsets = [152, 0], sizes = [8, 8], strides = [1, 1]} : vector<160x8xbf16> to vector<8x8xbf16>
    %647 = tpu.concatenate %627, %628, %629, %630, %631, %632, %633, %634, %635, %636, %637, %638, %639, %640, %641, %642 in 1 : vector<8x8xbf16>, vector<8x8xbf16>, vector<8x8xbf16>, vector<8x8xbf16>, vector<8x8xbf16>, vector<8x8xbf16>, vector<8x8xbf16>, vector<8x8xbf16>, vector<8x8xbf16>, vector<8x8xbf16>, vector<8x8xbf16>, vector<8x8xbf16>, vector<8x8xbf16>, vector<8x8xbf16>, vector<8x8xbf16>, vector<8x8xbf16> -> vector<8x128xbf16>
    %648 = tpu.concatenate %643, %644, %645, %646, %624 in 1 : vector<8x8xbf16>, vector<8x8xbf16>, vector<8x8xbf16>, vector<8x8xbf16>, vector<8x8xbf16> -> vector<8x40xbf16>
    %649 = tpu.concatenate %647, %648 in 1 : vector<8x128xbf16>, vector<8x40xbf16> -> vector<8x168xbf16>
    %c0_221 = arith.constant 0 : index
    %c0_222 = arith.constant 0 : index
    %650 = vector.load %arg12[%c0_221, %c0_222] : memref<168x20xbf16, #tpu.memory_space<vmem>>, vector<168x20xbf16>
    %cst_223 = arith.constant dense<0.000000e+00> : vector<8x20xf32>
    %651 = tpu.matmul %649, %650, %cst_223 {dimension_numbers = #tpu.dot_dimension_numbers<[1], [0], [0], [1], [0, 0, 1, 1], [], []>} : vector<8x168xbf16>, vector<168x20xbf16>, vector<8x20xf32> -> vector<8x20xf32>
    %c0_224 = arith.constant 0 : index
    %c0_225 = arith.constant 0 : index
    %652 = vector.load %arg13[%c0_224, %c0_225] : memref<1x20xf32, #tpu.memory_space<vmem>>, vector<1x20xf32>
    %653 = vector.broadcast %652 : vector<1x20xf32> to vector<8x20xf32>
    %654 = arith.addf %651, %653 : vector<8x20xf32>
    %cst_226 = arith.constant 0.000000e+00 : f32
    %655 = vector.broadcast %cst_226 : f32 to vector<8x20xf32>
    %656 = arith.maximumf %654, %655 : vector<8x20xf32>
    %657 = math.absf %654 : vector<8x20xf32>
    %cst_227 = arith.constant 0.000000e+00 : f32
    %658 = vector.broadcast %cst_227 : f32 to vector<8x20xf32>
    %659 = arith.subf %658, %657 : vector<8x20xf32>
    %660 = math.exp %659 : vector<8x20xf32>
    %cst_228 = arith.constant 1.000000e+00 : f32
    %661 = vector.broadcast %cst_228 : f32 to vector<8x20xf32>
    %662 = arith.addf %661, %660 : vector<8x20xf32>
    %663 = math.log %662 : vector<8x20xf32>
    %664 = arith.addf %656, %663 : vector<8x20xf32>
    %665 = arith.truncf %664 : vector<8x20xf32> to vector<8x20xbf16>
    %c0_229 = arith.constant 0 : index
    %c0_230 = arith.constant 0 : index
    %c0_231 = arith.constant 0 : index
    %666 = vector.load %arg14[%c0_229, %c0_230, %c0_231] : memref<3x20x20xbf16, #tpu.memory_space<vmem>>, vector<1x20x20xbf16>
    %667 = vector.shape_cast %666 : vector<1x20x20xbf16> to vector<20x20xbf16>
    %cst_232 = arith.constant dense<0.000000e+00> : vector<8x20xf32>
    %668 = tpu.matmul %665, %667, %cst_232 {dimension_numbers = #tpu.dot_dimension_numbers<[1], [0], [0], [1], [0, 0, 1, 1], [], []>} : vector<8x20xbf16>, vector<20x20xbf16>, vector<8x20xf32> -> vector<8x20xf32>
    %c0_233 = arith.constant 0 : index
    %c0_234 = arith.constant 0 : index
    %c0_235 = arith.constant 0 : index
    %669 = vector.load %arg15[%c0_233, %c0_234, %c0_235] : memref<3x1x20xf32, #tpu.memory_space<vmem>>, vector<1x1x20xf32>
    %670 = vector.shape_cast %669 : vector<1x1x20xf32> to vector<1x20xf32>
    %671 = vector.broadcast %670 : vector<1x20xf32> to vector<8x20xf32>
    %672 = arith.addf %668, %671 : vector<8x20xf32>
    %cst_236 = arith.constant 0.000000e+00 : f32
    %673 = vector.broadcast %cst_236 : f32 to vector<8x20xf32>
    %674 = arith.maximumf %672, %673 : vector<8x20xf32>
    %675 = math.absf %672 : vector<8x20xf32>
    %cst_237 = arith.constant 0.000000e+00 : f32
    %676 = vector.broadcast %cst_237 : f32 to vector<8x20xf32>
    %677 = arith.subf %676, %675 : vector<8x20xf32>
    %678 = math.exp %677 : vector<8x20xf32>
    %cst_238 = arith.constant 1.000000e+00 : f32
    %679 = vector.broadcast %cst_238 : f32 to vector<8x20xf32>
    %680 = arith.addf %679, %678 : vector<8x20xf32>
    %681 = math.log %680 : vector<8x20xf32>
    %682 = arith.addf %674, %681 : vector<8x20xf32>
    %683 = arith.truncf %682 : vector<8x20xf32> to vector<8x20xbf16>
    %c1_239 = arith.constant 1 : index
    %c0_240 = arith.constant 0 : index
    %c0_241 = arith.constant 0 : index
    %684 = vector.load %arg14[%c1_239, %c0_240, %c0_241] : memref<3x20x20xbf16, #tpu.memory_space<vmem>>, vector<1x20x20xbf16>
    %685 = vector.shape_cast %684 : vector<1x20x20xbf16> to vector<20x20xbf16>
    %cst_242 = arith.constant dense<0.000000e+00> : vector<8x20xf32>
    %686 = tpu.matmul %683, %685, %cst_242 {dimension_numbers = #tpu.dot_dimension_numbers<[1], [0], [0], [1], [0, 0, 1, 1], [], []>} : vector<8x20xbf16>, vector<20x20xbf16>, vector<8x20xf32> -> vector<8x20xf32>
    %c1_243 = arith.constant 1 : index
    %c0_244 = arith.constant 0 : index
    %c0_245 = arith.constant 0 : index
    %687 = vector.load %arg15[%c1_243, %c0_244, %c0_245] : memref<3x1x20xf32, #tpu.memory_space<vmem>>, vector<1x1x20xf32>
    %688 = vector.shape_cast %687 : vector<1x1x20xf32> to vector<1x20xf32>
    %689 = vector.broadcast %688 : vector<1x20xf32> to vector<8x20xf32>
    %690 = arith.addf %686, %689 : vector<8x20xf32>
    %cst_246 = arith.constant 0.000000e+00 : f32
    %691 = vector.broadcast %cst_246 : f32 to vector<8x20xf32>
    %692 = arith.maximumf %690, %691 : vector<8x20xf32>
    %693 = math.absf %690 : vector<8x20xf32>
    %cst_247 = arith.constant 0.000000e+00 : f32
    %694 = vector.broadcast %cst_247 : f32 to vector<8x20xf32>
    %695 = arith.subf %694, %693 : vector<8x20xf32>
    %696 = math.exp %695 : vector<8x20xf32>
    %cst_248 = arith.constant 1.000000e+00 : f32
    %697 = vector.broadcast %cst_248 : f32 to vector<8x20xf32>
    %698 = arith.addf %697, %696 : vector<8x20xf32>
    %699 = math.log %698 : vector<8x20xf32>
    %700 = arith.addf %692, %699 : vector<8x20xf32>
    %701 = arith.truncf %700 : vector<8x20xf32> to vector<8x20xbf16>
    %c2_249 = arith.constant 2 : index
    %c0_250 = arith.constant 0 : index
    %c0_251 = arith.constant 0 : index
    %702 = vector.load %arg14[%c2_249, %c0_250, %c0_251] : memref<3x20x20xbf16, #tpu.memory_space<vmem>>, vector<1x20x20xbf16>
    %703 = vector.shape_cast %702 : vector<1x20x20xbf16> to vector<20x20xbf16>
    %cst_252 = arith.constant dense<0.000000e+00> : vector<8x20xf32>
    %704 = tpu.matmul %701, %703, %cst_252 {dimension_numbers = #tpu.dot_dimension_numbers<[1], [0], [0], [1], [0, 0, 1, 1], [], []>} : vector<8x20xbf16>, vector<20x20xbf16>, vector<8x20xf32> -> vector<8x20xf32>
    %c2_253 = arith.constant 2 : index
    %c0_254 = arith.constant 0 : index
    %c0_255 = arith.constant 0 : index
    %705 = vector.load %arg15[%c2_253, %c0_254, %c0_255] : memref<3x1x20xf32, #tpu.memory_space<vmem>>, vector<1x1x20xf32>
    %706 = vector.shape_cast %705 : vector<1x1x20xf32> to vector<1x20xf32>
    %707 = vector.broadcast %706 : vector<1x20xf32> to vector<8x20xf32>
    %708 = arith.addf %704, %707 : vector<8x20xf32>
    %cst_256 = arith.constant 0.000000e+00 : f32
    %709 = vector.broadcast %cst_256 : f32 to vector<8x20xf32>
    %710 = arith.maximumf %708, %709 : vector<8x20xf32>
    %711 = math.absf %708 : vector<8x20xf32>
    %cst_257 = arith.constant 0.000000e+00 : f32
    %712 = vector.broadcast %cst_257 : f32 to vector<8x20xf32>
    %713 = arith.subf %712, %711 : vector<8x20xf32>
    %714 = math.exp %713 : vector<8x20xf32>
    %cst_258 = arith.constant 1.000000e+00 : f32
    %715 = vector.broadcast %cst_258 : f32 to vector<8x20xf32>
    %716 = arith.addf %715, %714 : vector<8x20xf32>
    %717 = math.log %716 : vector<8x20xf32>
    %718 = arith.addf %710, %717 : vector<8x20xf32>
    %719 = tpu.concatenate %718, %617 in 1 : vector<8x20xf32>, vector<8x20xf32> -> vector<8x40xf32>
    %720 = arith.truncf %719 : vector<8x40xf32> to vector<8x40xbf16>
    %cst_259 = arith.constant dense<0.000000e+00> : vector<160x40xf32>
    %721 = tpu.matmul %66, %720, %cst_259 {dimension_numbers = #tpu.dot_dimension_numbers<[1], [0], [0], [1], [0, 0, 1, 1], [], []>} : vector<160x8xbf16>, vector<8x40xbf16>, vector<160x40xf32> -> vector<160x40xf32>
    %722 = arith.truncf %721 : vector<160x40xf32> to vector<160x40xbf16>
    %723 = vector.extract_strided_slice %722 {offsets = [0, 0], sizes = [8, 40], strides = [1, 1]} : vector<160x40xbf16> to vector<8x40xbf16>
    %724 = vector.extract_strided_slice %722 {offsets = [8, 0], sizes = [8, 40], strides = [1, 1]} : vector<160x40xbf16> to vector<8x40xbf16>
    %725 = vector.extract_strided_slice %722 {offsets = [16, 0], sizes = [8, 40], strides = [1, 1]} : vector<160x40xbf16> to vector<8x40xbf16>
    %726 = vector.extract_strided_slice %722 {offsets = [24, 0], sizes = [8, 40], strides = [1, 1]} : vector<160x40xbf16> to vector<8x40xbf16>
    %727 = vector.extract_strided_slice %722 {offsets = [32, 0], sizes = [8, 40], strides = [1, 1]} : vector<160x40xbf16> to vector<8x40xbf16>
    %728 = vector.extract_strided_slice %722 {offsets = [40, 0], sizes = [8, 40], strides = [1, 1]} : vector<160x40xbf16> to vector<8x40xbf16>
    %729 = vector.extract_strided_slice %722 {offsets = [48, 0], sizes = [8, 40], strides = [1, 1]} : vector<160x40xbf16> to vector<8x40xbf16>
    %730 = vector.extract_strided_slice %722 {offsets = [56, 0], sizes = [8, 40], strides = [1, 1]} : vector<160x40xbf16> to vector<8x40xbf16>
    %731 = vector.extract_strided_slice %722 {offsets = [64, 0], sizes = [8, 40], strides = [1, 1]} : vector<160x40xbf16> to vector<8x40xbf16>
    %732 = vector.extract_strided_slice %722 {offsets = [72, 0], sizes = [8, 40], strides = [1, 1]} : vector<160x40xbf16> to vector<8x40xbf16>
    %733 = vector.extract_strided_slice %722 {offsets = [80, 0], sizes = [8, 40], strides = [1, 1]} : vector<160x40xbf16> to vector<8x40xbf16>
    %734 = vector.extract_strided_slice %722 {offsets = [88, 0], sizes = [8, 40], strides = [1, 1]} : vector<160x40xbf16> to vector<8x40xbf16>
    %735 = vector.extract_strided_slice %722 {offsets = [96, 0], sizes = [8, 40], strides = [1, 1]} : vector<160x40xbf16> to vector<8x40xbf16>
    %736 = vector.extract_strided_slice %722 {offsets = [104, 0], sizes = [8, 40], strides = [1, 1]} : vector<160x40xbf16> to vector<8x40xbf16>
    %737 = vector.extract_strided_slice %722 {offsets = [112, 0], sizes = [8, 40], strides = [1, 1]} : vector<160x40xbf16> to vector<8x40xbf16>
    %738 = vector.extract_strided_slice %722 {offsets = [120, 0], sizes = [8, 40], strides = [1, 1]} : vector<160x40xbf16> to vector<8x40xbf16>
    %739 = vector.extract_strided_slice %722 {offsets = [128, 0], sizes = [8, 40], strides = [1, 1]} : vector<160x40xbf16> to vector<8x40xbf16>
    %740 = vector.extract_strided_slice %722 {offsets = [136, 0], sizes = [8, 40], strides = [1, 1]} : vector<160x40xbf16> to vector<8x40xbf16>
    %741 = vector.extract_strided_slice %722 {offsets = [144, 0], sizes = [8, 40], strides = [1, 1]} : vector<160x40xbf16> to vector<8x40xbf16>
    %742 = vector.extract_strided_slice %722 {offsets = [152, 0], sizes = [8, 40], strides = [1, 1]} : vector<160x40xbf16> to vector<8x40xbf16>
    %743 = tpu.concatenate %723, %724, %725, %726, %727, %728, %729, %730, %731, %732, %733, %734, %735, %736, %737, %738 in 1 : vector<8x40xbf16>, vector<8x40xbf16>, vector<8x40xbf16>, vector<8x40xbf16>, vector<8x40xbf16>, vector<8x40xbf16>, vector<8x40xbf16>, vector<8x40xbf16>, vector<8x40xbf16>, vector<8x40xbf16>, vector<8x40xbf16>, vector<8x40xbf16>, vector<8x40xbf16>, vector<8x40xbf16>, vector<8x40xbf16>, vector<8x40xbf16> -> vector<8x640xbf16>
    %744 = tpu.concatenate %739, %740, %741, %742, %720 in 1 : vector<8x40xbf16>, vector<8x40xbf16>, vector<8x40xbf16>, vector<8x40xbf16>, vector<8x40xbf16> -> vector<8x200xbf16>
    %745 = tpu.concatenate %743, %744 in 1 : vector<8x640xbf16>, vector<8x200xbf16> -> vector<8x840xbf16>
    %c0_260 = arith.constant 0 : index
    %c0_261 = arith.constant 0 : index
    %746 = vector.load %arg16[%c0_260, %c0_261] : memref<840x80xbf16, #tpu.memory_space<vmem>>, vector<840x80xbf16>
    %cst_262 = arith.constant dense<0.000000e+00> : vector<8x80xf32>
    %747 = tpu.matmul %745, %746, %cst_262 {dimension_numbers = #tpu.dot_dimension_numbers<[1], [0], [0], [1], [0, 0, 1, 1], [], []>} : vector<8x840xbf16>, vector<840x80xbf16>, vector<8x80xf32> -> vector<8x80xf32>
    %c0_263 = arith.constant 0 : index
    %c0_264 = arith.constant 0 : index
    %748 = vector.load %arg17[%c0_263, %c0_264] : memref<1x80xf32, #tpu.memory_space<vmem>>, vector<1x80xf32>
    %749 = vector.broadcast %748 : vector<1x80xf32> to vector<8x80xf32>
    %750 = arith.addf %747, %749 : vector<8x80xf32>
    %751 = vector.extract_strided_slice %750 {offsets = [0, 0], sizes = [8, 60], strides = [1, 1]} : vector<8x80xf32> to vector<8x60xf32>
    %cst_265 = arith.constant 5.000000e-01 : f32
    %752 = vector.broadcast %cst_265 : f32 to vector<8x60xf32>
    %753 = arith.mulf %752, %751 : vector<8x60xf32>
    %754 = math.tanh %753 : vector<8x60xf32>
    %cst_266 = arith.constant 1.000000e+00 : f32
    %755 = vector.broadcast %cst_266 : f32 to vector<8x60xf32>
    %756 = arith.addf %754, %755 : vector<8x60xf32>
    %cst_267 = arith.constant 5.000000e-01 : f32
    %757 = vector.broadcast %cst_267 : f32 to vector<8x60xf32>
    %758 = arith.mulf %757, %756 : vector<8x60xf32>
    %759 = vector.extract_strided_slice %750 {offsets = [0, 60], sizes = [8, 20], strides = [1, 1]} : vector<8x80xf32> to vector<8x20xf32>
    %760 = math.tanh %759 : vector<8x20xf32>
    %761 = vector.extract_strided_slice %758 {offsets = [0, 0], sizes = [8, 20], strides = [1, 1]} : vector<8x60xf32> to vector<8x20xf32>
    %762 = vector.extract_strided_slice %758 {offsets = [0, 20], sizes = [8, 20], strides = [1, 1]} : vector<8x60xf32> to vector<8x20xf32>
    %763 = vector.extract_strided_slice %758 {offsets = [0, 40], sizes = [8, 20], strides = [1, 1]} : vector<8x60xf32> to vector<8x20xf32>
    %764 = arith.mulf %762, %615 : vector<8x20xf32>
    %765 = arith.mulf %761, %760 : vector<8x20xf32>
    %766 = arith.addf %764, %765 : vector<8x20xf32>
    %767 = math.tanh %766 : vector<8x20xf32>
    %768 = arith.mulf %763, %767 : vector<8x20xf32>
    %769 = vector.broadcast %172 : vector<1x20xf32> to vector<8x20xf32>
    %770 = arith.mulf %763, %769 : vector<8x20xf32>
    %cst_268 = arith.constant dense<0.000000e+00> : vector<8xf32>
    %771 = vector.multi_reduction <add>, %770, %cst_268 [1] : vector<8x20xf32> to vector<8xf32>
    %772 = vector.shape_cast %771 : vector<8xf32> to vector<8x1xf32>
    %773 = arith.addf %171, %772 : vector<8x1xf32>
    %774 = tpu.concatenate %773, %166 in 1 : vector<8x1xf32>, vector<8x7xf32> -> vector<8x8xf32>
    %775 = arith.truncf %774 : vector<8x8xf32> to vector<8x8xbf16>
    %cst_269 = arith.constant dense<0.000000e+00> : vector<160x8xf32>
    %776 = tpu.matmul %66, %775, %cst_269 {dimension_numbers = #tpu.dot_dimension_numbers<[1], [0], [0], [1], [0, 0, 1, 1], [], []>} : vector<160x8xbf16>, vector<8x8xbf16>, vector<160x8xf32> -> vector<160x8xf32>
    %777 = arith.truncf %776 : vector<160x8xf32> to vector<160x8xbf16>
    %778 = vector.extract_strided_slice %777 {offsets = [0, 0], sizes = [8, 8], strides = [1, 1]} : vector<160x8xbf16> to vector<8x8xbf16>
    %779 = vector.extract_strided_slice %777 {offsets = [8, 0], sizes = [8, 8], strides = [1, 1]} : vector<160x8xbf16> to vector<8x8xbf16>
    %780 = vector.extract_strided_slice %777 {offsets = [16, 0], sizes = [8, 8], strides = [1, 1]} : vector<160x8xbf16> to vector<8x8xbf16>
    %781 = vector.extract_strided_slice %777 {offsets = [24, 0], sizes = [8, 8], strides = [1, 1]} : vector<160x8xbf16> to vector<8x8xbf16>
    %782 = vector.extract_strided_slice %777 {offsets = [32, 0], sizes = [8, 8], strides = [1, 1]} : vector<160x8xbf16> to vector<8x8xbf16>
    %783 = vector.extract_strided_slice %777 {offsets = [40, 0], sizes = [8, 8], strides = [1, 1]} : vector<160x8xbf16> to vector<8x8xbf16>
    %784 = vector.extract_strided_slice %777 {offsets = [48, 0], sizes = [8, 8], strides = [1, 1]} : vector<160x8xbf16> to vector<8x8xbf16>
    %785 = vector.extract_strided_slice %777 {offsets = [56, 0], sizes = [8, 8], strides = [1, 1]} : vector<160x8xbf16> to vector<8x8xbf16>
    %786 = vector.extract_strided_slice %777 {offsets = [64, 0], sizes = [8, 8], strides = [1, 1]} : vector<160x8xbf16> to vector<8x8xbf16>
    %787 = vector.extract_strided_slice %777 {offsets = [72, 0], sizes = [8, 8], strides = [1, 1]} : vector<160x8xbf16> to vector<8x8xbf16>
    %788 = vector.extract_strided_slice %777 {offsets = [80, 0], sizes = [8, 8], strides = [1, 1]} : vector<160x8xbf16> to vector<8x8xbf16>
    %789 = vector.extract_strided_slice %777 {offsets = [88, 0], sizes = [8, 8], strides = [1, 1]} : vector<160x8xbf16> to vector<8x8xbf16>
    %790 = vector.extract_strided_slice %777 {offsets = [96, 0], sizes = [8, 8], strides = [1, 1]} : vector<160x8xbf16> to vector<8x8xbf16>
    %791 = vector.extract_strided_slice %777 {offsets = [104, 0], sizes = [8, 8], strides = [1, 1]} : vector<160x8xbf16> to vector<8x8xbf16>
    %792 = vector.extract_strided_slice %777 {offsets = [112, 0], sizes = [8, 8], strides = [1, 1]} : vector<160x8xbf16> to vector<8x8xbf16>
    %793 = vector.extract_strided_slice %777 {offsets = [120, 0], sizes = [8, 8], strides = [1, 1]} : vector<160x8xbf16> to vector<8x8xbf16>
    %794 = vector.extract_strided_slice %777 {offsets = [128, 0], sizes = [8, 8], strides = [1, 1]} : vector<160x8xbf16> to vector<8x8xbf16>
    %795 = vector.extract_strided_slice %777 {offsets = [136, 0], sizes = [8, 8], strides = [1, 1]} : vector<160x8xbf16> to vector<8x8xbf16>
    %796 = vector.extract_strided_slice %777 {offsets = [144, 0], sizes = [8, 8], strides = [1, 1]} : vector<160x8xbf16> to vector<8x8xbf16>
    %797 = vector.extract_strided_slice %777 {offsets = [152, 0], sizes = [8, 8], strides = [1, 1]} : vector<160x8xbf16> to vector<8x8xbf16>
    %798 = tpu.concatenate %778, %779, %780, %781, %782, %783, %784, %785, %786, %787, %788, %789, %790, %791, %792, %793 in 1 : vector<8x8xbf16>, vector<8x8xbf16>, vector<8x8xbf16>, vector<8x8xbf16>, vector<8x8xbf16>, vector<8x8xbf16>, vector<8x8xbf16>, vector<8x8xbf16>, vector<8x8xbf16>, vector<8x8xbf16>, vector<8x8xbf16>, vector<8x8xbf16>, vector<8x8xbf16>, vector<8x8xbf16>, vector<8x8xbf16>, vector<8x8xbf16> -> vector<8x128xbf16>
    %799 = tpu.concatenate %794, %795, %796, %797, %775 in 1 : vector<8x8xbf16>, vector<8x8xbf16>, vector<8x8xbf16>, vector<8x8xbf16>, vector<8x8xbf16> -> vector<8x40xbf16>
    %800 = tpu.concatenate %798, %799 in 1 : vector<8x128xbf16>, vector<8x40xbf16> -> vector<8x168xbf16>
    %c0_270 = arith.constant 0 : index
    %c0_271 = arith.constant 0 : index
    %801 = vector.load %arg12[%c0_270, %c0_271] : memref<168x20xbf16, #tpu.memory_space<vmem>>, vector<168x20xbf16>
    %cst_272 = arith.constant dense<0.000000e+00> : vector<8x20xf32>
    %802 = tpu.matmul %800, %801, %cst_272 {dimension_numbers = #tpu.dot_dimension_numbers<[1], [0], [0], [1], [0, 0, 1, 1], [], []>} : vector<8x168xbf16>, vector<168x20xbf16>, vector<8x20xf32> -> vector<8x20xf32>
    %c0_273 = arith.constant 0 : index
    %c0_274 = arith.constant 0 : index
    %803 = vector.load %arg13[%c0_273, %c0_274] : memref<1x20xf32, #tpu.memory_space<vmem>>, vector<1x20xf32>
    %804 = vector.broadcast %803 : vector<1x20xf32> to vector<8x20xf32>
    %805 = arith.addf %802, %804 : vector<8x20xf32>
    %cst_275 = arith.constant 0.000000e+00 : f32
    %806 = vector.broadcast %cst_275 : f32 to vector<8x20xf32>
    %807 = arith.maximumf %805, %806 : vector<8x20xf32>
    %808 = math.absf %805 : vector<8x20xf32>
    %cst_276 = arith.constant 0.000000e+00 : f32
    %809 = vector.broadcast %cst_276 : f32 to vector<8x20xf32>
    %810 = arith.subf %809, %808 : vector<8x20xf32>
    %811 = math.exp %810 : vector<8x20xf32>
    %cst_277 = arith.constant 1.000000e+00 : f32
    %812 = vector.broadcast %cst_277 : f32 to vector<8x20xf32>
    %813 = arith.addf %812, %811 : vector<8x20xf32>
    %814 = math.log %813 : vector<8x20xf32>
    %815 = arith.addf %807, %814 : vector<8x20xf32>
    %816 = arith.truncf %815 : vector<8x20xf32> to vector<8x20xbf16>
    %c0_278 = arith.constant 0 : index
    %c0_279 = arith.constant 0 : index
    %c0_280 = arith.constant 0 : index
    %817 = vector.load %arg14[%c0_278, %c0_279, %c0_280] : memref<3x20x20xbf16, #tpu.memory_space<vmem>>, vector<1x20x20xbf16>
    %818 = vector.shape_cast %817 : vector<1x20x20xbf16> to vector<20x20xbf16>
    %cst_281 = arith.constant dense<0.000000e+00> : vector<8x20xf32>
    %819 = tpu.matmul %816, %818, %cst_281 {dimension_numbers = #tpu.dot_dimension_numbers<[1], [0], [0], [1], [0, 0, 1, 1], [], []>} : vector<8x20xbf16>, vector<20x20xbf16>, vector<8x20xf32> -> vector<8x20xf32>
    %c0_282 = arith.constant 0 : index
    %c0_283 = arith.constant 0 : index
    %c0_284 = arith.constant 0 : index
    %820 = vector.load %arg15[%c0_282, %c0_283, %c0_284] : memref<3x1x20xf32, #tpu.memory_space<vmem>>, vector<1x1x20xf32>
    %821 = vector.shape_cast %820 : vector<1x1x20xf32> to vector<1x20xf32>
    %822 = vector.broadcast %821 : vector<1x20xf32> to vector<8x20xf32>
    %823 = arith.addf %819, %822 : vector<8x20xf32>
    %cst_285 = arith.constant 0.000000e+00 : f32
    %824 = vector.broadcast %cst_285 : f32 to vector<8x20xf32>
    %825 = arith.maximumf %823, %824 : vector<8x20xf32>
    %826 = math.absf %823 : vector<8x20xf32>
    %cst_286 = arith.constant 0.000000e+00 : f32
    %827 = vector.broadcast %cst_286 : f32 to vector<8x20xf32>
    %828 = arith.subf %827, %826 : vector<8x20xf32>
    %829 = math.exp %828 : vector<8x20xf32>
    %cst_287 = arith.constant 1.000000e+00 : f32
    %830 = vector.broadcast %cst_287 : f32 to vector<8x20xf32>
    %831 = arith.addf %830, %829 : vector<8x20xf32>
    %832 = math.log %831 : vector<8x20xf32>
    %833 = arith.addf %825, %832 : vector<8x20xf32>
    %834 = arith.truncf %833 : vector<8x20xf32> to vector<8x20xbf16>
    %c1_288 = arith.constant 1 : index
    %c0_289 = arith.constant 0 : index
    %c0_290 = arith.constant 0 : index
    %835 = vector.load %arg14[%c1_288, %c0_289, %c0_290] : memref<3x20x20xbf16, #tpu.memory_space<vmem>>, vector<1x20x20xbf16>
    %836 = vector.shape_cast %835 : vector<1x20x20xbf16> to vector<20x20xbf16>
    %cst_291 = arith.constant dense<0.000000e+00> : vector<8x20xf32>
    %837 = tpu.matmul %834, %836, %cst_291 {dimension_numbers = #tpu.dot_dimension_numbers<[1], [0], [0], [1], [0, 0, 1, 1], [], []>} : vector<8x20xbf16>, vector<20x20xbf16>, vector<8x20xf32> -> vector<8x20xf32>
    %c1_292 = arith.constant 1 : index
    %c0_293 = arith.constant 0 : index
    %c0_294 = arith.constant 0 : index
    %838 = vector.load %arg15[%c1_292, %c0_293, %c0_294] : memref<3x1x20xf32, #tpu.memory_space<vmem>>, vector<1x1x20xf32>
    %839 = vector.shape_cast %838 : vector<1x1x20xf32> to vector<1x20xf32>
    %840 = vector.broadcast %839 : vector<1x20xf32> to vector<8x20xf32>
    %841 = arith.addf %837, %840 : vector<8x20xf32>
    %cst_295 = arith.constant 0.000000e+00 : f32
    %842 = vector.broadcast %cst_295 : f32 to vector<8x20xf32>
    %843 = arith.maximumf %841, %842 : vector<8x20xf32>
    %844 = math.absf %841 : vector<8x20xf32>
    %cst_296 = arith.constant 0.000000e+00 : f32
    %845 = vector.broadcast %cst_296 : f32 to vector<8x20xf32>
    %846 = arith.subf %845, %844 : vector<8x20xf32>
    %847 = math.exp %846 : vector<8x20xf32>
    %cst_297 = arith.constant 1.000000e+00 : f32
    %848 = vector.broadcast %cst_297 : f32 to vector<8x20xf32>
    %849 = arith.addf %848, %847 : vector<8x20xf32>
    %850 = math.log %849 : vector<8x20xf32>
    %851 = arith.addf %843, %850 : vector<8x20xf32>
    %852 = arith.truncf %851 : vector<8x20xf32> to vector<8x20xbf16>
    %c2_298 = arith.constant 2 : index
    %c0_299 = arith.constant 0 : index
    %c0_300 = arith.constant 0 : index
    %853 = vector.load %arg14[%c2_298, %c0_299, %c0_300] : memref<3x20x20xbf16, #tpu.memory_space<vmem>>, vector<1x20x20xbf16>
    %854 = vector.shape_cast %853 : vector<1x20x20xbf16> to vector<20x20xbf16>
    %cst_301 = arith.constant dense<0.000000e+00> : vector<8x20xf32>
    %855 = tpu.matmul %852, %854, %cst_301 {dimension_numbers = #tpu.dot_dimension_numbers<[1], [0], [0], [1], [0, 0, 1, 1], [], []>} : vector<8x20xbf16>, vector<20x20xbf16>, vector<8x20xf32> -> vector<8x20xf32>
    %c2_302 = arith.constant 2 : index
    %c0_303 = arith.constant 0 : index
    %c0_304 = arith.constant 0 : index
    %856 = vector.load %arg15[%c2_302, %c0_303, %c0_304] : memref<3x1x20xf32, #tpu.memory_space<vmem>>, vector<1x1x20xf32>
    %857 = vector.shape_cast %856 : vector<1x1x20xf32> to vector<1x20xf32>
    %858 = vector.broadcast %857 : vector<1x20xf32> to vector<8x20xf32>
    %859 = arith.addf %855, %858 : vector<8x20xf32>
    %cst_305 = arith.constant 0.000000e+00 : f32
    %860 = vector.broadcast %cst_305 : f32 to vector<8x20xf32>
    %861 = arith.maximumf %859, %860 : vector<8x20xf32>
    %862 = math.absf %859 : vector<8x20xf32>
    %cst_306 = arith.constant 0.000000e+00 : f32
    %863 = vector.broadcast %cst_306 : f32 to vector<8x20xf32>
    %864 = arith.subf %863, %862 : vector<8x20xf32>
    %865 = math.exp %864 : vector<8x20xf32>
    %cst_307 = arith.constant 1.000000e+00 : f32
    %866 = vector.broadcast %cst_307 : f32 to vector<8x20xf32>
    %867 = arith.addf %866, %865 : vector<8x20xf32>
    %868 = math.log %867 : vector<8x20xf32>
    %869 = arith.addf %861, %868 : vector<8x20xf32>
    %870 = tpu.concatenate %869, %768 in 1 : vector<8x20xf32>, vector<8x20xf32> -> vector<8x40xf32>
    %871 = arith.truncf %870 : vector<8x40xf32> to vector<8x40xbf16>
    %cst_308 = arith.constant dense<0.000000e+00> : vector<160x40xf32>
    %872 = tpu.matmul %66, %871, %cst_308 {dimension_numbers = #tpu.dot_dimension_numbers<[1], [0], [0], [1], [0, 0, 1, 1], [], []>} : vector<160x8xbf16>, vector<8x40xbf16>, vector<160x40xf32> -> vector<160x40xf32>
    %873 = arith.truncf %872 : vector<160x40xf32> to vector<160x40xbf16>
    %874 = vector.extract_strided_slice %873 {offsets = [0, 0], sizes = [8, 40], strides = [1, 1]} : vector<160x40xbf16> to vector<8x40xbf16>
    %875 = vector.extract_strided_slice %873 {offsets = [8, 0], sizes = [8, 40], strides = [1, 1]} : vector<160x40xbf16> to vector<8x40xbf16>
    %876 = vector.extract_strided_slice %873 {offsets = [16, 0], sizes = [8, 40], strides = [1, 1]} : vector<160x40xbf16> to vector<8x40xbf16>
    %877 = vector.extract_strided_slice %873 {offsets = [24, 0], sizes = [8, 40], strides = [1, 1]} : vector<160x40xbf16> to vector<8x40xbf16>
    %878 = vector.extract_strided_slice %873 {offsets = [32, 0], sizes = [8, 40], strides = [1, 1]} : vector<160x40xbf16> to vector<8x40xbf16>
    %879 = vector.extract_strided_slice %873 {offsets = [40, 0], sizes = [8, 40], strides = [1, 1]} : vector<160x40xbf16> to vector<8x40xbf16>
    %880 = vector.extract_strided_slice %873 {offsets = [48, 0], sizes = [8, 40], strides = [1, 1]} : vector<160x40xbf16> to vector<8x40xbf16>
    %881 = vector.extract_strided_slice %873 {offsets = [56, 0], sizes = [8, 40], strides = [1, 1]} : vector<160x40xbf16> to vector<8x40xbf16>
    %882 = vector.extract_strided_slice %873 {offsets = [64, 0], sizes = [8, 40], strides = [1, 1]} : vector<160x40xbf16> to vector<8x40xbf16>
    %883 = vector.extract_strided_slice %873 {offsets = [72, 0], sizes = [8, 40], strides = [1, 1]} : vector<160x40xbf16> to vector<8x40xbf16>
    %884 = vector.extract_strided_slice %873 {offsets = [80, 0], sizes = [8, 40], strides = [1, 1]} : vector<160x40xbf16> to vector<8x40xbf16>
    %885 = vector.extract_strided_slice %873 {offsets = [88, 0], sizes = [8, 40], strides = [1, 1]} : vector<160x40xbf16> to vector<8x40xbf16>
    %886 = vector.extract_strided_slice %873 {offsets = [96, 0], sizes = [8, 40], strides = [1, 1]} : vector<160x40xbf16> to vector<8x40xbf16>
    %887 = vector.extract_strided_slice %873 {offsets = [104, 0], sizes = [8, 40], strides = [1, 1]} : vector<160x40xbf16> to vector<8x40xbf16>
    %888 = vector.extract_strided_slice %873 {offsets = [112, 0], sizes = [8, 40], strides = [1, 1]} : vector<160x40xbf16> to vector<8x40xbf16>
    %889 = vector.extract_strided_slice %873 {offsets = [120, 0], sizes = [8, 40], strides = [1, 1]} : vector<160x40xbf16> to vector<8x40xbf16>
    %890 = vector.extract_strided_slice %873 {offsets = [128, 0], sizes = [8, 40], strides = [1, 1]} : vector<160x40xbf16> to vector<8x40xbf16>
    %891 = vector.extract_strided_slice %873 {offsets = [136, 0], sizes = [8, 40], strides = [1, 1]} : vector<160x40xbf16> to vector<8x40xbf16>
    %892 = vector.extract_strided_slice %873 {offsets = [144, 0], sizes = [8, 40], strides = [1, 1]} : vector<160x40xbf16> to vector<8x40xbf16>
    %893 = vector.extract_strided_slice %873 {offsets = [152, 0], sizes = [8, 40], strides = [1, 1]} : vector<160x40xbf16> to vector<8x40xbf16>
    %894 = tpu.concatenate %874, %875, %876, %877, %878, %879, %880, %881, %882, %883, %884, %885, %886, %887, %888, %889 in 1 : vector<8x40xbf16>, vector<8x40xbf16>, vector<8x40xbf16>, vector<8x40xbf16>, vector<8x40xbf16>, vector<8x40xbf16>, vector<8x40xbf16>, vector<8x40xbf16>, vector<8x40xbf16>, vector<8x40xbf16>, vector<8x40xbf16>, vector<8x40xbf16>, vector<8x40xbf16>, vector<8x40xbf16>, vector<8x40xbf16>, vector<8x40xbf16> -> vector<8x640xbf16>
    %895 = tpu.concatenate %890, %891, %892, %893, %871 in 1 : vector<8x40xbf16>, vector<8x40xbf16>, vector<8x40xbf16>, vector<8x40xbf16>, vector<8x40xbf16> -> vector<8x200xbf16>
    %896 = tpu.concatenate %894, %895 in 1 : vector<8x640xbf16>, vector<8x200xbf16> -> vector<8x840xbf16>
    %c0_309 = arith.constant 0 : index
    %c0_310 = arith.constant 0 : index
    %897 = vector.load %arg16[%c0_309, %c0_310] : memref<840x80xbf16, #tpu.memory_space<vmem>>, vector<840x80xbf16>
    %cst_311 = arith.constant dense<0.000000e+00> : vector<8x80xf32>
    %898 = tpu.matmul %896, %897, %cst_311 {dimension_numbers = #tpu.dot_dimension_numbers<[1], [0], [0], [1], [0, 0, 1, 1], [], []>} : vector<8x840xbf16>, vector<840x80xbf16>, vector<8x80xf32> -> vector<8x80xf32>
    %c0_312 = arith.constant 0 : index
    %c0_313 = arith.constant 0 : index
    %899 = vector.load %arg17[%c0_312, %c0_313] : memref<1x80xf32, #tpu.memory_space<vmem>>, vector<1x80xf32>
    %900 = vector.broadcast %899 : vector<1x80xf32> to vector<8x80xf32>
    %901 = arith.addf %898, %900 : vector<8x80xf32>
    %902 = vector.extract_strided_slice %901 {offsets = [0, 0], sizes = [8, 60], strides = [1, 1]} : vector<8x80xf32> to vector<8x60xf32>
    %cst_314 = arith.constant 5.000000e-01 : f32
    %903 = vector.broadcast %cst_314 : f32 to vector<8x60xf32>
    %904 = arith.mulf %903, %902 : vector<8x60xf32>
    %905 = math.tanh %904 : vector<8x60xf32>
    %cst_315 = arith.constant 1.000000e+00 : f32
    %906 = vector.broadcast %cst_315 : f32 to vector<8x60xf32>
    %907 = arith.addf %905, %906 : vector<8x60xf32>
    %cst_316 = arith.constant 5.000000e-01 : f32
    %908 = vector.broadcast %cst_316 : f32 to vector<8x60xf32>
    %909 = arith.mulf %908, %907 : vector<8x60xf32>
    %910 = vector.extract_strided_slice %909 {offsets = [0, 40], sizes = [8, 20], strides = [1, 1]} : vector<8x60xf32> to vector<8x20xf32>
    %911 = vector.broadcast %172 : vector<1x20xf32> to vector<8x20xf32>
    %912 = arith.mulf %910, %911 : vector<8x20xf32>
    %cst_317 = arith.constant dense<0.000000e+00> : vector<8xf32>
    %913 = vector.multi_reduction <add>, %912, %cst_317 [1] : vector<8x20xf32> to vector<8xf32>
    %914 = vector.shape_cast %913 : vector<8xf32> to vector<8x1xf32>
    %915 = arith.addf %171, %914 : vector<8x1xf32>
    %916 = tpu.concatenate %622, %773, %915 in 1 : vector<8x1xf32>, vector<8x1xf32>, vector<8x1xf32> -> vector<8x3xf32>
    %c0_318 = arith.constant 0 : index
    %c0_319 = arith.constant 0 : index
    %917 = vector.load %arg21[%c0_318, %c0_319] : memref<8x3xf32, #tpu.memory_space<vmem>>, vector<8x3xf32>
    tpu.vector_store %arg21[%c0_318, %c0_319], %916 {strides = array<i32>} : memref<8x3xf32, #tpu.memory_space<vmem>>, vector<8x3xf32>,
    return
  }
  func.func @transform_0(%arg0: i32) -> (i32, i32) {
    %c0_i32 = arith.constant 0 : i32
    %c0_i32_0 = arith.constant 0 : i32
    return %arg0, %c0_i32 : i32, i32
  }
  func.func @transform_1(%arg0: i32) -> (i32, i32) {
    %c0_i32 = arith.constant 0 : i32
    %c0_i32_0 = arith.constant 0 : i32
    return %arg0, %c0_i32 : i32, i32
  }
  func.func @transform_2(%arg0: i32) -> (i32, i32) {
    %c0_i32 = arith.constant 0 : i32
    %c0_i32_0 = arith.constant 0 : i32
    return %arg0, %c0_i32 : i32, i32
  }
  func.func @transform_3(%arg0: i32) -> (i32, i32) {
    %c0_i32 = arith.constant 0 : i32
    %c0_i32_0 = arith.constant 0 : i32
    return %arg0, %c0_i32 : i32, i32
  }
  func.func @transform_4(%arg0: i32) -> (i32, i32) {
    %c0_i32 = arith.constant 0 : i32
    %c0_i32_0 = arith.constant 0 : i32
    return %arg0, %c0_i32 : i32, i32
  }
  func.func @transform_5(%arg0: i32) -> (i32, i32, i32) {
    %c0_i32 = arith.constant 0 : i32
    %c0_i32_0 = arith.constant 0 : i32
    %c0_i32_1 = arith.constant 0 : i32
    %c0_i32_2 = arith.constant 0 : i32
    return %c0_i32, %c0_i32_0, %c0_i32_1 : i32, i32, i32
  }
  func.func @transform_6(%arg0: i32) -> (i32, i32, i32) {
    %c0_i32 = arith.constant 0 : i32
    %c0_i32_0 = arith.constant 0 : i32
    %c0_i32_1 = arith.constant 0 : i32
    %c0_i32_2 = arith.constant 0 : i32
    return %c0_i32, %c0_i32_0, %c0_i32_1 : i32, i32, i32
  }
  func.func @transform_7(%arg0: i32) -> (i32, i32) {
    %c0_i32 = arith.constant 0 : i32
    %c0_i32_0 = arith.constant 0 : i32
    %c0_i32_1 = arith.constant 0 : i32
    return %c0_i32, %c0_i32_0 : i32, i32
  }
  func.func @transform_8(%arg0: i32) -> (i32, i32) {
    %c0_i32 = arith.constant 0 : i32
    %c0_i32_0 = arith.constant 0 : i32
    %c0_i32_1 = arith.constant 0 : i32
    return %c0_i32, %c0_i32_0 : i32, i32
  }
  func.func @transform_9(%arg0: i32) -> (i32, i32, i32) {
    %c0_i32 = arith.constant 0 : i32
    %c0_i32_0 = arith.constant 0 : i32
    %c0_i32_1 = arith.constant 0 : i32
    %c0_i32_2 = arith.constant 0 : i32
    return %c0_i32, %c0_i32_0, %c0_i32_1 : i32, i32, i32
  }
  func.func @transform_10(%arg0: i32) -> (i32, i32, i32) {
    %c0_i32 = arith.constant 0 : i32
    %c0_i32_0 = arith.constant 0 : i32
    %c0_i32_1 = arith.constant 0 : i32
    %c0_i32_2 = arith.constant 0 : i32
    return %c0_i32, %c0_i32_0, %c0_i32_1 : i32, i32, i32
  }
  func.func @transform_11(%arg0: i32) -> (i32, i32) {
    %c0_i32 = arith.constant 0 : i32
    %c0_i32_0 = arith.constant 0 : i32
    %c0_i32_1 = arith.constant 0 : i32
    return %c0_i32, %c0_i32_0 : i32, i32
  }
  func.func @transform_12(%arg0: i32) -> (i32, i32) {
    %c0_i32 = arith.constant 0 : i32
    %c0_i32_0 = arith.constant 0 : i32
    %c0_i32_1 = arith.constant 0 : i32
    return %c0_i32, %c0_i32_0 : i32, i32
  }
  func.func @transform_13(%arg0: i32) -> (i32, i32, i32) {
    %c0_i32 = arith.constant 0 : i32
    %c0_i32_0 = arith.constant 0 : i32
    %c0_i32_1 = arith.constant 0 : i32
    %c0_i32_2 = arith.constant 0 : i32
    return %c0_i32, %c0_i32_0, %c0_i32_1 : i32, i32, i32
  }
  func.func @transform_14(%arg0: i32) -> (i32, i32, i32) {
    %c0_i32 = arith.constant 0 : i32
    %c0_i32_0 = arith.constant 0 : i32
    %c0_i32_1 = arith.constant 0 : i32
    %c0_i32_2 = arith.constant 0 : i32
    return %c0_i32, %c0_i32_0, %c0_i32_1 : i32, i32, i32
  }
  func.func @transform_15(%arg0: i32) -> (i32, i32) {
    %c0_i32 = arith.constant 0 : i32
    %c0_i32_0 = arith.constant 0 : i32
    %c0_i32_1 = arith.constant 0 : i32
    return %c0_i32, %c0_i32_0 : i32, i32
  }
  func.func @transform_16(%arg0: i32) -> (i32, i32) {
    %c0_i32 = arith.constant 0 : i32
    %c0_i32_0 = arith.constant 0 : i32
    %c0_i32_1 = arith.constant 0 : i32
    return %c0_i32, %c0_i32_0 : i32, i32
  }
  func.func @transform_17(%arg0: i32) -> (i32, i32) {
    %c0_i32 = arith.constant 0 : i32
    %c0_i32_0 = arith.constant 0 : i32
    %c0_i32_1 = arith.constant 0 : i32
    return %c0_i32, %c0_i32_0 : i32, i32
  }
  func.func @transform_18(%arg0: i32) -> (i32, i32) {
    %c0_i32 = arith.constant 0 : i32
    %c0_i32_0 = arith.constant 0 : i32
    %c0_i32_1 = arith.constant 0 : i32
    return %c0_i32, %c0_i32_0 : i32, i32
  }
  func.func @transform_19(%arg0: i32) -> (i32, i32) {
    %c0_i32 = arith.constant 0 : i32
    %c0_i32_0 = arith.constant 0 : i32
    %c0_i32_1 = arith.constant 0 : i32
    return %c0_i32, %c0_i32_0 : i32, i32
  }
  func.func @transform_20(%arg0: i32) -> (i32, i32) {
    %c0_i32 = arith.constant 0 : i32
    %c0_i32_0 = arith.constant 0 : i32
    return %arg0, %c0_i32 : i32, i32
  }
}

</mosaic_0001>

<bundles_post_ra>
// kernel: lstm_model_forward.1
= control target key start
LH: loop header
LB: loop body
LE: loop exit
PB: predicated region body
PF: predicated region fallthrough
CT: control target
= control target key end

     0   :  { %s9115_s23 = smov 0   ;;  %s11864_s0 = inlined_call_operand.vmem [shape: f32[16,3], index: 0, kind: input, shape index: {}]   ;;  %s11865_s1 = inlined_call_operand.vmem [shape: f32[16,1], index: 1, kind: input, shape index: {}]   ;;  %s11866_s2 = inlined_call_operand.vmem [shape: f32[16,8], index: 2, kind: input, shape index: {}]   ;;  %s11867_s3 = inlined_call_operand.vmem [shape: f32[16,5], index: 3, kind: input, shape index: {}]   ;;  %s11868_s4 = inlined_call_operand.vmem [shape: f32[16,2], index: 4, kind: input, shape index: {}]   ;;  %s11869_s5 = inlined_call_operand.vmem [shape: f32[20,1,1], index: 5, kind: input, shape index: {}]   ;;  %s11870_s6 = inlined_call_operand.vmem [shape: f32[20,1,1], index: 6, kind: input, shape index: {}]   ;;  %s11871_s7 = inlined_call_operand.vmem [shape: bf16[105,40], index: 7, kind: input, shape index: {}]   ;;  %s11872_s8 = inlined_call_operand.vmem [shape: f32[1,40], index: 8, kind: input, shape index: {}]   ;;  %s11873_s9 = inlined_call_operand.vmem [shape: bf16[3,40,40], index: 9, kind: input, shape index: {}]   ;;  %s11874_s10 = inlined_call_operand.vmem [shape: f32[3,1,40], index: 10, kind: input, shape index: {}]   ;;  %s11875_s11 = inlined_call_operand.vmem [shape: bf16[168,20], index: 11, kind: input, shape index: {}]   ;;  %s11876_s12 = inlined_call_operand.vmem [shape: f32[1,20], index: 12, kind: input, shape index: {}]   ;;  %s11877_s13 = inlined_call_operand.vmem [shape: bf16[3,20,20], index: 13, kind: input, shape index: {}]   ;;  %s11878_s14 = inlined_call_operand.vmem [shape: f32[3,1,20], index: 14, kind: input, shape index: {}]   ;;  %s11879_s15 = inlined_call_operand.vmem [shape: bf16[840,80], index: 15, kind: input, shape index: {}]   ;;  %s11880_s16 = inlined_call_operand.vmem [shape: f32[1,80], index: 16, kind: input, shape index: {}]   ;;  %s11881_s17 = inlined_call_operand.vmem [shape: f32[5,1], index: 17, kind: input, shape index: {}]   ;;  %s11882_s18 = inlined_call_operand.vmem [shape: f32[1,20], index: 18, kind: input, shape index: {}]   ;;  %s11883_s19 = inlined_call_operand.<no memory space> [shape: f32[1,1], index: 19, kind: input, shape index: {}]   ;;  %s11884_s20 = inlined_call_operand.vmem [shape: f32[16,3], index: 20, kind: output, shape index: {}]  }
   0x1   :  { %12004 = sst [smem:[#allocation39_spill]] %s11864_s0  ;;  %v25_v0 = vstv %s11883_s19 }
   0x2   :  { %12005 = sst [smem:[#allocation40_spill]] %s11865_s1  ;;  %26 = vst [vmem:[#allocation2] sm:$0x1] %v25_v0 }
   0x3   :  { %12006 = sst [smem:[#allocation41_spill]] %s11866_s2 }
   0x4   :  { %12007 = sst [smem:[#allocation42_spill]] %s11867_s3 }
   0x5   :  { %12008 = sst [smem:[#allocation43_spill]] %s11868_s4 }
   0x6   :  { %12009 = sst [smem:[#allocation44_spill]] %s11869_s5 }
   0x7   :  { %12010 = sst [smem:[#allocation45_spill]] %s11870_s6 }
   0x8   :  { %12011 = sst [smem:[#allocation46_spill]] %s11871_s7 }
   0x9   :  { %12012 = sst [smem:[#allocation47_spill]] %s11872_s8 }
   0xa   :  { %12013 = sst [smem:[#allocation48_spill]] %s11873_s9 }
   0xb   :  { %12014 = sst [smem:[#allocation49_spill]] %s11874_s10 }
   0xc   :  { %12015 = sst [smem:[#allocation50_spill]] %s11881_s17 }
   0xd   :  { %12016 = sst [smem:[#allocation51_spill]] %s11882_s18 }
   0xe   :  { %12017 = sst [smem:[#allocation52_spill]] %s11884_s20 }
   0xf LB: > { %12018 = sst [smem:[#allocation3_spill]] %s8967_s23  ;;  %s7159_s24 = sadd.s32 4294967295, %s8967_s23   ;;  %s8967_s23 = sphi %s9115_s23, %s32_s23  }
  0x10   : > { %p7163_p0 = scmp.ge.s32.totalorder %s8967_s23, 1  ;;  %p599_p1 = scmp.lt.s32.totalorder %s8967_s23, 3 }
  0x12   : > { %p600_p2 = pnand %p7163_p0, %p599_p1 }
  0x14   : > { %603 = sbr.rel (%p600_p2) target bundleno = 11737 (0x2dd9), region = 100 }
  0x19   : > { %s12019_s5 = sld [smem:[#allocation44_spill]]  ;;  %v11910_v2 = vmov 0   ;;  %v11912_v3 = vmov 0.0   ;;  %p671_p3 = scmp.lt.s32.totalorder %s7159_s24, 1  ;;  %vm8971_vm0 = vmmov 0   ;;  %vm703_vm1 = vcmask 1042432  }
  0x1a   : > { %8570 = vset.pattern.permute.xlu1 %v11910_v2  ;;  %8022 = vmatprep.subr.mxu0 %v11912_v3  ;;  %s12021_s4 = sld [smem:[#allocation41_spill]]  ;;  %vm11885_vm2 = vcmask 23552   ;;  %vm1408_vm3 = vcmask 1043456   ;;  %vm782_vm4 = vcmask 59392   ;;  %vm1377_vm8 = vcmask 64512   ;;  %s8972_s22 = smov 10  }
  0x1b   : > { %8024 = vmatprep.mubr.msk.f32.mxu0 %vm8971_vm0, %v11912_v3  ;;  %s12240_s24 = smov (!%p671_p3, %s7159_s24), 1  ;;  %8569 = vset.pattern.permute.xlu0 %v11910_v2  ;;  %s12022_s21 = sld [smem:[#allocation39_spill]]  ;;  %vm1720_vm11 = vcmask 1044480   ;;  %vm1581_vm12 = vcmask 39936   ;;  %vm1585_vm13 = vcmask 80896   ;;  %vm1588_vm14 = vcmask 121856  }
  0x1c   : > { %s9134_s26 = sshll.u32 %s12240_s24, 3  ;;  %s12023_s6 = sld [smem:[#allocation45_spill]]  ;;  %vm11956_vm15 = vcmask 162816  }
  0x1d   : > { %12020 = sst [smem:[#allocation4_spill]] %s9134_s26  ;;  %s11886_s2 = smov 20  }
  0x1e   : > { %s12024_s27 = sld [smem:[#allocation40_spill]]  ;;  %s8974_s24 = smov 5  }
  0x1f   : > { %v7173_v1 = vld [vmem:[%s12019_s5 + $0x1] ss:$0 sm:$0xff]  ;;  %v7174_v4 = vld [vmem:[%s12019_s5 + $0x2] ss:$0 sm:$0xff]  ;;  %v7175_v7 = vld [vmem:[%s12019_s5 + $0x3] ss:$0 sm:$0xff] }
  0x20   : > { %949 = vperm.xlu1 %8570, %v7173_v1   ;;  %s682_s29 = scalar_lea.vmem %s12021_s4, %s9134_s26  ;;  %v7176_v14 = vld [vmem:[%s12019_s5 + $0x4] ss:$0 sm:$0xff]  ;;  %v7172_v15 = vld [vmem:[%s12019_s5] ss:$0 sm:$0xff]  ;;  %v7177_v16 = vld [vmem:[%s12019_s5 + $0x5] ss:$0 sm:$0xff] }
  0x21   : > { %s674_s1 = scalar_lea.vmem %s12022_s21, %s9134_s26  ;;  %v9144_v5 = vld [vmem:[%s682_s29] sm:$0xff]  ;;  %v7181_v21 = vld [vmem:[%s12019_s5 + $0x9] ss:$0 sm:$0xff]  ;;  %v7183_v23 = vld [vmem:[%s12019_s5 + $0xb] ss:$0 sm:$0xff]  ;;  %s12025_s21 = sld [smem:[#allocation42_spill]] }
  0x22   : > { %v696_v6 = vld [vmem:[%s674_s1] sm:$0xff]  ;;  %8023 = vmatpush3.msk.msra.mxu0 %vm703_vm1, %v9144_v5  ;;  %v7201_v25 = vld [vmem:[%s12023_s6 + $0x9] ss:$0 sm:$0xff]  ;;  %v7180_v26 = vld [vmem:[%s12019_s5 + $0x8] ss:$0 sm:$0xff]  ;;  %v781_v1 = vmul.f32 %v9144_v5, %v9144_v5  ;;  %s8975_s25 = smov 15  }
  0x23   : > { %v777_v8 = vmul.f32 %v696_v6, %v696_v6  ;;  %8025 = vmatmul.mubr.msk.f32.vlgmr.msra.gmra.mxu0 %vm11885_vm2, %v696_v6  ;;  %8049 = vmatprep.subr.bf16.mxu0 %v11912_v3  ;;  %v7192_v10 = vld [vmem:[%s12023_s6] ss:$0 sm:$0xff]  ;;  %v7193_v11 = vld [vmem:[%s12023_s6 + $0x1] ss:$0 sm:$0xff]  ;;  %v7194_v12 = vld [vmem:[%s12023_s6 + $0x2] ss:$0 sm:$0xff] }
  0x24   : > { %953 = vperm.xlu1 %8570, %v7174_v4   ;;  %8063 = vmatprep.mubr.msk.bf16.mxu0 %vm8971_vm0, %v11912_v3  ;;  %v7195_v13 = vld [vmem:[%s12023_s6 + $0x3] ss:$0 sm:$0xff]  ;;  %v7197_v17 = vld [vmem:[%s12023_s6 + $0x5] ss:$0 sm:$0xff]  ;;  %v7178_v18 = vld [vmem:[%s12019_s5 + $0x6] ss:$0 sm:$0xff]  ;;  %s678_s28 = scalar_lea.vmem %s12024_s27, %s9134_s26 }
  0x25   : > { %v778_v9 = vsel %vm11885_vm2, %v777_v8, 0.0  ;;  %v7199_v19 = vld [vmem:[%s12023_s6 + $0x7] ss:$0 sm:$0xff]  ;;  %v7196_v22 = vld [vmem:[%s12023_s6 + $0x4] ss:$0 sm:$0xff]  ;;  %s8976_s19 = smov 30  }
  0x26   : > { %779 = vadd.xlane.f32.xlu0 %v778_v9  ;;  %v7179_v20 = vld [vmem:[%s12019_s5 + $0x7] ss:$0 sm:$0xff]  ;;  %v7198_v24 = vld [vmem:[%s12023_s6 + $0x6] ss:$0 sm:$0xff]  ;;  %v7203_v27 = vld [vmem:[%s12023_s6 + $0xb] ss:$0 sm:$0xff] }
  0x27   : > { %v7182_v28 = vld [vmem:[%s12019_s5 + $0xa] ss:$0 sm:$0xff]  ;;  %v7184_v29 = vld [vmem:[%s12019_s5 + $0xc] ss:$0 sm:$0xff]  ;;  %v7200_v30 = vld [vmem:[%s12023_s6 + $0x8] ss:$0 sm:$0xff]  ;;  %s686_s1 = scalar_lea.vmem %s12025_s21, %s9134_s26 }
  0x28   : > { %957 = vperm.xlu1 %8570, %v7175_v7   ;;  %v7186_v31 = vld [vmem:[%s12019_s5 + $0xe] ss:$0 sm:$0xff]  ;;  %v7202_v32 = vld [vmem:[%s12023_s6 + $0xa] ss:$0 sm:$0xff]  ;;  %v7204_v33 = vld [vmem:[%s12023_s6 + $0xc] ss:$0 sm:$0xff] }
  0x29   : > { %v698_v34 = vld [vmem:[%s678_s28] sm:$0xff]  ;;  %v7206_v35 = vld [vmem:[%s12023_s6 + $0xe] ss:$0 sm:$0xff]  ;;  %v7185_v36 = vld [vmem:[%s12019_s5 + $0xd] ss:$0 sm:$0xff]  ;;  %v783_v7 = vsel %vm782_vm4, %v781_v1, 0.0 }
  0x2a   : > { %v7188_v37 = vld [vmem:[%s12019_s5 + $0x10] ss:$0 sm:$0xff]  ;;  %v7187_v38 = vld [vmem:[%s12019_s5 + $0xf] ss:$0 sm:$0xff]  ;;  %v7190_v39 = vld [vmem:[%s12019_s5 + $0x12] ss:$0 sm:$0xff] }
  0x2b   : > { %v7205_v40 = vld [vmem:[%s12023_s6 + $0xd] ss:$0 sm:$0xff]  ;;  %v7208_v41 = vld [vmem:[%s12023_s6 + $0x10] ss:$0 sm:$0xff]  ;;  %v7207_v42 = vld [vmem:[%s12023_s6 + $0xf] ss:$0 sm:$0xff] }
  0x2c   : > { %1165 = vperm.xlu1 %8570, %v7192_v10   ;;  %v7210_v43 = vld [vmem:[%s12023_s6 + $0x12] ss:$0 sm:$0xff]  ;;  %v7189_v44 = vld [vmem:[%s12019_s5 + $0x11] ss:$0 sm:$0xff]  ;;  %v7191_v45 = vld [vmem:[%s12019_s5 + $0x13] ss:$0 sm:$0xff] }
  0x2d   : > { %v7209_v46 = vld [vmem:[%s12023_s6 + $0x11] ss:$0 sm:$0xff]  ;;  %v7211_v47 = vld [vmem:[%s12023_s6 + $0x13] ss:$0 sm:$0xff]  ;;  %v9274_v48 = vld [vmem:[%s686_s1] sm:$0xff]  ;;  %v784_v9 = vrot.slane %v783_v7, 4 }
  0x2e   : > { %v9280_v50 = vpack.c.bf16 %v9274_v48, %v9274_v48  ;;  %s11935_s3 = smov 40   ;;  %s8978_s27 = smov 25   ;;  %vm1594_vm1 = vcmask 203776   ;;  %vm1597_vm4 = vcmask 244736   ;;  %vm1717_vm2 = vcmask 859136  }
  0x2f   : > { %s8979_s28 = smov 50   ;;  %s8980_s4 = smov 35  }
  0x30   : > { %1169 = vperm.xlu1 %8570, %v7193_v11   ;;  %8512 = vmatprep.subr.msk.bf16.mxu1 %vm1408_vm3, %v9280_v50  ;;  %v1410_v51 = vsel %vm1408_vm3, %v9280_v50, 0  ;;  %v785_v11 = vadd.f32 %v784_v9, %v783_v7  ;;  %s12026_s7 = sld [smem:[#allocation46_spill]]  ;;  %s8981_s0 = smov 60  }
  0x31   : > { %8028 = vmatpush3.bf16.msra.mxu1 %v1410_v51  ;;  %s8982_s21 = smov 45   ;;  %s8984_s1 = smov 70  }
  0x32   : > { %8077 = vmatprep.subr.bf16.mxu1 %v11912_v3  ;;  %s12027_s9 = sld [smem:[#allocation48_spill]]  ;;  %s11892_s29 = smov 88  }
  0x33   : > { %s12028_s8 = sld [smem:[#allocation47_spill]]  ;;  %s11888_s30 = smov 64  }
  0x34   : > { %1173 = vperm.xlu1 %8570, %v7194_v12   ;;  %s12029_s10 = sld [smem:[#allocation49_spill]]  ;;  %s12081_s5 = smov 32  }
  0x35   : > { %s12031_s17 = sld [smem:[#allocation50_spill]]  ;;  %s12085_s6 = smov 112  }
  0x36   : > { %s12111_s18 = sld [smem:[#allocation51_spill]] }
  0x37   : > { %s12234_s23 = sld [smem:[#allocation52_spill]] }
  0x38   : > { %1177 = vperm.xlu1 %8570, %v7195_v13  }
  0x3c   : > { %961 = vperm.xlu1 %8570, %v7176_v14   ;;  %945 = vperm.xlu0 %8569, %v7172_v15   ;;  %v786_v14 = vrot.slane %v785_v11, 2 }
  0x40   : > { %965 = vperm.xlu1 %8570, %v7177_v16   ;;  %1185 = vperm.xlu0 %8569, %v7197_v17   ;;  %v787_v16 = vadd.f32 %v786_v14, %v785_v11 }
  0x44   : > { %969 = vperm.xlu1 %8570, %v7178_v18   ;;  %1193 = vperm.xlu0 %8569, %v7199_v19   ;;  %v788_v18 = vrot.slane %v787_v16, 1 }
  0x48   : > { %973 = vperm.xlu1 %8570, %v7179_v20   ;;  %981 = vperm.xlu0 %8569, %v7181_v21   ;;  %v789_v21 = vadd.f32 %v788_v18, %v787_v16 }
  0x4c   : > { %1181 = vperm.xlu1 %8570, %v7196_v22   ;;  %989 = vperm.xlu0 %8569, %v7183_v23  }
  0x50   : > { %1189 = vperm.xlu1 %8570, %v7198_v24   ;;  %1201 = vperm.xlu0 %8569, %v7201_v25  }
  0x54   : > { %977 = vperm.xlu1 %8570, %v7180_v26   ;;  %1209 = vperm.xlu0 %8569, %v7203_v27  }
  0x58   : > { %985 = vperm.xlu1 %8570, %v7182_v28   ;;  %993 = vperm.xlu0 %8569, %v7184_v29  }
  0x5c   : > { %1197 = vperm.xlu1 %8570, %v7200_v30   ;;  %1001 = vperm.xlu0 %8569, %v7186_v31  }
  0x60   : > { %1205 = vperm.xlu1 %8570, %v7202_v32   ;;  %1213 = vperm.xlu0 %8569, %v7204_v33  }
  0x64   : > { %803 = vperm.xlu1 %8570, %v698_v34   ;;  %1221 = vperm.xlu0 %8569, %v7206_v35  }
  0x68   : > { %997 = vperm.xlu1 %8570, %v7185_v36   ;;  %1009 = vperm.xlu0 %8569, %v7188_v37  }
  0x6c   : > { %1005 = vperm.xlu1 %8570, %v7187_v38   ;;  %1017 = vperm.xlu0 %8569, %v7190_v39   ;;  %v797_v39 = vlaneseq }
  0x6e   : > { %v9359_v14 = vand.u32 127, %v797_v39 }
  0x70   : > { %1217 = vperm.xlu1 %8570, %v7205_v40   ;;  %1229 = vperm.xlu0 %8569, %v7208_v41  }
  0x74   : > { %1225 = vperm.xlu1 %8570, %v7207_v42   ;;  %1237 = vperm.xlu0 %8569, %v7210_v43   ;;  %v9347_v43 = vshrl.u32 %v797_v39, 7 }
  0x76   : > { %vm811_vm5 = vcmp.ne.s32.totalorder %v9347_v43, %v9359_v14 }
  0x78   : > { %1013 = vperm.xlu1 %8570, %v7189_v44  }
  0x7c   : > { %1021 = vperm.xlu1 %8570, %v7191_v45  }
  0x80   : > { %1233 = vperm.xlu1 %8570, %v7209_v46  }
  0x84   : > { %1241 = vperm.xlu1 %8570, %v7211_v47   ;;  %v808_v47 = vsub.s32 3, %v9347_v43 }
  0x9b   : > { %v9276_v49 = vpop.permute.xlu1 %949 }
  0x9f   : > { %v9286_v52 = vpop.permute.xlu1 %953 }
  0xa3   : > { %v9289_v53 = vpop.permute.xlu1 %957 }
  0xa7   : > { %v9291_v54 = vpop.permute.xlu1 %1165 }
  0xab   : > { %v9293_v55 = vpop.permute.xlu1 %1169 }
  0xaf   : > { %v9295_v56 = vpop.permute.xlu1 %1173  ;;  %v780_v59 = vpop.xlane.xlu0 %779 }
  0xb0   : > { %v790_v24 = vadd.f32 %v789_v21, %v780_v59 }
  0xb3   : > { %v9297_v57 = vpop.permute.xlu1 %1177 }
  0xb7   : > { %v9299_v58 = vpop.permute.xlu1 %961  ;;  %v9303_v61 = vpop.permute.xlu0 %945 }
  0xbb   : > { %v9301_v60 = vpop.permute.xlu1 %965  ;;  %v9309_v0 = vpop.permute.xlu0 %1185 }
  0xbf   : > { %v9305_v62 = vpop.permute.xlu1 %969  ;;  %v9315_v6 = vpop.permute.xlu0 %1193 }
  0xc3   : > { %v9307_v63 = vpop.permute.xlu1 %973  ;;  %v9319_v10 = vpop.permute.xlu0 %981 }
  0xc7   : > { %v9313_v4 = vpop.permute.xlu1 %1181  ;;  %v9323_v13 = vpop.permute.xlu0 %989 }
  0xcb   : > { %v9317_v8 = vpop.permute.xlu1 %1189  ;;  %v9327_v17 = vpop.permute.xlu0 %1201 }
  0xcf   : > { %v9321_v12 = vpop.permute.xlu1 %977  ;;  %v9331_v20 = vpop.permute.xlu0 %1209 }
  0xd3   : > { %v9325_v15 = vpop.permute.xlu1 %985  ;;  %v994_v26 = vpop.permute.xlu0 %993 }
  0xd7   : > { %v9329_v19 = vpop.permute.xlu1 %1197  ;;  %v9337_v32 = vpop.permute.xlu0 %1001 }
  0xdb   : > { %v9333_v22 = vpop.permute.xlu1 %1205  ;;  %v1214_v34 = vpop.permute.xlu0 %1213 }
  0xdf   : > { %v9335_v30 = vpop.permute.xlu1 %803  ;;  %v9339_v36 = vpop.permute.xlu0 %1221 }
  0xe3   : > { %v773_v23 = vpop.f32.mrf.mxu0  ;;  %v998_v33 = vpop.permute.xlu1 %997 }
  0xe4   : > { %v791_v25 = vmul.f32 2.0, %v773_v23  ;;  %v1010_v42 = vpop.permute.xlu0 %1009  ;;  %v9367_v23 = vrot.slane %v9144_v5, %v808_v47 }
  0xe5   : > { %v8026_v27 = vpop.f32.mrf.mxu0 }
  0xe6   : > { %v792_v28 = vsub.f32 %v790_v24, %v791_v25  ;;  %vm810_vm6 = vcmp.eq.f32.partialorder %v9335_v30, %v9367_v23 }
  0xe7   : > { %v1006_v35 = vpop.permute.xlu1 %1005  ;;  %vm812_vm9 = vmand %vm810_vm6, %vm811_vm5  ;;  %vm1600_vm5 = vcmask 285696   ;;  %vm1603_vm6 = vcmask 326656  }
  0xe8   : > { %v793_v29 = vmax.f32 %v792_v28, 0.0  ;;  %v9351_v59 = vpop.permute.xlu0 %1017 }
  0xea   : > { %v794_v31 = vmax.f32 %v793_v29, 1e-12 }
  0xeb   : > { %v1218_v40 = vpop.permute.xlu1 %1217 }
  0xec   : > { %8657 = vrsqrt.f32 %v794_v31 }
  0xef   : > { %v1226_v45 = vpop.permute.xlu1 %1225 }
  0xf3   : > { %v9369_v25 = vpop.permute.xlu1 %1013 }
  0xf9   : > { %v9341_v37 = vpop.eup %8657 }
  0xfa   : > { %v9344_v38 = vmul.f32 %v9341_v37, %v793_v29  ;;  %v1036_v46 = vsub.f32 %v9341_v37, %v994_v26  ;;  %v1039_v1 = vsub.f32 %v9341_v37, %v1006_v35  ;;  %v1037_v7 = vsub.f32 %v9341_v37, %v998_v33  ;;  %v1230_v29 = vpop.permute.xlu0 %1229 }
  0xfb   : > { %v1024_v9 = vsub.f32 %v9341_v37, %v9303_v61  ;;  %v1025_v11 = vsub.f32 %v9341_v37, %v9276_v49  ;;  %v1040_v18 = vsub.f32 %v9341_v37, %v1010_v42  ;;  %v1026_v21 = vsub.f32 %v9341_v37, %v9286_v52 }
  0xfc   : > { %v815_v41 = vmul.f32 0.13333334, %v9344_v38  ;;  %v9361_v16 = vmul.f32 %v1214_v34, %v1036_v46  ;;  %v1042_v49 = vsub.f32 %v9341_v37, %v9351_v59  ;;  %v1038_v27 = vsub.f32 %v9341_v37, %v9337_v32 }
  0xfd   : > { %v1244_v61 = vmul.f32 %v9291_v54, %v1024_v9  ;;  %v1245_v26 = vmul.f32 %v9293_v55, %v1025_v11  ;;  %v1041_v28 = vsub.f32 %v9341_v37, %v9369_v25  ;;  %v1027_v5 = vsub.f32 %v9341_v37, %v9289_v53 }
  0xfe   : > { %v816_v44 = vmax.f32 %v815_v41, 0.0  ;;  %v9381_v52 = vmul.f32 %v1218_v40, %v1037_v7  ;;  %v9383_v31 = vmul.f32 %v1226_v45, %v1039_v1  ;;  %v1276_v55 = vmul.f32 -0.5, %v9361_v16 }
  0xff   : > { %v1264_v54 = vmul.f32 -0.5, %v1244_v61  ;;  %v1265_v33 = vmul.f32 -0.5, %v1245_v26  ;;  %v9386_v34 = vmul.f32 %v1230_v29, %v1040_v18  ;;  %v1246_v35 = vmul.f32 %v9295_v56, %v1026_v21 }
 0x100   : > { %v817_v51 = vmin.f32 %v816_v44, 1.0  ;;  %v1247_v32 = vmul.f32 %v9297_v57, %v1027_v5  ;;  %v1028_v53 = vsub.f32 %v9341_v37, %v9299_v58  ;;  %v1029_v45 = vsub.f32 %v9341_v37, %v9301_v60 }
 0x101   : > { %v1284_v41 = vmul.f32 %v1264_v54, %v1244_v61  ;;  %v1285_v42 = vmul.f32 %v1265_v33, %v1245_v26  ;;  %v1266_v40 = vmul.f32 -0.5, %v1246_v35  ;;  %v1030_v46 = vsub.f32 %v9341_v37, %v9305_v62 }
 0x102   : > { %v819_v24 = vmul.f32 2.0, %v817_v51  ;;  %v1267_v44 = vmul.f32 -0.5, %v1247_v32  ;;  %v1248_v56 = vmul.f32 %v9313_v4, %v1028_v53  ;;  %v1031_v57 = vsub.f32 %v9341_v37, %v9307_v63  ;;  %v9409_v63 = vpop.permute.xlu1 %1021 }
 0x103   : > { %v1304_v47 = vmul.f32 1.442695, %v1284_v41  ;;  %v1306_v1 = vmul.f32 1.442695, %v1285_v42  ;;  %v1286_v7 = vmul.f32 %v1266_v40, %v1246_v35  ;;  %v1249_v11 = vmul.f32 %v9309_v0, %v1029_v45 }
 0x104   : > { %v820_v39 = vsub.f32 3.0, %v819_v24  ;;  %v1287_v9 = vmul.f32 %v1267_v44, %v1247_v32  ;;  %v1250_v58 = vmul.f32 %v9317_v8, %v1030_v46  ;;  %v1268_v60 = vmul.f32 -0.5, %v1248_v56 }
 0x105   : > { %8659 = vpow2.f32 %v1304_v47  ;;  %v1251_v62 = vmul.f32 %v9315_v6, %v1031_v57  ;;  %v1032_v4 = vsub.f32 %v9341_v37, %v9321_v12  ;;  %vm813_vm7 = vcmp.lt.f32.partialorder %v9344_v38, 7.5 }
 0x106   : > { %8661 = vpow2.f32 %v1306_v1  ;;  %v1308_v0 = vmul.f32 1.442695, %v1286_v7  ;;  %v1310_v8 = vmul.f32 1.442695, %v1287_v9  ;;  %v1269_v18 = vmul.f32 -0.5, %v1249_v11  ;;  %v1234_v44 = vpop.permute.xlu1 %1233  ;;  %vm814_vm10 = vmand %vm812_vm9, %vm813_vm7 }
 0x107   : > { %v1288_v21 = vmul.f32 %v1268_v60, %v1248_v56  ;;  %v1270_v24 = vmul.f32 -0.5, %v1250_v58  ;;  %v1271_v61 = vmul.f32 -0.5, %v1251_v62  ;;  %v1033_v26 = vsub.f32 %v9341_v37, %v9319_v10 }
 0x108   : > { %v818_v5 = vmul.f32 %v817_v51, %v817_v51  ;;  %8663 = vpow2.f32 %v1308_v0  ;;  %v1289_v6 = vmul.f32 %v1269_v18, %v1249_v11  ;;  %v1252_v29 = vmul.f32 %v9329_v19, %v1032_v4  ;;  %v1238_v11 = vpop.permute.xlu0 %1237 }
 0x109   : > { %v1277_v12 = vmul.f32 -0.5, %v9381_v52  ;;  %8665 = vpow2.f32 %v1310_v8  ;;  %v1312_v54 = vmul.f32 1.442695, %v1288_v21  ;;  %v1290_v33 = vmul.f32 %v1270_v24, %v1250_v58 }
 0x10a   : > { %v821_v35 = vmul.f32 %v820_v39, %v818_v5  ;;  %v1314_v32 = vmul.f32 1.442695, %v1289_v6  ;;  %v1291_v41 = vmul.f32 %v1271_v61, %v1251_v62  ;;  %v1253_v42 = vmul.f32 %v9327_v17, %v1033_v26  ;;  %v1242_v9 = vpop.permute.xlu1 %1241 }
 0x10b   : > { %v1280_v53 = vmul.f32 -0.5, %v9386_v34  ;;  %v1258_v40 = vmul.f32 %v9339_v36, %v1038_v27  ;;  %8667 = vpow2.f32 %v1312_v54  ;;  %v1316_v10 = vmul.f32 1.442695, %v1290_v33 }
 0x10c   : > { %v1296_v51 = vmul.f32 %v1276_v55, %v9361_v16  ;;  %8669 = vpow2.f32 %v1314_v32  ;;  %v1318_v19 = vmul.f32 1.442695, %v1291_v41  ;;  %v1272_v45 = vmul.f32 -0.5, %v1252_v29 }
 0x10d   : > { %v1261_v39 = vmul.f32 %v1234_v44, %v1041_v28  ;;  %8671 = vpow2.f32 %v1316_v10  ;;  %v1273_v46 = vmul.f32 -0.5, %v1253_v42  ;;  %v1034_v17 = vsub.f32 %v9341_v37, %v9325_v15 }
 0x10e   : > { %v822_v47 = vsub.f32 1.0, %v821_v35  ;;  %v1297_v36 = vmul.f32 %v1277_v12, %v9381_v52  ;;  %8673 = vpow2.f32 %v1318_v19  ;;  %v1292_v27 = vmul.f32 %v1272_v45, %v1252_v29 }
 0x10f   : > { %v1279_v16 = vmul.f32 -0.5, %v9383_v31  ;;  %v1293_v55 = vmul.f32 %v1273_v46, %v1253_v42  ;;  %v1035_v1 = vsub.f32 %v9341_v37, %v9323_v13  ;;  %v1254_v25 = vmul.f32 %v9333_v22, %v1034_v17 }
 0x110   : > { %v1300_v15 = vmul.f32 %v1280_v53, %v9386_v34  ;;  %v1278_v28 = vmul.f32 -0.5, %v1258_v40  ;;  %v1043_v52 = vsub.f32 %v9341_v37, %v9409_v63  ;;  %v1320_v56 = vmul.f32 1.442695, %v1292_v27 }
 0x111   : > { %v1328_v13 = vmul.f32 1.442695, %v1296_v51  ;;  %v1322_v57 = vmul.f32 1.442695, %v1293_v55  ;;  %v1255_v22 = vmul.f32 %v9331_v20, %v1035_v1  ;;  %v1274_v7 = vmul.f32 -0.5, %v1254_v25 }
 0x112   : > { %v8660_v43 = vpop.eup %8659  ;;  %v9441_v14 = vsel %vm814_vm10, %v822_v47, 0.0  ;;  %v1330_v30 = vmul.f32 1.442695, %v1297_v36  ;;  %v1281_v23 = vmul.f32 -0.5, %v1261_v39  ;;  %8675 = vpow2.f32 %v1320_v56 }
 0x113   : > { %v8662_v34 = vpop.eup %8661  ;;  %v1344_v58 = vmul.f32 %v8660_v43, %v9441_v14  ;;  %8677 = vpow2.f32 %v1322_v57  ;;  %v1275_v60 = vmul.f32 -0.5, %v1255_v22  ;;  %v1294_v38 = vmul.f32 %v1274_v7, %v1254_v25 }
 0x114   : > { %v1298_v62 = vmul.f32 %v1278_v28, %v1258_v40  ;;  %v1299_v4 = vmul.f32 %v1279_v16, %v9383_v31  ;;  %v1262_v20 = vmul.f32 %v1238_v11, %v1042_v49  ;;  %v1345_v63 = vmul.f32 %v8662_v34, %v9441_v14 }
 0x115   : > { %v8664_v0 = vpop.eup %8663  ;;  %8679 = vpow2.f32 %v1328_v13  ;;  %v1263_v8 = vmul.f32 %v1242_v9, %v1043_v52  ;;  %v1295_v18 = vmul.f32 %v1275_v60, %v1255_v22  ;;  %v1324_v21 = vmul.f32 1.442695, %v1294_v38 }
 0x116   : > { %v8666_v24 = vpop.eup %8665  ;;  %8681 = vpow2.f32 %v1330_v30  ;;  %v1301_v61 = vmul.f32 %v1281_v23, %v1261_v39  ;;  %v9449_v26 = vpack.c.bf16 %v1345_v63, %v1344_v58  ;;  %v1346_v5 = vmul.f32 %v8664_v0, %v9441_v14 }
 0x117   : > { %v1336_v6 = vmul.f32 1.442695, %v1300_v15  ;;  %v1347_v31 = vmul.f32 %v8666_v24, %v9441_v14  ;;  %8683 = vpow2.f32 %v1324_v21  ;;  %v1326_v37 = vmul.f32 1.442695, %v1295_v18 }
 0x118   : > { %v8668_v59 = vpop.eup %8667  ;;  %v1332_v49 = vmul.f32 1.442695, %v1298_v62  ;;  %v1334_v29 = vmul.f32 1.442695, %v1299_v4  ;;  %v1282_v12 = vmul.f32 -0.5, %v1262_v20  ;;  %8029 = vmatprep.mubr.msk.bf16.mxu1 %vm1377_vm8, %v9449_v26  ;;  %v1283_v33 = vmul.f32 -0.5, %v1263_v8 }
 0x119   : > { %v8670_v54 = vpop.eup %8669  ;;  %v9455_v35 = vpack.c.bf16 %v1347_v31, %v1346_v5  ;;  %v1348_v32 = vmul.f32 %v8668_v59, %v9441_v14  ;;  %8685 = vpow2.f32 %v1326_v37  ;;  %v1338_v42 = vmul.f32 1.442695, %v1301_v61 }
 0x11a   : > { %v8672_v41 = vpop.eup %8671  ;;  %v1349_v53 = vmul.f32 %v8670_v54, %v9441_v14  ;;  %8687 = vpow2.f32 %v1336_v6  ;;  %v1302_v10 = vmul.f32 %v1282_v12, %v1262_v20  ;;  %v1303_v44 = vmul.f32 %v1283_v33, %v1263_v8 }
 0x11b   : > { %v8674_v40 = vpop.eup %8673  ;;  %8030 = vmatmul.mubr.msk.bf16.vlgmr.msra.gmra.mxu1 %vm1377_vm8, %v9455_v35  ;;  %8689 = vpow2.f32 %v1332_v49  ;;  %v1350_v19 = vmul.f32 %v8672_v41, %v9441_v14  ;;  %vm1606_vm7 = vcmask 367616   ;;  %vm1609_vm9 = vcmask 408576  }
 0x11c   : > { %v9461_v51 = vpack.c.bf16 %v1349_v53, %v1348_v32  ;;  %8691 = vpow2.f32 %v1334_v29  ;;  %v1351_v45 = vmul.f32 %v8674_v40, %v9441_v14  ;;  %v1340_v17 = vmul.f32 1.442695, %v1302_v10 }
 0x11d   : > { %8693 = vpow2.f32 %v1338_v42  ;;  %v1342_v36 = vmul.f32 1.442695, %v1303_v44  ;;  %vm1612_vm10 = vcmask 449536  }
 0x11e   : > { %8033 = vmatprep.mubr.msk.bf16.mxu1 %vm1377_vm8, %v9461_v51  ;;  %v9468_v27 = vpack.c.bf16 %v1351_v45, %v1350_v19  ;;  %8695 = vpow2.f32 %v1340_v17 }
 0x11f   : > { %v8676_v39 = vpop.eup %8675  ;;  %8697 = vpow2.f32 %v1342_v36 }
 0x120   : > { %v8678_v46 = vpop.eup %8677  ;;  %v1352_v47 = vmul.f32 %v8676_v39, %v9441_v14 }
 0x121   : > { %v1353_v16 = vmul.f32 %v8678_v46, %v9441_v14 }
 0x122   : > { %v8680_v55 = vpop.eup %8679 }
 0x123   : > { %v8682_v1 = vpop.eup %8681  ;;  %8034 = vmatmul.mubr.msk.bf16.gmra.mxu1 %vm1377_vm8, %v9468_v27  ;;  %v9473_v25 = vpack.c.bf16 %v1353_v16, %v1352_v47  ;;  %v1356_v56 = vmul.f32 %v8680_v55, %v9441_v14 }
 0x124   : > { %v8684_v15 = vpop.eup %8683  ;;  %v1357_v13 = vmul.f32 %v8682_v1, %v9441_v14 }
 0x125   : > { %8037 = vmatprep.mubr.msk.bf16.mxu1 %vm1377_vm8, %v9473_v25  ;;  %v1354_v28 = vmul.f32 %v8684_v15, %v9441_v14 }
 0x126   : > { %v8686_v52 = vpop.eup %8685  ;;  %v9483_v23 = vpack.c.bf16 %v1357_v13, %v1356_v56  ;;  %v8571_v56 = vld [vmem:[%s12026_s7 + $0x30] sm:$0x1f]   ;;  %v8983_v13 = vmov 65535  }
 0x127   : > { %v1355_v57 = vmul.f32 %v8686_v52, %v9441_v14  ;;  %v8688_v22 = vpop.eup %8687 }
 0x128   : > { %v8690_v7 = vpop.eup %8689  ;;  %v1360_v58 = vmul.f32 %v8688_v22, %v9441_v14 }
 0x129   : > { %v9481_v43 = vpack.c.bf16 %v1355_v57, %v1354_v28  ;;  %v8692_v30 = vpop.eup %8691  ;;  %v1358_v34 = vmul.f32 %v8690_v7, %v9441_v14  ;;  %v1721_v57 = vsel %vm1408_vm3, 4294967295, %v8983_v13 }
 0x12a   : > { %v8694_v9 = vpop.eup %8693  ;;  %v1359_v11 = vmul.f32 %v8692_v30, %v9441_v14  ;;  %v1722_v22 = vsel %vm1720_vm11, %v1721_v57, 0 }
 0x12b   : > { %8038 = vmatmul.mubr.msk.bf16.gmra.mxu1 %vm1377_vm8, %v9481_v43  ;;  %v1361_v60 = vmul.f32 %v8694_v9, %v9441_v14  ;;  %v8696_v38 = vpop.eup %8695  ;;  %v1724_v9 = vand.u32 %v8571_v56, %v1722_v22 }
 0x12c   : > { %8041 = vmatprep.mubr.msk.bf16.mxu1 %vm1377_vm8, %v9483_v23  ;;  %v9493_v62 = vpack.c.bf16 %v1359_v11, %v1358_v34  ;;  %v8698_v4 = vpop.eup %8697  ;;  %v1362_v63 = vmul.f32 %v8696_v38, %v9441_v14  ;;  %v8572_v34 = vld [vmem:[%s12026_s7 + $0x28] sm:$0xff]   ;;  %v8574_v38 = vld [vmem:[%s12026_s7 + $0x18] sm:$0xff]  }
 0x12d   : > { %v9495_v20 = vpack.c.bf16 %v1361_v60, %v1360_v58  ;;  %v1363_v0 = vmul.f32 %v8698_v4, %v9441_v14  ;;  %8050 = vmatpush3.bf16.msra.mxu0 %v1724_v9  ;;  %v8573_v58 = vld [vmem:[%s12026_s7 + $0x20] sm:$0xff]   ;;  %v8575_v4 = vld [vmem:[%s12026_s7 + $0x10] sm:$0xff]   ;;  %v8579_v9 = vld [vmem:[%s12027_s9 + $0x8] sm:$0xff]  }
 0x12e   : > { %8051 = vmatprep.subr.bf16.mxu0 %v11912_v3 }
 0x12f   : > { %v9503_v8 = vpack.c.bf16 %v1363_v0, %v1362_v63  ;;  %v8576_v63 = vld [vmem:[%s12026_s7 + $0x8] sm:$0xff]   ;;  %v8577_v0 = vld [vmem:[%s12026_s7] sm:$0xff]   ;;  %s11963_s7 = smov 68  }
 0x131   : > { %8052 = vmatpush3.bf16.msra.mxu0 %v8572_v34  ;;  %v8580_v34 = vld [vmem:[%s12027_s9] sm:$0xff]  }
 0x132   : > { %8053 = vmatprep.subr.bf16.mxu0 %v11912_v3 }
 0x133   : > { %8042 = vmatmul.mubr.msk.bf16.gmra.mxu1 %vm1377_vm8, %v9493_v62 }
 0x134   : > { %8045 = vmatprep.mubr.msk.bf16.mxu1 %vm1377_vm8, %v9495_v20 }
 0x135   : > { %8054 = vmatpush3.bf16.msra.mxu0 %v8573_v58 }
 0x136   : > { %8055 = vmatprep.subr.bf16.mxu0 %v11912_v3 }
 0x139   : > { %8056 = vmatpush3.bf16.msra.mxu0 %v8574_v38 }
 0x13a   : > { %8057 = vmatprep.subr.bf16.mxu0 %v11912_v3 }
 0x13b   : > { %8046 = vmatmul.mubr.msk.bf16.gmra.mxu1 %vm1377_vm8, %v9503_v8 }
 0x13c   : > { %8083 = vmatprep.mubr.msk.bf16.mxu1 %vm8971_vm0, %v11912_v3 }
 0x13d   : > { %8058 = vmatpush3.bf16.msra.mxu0 %v8575_v4 }
 0x13e   : > { %8059 = vmatprep.subr.bf16.mxu0 %v11912_v3 }
 0x141   : > { %8060 = vmatpush3.bf16.msra.mxu0 %v8576_v63 }
 0x142   : > { %8061 = vmatprep.subr.bf16.mxu0 %v11912_v3 }
 0x145   : > { %8062 = vmatpush3.bf16.msra.mxu0 %v8577_v0 }
 0x146   : > { %8067 = vmatprep.subr.bf16.mxu0 %v11912_v3 }
 0x1db   : > { %v8031_v18 = vpop.f32.mrf.mxu1 }
 0x1dd   : > { %v1446_v21 = vpop.f32.mrf.mxu1 }
 0x1df   : > { %v8032_v24 = vpop.f32.mrf.mxu1 }
 0x1e0   : > { %v1526_v45 = vpack.c.bf16 %v8032_v24, %v8031_v18 }
 0x1e1   : > { %v1449_v61 = vpop.f32.mrf.mxu1 }
 0x1e2   : > { %v9514_v39 = vpack.c.bf16 %v1449_v61, %v1446_v21  ;;  %v1542_v36 = vrot.slane %v1526_v45, 4 }
 0x1e3   : > { %v8035_v5 = vpop.f32.mrf.mxu1 }
 0x1e4   : > { %v1536_v17 = vrot.slane %v9514_v39, 4 }
 0x1e5   : > { %v1462_v6 = vpop.f32.mrf.mxu1 }
 0x1e7   : > { %v8036_v31 = vpop.f32.mrf.mxu1 }
 0x1e8   : > { %v1528_v16 = vpack.c.bf16 %v8036_v31, %v8035_v5 }
 0x1e9   : > { %v1465_v37 = vpop.f32.mrf.mxu1 }
 0x1ea   : > { %v1527_v47 = vpack.c.bf16 %v1465_v37, %v1462_v6  ;;  %v1554_v1 = vrot.slane %v1528_v16, 4 }
 0x1eb   : > { %v8039_v59 = vpop.f32.mrf.mxu1 }
 0x1ed   : > { %v1478_v49 = vpop.f32.mrf.mxu1 }
 0x1ef   : > { %v8040_v29 = vpop.f32.mrf.mxu1 }
 0x1f0   : > { %v1530_v15 = vpack.c.bf16 %v8040_v29, %v8039_v59 }
 0x1f1   : > { %v1481_v14 = vpop.f32.mrf.mxu1 }
 0x1f2   : > { %v1529_v55 = vpack.c.bf16 %v1481_v14, %v1478_v49  ;;  %v1566_v7 = vrot.slane %v1530_v15, 4 }
 0x1f3   : > { %v8043_v12 = vpop.f32.mrf.mxu1 }
 0x1f4   : > { %v1560_v28 = vrot.slane %v1529_v55, 4 }
 0x1f5   : > { %v1494_v54 = vpop.f32.mrf.mxu1 }
 0x1f7   : > { %v8044_v33 = vpop.f32.mrf.mxu1 }
 0x1f8   : > { %v1532_v30 = vpack.c.bf16 %v8044_v33, %v8043_v12 }
 0x1f9   : > { %v1497_v32 = vpop.f32.mrf.mxu1 }
 0x1fa   : > { %v1531_v52 = vpack.c.bf16 %v1497_v32, %v1494_v54  ;;  %v1578_v60 = vrot.slane %v1532_v30, 4 }
 0x1fb   : > { %v8047_v41 = vpop.f32.mrf.mxu1 }
 0x1fc   : > { %v1572_v11 = vrot.slane %v1531_v52, 4 }
 0x1fd   : > { %v1510_v42 = vpop.f32.mrf.mxu1 }
 0x1ff   : > { %v8048_v53 = vpop.f32.mrf.mxu1 }
 0x200   : > { %v1534_v40 = vpack.c.bf16 %v8048_v53, %v8047_v41 }
 0x201   : > { %v1513_v10 = vpop.f32.mrf.mxu1 }
 0x202   : > { %v9509_v44 = vpack.c.bf16 %v1513_v10, %v1510_v42  ;;  %1632 = vrot.lane.b32.xlu1 %v1534_v40, %s8972_s22  ;;  %v1634_v46 = vrot.slane %v1534_v40, 4 }
 0x204   : > { %v1628_v19 = vrot.slane %v9509_v44, 4 }
 0x206   : > { %1638 = vrot.lane.b32.xlu1 %v9280_v50, %s11886_s2  ;;  %1629 = vrot.lane.b32.xlu0 %v1628_v19, %s8974_s24  ;;  %v1548_v50 = vrot.slane %v1527_v47, 4 }
 0x20a   : > { %1540 = vrot.lane.b32.xlu1 %v1526_v45, %s8972_s22  ;;  %1635 = vrot.lane.b32.xlu0 %v1634_v46, %s8975_s25  ;;  %s8985_s22 = smov 55  }
 0x20e   : > { %1546 = vrot.lane.b32.xlu1 %v1527_v47, %s11886_s2  ;;  %1537 = vrot.lane.b32.xlu0 %v1536_v17, %s8974_s24  ;;  %s11898_s24 = smov 24   ;;  %s11924_s2 = smov 112  }
 0x212   : > { %1552 = vrot.lane.b32.xlu1 %v1528_v16, %s8976_s19  ;;  %1543 = vrot.lane.b32.xlu0 %v1542_v36, %s8975_s25  ;;  %s8986_s19 = smov 65   ;;  %s11906_s25 = smov 8  }
 0x216   : > { %1558 = vrot.lane.b32.xlu1 %v1529_v55, %s11935_s3  ;;  %1549 = vrot.lane.b32.xlu0 %v1548_v50, %s8978_s27  ;;  %s11908_s27 = smov 48  }
 0x21a   : > { %1564 = vrot.lane.b32.xlu1 %v1530_v15, %s8979_s28  ;;  %1555 = vrot.lane.b32.xlu0 %v1554_v1, %s8980_s4  ;;  %s8987_s4 = smov 75   ;;  %s11890_s28 = smov 56  }
 0x21e   : > { %1570 = vrot.lane.b32.xlu1 %v1531_v52, %s8981_s0  ;;  %1561 = vrot.lane.b32.xlu0 %v1560_v28, %s8982_s21  ;;  %s11931_s0 = smov 72   ;;  %s11894_s21 = smov 96  }
 0x222   : > { %1576 = vrot.lane.b32.xlu1 %v1532_v30, %s8984_s1  ;;  %1567 = vrot.lane.b32.xlu0 %v1566_v7, %s8985_s22  ;;  %v8578_v7 = vld [vmem:[%s12027_s9 + $0x10] ss:$0 sps:$4 sm:$0xff]   ;;  %s12030_s1 = sld [smem:[#allocation43_spill]] }
 0x223   : > { %v1807_v30 = vsel %vm1408_vm3, %v8578_v7, 0 }
 0x226   : > { %1573 = vrot.lane.b32.xlu0 %v1572_v11, %s8986_s19  ;;  %s11933_s19 = smov 80   ;;  %v7222_v11 = vld [vmem:[%s12028_s8] ss:$0 sm:$0xff]  ;;  %s12140_s8 = smov 108  }
 0x228   : > { %s690_s22 = scalar_lea.vmem %s12030_s1, %s9134_s26  ;;  %s12047_s1 = smov 96  }
 0x22a   : > { %1579 = vrot.lane.b32.xlu0 %v1578_v60, %s8987_s4  ;;  %s11937_s4 = smov 32  }
 0x274   : > { %v1633_v18 = vpop.permute.xlu1 %1632 }
 0x278   : > { %v1630_v21 = vpop.permute.xlu0 %1629  ;;  %v1639_v6 = vpop.permute.xlu1 %1638 }
 0x279   : > { %v1642_v24 = vsel %vm1581_vm12, %v9509_v44, %v1630_v21 }
 0x27a   : > { %v1644_v61 = vsel %vm1585_vm13, %v1642_v24, %v1633_v18 }
 0x27c   : > { %v1636_v5 = vpop.permute.xlu0 %1635  ;;  %v1541_v29 = vpop.permute.xlu1 %1540 }
 0x27d   : > { %v1646_v31 = vsel %vm1588_vm14, %v1644_v61, %v1636_v5 }
 0x27e   : > { %v1648_v37 = vsel %vm11956_vm15, %v1646_v31, %v1639_v6 }
 0x27f   : > { %1650 = vrot.lane.b32.xlu1 %v1648_v37, %s11933_s19 }
 0x280   : > { %v1538_v59 = vpop.permute.xlu0 %1537  ;;  %v1547_v33 = vpop.permute.xlu1 %1546 }
 0x281   : > { %v1584_v49 = vsel %vm1581_vm12, %v9514_v39, %v1538_v59 }
 0x282   : > { %v1587_v14 = vsel %vm1585_vm13, %v1584_v49, %v1541_v29  ;;  %vm1615_vm13 = vcmask 490496   ;;  %v8581_v49 = vld [vmem:[%s12027_s9 + $0x24] ss:$0 sps:$4 sm:$0xff]  }
 0x283   : > { %v1892_v29 = vsel %vm1408_vm3, %v8581_v49, 0 }
 0x284   : > { %v1544_v12 = vpop.permute.xlu0 %1543  ;;  %v1553_v41 = vpop.permute.xlu1 %1552  ;;  %8078 = vmatpush3.bf16.msra.mxu1 %v1892_v29 }
 0x285   : > { %v1590_v54 = vsel %vm1588_vm14, %v1587_v14, %v1544_v12  ;;  %vm1618_vm14 = vcmask 531456   ;;  %v8582_v14 = vld [vmem:[%s12027_s9 + $0x1c] sm:$0xff]   ;;  %8079 = vmatprep.subr.bf16.mxu1 %v11912_v3  ;;  %v8583_v12 = vld [vmem:[%s12027_s9 + $0x14] sm:$0xff]  }
 0x286   : > { %v1593_v40 = vsel %vm11956_vm15, %v1590_v54, %v1547_v33  ;;  %v7231_v54 = vld [vmem:[%s12029_s10] ss:$0 sm:$0xff] }
 0x288   : > { %v1550_v32 = vpop.permute.xlu0 %1549  ;;  %v1559_v53 = vpop.permute.xlu1 %1558  ;;  %8080 = vmatpush3.bf16.msra.mxu1 %v8582_v14 }
 0x289   : > { %v1596_v44 = vsel %vm1594_vm1, %v1593_v40, %v1550_v32  ;;  %vm1621_vm1 = vcmask 572416   ;;  %8081 = vmatprep.subr.bf16.mxu1 %v11912_v3 }
 0x28a   : > { %v1599_v19 = vsel %vm1597_vm4, %v1596_v44, %v1553_v41  ;;  %vm1624_vm4 = vcmask 613376  }
 0x28c   : > { %v1556_v42 = vpop.permute.xlu0 %1555  ;;  %v1565_v45 = vpop.permute.xlu1 %1564  ;;  %8082 = vmatpush3.bf16.msra.mxu1 %v8583_v12 }
 0x28d   : > { %v1602_v46 = vsel %vm1600_vm5, %v1599_v19, %v1556_v42  ;;  %vm1652_vm5 = vcmask 654336   ;;  %8097 = vmatprep.subr.mxu1 %v11912_v3 }
 0x28e   : > { %v1605_v17 = vsel %vm1603_vm6, %v1602_v46, %v1559_v53  ;;  %v9599_v46 = vld [vmem:[%s690_s22] sm:$0xff]  ;;  %s11900_s22 = smov 16  }
 0x290   : > { %v1562_v10 = vpop.permute.xlu0 %1561  ;;  %v1571_v36 = vpop.permute.xlu1 %1570 }
 0x291   : > { %v1608_v47 = vsel %vm1606_vm7, %v1605_v17, %v1562_v10  ;;  %vm2297_vm7 = vcmask 261120  }
 0x292   : > { %v1611_v16 = vsel %vm1609_vm9, %v1608_v47, %v1565_v45  ;;  %vm11904_vm9 = vcmask 392192  }
 0x294   : > { %v1568_v39 = vpop.permute.xlu0 %1567  ;;  %v1577_v15 = vpop.permute.xlu1 %1576 }
 0x295   : > { %v1614_v55 = vsel %vm1612_vm10, %v1611_v16, %v1568_v39  ;;  %vm2305_vm10 = vcmask 457728  }
 0x296   : > { %v1617_v1 = vsel %vm1615_vm13, %v1614_v55, %v1571_v36  ;;  %v2028_v55 = vld [vmem:[%s12031_s17] sm:$0x1f]  ;;  %vm11903_vm13 = vcmask 523264   ;;  %s12136_s17 = smov 68  }
 0x298   : > { %v1574_v50 = vpop.permute.xlu0 %1573 }
 0x299   : > { %v1620_v28 = vsel %vm1618_vm14, %v1617_v1, %v1574_v50  ;;  %vm2311_vm14 = vcmask 588800  }
 0x29a   : > { %v1623_v56 = vsel %vm1621_vm1, %v1620_v28, %v1577_v15  ;;  %vm2316_vm1 = vcmask 719872  }
 0x29c   : > { %v1580_v52 = vpop.permute.xlu0 %1579 }
 0x29d   : > { %v1626_v13 = vsel %vm1624_vm4, %v1623_v56, %v1580_v52  ;;  %v8585_v52 = vld [vmem:[%s12027_s9 + $0x30] sm:$0xff]   ;;  %v8586_v56 = vld [vmem:[%s12027_s9 + $0x28] sm:$0xff]   ;;  %vm2319_vm4 = vcmask 785408  }
 0x2f1   : > { %v1651_v57 = vpop.permute.xlu1 %1650 }
 0x2f2   : > { %v1654_v22 = vsel %vm1652_vm5, %v1626_v13, %v1651_v57  ;;  %v7242_v13 = vld [vmem:[%s12029_s10 + $0x1] ss:$0 sm:$0xff] }
 0x2f3   : > { %8064 = vmatmul.mubr.msk.bf16.vlgmr.msra.gmra.mxu0 %vm1717_vm2, %v1654_v22  ;;  %vm11902_vm2 = vcmask 7168  }
 0x2f4   : > { %8073 = vmatprep.mubr.msk.bf16.mxu0 %vm8971_vm0, %v11912_v3  ;;  %8068 = vmatpush3.bf16.msra.mxu0 %v1807_v30  ;;  %v2114_v36 = vsel %vm11902_vm2, %v9599_v46, 0.0  ;;  %vm11905_vm2 = vcmask 850944  }
 0x2f5   : > { %8069 = vmatprep.subr.bf16.mxu0 %v11912_v3  ;;  %v9606_v1 = vpack.c.bf16 %v2114_v36, %v2114_v36 }
 0x2f7   : > { %v2117_v15 = vsel %vm1408_vm3, %v9606_v1, 0 }
 0x2f8   : > { %8070 = vmatpush3.bf16.msra.mxu0 %v8579_v9 }
 0x2f9   : > { %8071 = vmatprep.subr.bf16.mxu0 %v11912_v3 }
 0x2fc   : > { %8072 = vmatpush3.bf16.msra.mxu0 %v8580_v34 }
 0x2fd   : > { %8087 = vmatprep.subr.bf16.mxu0 %v11912_v3 }
 0x3b3   : > { %v1760_v58 = vpop.f32.mrf.mxu0 }
 0x3b4   : > { %v1761_v60 = vadd.f32 %v7222_v11, %v1760_v58 }
 0x3b5   : > { %v8065_v38 = vpop.f32.mrf.mxu0 }
 0x3b6   : > { %v1767_v4 = vand.u32 2147483647, %v1761_v60  ;;  %v1766_v6 = vmax.f32 %v1761_v60, 0.0 }
 0x3b7   : > { %v1763_v63 = vpop.f32.mrf.mxu0 }
 0x3b8   : > { %v1768_v0 = vsub.f32 0.0, %v1767_v4 }
 0x3b9   : > { %v8066_v18 = vpop.f32.mrf.mxu0 }
 0x3ba   : > { %v1769_v21 = vmul.f32 1.442695, %v1768_v0 }
 0x3bc   : > { %8699 = vpow2.f32 %v1769_v21 }
 0x3c9   : > { %v8700_v24 = vpop.eup %8699 }
 0x3ca   : > { %v1771_v61 = vadd.f32 1.0, %v8700_v24 }
 0x3cc   : > { %8701 = vlog2.f32 %v1771_v61 }
 0x3d9   : > { %v8702_v5 = vpop.eup %8701 }
 0x3da   : > { %v1773_v31 = vmul.f32 0.6931472, %v8702_v5 }
 0x3dc   : > { %v1774_v37 = vadd.f32 %v1773_v31, %v1766_v6 }
 0x3de   : > { %v1775_v59 = vpack.c.bf16 %v1774_v37, %v1774_v37 }
 0x3e0   : > { %8074 = vmatmul.mubr.msk.bf16.vlgmr.msra.gmra.mxu0 %vm1603_vm6, %v1775_v59 }
 0x3e1   : > { %8093 = vmatprep.mubr.msk.bf16.mxu0 %vm8971_vm0, %v11912_v3 }
 0x4a0   : > { %v1843_v33 = vpop.f32.mrf.mxu0 }
 0x4a1   : > { %v1844_v32 = vadd.f32 %v7231_v54, %v1843_v33 }
 0x4a2   : > { %v8075_v41 = vpop.f32.mrf.mxu0 }
 0x4a3   : > { %v1850_v42 = vand.u32 2147483647, %v1844_v32  ;;  %v1849_v17 = vmax.f32 %v1844_v32, 0.0 }
 0x4a4   : > { %v1846_v53 = vpop.f32.mrf.mxu0 }
 0x4a5   : > { %v1851_v40 = vsub.f32 0.0, %v1850_v42 }
 0x4a6   : > { %v8076_v10 = vpop.f32.mrf.mxu0 }
 0x4a7   : > { %v1852_v44 = vmul.f32 1.442695, %v1851_v40 }
 0x4a9   : > { %8703 = vpow2.f32 %v1852_v44 }
 0x4b6   : > { %v8704_v19 = vpop.eup %8703 }
 0x4b7   : > { %v1854_v45 = vadd.f32 1.0, %v8704_v19 }
 0x4b9   : > { %8705 = vlog2.f32 %v1854_v45 }
 0x4c6   : > { %v8706_v39 = vpop.eup %8705 }
 0x4c7   : > { %v1856_v47 = vmul.f32 0.6931472, %v8706_v39 }
 0x4c9   : > { %v1857_v16 = vadd.f32 %v1856_v47, %v1849_v17 }
 0x4cb   : > { %v1858_v50 = vpack.c.bf16 %v1857_v16, %v1857_v16 }
 0x4cd   : > { %8084 = vmatmul.mubr.msk.bf16.vlgmr.msra.gmra.mxu1 %vm1603_vm6, %v1858_v50 }
 0x4ce   : > { %8098 = vmatpush3.msk.msra.mxu1 %vm1720_vm11, %v2028_v55  ;;  %8099 = vmatprep.mubr.msk.f32.mxu1 %vm8971_vm0, %v11912_v3  ;;  %vm2291_vm11 = vcmask 130048  }
 0x4cf   : > { %8513 = vmatprep.subr.msk.bf16.mxu1 %vm1408_vm3, %v9606_v1 }
 0x4d5   : > { %8100 = vmatmul.mubr.msk.f32.vlgmr.msra.gmra.mxu1 %vm1581_vm12, %v9274_v48  ;;  %v8584_v48 = vld [vmem:[%s12027_s9 + $0x38] ss:$0 sps:$4 sm:$0xff]   ;;  %vm2294_vm12 = vcmask 195584   ;;  %s9006_s9 = smov 2  }
 0x4d6   : > { %8103 = vmatpush3.bf16.msra.mxu1 %v2117_v15  ;;  %8104 = vmatprep.mubr.msk.bf16.mxu1 %vm1377_vm8, %v9449_v26  ;;  %v1977_v28 = vsel %vm1408_vm3, %v8584_v48, 0  ;;  %v9676_v15 = vld [vmem:[%s11875_s11 + $0x38] sm:$0xff]  }
 0x4d7   : > { %8124 = vmatprep.subr.bf16.mxu1 %v11912_v3  ;;  %8088 = vmatpush3.bf16.msra.mxu0 %v1977_v28 }
 0x4d8   : > { %8089 = vmatprep.subr.bf16.mxu0 %v11912_v3 }
 0x4d9   : > { %8105 = vmatmul.mubr.msk.bf16.vlgmr.msra.gmra.mxu1 %vm1377_vm8, %v9455_v35 }
 0x4da   : > { %8108 = vmatprep.mubr.msk.bf16.mxu1 %vm1377_vm8, %v9461_v51 }
 0x4db   : > { %8090 = vmatpush3.bf16.msra.mxu0 %v8585_v52 }
 0x4dc   : > { %8091 = vmatprep.subr.bf16.mxu0 %v11912_v3 }
 0x4df   : > { %8092 = vmatpush3.bf16.msra.mxu0 %v8586_v56 }
 0x4e0   : > { %2450 = vmatprep.subr.bf16.mxu0 %v11910_v2 }
 0x4e1   : > { %8109 = vmatmul.mubr.msk.bf16.gmra.mxu1 %vm1377_vm8, %v9468_v27 }
 0x4e2   : > { %8112 = vmatprep.mubr.msk.bf16.mxu1 %vm1377_vm8, %v9473_v25 }
 0x4e9   : > { %8113 = vmatmul.mubr.msk.bf16.gmra.mxu1 %vm1377_vm8, %v9481_v43 }
 0x4ea   : > { %8116 = vmatprep.mubr.msk.bf16.mxu1 %vm1377_vm8, %v9483_v23 }
 0x4f1   : > { %8117 = vmatmul.mubr.msk.bf16.gmra.mxu1 %vm1377_vm8, %v9493_v62 }
 0x4f2   : > { %8120 = vmatprep.mubr.msk.bf16.mxu1 %vm1377_vm8, %v9495_v20 }
 0x4f9   : > { %8121 = vmatmul.mubr.msk.bf16.gmra.mxu1 %vm1377_vm8, %v9503_v8 }
 0x4fa   : > { %8128 = vmatprep.mubr.msk.bf16.mxu1 %vm8971_vm0, %v11912_v3 }
 0x58d   : > { %v1928_v57 = vpop.f32.mrf.mxu1 }
 0x58e   : > { %v1929_v22 = vadd.f32 %v7242_v13, %v1928_v57  ;;  %v9684_v13 = vld [vmem:[%s11875_s11 + $0x30] sm:$0xff]  }
 0x58f   : > { %v8085_v7 = vpop.f32.mrf.mxu1 }
 0x590   : > { %v1935_v30 = vand.u32 2147483647, %v1929_v22  ;;  %v1934_v17 = vmax.f32 %v1929_v22, 0.0 }
 0x591   : > { %v1931_v9 = vpop.f32.mrf.mxu1 }
 0x592   : > { %v1936_v34 = vsub.f32 0.0, %v1935_v30  ;;  %v9692_v9 = vld [vmem:[%s11875_s11 + $0x28] sm:$0xff]  }
 0x593   : > { %v8086_v11 = vpop.f32.mrf.mxu1 }
 0x594   : > { %v1937_v58 = vmul.f32 1.442695, %v1936_v34 }
 0x595   : > { %v9657_v60 = vpop.f32.mrf.mxu1 }
 0x596   : > { %12032 = vst [vmem:[#allocation5_spill] sm:$0xff] %v9657_v60  ;;  %8707 = vpow2.f32 %v1937_v58 }
 0x597   : > { %v8101_v38 = vpop.f32.mrf.mxu1 }
 0x598   : > { %v9703_v38 = vld [vmem:[%s11875_s11 + $0x20] sm:$0xff]  }
 0x599   : > { %v8106_v4 = vpop.f32.mrf.mxu1 }
 0x59b   : > { %v2153_v63 = vpop.f32.mrf.mxu1 }
 0x59d   : > { %v8107_v0 = vpop.f32.mrf.mxu1 }
 0x59e   : > { %v2233_v18 = vpack.c.bf16 %v8107_v0, %v8106_v4  ;;  %v9713_v0 = vld [vmem:[%s11875_s11 + $0x18] sm:$0xff]  }
 0x59f   : > { %v2156_v21 = vpop.f32.mrf.mxu1 }
 0x5a0   : > { %v2249_v24 = vrot.slane %v2233_v18, 4  ;;  %v9659_v61 = vpack.c.bf16 %v2156_v21, %v2153_v63  ;;  %2247 = vrot.lane.b32.xlu1 %v2233_v18, %s11900_s22  ;;  %v9721_v18 = vld [vmem:[%s11875_s11 + $0x10] sm:$0xff]   ;;  %v9730_v21 = vld [vmem:[%s11875_s11 + $0x8] sm:$0xff]  }
 0x5a1   : > { %v8110_v5 = vpop.f32.mrf.mxu1 }
 0x5a2   : > { %2250 = vrot.lane.b32.xlu0 %v2249_v24, %s11898_s24  ;;  %v2243_v59 = vrot.slane %v9659_v61, 4  ;;  %v9737_v24 = vld [vmem:[%s11875_s11] sm:$0xff]  }
 0x5a3   : > { %v8708_v6 = vpop.eup %8707  ;;  %v2169_v31 = vpop.f32.mrf.mxu1 }
 0x5a4   : > { %v1939_v37 = vadd.f32 1.0, %v8708_v6  ;;  %v9752_v6 = vld [vmem:[%s11875_s11 + $0x48] sm:$0xff]  }
 0x5a5   : > { %v8111_v49 = vpop.f32.mrf.mxu1 }
 0x5a6   : > { %8709 = vlog2.f32 %v1939_v37  ;;  %v2235_v29 = vpack.c.bf16 %v8111_v49, %v8110_v5  ;;  %2244 = vrot.lane.b32.xlu0 %v2243_v59, %s11906_s25 }
 0x5a7   : > { %v2172_v14 = vpop.f32.mrf.mxu1 }
 0x5a8   : > { %v2261_v12 = vrot.slane %v2235_v29, 4  ;;  %v2234_v54 = vpack.c.bf16 %v2172_v14, %v2169_v31  ;;  %2259 = vrot.lane.b32.xlu1 %v2235_v29, %s11908_s27  ;;  %v9759_v31 = vld [vmem:[%s11875_s11 + $0x40] sm:$0xff]   ;;  %s12059_s27 = smov 56  }
 0x5a9   : > { %v8114_v33 = vpop.f32.mrf.mxu1 }
 0x5aa   : > { %2262 = vrot.lane.b32.xlu0 %v2261_v12, %s11890_s28  ;;  %v2255_v41 = vrot.slane %v2234_v54, 4  ;;  %s11896_s28 = smov 104  }
 0x5ab   : > { %v2185_v32 = vpop.f32.mrf.mxu1 }
 0x5ac   : > { %2253 = vrot.lane.b32.xlu1 %v2234_v54, %s11937_s4 }
 0x5ad   : > { %v8115_v42 = vpop.f32.mrf.mxu1 }
 0x5ae   : > { %v2237_v53 = vpack.c.bf16 %v8115_v42, %v8114_v33  ;;  %2256 = vrot.lane.b32.xlu0 %v2255_v41, %s11935_s3 }
 0x5af   : > { %v2188_v40 = vpop.f32.mrf.mxu1 }
 0x5b0   : > { %v2273_v10 = vrot.slane %v2237_v53, 4  ;;  %v2236_v44 = vpack.c.bf16 %v2188_v40, %v2185_v32  ;;  %2271 = vrot.lane.b32.xlu1 %v2237_v53, %s11933_s19 }
 0x5b1   : > { %v8118_v19 = vpop.f32.mrf.mxu1 }
 0x5b2   : > { %2274 = vrot.lane.b32.xlu0 %v2273_v10, %s11892_s29  ;;  %v2267_v36 = vrot.slane %v2236_v44, 4  ;;  %s11929_s29 = smov 120  }
 0x5b3   : > { %v8710_v45 = vpop.eup %8709  ;;  %v2201_v39 = vpop.f32.mrf.mxu1 }
 0x5b4   : > { %v1941_v47 = vmul.f32 0.6931472, %v8710_v45  ;;  %2265 = vrot.lane.b32.xlu1 %v2236_v44, %s11888_s30  ;;  %s9002_s30 = smov 127  }
 0x5b5   : > { %v8119_v16 = vpop.f32.mrf.mxu1 }
 0x5b6   : > { %v1942_v50 = vadd.f32 %v1941_v47, %v1934_v17  ;;  %2268 = vrot.lane.b32.xlu0 %v2267_v36, %s11931_s0  ;;  %v2239_v28 = vpack.c.bf16 %v8119_v16, %v8118_v19 }
 0x5b7   : > { %v2204_v55 = vpop.f32.mrf.mxu1 }
 0x5b8   : > { %v1943_v48 = vpack.c.bf16 %v1942_v50, %v1942_v50  ;;  %v2238_v57 = vpack.c.bf16 %v2204_v55, %v2201_v39  ;;  %v2285_v4 = vrot.slane %v2239_v28, 4 }
 0x5b9   : > { %v8122_v52 = vpop.f32.mrf.mxu1 }
 0x5ba   : > { %8094 = vmatmul.mubr.msk.bf16.vlgmr.msra.gmra.mxu0 %vm1603_vm6, %v1943_v48  ;;  %2283 = vrot.lane.b32.xlu0 %v2239_v28, %s11924_s2  ;;  %v2279_v34 = vrot.slane %v2238_v57, 4 }
 0x5bb   : > { %v2217_v56 = vpop.f32.mrf.mxu1  ;;  %2451 = vmatpush1.bf16.msra.mxu0 %v9676_v15 }
 0x5bc   : > { %2452 = vmatprep.subr.bf16.mxu0 %v11910_v2 }
 0x5bd   : > { %v8123_v22 = vpop.f32.mrf.mxu1 }
 0x5be   : > { %v2241_v7 = vpack.c.bf16 %v8123_v22, %v8122_v52  ;;  %2277 = vrot.lane.b32.xlu0 %v2238_v57, %s11894_s21  ;;  %s12044_s21 = smov 48  }
 0x5bf   : > { %v2220_v30 = vpop.f32.mrf.mxu1  ;;  %2453 = vmatpush1.bf16.msra.mxu0 %v9684_v13 }
 0x5c0   : > { %2337 = vrot.lane.b32.xlu1 %v2241_v7, %s11900_s22  ;;  %2454 = vmatprep.subr.bf16.mxu0 %v11910_v2  ;;  %v2339_v11 = vrot.slane %v2241_v7, 4  ;;  %v9696_v58 = vpack.c.bf16 %v2220_v30, %v2217_v56  ;;  %s12048_s22 = smov 8  }
 0x5c2   : > { %2280 = vrot.lane.b32.xlu0 %v2279_v34, %s11896_s28  ;;  %v2333_v63 = vrot.slane %v9696_v58, 4  ;;  %s12055_s28 = smov 88  }
 0x5c3   : > { %2455 = vmatpush1.bf16.msra.mxu0 %v9692_v9 }
 0x5c4   : > { %2340 = vrot.lane.b32.xlu1 %v2339_v11, %s11898_s24  ;;  %2456 = vmatprep.subr.bf16.mxu0 %v11910_v2  ;;  %s12060_s24 = smov 24  }
 0x5c6   : > { %2286 = vrot.lane.b32.xlu0 %v2285_v4, %s11929_s29 }
 0x5c7   : > { %2457 = vmatpush1.bf16.msra.mxu0 %v9703_v38 }
 0x5c8   : > { %2334 = vrot.lane.b32.xlu1 %v2333_v63, %s11906_s25  ;;  %2458 = vmatprep.subr.bf16.mxu0 %v11910_v2  ;;  %s12058_s25 = smov 104  }
 0x5cb   : > { %2459 = vmatpush1.bf16.msra.mxu0 %v9713_v0 }
 0x5cc   : > { %2343 = vrot.lane.b32.xlu1 %v9606_v1, %s11937_s4  ;;  %2460 = vmatprep.subr.bf16.mxu0 %v11910_v2  ;;  %v8595_v1 = vld [vmem:[%s11875_s11 + $0x50] ss:$0 sps:$4 sm:$0xff]  }
 0x5cd   : > { %v9746_v5 = vsel %vm1408_vm3, %v8595_v1, 0 }
 0x5ce   : > { %12033 = vst [vmem:[#allocation6_spill] sm:$0xff] %v9746_v5 }
 0x5cf   : > { %2461 = vmatpush1.bf16.msra.mxu0 %v9721_v18 }
 0x5d0   : > { %2462 = vmatprep.subr.bf16.mxu0 %v11910_v2 }
 0x5d3   : > { %2463 = vmatpush1.bf16.msra.mxu0 %v9730_v21 }
 0x5d4   : > { %2464 = vmatprep.subr.bf16.mxu0 %v11910_v2 }
 0x5d7   : > { %2465 = vmatpush1.bf16.msra.mxu0 %v9737_v24 }
 0x5d8   : > { %2476 = vmatprep.subr.bf16.mxu0 %v11910_v2 }
 0x5db   : > { %2477 = vmatpush2.bf16.msra.mxu0 %v9746_v5 }
 0x5dc   : > { %2478 = vmatprep.subr.bf16.mxu0 %v11910_v2 }
 0x5df   : > { %2479 = vmatpush2.bf16.msra.mxu0 %v9752_v6 }
 0x5e0   : > { %2480 = vmatprep.subr.bf16.mxu0 %v11910_v2  ;;  %v10028_v2 = vld [vmem:[%s11879_s15 + $0xa8] sm:$0xff]  }
 0x5e1   : > { %12041 = vst [vmem:[#allocation14_spill] sm:$0xff] %v10028_v2 }
 0x5e3   : > { %2481 = vmatpush2.bf16.msra.mxu0 %v9759_v31 }
 0x5e4   : > { %8140 = vmatprep.subr.bf16.mxu0 %v11912_v3 }
 0x612   : > { %v2248_v59 = vpop.permute.xlu1 %2247 }
 0x614   : > { %v2251_v37 = vpop.permute.xlu0 %2250 }
 0x618   : > { %v2245_v49 = vpop.permute.xlu0 %2244 }
 0x619   : > { %v2290_v12 = vsel %vm1377_vm8, %v9659_v61, %v2245_v49 }
 0x61a   : > { %v2260_v29 = vpop.permute.xlu1 %2259  ;;  %v2293_v32 = vsel %vm2291_vm11, %v2290_v12, %v2248_v59  ;;  %v9800_v12 = vld [vmem:[%s11877_s13] sm:$0xff]  }
 0x61b   : > { %v2296_v42 = vsel %vm2294_vm12, %v2293_v32, %v2251_v37 }
 0x61c   : > { %v2263_v14 = vpop.permute.xlu0 %2262 }
 0x61e   : > { %v2254_v33 = vpop.permute.xlu1 %2253 }
 0x61f   : > { %v2299_v53 = vsel %vm2297_vm7, %v2296_v42, %v2254_v33 }
 0x620   : > { %v2257_v54 = vpop.permute.xlu0 %2256 }
 0x621   : > { %v2301_v44 = vsel %vm1603_vm6, %v2299_v53, %v2257_v54  ;;  %v7271_v54 = vld [vmem:[%s11876_s12] ss:$0 sm:$0xff] }
 0x622   : > { %v2272_v40 = vpop.permute.xlu1 %2271  ;;  %v2304_v45 = vsel %vm11904_vm9, %v2301_v44, %v2260_v29  ;;  %vm2328_vm9 = vcmask 982016   ;;  %v8598_v29 = vld [vmem:[%s11877_s13 + $0x8] ss:$0 sps:$4 sm:$0x33]  }
 0x623   : > { %v2307_v39 = vsel %vm2305_vm10, %v2304_v45, %v2263_v14 }
 0x624   : > { %v2275_v41 = vpop.permute.xlu0 %2274 }
 0x626   : > { %v2266_v61 = vpop.permute.xlu1 %2265 }
 0x627   : > { %v2310_v17 = vsel %vm11903_vm13, %v2307_v39, %v2266_v61  ;;  %vm2325_vm13 = vcmask 916480  }
 0x628   : > { %v2269_v10 = vpop.permute.xlu0 %2268 }
 0x629   : > { %v2313_v16 = vsel %vm2311_vm14, %v2310_v17, %v2269_v10 }
 0x62a   : > { %v2315_v55 = vsel %vm1652_vm5, %v2313_v16, %v2272_v40  ;;  %v8600_v16 = vld [vmem:[%s11877_s13 + $0x14] ss:$0 sps:$4 sm:$0x33]  }
 0x62b   : > { %v2318_v28 = vsel %vm2316_vm1, %v2315_v55, %v2275_v41  ;;  %v9821_v55 = vld [vmem:[%s11877_s13 + $0xc] sm:$0xff]  }
 0x62c   : > { %v2284_v19 = vpop.permute.xlu0 %2283 }
 0x630   : > { %v2278_v47 = vpop.permute.xlu0 %2277 }
 0x631   : > { %v2321_v56 = vsel %vm2319_vm4, %v2318_v28, %v2278_v47 }
 0x632   : > { %v2338_v36 = vpop.permute.xlu1 %2337 }
 0x634   : > { %v2281_v48 = vpop.permute.xlu0 %2280 }
 0x635   : > { %v2324_v22 = vsel %vm11905_vm2, %v2321_v56, %v2281_v48  ;;  %vm2522_vm2 = vcmask 1041408   ;;  %v7284_v48 = vld [vmem:[%s11878_s14] ss:$0 sm:$0xff] }
 0x636   : > { %v2341_v50 = vpop.permute.xlu1 %2340  ;;  %v2327_v4 = vsel %vm2325_vm13, %v2324_v22, %v2284_v19  ;;  %v9794_v14 = vsel %vm2522_vm2, %v8598_v29, 0  ;;  %v8602_v29 = vld [vmem:[%s11877_s13 + $0x20] ss:$0 sps:$4 sm:$0x33]  }
 0x637   : > { %12034 = vst [vmem:[#allocation7_spill] sm:$0xff] %v9794_v14  ;;  %8125 = vmatpush3.bf16.msra.mxu1 %v9794_v14 }
 0x638   : > { %v2287_v30 = vpop.permute.xlu0 %2286  ;;  %8126 = vmatprep.subr.bf16.mxu1 %v11912_v3 }
 0x639   : > { %v2330_v1 = vsel %vm2328_vm9, %v2327_v4, %v2287_v30 }
 0x63a   : > { %v2335_v52 = vpop.permute.xlu1 %2334 }
 0x63b   : > { %v2347_v57 = vsel %vm1377_vm8, %v9696_v58, %v2335_v52  ;;  %8127 = vmatpush3.bf16.msra.mxu1 %v9800_v12 }
 0x63c   : > { %v2349_v7 = vsel %vm2291_vm11, %v2347_v57, %v2338_v36  ;;  %8132 = vmatprep.subr.bf16.mxu1 %v11912_v3 }
 0x63d   : > { %v2351_v34 = vsel %vm2294_vm12, %v2349_v7, %v2341_v50  ;;  %v9815_v50 = vsel %vm2522_vm2, %v8600_v16, 0 }
 0x63e   : > { %v2344_v11 = vpop.permute.xlu1 %2343 }
 0x63f   : > { %v2353_v63 = vsel %vm2297_vm7, %v2351_v34, %v2344_v11 }
 0x640   : > { %7283 = vmatprep.mubr.msk.bf16.mxu0 %vm1603_vm6, %v2353_v63 }
 0x641   : > { %2483 = vmatmul.mubr.bf16.vlgmr.msra.gmra.mxu0 %v2330_v1 }
 0x642   : > { %8144 = vmatprep.mubr.msk.bf16.mxu0 %vm8971_vm0, %v11912_v3 }
 0x67a   : > { %v9788_v58 = vpop.f32.mrf.mxu0 }
 0x67c   : > { %v8095_v37 = vpop.f32.mrf.mxu0 }
 0x67e   : > { %v2016_v59 = vpop.f32.mrf.mxu0 }
 0x680   : > { %v8096_v49 = vpop.f32.mrf.mxu0 }
 0x701   : > { %v2484_v33 = vpop.f32.mrf.mxu0 }
 0x702   : > { %v2485_v32 = vadd.f32 %v7271_v54, %v2484_v33  ;;  %v9835_v54 = vsel %vm2522_vm2, %v8602_v29, 0  ;;  %v9841_v33 = vld [vmem:[%s11877_s13 + $0x18] sm:$0xff]   ;;  %vm12075_vm2 = vcmask 7168  }
 0x703   : > { %v2486_v41 = vpop.f32.mrf.mxu0  ;;  %8141 = vmatpush3.bf16.msra.mxu0 %v9835_v54 }
 0x704   : > { %v2491_v42 = vand.u32 2147483647, %v2485_v32  ;;  %v2490_v39 = vmax.f32 %v2485_v32, 0.0  ;;  %8142 = vmatprep.subr.bf16.mxu0 %v11912_v3  ;;  %v7292_v32 = vld [vmem:[%s11878_s14 + $0x1] ss:$0 sm:$0xff] }
 0x705   : > { %v2487_v53 = vpop.f32.mrf.mxu0 }
 0x706   : > { %v2492_v40 = vsub.f32 0.0, %v2491_v42 }
 0x707   : > { %v2488_v10 = vpop.f32.mrf.mxu0  ;;  %8143 = vmatpush3.bf16.msra.mxu0 %v9841_v33 }
 0x708   : > { %v2493_v44 = vmul.f32 1.442695, %v2492_v40 }
 0x70a   : > { %8711 = vpow2.f32 %v2493_v44 }
 0x717   : > { %v8712_v19 = vpop.eup %8711 }
 0x718   : > { %v2495_v45 = vadd.f32 1.0, %v8712_v19 }
 0x71a   : > { %8713 = vlog2.f32 %v2495_v45 }
 0x727   : > { %v8714_v61 = vpop.eup %8713 }
 0x728   : > { %v2497_v17 = vmul.f32 0.6931472, %v8714_v61 }
 0x72a   : > { %v2498_v47 = vadd.f32 %v2497_v17, %v2490_v39 }
 0x72c   : > { %v2499_v36 = vpack.c.bf16 %v2498_v47, %v2498_v47 }
 0x72e   : > { %8129 = vmatmul.mubr.msk.bf16.vlgmr.msra.gmra.mxu1 %vm11956_vm15, %v2499_v36 }
 0x72f   : > { %8136 = vmatprep.mubr.msk.bf16.mxu1 %vm8971_vm0, %v11912_v3  ;;  %8133 = vmatpush3.bf16.msra.mxu1 %v9815_v50 }
 0x730   : > { %8134 = vmatprep.subr.bf16.mxu1 %v11912_v3 }
 0x733   : > { %8135 = vmatpush3.bf16.msra.mxu1 %v9821_v55 }
 0x7ee   : > { %v2560_v28 = vpop.f32.mrf.mxu1 }
 0x7ef   : > { %v2561_v52 = vadd.f32 %v7284_v48, %v2560_v28  ;;  %v7253_v28 = vld [vmem:[%s12029_s10 + $0x2] ss:$0 sm:$0xff] }
 0x7f0   : > { %v8130_v56 = vpop.f32.mrf.mxu1 }
 0x7f1   : > { %v2567_v57 = vand.u32 2147483647, %v2561_v52  ;;  %v2566_v1 = vmax.f32 %v2561_v52, 0.0  ;;  %v2014_v52 = vadd.f32 %v7253_v28, %v9788_v58  ;;  %v9910_v28 = vld [vmem:[%s11879_s15 + $0x68] sm:$0xff]  }
 0x7f2   : > { %v2563_v22 = vpop.f32.mrf.mxu1 }
 0x7f3   : > { %v2568_v7 = vsub.f32 0.0, %v2567_v57  ;;  %v2020_v56 = vand.u32 2147483647, %v2014_v52 }
 0x7f4   : > { %v8131_v30 = vpop.f32.mrf.mxu1 }
 0x7f5   : > { %v2569_v34 = vmul.f32 1.442695, %v2568_v7  ;;  %v2021_v57 = vsub.f32 0.0, %v2020_v56  ;;  %v7300_v7 = vld [vmem:[%s11878_s14 + $0x2] ss:$0 sm:$0xff] }
 0x7f6   : > { %v9922_v56 = vld [vmem:[%s11879_s15 + $0x60] sm:$0xff]  }
 0x7f7   : > { %8715 = vpow2.f32 %v2569_v34  ;;  %v2022_v22 = vmul.f32 1.442695, %v2021_v57  ;;  %v9928_v57 = vld [vmem:[%s11879_s15 + $0x20] sm:$0xff]  }
 0x804   : > { %v8716_v11 = vpop.eup %8715 }
 0x805   : > { %v2571_v4 = vadd.f32 1.0, %v8716_v11 }
 0x807   : > { %8717 = vlog2.f32 %v2571_v4 }
 0x814   : > { %v8718_v63 = vpop.eup %8717 }
 0x815   : > { %v2573_v37 = vmul.f32 0.6931472, %v8718_v63 }
 0x817   : > { %v2574_v59 = vadd.f32 %v2573_v37, %v2566_v1 }
 0x819   : > { %v2575_v49 = vpack.c.bf16 %v2574_v59, %v2574_v59 }
 0x81b   : > { %8137 = vmatmul.mubr.msk.bf16.vlgmr.msra.gmra.mxu1 %vm11956_vm15, %v2575_v49 }
 0x81c   : > { %8150 = vmatprep.mubr.msk.bf16.mxu1 %vm1377_vm8, %v9449_v26 }
 0x8db   : > { %v2637_v41 = vpop.f32.mrf.mxu1 }
 0x8dc   : > { %v2638_v42 = vadd.f32 %v7292_v32, %v2637_v41 }
 0x8dd   : > { %v8138_v53 = vpop.f32.mrf.mxu1 }
 0x8de   : > { %v2644_v40 = vand.u32 2147483647, %v2638_v42  ;;  %v2643_v47 = vmax.f32 %v2638_v42, 0.0 }
 0x8df   : > { %v2640_v10 = vpop.f32.mrf.mxu1 }
 0x8e0   : > { %v2645_v44 = vsub.f32 0.0, %v2644_v40  ;;  %v2019_v40 = vmax.f32 %v2014_v52, 0.0  ;;  %v9916_v52 = vld [vmem:[%s11879_s15 + $0x28] sm:$0xff]  }
 0x8e1   : > { %v8139_v19 = vpop.f32.mrf.mxu1 }
 0x8e2   : > { %v2646_v45 = vmul.f32 1.442695, %v2645_v44 }
 0x8e4   : > { %8719 = vpow2.f32 %v2646_v45 }
 0x8f1   : > { %v8720_v61 = vpop.eup %8719 }
 0x8f2   : > { %v2648_v39 = vadd.f32 1.0, %v8720_v61 }
 0x8f4   : > { %8721 = vlog2.f32 %v2648_v39 }
 0x8f5   : > { %8723 = vpow2.f32 %v2022_v22  ;;  %v9935_v22 = vld [vmem:[%s11879_s15 + $0x58] sm:$0xff]  }
 0x901   : > { %v8722_v17 = vpop.eup %8721 }
 0x902   : > { %v2650_v36 = vmul.f32 0.6931472, %v8722_v17  ;;  %v8724_v49 = vpop.eup %8723 }
 0x903   : > { %v2024_v29 = vadd.f32 1.0, %v8724_v49 }
 0x904   : > { %v2651_v16 = vadd.f32 %v2650_v36, %v2643_v47  ;;  %v9887_v47 = vld [vmem:[%s11879_s15 + $0x78] sm:$0xff]  }
 0x905   : > { %v9892_v36 = vld [vmem:[%s11879_s15 + $0x38] sm:$0xff]   ;;  %7538 = vmatprep.subr.bf16.mxu0 %v9887_v47 }
 0x906   : > { %v2652_v48 = vpack.c.bf16 %v2651_v16, %v2651_v16  ;;  %v9897_v16 = vld [vmem:[%s11879_s15 + $0x70] sm:$0xff]  }
 0x908   : > { %8145 = vmatmul.mubr.msk.bf16.vlgmr.msra.gmra.mxu0 %vm11956_vm15, %v2652_v48  ;;  %v9904_v48 = vld [vmem:[%s11879_s15 + $0x30] sm:$0xff]  }
 0x909   : > { %7539 = vmatpush3.bf16.msra.mxu0 %v9892_v36 }
 0x90a   : > { %7540 = vmatprep.subr.bf16.mxu0 %v9897_v16 }
 0x90d   : > { %7541 = vmatpush3.bf16.msra.mxu0 %v9904_v48 }
 0x90e   : > { %7542 = vmatprep.subr.bf16.mxu0 %v9910_v28 }
 0x911   : > { %7543 = vmatpush3.bf16.msra.mxu0 %v9916_v52 }
 0x912   : > { %7544 = vmatprep.subr.bf16.mxu0 %v9922_v56 }
 0x915   : > { %7545 = vmatpush3.bf16.msra.mxu0 %v9928_v57 }
 0x916   : > { %7546 = vmatprep.subr.bf16.mxu0 %v9935_v22 }
 0x9c8   : > { %v2714_v30 = vpop.f32.mrf.mxu0 }
 0x9c9   : > { %v2715_v34 = vadd.f32 %v7300_v7, %v2714_v30  ;;  %v9940_v7 = vld [vmem:[%s11879_s15 + $0x18] sm:$0xff]  }
 0x9ca   : > { %v8146_v11 = vpop.f32.mrf.mxu0  ;;  %7547 = vmatpush3.bf16.msra.mxu0 %v9940_v7 }
 0x9cb   : > { %v2721_v4 = vand.u32 2147483647, %v2715_v34  ;;  %v2720_v10 = vmax.f32 %v2715_v34, 0.0  ;;  %v9947_v34 = vld [vmem:[%s11879_s15 + $0x50] sm:$0xff]  }
 0x9cc   : > { %v2717_v63 = vpop.f32.mrf.mxu0  ;;  %v9952_v11 = vld [vmem:[%s11879_s15 + $0x10] sm:$0xff]   ;;  %7548 = vmatprep.subr.bf16.mxu0 %v9947_v34 }
 0x9cd   : > { %v2722_v1 = vsub.f32 0.0, %v2721_v4 }
 0x9ce   : > { %v8147_v37 = vpop.f32.mrf.mxu0  ;;  %7549 = vmatpush3.bf16.msra.mxu0 %v9952_v11 }
 0x9cf   : > { %v2723_v59 = vmul.f32 1.442695, %v2722_v1  ;;  %v9959_v1 = vld [vmem:[%s11879_s15 + $0x48] sm:$0xff]  }
 0x9d0   : > { %v9964_v37 = vld [vmem:[%s11879_s15 + $0x8] sm:$0xff]   ;;  %7550 = vmatprep.subr.bf16.mxu0 %v9959_v1 }
 0x9d1   : > { %8725 = vpow2.f32 %v2723_v59 }
 0x9d2   : > { %8727 = vlog2.f32 %v2024_v29  ;;  %7551 = vmatpush3.bf16.msra.mxu0 %v9964_v37 }
 0x9de   : > { %v8726_v58 = vpop.eup %8725 }
 0x9df   : > { %v2725_v32 = vadd.f32 1.0, %v8726_v58  ;;  %v8728_v41 = vpop.eup %8727 }
 0x9e0   : > { %v2026_v42 = vmul.f32 0.6931472, %v8728_v41  ;;  %v9973_v41 = vld [vmem:[%s11879_s15 + $0x40] sm:$0xff]  }
 0x9e1   : > { %8729 = vlog2.f32 %v2725_v32  ;;  %7552 = vmatprep.subr.bf16.mxu0 %v9973_v41 }
 0x9e2   : > { %v9856_v19 = vadd.f32 %v2026_v42, %v2019_v40  ;;  %v9978_v42 = vld [vmem:[%s11879_s15] sm:$0xff]  }
 0x9e3   : > { %7553 = vmatpush3.bf16.msra.mxu0 %v9978_v42 }
 0x9ee   : > { %v8730_v53 = vpop.eup %8729 }
 0x9ef   : > { %v2727_v44 = vmul.f32 0.6931472, %v8730_v53 }
 0x9f1   : > { %v2728_v45 = vadd.f32 %v2727_v44, %v2720_v10  ;;  %v9988_v44 = vld [vmem:[%s11879_s15 + $0x178] sm:$0xff]  }
 0x9f2   : > { %12035 = vst [vmem:[#allocation8_spill] sm:$0xff] %v9988_v44  ;;  %7582 = vmatprep.subr.bf16.mxu0 %v9988_v44 }
 0x9f3   : > { %v2729_v61 = vsel %vm11956_vm15, %v2728_v45, %v9856_v19  ;;  %vm12078_vm15 = vcmask 523264  }
 0x9f4   : > { %v9860_v39 = vpack.c.bf16 %v2729_v61, %v2729_v61 }
 0x9f6   : > { %8514 = vmatprep.subr.msk.bf16.mxu1 %vm1408_vm3, %v9860_v39  ;;  %v2732_v17 = vsel %vm1408_vm3, %v9860_v39, 0 }
 0x9f7   : > { %8149 = vmatpush3.bf16.msra.mxu1 %v2732_v17  ;;  %v9994_v17 = vld [vmem:[%s11879_s15 + $0xf8] sm:$0xff]  }
 0x9f8   : > { %12036 = vst [vmem:[#allocation9_spill] sm:$0xff] %v9994_v17  ;;  %7560 = vmatprep.subr.bf16.mxu1 %v9994_v17 }
 0x9fa   : > { %8151 = vmatmul.mubr.msk.bf16.vlgmr.msra.gmra.mxu1 %vm1377_vm8, %v9455_v35 }
 0x9fb   : > { %8154 = vmatprep.mubr.msk.bf16.mxu1 %vm1377_vm8, %v9461_v51 }
 0xa02   : > { %8155 = vmatmul.mubr.msk.bf16.gmra.mxu1 %vm1377_vm8, %v9468_v27 }
 0xa03   : > { %8158 = vmatprep.mubr.msk.bf16.mxu1 %vm1377_vm8, %v9473_v25 }
 0xa0a   : > { %8159 = vmatmul.mubr.msk.bf16.gmra.mxu1 %vm1377_vm8, %v9481_v43 }
 0xa0b   : > { %8162 = vmatprep.mubr.msk.bf16.mxu1 %vm1377_vm8, %v9483_v23 }
 0xa12   : > { %8163 = vmatmul.mubr.msk.bf16.gmra.mxu1 %vm1377_vm8, %v9493_v62 }
 0xa13   : > { %8166 = vmatprep.mubr.msk.bf16.mxu1 %vm1377_vm8, %v9495_v20 }
 0xa1a   : > { %8167 = vmatmul.mubr.msk.bf16.gmra.mxu1 %vm1377_vm8, %v9503_v8 }
 0xaba   : > { %v8152_v30 = vpop.f32.mrf.mxu1 }
 0xabc   : > { %v2768_v4 = vpop.f32.mrf.mxu1 }
 0xabe   : > { %v8153_v63 = vpop.f32.mrf.mxu1 }
 0xabf   : > { %v2848_v59 = vpack.c.bf16 %v8153_v63, %v8152_v30  ;;  %v9999_v30 = vld [vmem:[%s11879_s15 + $0xb8] sm:$0xff]  }
 0xac0   : > { %v2771_v49 = vpop.f32.mrf.mxu1  ;;  %12037 = vst [vmem:[#allocation10_spill] sm:$0xff] %v9999_v30  ;;  %7561 = vmatpush3.bf16.msra.mxu1 %v9999_v30 }
 0xac1   : > { %v2864_v29 = vrot.slane %v2848_v59, 4  ;;  %v9967_v58 = vpack.c.bf16 %v2771_v49, %v2768_v4 }
 0xac2   : > { %v8156_v32 = vpop.f32.mrf.mxu1 }
 0xac3   : > { %2865 = vrot.lane.b32.xlu1 %v2864_v29, %s11929_s29  ;;  %v2858_v40 = vrot.slane %v9967_v58, 4  ;;  %v10010_v29 = vld [vmem:[%s11879_s15 + $0xf0] sm:$0xff]  }
 0xac4   : > { %v2784_v53 = vpop.f32.mrf.mxu1  ;;  %12038 = vst [vmem:[#allocation11_spill] sm:$0xff] %v10010_v29  ;;  %7562 = vmatprep.subr.bf16.mxu1 %v10010_v29 }
 0xac6   : > { %v8157_v10 = vpop.f32.mrf.mxu1 }
 0xac7   : > { %2859 = vrot.lane.b32.xlu1 %v2858_v40, %s11935_s3 }
 0xac8   : > { %v2787_v45 = vpop.f32.mrf.mxu1 }
 0xac9   : > { %v2849_v61 = vpack.c.bf16 %v2787_v45, %v2784_v53  ;;  %v10015_v53 = vld [vmem:[%s11879_s15 + $0xb0] sm:$0xff]   ;;  %v2850_v45 = vpack.c.bf16 %v8157_v10, %v8156_v32  ;;  %v10036_v32 = vld [vmem:[%s11879_s15 + $0xe0] sm:$0xff]  }
 0xaca   : > { %v10001_v4 = vpop.f32.mrf.mxu1  ;;  %12039 = vst [vmem:[#allocation12_spill] sm:$0xff] %v10015_v53  ;;  %7563 = vmatpush3.bf16.msra.mxu1 %v10015_v53  ;;  %12042 = vst [vmem:[#allocation15_spill] sm:$0xff] %v10036_v32  ;;  %v10041_v10 = vld [vmem:[%s11879_s15 + $0xa0] sm:$0xff]  }
 0xacb   : > { %2862 = vrot.lane.b32.xlu1 %v2848_v59, %s11933_s19  ;;  %2868 = vrot.lane.b32.xlu0 %v2849_v61, %s11937_s4  ;;  %v2870_v49 = vrot.slane %v2849_v61, 4  ;;  %v10023_v61 = vld [vmem:[%s11879_s15 + $0xe8] sm:$0xff]   ;;  %12043 = vst [vmem:[#allocation16_spill] sm:$0xff] %v10041_v10 }
 0xacc   : > { %v2800_v63 = vpop.f32.mrf.mxu1  ;;  %12040 = vst [vmem:[#allocation13_spill] sm:$0xff] %v10023_v61  ;;  %7564 = vmatprep.subr.bf16.mxu1 %v10023_v61  ;;  %v10054_v61 = vld [vmem:[%s11879_s15 + $0x98] sm:$0xff]  }
 0xacd   : > { %12046 = vst [vmem:[#allocation18_spill] sm:$0xff] %v10054_v61 }
 0xace   : > { %v8161_v40 = vpop.f32.mrf.mxu1  ;;  %7565 = vmatpush3.bf16.msra.mxu1 %v10028_v2  ;;  %v10049_v2 = vld [vmem:[%s11879_s15 + $0xd8] sm:$0xff]  }
 0xacf   : > { %2871 = vrot.lane.b32.xlu0 %v2870_v49, %s11931_s0  ;;  %7566 = vmatprep.subr.bf16.mxu1 %v10036_v32  ;;  %12045 = vst [vmem:[#allocation17_spill] sm:$0xff] %v10049_v2  ;;  %s12083_s0 = smov 80  }
 0xad0   : > { %v2803_v59 = vpop.f32.mrf.mxu1 }
 0xad2   : > { %v8164_v3 = vpop.f32.mrf.mxu1  ;;  %7567 = vmatpush3.bf16.msra.mxu1 %v10041_v10 }
 0xad3   : > { %2874 = vrot.lane.b32.xlu0 %v2850_v45, %s11924_s2  ;;  %7568 = vmatprep.subr.bf16.mxu1 %v10049_v2  ;;  %s12057_s2 = smov 16  }
 0xad4   : > { %v2816_v49 = vpop.f32.mrf.mxu1 }
 0xad6   : > { %v8165_v60 = vpop.f32.mrf.mxu1  ;;  %7569 = vmatpush3.bf16.msra.mxu1 %v10054_v61  ;;  %v10083_v61 = vld [vmem:[%s11879_s15 + $0x88] sm:$0xff]  }
 0xad7   : > { %v2854_v53 = vpack.c.bf16 %v8165_v60, %v8164_v3  ;;  %12052 = vst [vmem:[#allocation22_spill] sm:$0xff] %v10083_v61 }
 0xad8   : > { %v2819_v29 = vpop.f32.mrf.mxu1 }
 0xad9   : > { %v2853_v30 = vpack.c.bf16 %v2819_v29, %v2816_v49  ;;  %2898 = vrot.lane.b32.xlu1 %v2854_v53, %s12044_s21  ;;  %v10063_v29 = vld [vmem:[%s11879_s15 + $0xd0] sm:$0xff]  }
 0xada   : > { %v8168_v17 = vpop.f32.mrf.mxu1  ;;  %12049 = vst [vmem:[#allocation19_spill] sm:$0xff] %v10063_v29  ;;  %v10068_v49 = vld [vmem:[%s11879_s15 + $0x90] sm:$0xff]   ;;  %7570 = vmatprep.subr.bf16.mxu1 %v10063_v29 }
 0xadb   : > { %v2894_v3 = vrot.slane %v2853_v30, 4  ;;  %2892 = vrot.lane.b32.xlu0 %v2853_v30, %s12047_s1  ;;  %12050 = vst [vmem:[#allocation20_spill] sm:$0xff] %v10068_v49  ;;  %7571 = vmatpush3.bf16.msra.mxu1 %v10068_v49  ;;  %v2900_v49 = vrot.slane %v2854_v53, 4 }
 0xadc   : > { %v2832_v60 = vpop.f32.mrf.mxu1 }
 0xadd   : > { %2895 = vrot.lane.b32.xlu1 %v2894_v3, %s12048_s22  ;;  %v10078_v3 = vld [vmem:[%s11879_s15 + $0xc8] sm:$0xff]  }
 0xade   : > { %v8169_v10 = vpop.f32.mrf.mxu1  ;;  %12051 = vst [vmem:[#allocation21_spill] sm:$0xff] %v10078_v3  ;;  %7572 = vmatprep.subr.bf16.mxu1 %v10078_v3 }
 0xadf   : > { %v2856_v32 = vpack.c.bf16 %v8169_v10, %v8168_v17  ;;  %7573 = vmatpush3.bf16.msra.mxu1 %v10083_v61  ;;  %v12056_v61 = vmov 0.0  }
 0xae0   : > { %v2835_v30 = vpop.f32.mrf.mxu1 }
 0xae1   : > { %v10071_v2 = vpack.c.bf16 %v2835_v30, %v2832_v60  ;;  %2944 = vrot.lane.b32.xlu0 %v2856_v32, %s11933_s19  ;;  %v2946_v17 = vrot.slane %v2856_v32, 4  ;;  %v10092_v60 = vld [vmem:[%s11879_s15 + $0xc0] sm:$0xff]   ;;  %v2851_v32 = vpack.c.bf16 %v2803_v59, %v2800_v63  ;;  %v2876_v63 = vrot.slane %v2850_v45, 4  ;;  %s12084_s19 = smov 72  }
 0xae2   : > { %12053 = vst [vmem:[#allocation23_spill] sm:$0xff] %v10092_v60  ;;  %v10098_v30 = vld [vmem:[%s11879_s15 + $0x80] sm:$0xff]   ;;  %7574 = vmatprep.subr.bf16.mxu1 %v10092_v60 }
 0xae3   : > { %v2940_v10 = vrot.slane %v10071_v2, 4  ;;  %12054 = vst [vmem:[#allocation24_spill] sm:$0xff] %v10098_v30  ;;  %7575 = vmatpush3.bf16.msra.mxu1 %v10098_v30 }
 0xae4   : > { %8170 = vmatprep.subr.bf16.mxu1 %v12056_v61 }
 0xae5   : > { %2947 = vrot.lane.b32.xlu0 %v2946_v17, %s11929_s29  ;;  %2941 = vrot.lane.b32.xlu1 %v2940_v10, %s11935_s3  ;;  %v2852_v17 = vpack.c.bf16 %v8161_v40, %v10001_v4  ;;  %v2882_v10 = vrot.slane %v2851_v32, 4  ;;  %s12086_s29 = smov 120   ;;  %s12087_s3 = smov 20  }
 0xae7   : > { %v2888_v53 = vrot.slane %v2852_v17, 4 }
 0xae9   : > { %3581 = vrot.lane.b32.xlu0 %v9599_v46, %s9002_s30  ;;  %2901 = vrot.lane.b32.xlu1 %v2900_v49, %s12055_s28  ;;  %s12061_s30 = smov 64  }
 0xaed   : > { %2886 = vrot.lane.b32.xlu0 %v2852_v17, %s12057_s2  ;;  %2883 = vrot.lane.b32.xlu1 %v2882_v10, %s12058_s25 }
 0xaf1   : > { %2889 = vrot.lane.b32.xlu0 %v2888_v53, %s12059_s27  ;;  %2877 = vrot.lane.b32.xlu1 %v2876_v63, %s12060_s24  ;;  %v10137_v53 = vld [vmem:[%s11879_s15 + $0x130] sm:$0xff]  }
 0xaf2   : > { %12064 = vst [vmem:[#allocation27_spill] sm:$0xff] %v10137_v53 }
 0xaf5   : > { %2950 = vrot.lane.b32.xlu0 %v9860_v39, %s11937_s4  ;;  %2880 = vrot.lane.b32.xlu1 %v2851_v32, %s12061_s30  ;;  %v10123_v39 = vld [vmem:[%s11879_s15 + $0x138] sm:$0xff]   ;;  %s12082_s4 = smov 40  }
 0xaf6   : > { %12062 = vst [vmem:[#allocation25_spill] sm:$0xff] %v10123_v39 }
 0xb35   : > { %v2866_v46 = vpop.permute.xlu1 %2865 }
 0xb39   : > { %v2860_v4 = vpop.permute.xlu1 %2859 }
 0xb3a   : > { %v2905_v30 = vsel %vm1603_vm6, %v9967_v58, %v2860_v4  ;;  %v10130_v58 = vld [vmem:[%s11879_s15 + $0x170] sm:$0xff]   ;;  %v10143_v4 = vld [vmem:[%s11879_s15 + $0x168] sm:$0xff]  }
 0xb3b   : > { %12063 = vst [vmem:[#allocation26_spill] sm:$0xff] %v10130_v58  ;;  %12065 = vst [vmem:[#allocation28_spill] sm:$0xff] %v10143_v4 }
 0xb3d   : > { %v2869_v40 = vpop.permute.xlu0 %2868  ;;  %v2863_v59 = vpop.permute.xlu1 %2862 }
 0xb3e   : > { %v2907_v45 = vsel %vm1652_vm5, %v2905_v30, %v2863_v59  ;;  %v2912_v17 = vsel %vm2297_vm7, %v2866_v46, %v2869_v40  ;;  %v10155_v59 = vld [vmem:[%s11879_s15 + $0x160] sm:$0xff]  }
 0xb3f   : > { %v2909_v30 = vsel %vm2328_vm9, %v2907_v45, %v2866_v46  ;;  %v10149_v46 = vld [vmem:[%s11879_s15 + $0x128] sm:$0xff]   ;;  %12067 = vst [vmem:[#allocation30_spill] sm:$0xff] %v10155_v59  ;;  %v10161_v45 = vld [vmem:[%s11879_s15 + $0x120] sm:$0xff]  }
 0xb40   : > { %12066 = vst [vmem:[#allocation29_spill] sm:$0xff] %v10149_v46  ;;  %12068 = vst [vmem:[#allocation31_spill] sm:$0xff] %v10161_v45 }
 0xb41   : > { %v2872_v49 = vpop.permute.xlu0 %2871 }
 0xb42   : > { %v2914_v10 = vsel %vm2311_vm14, %v2912_v17, %v2872_v49  ;;  %v10167_v17 = vld [vmem:[%s11879_s15 + $0x158] sm:$0xff]  }
 0xb43   : > { %12069 = vst [vmem:[#allocation32_spill] sm:$0xff] %v10167_v17 }
 0xb45   : > { %v10118_v63 = vpop.permute.xlu0 %2874 }
 0xb46   : > { %v2916_v32 = vsel %vm2325_vm13, %v2914_v10, %v10118_v63 }
 0xb47   : > { %3426 = vmatprep.mubr.bf16.mxu0 %v2916_v32 }
 0xb48   : > { %3427 = vmatmul.mubr.bf16.vlgmr.msra.gmra.mxu0 %v2909_v30  ;;  %v10173_v30 = vld [vmem:[%s11879_s15 + $0x118] sm:$0xff]  }
 0xb49   : > { %7583 = vmatpush3.bf16.msra.mxu0 %v10123_v39  ;;  %12070 = vst [vmem:[#allocation33_spill] sm:$0xff] %v10173_v30  ;;  %v10198_v39 = vld [vmem:[%s11879_s15 + $0x148] sm:$0xff]  }
 0xb4a   : > { %7584 = vmatprep.subr.bf16.mxu0 %v10130_v58  ;;  %v10190_v58 = vld [vmem:[%s11879_s15 + $0x110] sm:$0xff]   ;;  %12073 = vst [vmem:[#allocation36_spill] sm:$0xff] %v10198_v39 }
 0xb4b   : > { %v2899_v40 = vpop.permute.xlu1 %2898  ;;  %12072 = vst [vmem:[#allocation35_spill] sm:$0xff] %v10190_v58 }
 0xb4d   : > { %7585 = vmatpush3.bf16.msra.mxu0 %v10137_v53  ;;  %v2893_v49 = vpop.permute.xlu0 %2892 }
 0xb4e   : > { %7586 = vmatprep.subr.bf16.mxu0 %v10143_v4 }
 0xb4f   : > { %v2896_v10 = vpop.permute.xlu1 %2895 }
 0xb51   : > { %7587 = vmatpush3.bf16.msra.mxu0 %v10149_v46 }
 0xb52   : > { %7588 = vmatprep.subr.bf16.mxu0 %v10155_v59  ;;  %v10179_v59 = vld [vmem:[%s11879_s15 + $0x150] sm:$0xff]  }
 0xb53   : > { %v2945_v32 = vpop.permute.xlu0 %2944  ;;  %12071 = vst [vmem:[#allocation34_spill] sm:$0xff] %v10179_v59 }
 0xb55   : > { %7589 = vmatpush3.bf16.msra.mxu0 %v10161_v45 }
 0xb56   : > { %7590 = vmatprep.subr.bf16.mxu0 %v10167_v17 }
 0xb57   : > { %v10181_v46 = vpop.permute.xlu0 %2947  ;;  %v2942_v4 = vpop.permute.xlu1 %2941 }
 0xb58   : > { %v2954_v53 = vsel %vm1603_vm6, %v10071_v2, %v2942_v4 }
 0xb59   : > { %7591 = vmatpush3.bf16.msra.mxu0 %v10173_v30  ;;  %v2956_v45 = vsel %vm1652_vm5, %v2954_v53, %v2945_v32  ;;  %v10204_v53 = vld [vmem:[%s11879_s15 + $0x108] sm:$0xff]  }
 0xb5a   : > { %7592 = vmatprep.subr.bf16.mxu0 %v10179_v59  ;;  %v2958_v17 = vsel %vm2328_vm9, %v2956_v45, %v10181_v46  ;;  %12074 = vst [vmem:[#allocation37_spill] sm:$0xff] %v10204_v53  ;;  %v10210_v45 = vld [vmem:[%s11879_s15 + $0x140] sm:$0xff]  }
 0xb5b   : > { %v3582_v2 = vpop.permute.xlu0 %3581  ;;  %3506 = vmatprep.mubr.bf16.mxu0 %v2958_v17  ;;  %v2902_v4 = vpop.permute.xlu1 %2901  ;;  %v10217_v17 = vld [vmem:[%s11879_s15 + $0x100] sm:$0xff]  }
 0xb5c   : > { %v3584_v32 = vsel %vm12075_vm2, %v3582_v2, 0.0  ;;  %12076 = vst [vmem:[#allocation38_spill] sm:$0xff] %v10217_v17  ;;  %vm12077_vm2 = vcmask 392192  }
 0xb5d   : > { %7593 = vmatpush3.bf16.msra.mxu0 %v10190_v58  ;;  %v10219_v58 = vpack.c.bf16 %v3584_v32, %v3584_v32 }
 0xb5e   : > { %7594 = vmatprep.subr.bf16.mxu0 %v10198_v39  ;;  %v2933_v39 = vsel %vm1377_vm8, %v2893_v49, %v2896_v10 }
 0xb5f   : > { %v2887_v59 = vpop.permute.xlu0 %2886  ;;  %v2884_v30 = vpop.permute.xlu1 %2883  ;;  %v2935_v32 = vsel %vm12077_vm2, %v2933_v39, %v2899_v40  ;;  %vm12079_vm2 = vcmask 850944   ;;  %v10272_v39 = vld [vmem:[%s11879_s15 + $0x188] sm:$0xff]   ;;  %v10281_v40 = vld [vmem:[%s11879_s15 + $0x180] sm:$0xff]  }
 0xb60   : > { %v2926_v60 = vsel %vm2291_vm11, %v2884_v30, %v2887_v59  ;;  %v3587_v59 = vsel %vm1408_vm3, %v10219_v58, 0  ;;  %v2937_v10 = vsel %vm2316_vm1, %v2935_v32, %v2902_v4 }
 0xb61   : > { %7595 = vmatpush3.bf16.msra.mxu0 %v10204_v53  ;;  %v8652_v53 = vld [vmem:[%s11879_s15 + $0x1a0] ss:$0 sps:$4 sm:$0xff]  }
 0xb62   : > { %7596 = vmatprep.subr.bf16.mxu0 %v10210_v45 }
 0xb63   : > { %v2890_v3 = vpop.permute.xlu0 %2889  ;;  %v2878_v29 = vpop.permute.xlu1 %2877 }
 0xb64   : > { %v2928_v2 = vsel %vm2305_vm10, %v2926_v60, %v2890_v3  ;;  %v2919_v3 = vsel %vm2294_vm12, %v10118_v63, %v2878_v29  ;;  %v10250_v29 = vld [vmem:[%s11879_s15 + $0x198] sm:$0xff]   ;;  %v10259_v63 = vld [vmem:[%s11879_s15 + $0x190] sm:$0xff]  }
 0xb65   : > { %7597 = vmatpush3.bf16.msra.mxu0 %v10217_v17  ;;  %v2930_v44 = vsel %vm2319_vm4, %v2928_v2, %v2893_v49  ;;  %v10240_v49 = vsel %vm1408_vm3, %v8652_v53, 0 }
 0xb66   : > { %3466 = vmatprep.mubr.bf16.mxu1 %v2930_v44  ;;  %8515 = vmatprep.subr.msk.bf16.mxu0 %vm1408_vm3, %v10219_v58 }
 0xb67   : > { %v2881_v60 = vpop.permute.xlu1 %2880 }
 0xb68   : > { %3507 = vmatmul.mubr.bf16.vlgmr.msra.gmra.mxu0 %v2937_v10  ;;  %v2921_v17 = vsel %vm12078_vm15, %v2919_v3, %v2881_v60  ;;  %vm12088_vm15 = vcmask 392192  }
 0xb69   : > { %v2923_v44 = vsel %vm12079_vm2, %v2921_v17, %v2884_v30  ;;  %8186 = vmatprep.mubr.msk.bf16.mxu0 %vm1377_vm8, %v9449_v26  ;;  %8185 = vmatpush3.bf16.msra.mxu0 %v3587_v59  ;;  %v2951_v30 = vpop.permute.xlu0 %2950  ;;  %vm12089_vm2 = vcmask 523264  }
 0xb6a   : > { %3467 = vmatmul.mubr.bf16.vlgmr.msra.gmra.mxu1 %v2923_v44  ;;  %8206 = vmatprep.subr.bf16.mxu0 %v12056_v61  ;;  %v2961_v4 = vsel %vm2297_vm7, %v10181_v46, %v2951_v30 }
 0xb6b   : > { %8171 = vmatpush3.bf16.msra.mxu1 %v10240_v49  ;;  %8180 = vmatprep.mubr.msk.bf16.mxu1 %vm8971_vm0, %v12056_v61 }
 0xb6c   : > { %8172 = vmatprep.subr.bf16.mxu1 %v12056_v61 }
 0xb6f   : > { %8173 = vmatpush3.bf16.msra.mxu1 %v10250_v29 }
 0xb70   : > { %8187 = vmatmul.mubr.msk.bf16.vlgmr.msra.gmra.mxu0 %vm1377_vm8, %v9455_v35  ;;  %8174 = vmatprep.subr.bf16.mxu1 %v12056_v61 }
 0xb71   : > { %8190 = vmatprep.mubr.msk.bf16.mxu0 %vm1377_vm8, %v9461_v51  ;;  %8207 = vmatpush3.bf16.msra.mxu0 %v9794_v14 }
 0xb72   : > { %8208 = vmatprep.subr.bf16.mxu0 %v12056_v61 }
 0xb73   : > { %8175 = vmatpush3.bf16.msra.mxu1 %v10259_v63 }
 0xb74   : > { %8176 = vmatprep.subr.bf16.mxu1 %v12056_v61 }
 0xb75   : > { %8209 = vmatpush3.bf16.msra.mxu0 %v9800_v12  ;;  %v12080_v12 = vmov 0  }
 0xb76   : > { %8222 = vmatprep.subr.bf16.mxu0 %v12056_v61 }
 0xb77   : > { %8177 = vmatpush3.bf16.msra.mxu1 %v10272_v39 }
 0xb78   : > { %8191 = vmatmul.mubr.msk.bf16.gmra.mxu0 %vm1377_vm8, %v9468_v27  ;;  %8178 = vmatprep.subr.bf16.mxu1 %v12056_v61 }
 0xb79   : > { %8194 = vmatprep.mubr.msk.bf16.mxu0 %vm1377_vm8, %v9473_v25 }
 0xb7b   : > { %8179 = vmatpush3.bf16.msra.mxu1 %v10281_v40 }
 0xb7c   : > { %3814 = vmatprep.subr.bf16.mxu1 %v12080_v12 }
 0xb7e   : > { %8181 = vmatmul.mubr.msk.bf16.vlgmr.msra.gmra.mxu1 %vm2311_vm14, %v2961_v4 }
 0xb7f   : > { %3815 = vmatpush1.bf16.msra.mxu1 %v9676_v15 }
 0xb80   : > { %8195 = vmatmul.mubr.msk.bf16.gmra.mxu0 %vm1377_vm8, %v9481_v43  ;;  %3816 = vmatprep.subr.bf16.mxu1 %v12080_v12 }
 0xb81   : > { %8198 = vmatprep.mubr.msk.bf16.mxu0 %vm1377_vm8, %v9483_v23 }
 0xb83   : > { %3817 = vmatpush1.bf16.msra.mxu1 %v9684_v13 }
 0xb84   : > { %3818 = vmatprep.subr.bf16.mxu1 %v12080_v12 }
 0xb87   : > { %3819 = vmatpush1.bf16.msra.mxu1 %v9692_v9 }
 0xb88   : > { %8199 = vmatmul.mubr.msk.bf16.gmra.mxu0 %vm1377_vm8, %v9493_v62  ;;  %3820 = vmatprep.subr.bf16.mxu1 %v12080_v12 }
 0xb89   : > { %8202 = vmatprep.mubr.msk.bf16.mxu0 %vm1377_vm8, %v9495_v20 }
 0xb8b   : > { %3821 = vmatpush1.bf16.msra.mxu1 %v9703_v38 }
 0xb8c   : > { %3822 = vmatprep.subr.bf16.mxu1 %v12080_v12 }
 0xb8f   : > { %3823 = vmatpush1.bf16.msra.mxu1 %v9713_v0 }
 0xb90   : > { %8203 = vmatmul.mubr.msk.bf16.gmra.mxu0 %vm1377_vm8, %v9503_v8  ;;  %3824 = vmatprep.subr.bf16.mxu1 %v12080_v12 }
 0xb91   : > { %8210 = vmatprep.mubr.msk.bf16.mxu0 %vm8971_vm0, %v12056_v61 }
 0xb93   : > { %3825 = vmatpush1.bf16.msra.mxu1 %v9721_v18 }
 0xb94   : > { %3826 = vmatprep.subr.bf16.mxu1 %v12080_v12 }
 0xb97   : > { %3827 = vmatpush1.bf16.msra.mxu1 %v9730_v21 }
 0xb98   : > { %3828 = vmatprep.subr.bf16.mxu1 %v12080_v12 }
 0xb9b   : > { %3829 = vmatpush1.bf16.msra.mxu1 %v9737_v24 }
 0xb9c   : > { %3840 = vmatprep.subr.bf16.mxu1 %v12080_v12 }
 0xb9f   : > { %3841 = vmatpush2.bf16.msra.mxu1 %v9746_v5 }
 0xba0   : > { %3842 = vmatprep.subr.bf16.mxu1 %v12080_v12 }
 0xba3   : > { %3843 = vmatpush2.bf16.msra.mxu1 %v9752_v6 }
 0xba4   : > { %3844 = vmatprep.subr.bf16.mxu1 %v12080_v12 }
 0xba7   : > { %3845 = vmatpush2.bf16.msra.mxu1 %v9759_v31 }
 0xba8   : > { %8214 = vmatprep.subr.bf16.mxu1 %v12056_v61 }
 0xc08   : > { %v7554_v15 = vpop.f32.mrf.mxu0 }
 0xc0a   : > { %v7555_v13 = vpop.f32.mrf.mxu0 }
 0xc0b   : > { %v7556_v9 = vadd.f32 %v7555_v13, %v7554_v15 }
 0xc0c   : > { %v7557_v38 = vpop.f32.mrf.mxu0 }
 0xc0e   : > { %v7558_v0 = vpop.f32.mrf.mxu0 }
 0xc28   : > { %v7598_v18 = vpop.f32.mrf.mxu0 }
 0xc2a   : > { %v7599_v21 = vpop.f32.mrf.mxu0  ;;  %v7576_v24 = vpop.f32.mrf.mxu1 }
 0xc2c   : > { %v7601_v46 = vpop.f32.mrf.mxu0  ;;  %v7577_v53 = vpop.f32.mrf.mxu1 }
 0xc2e   : > { %v7602_v17 = vpop.f32.mrf.mxu0  ;;  %v7579_v2 = vpop.f32.mrf.mxu1 }
 0xc30   : > { %v8188_v32 = vpop.f32.mrf.mxu0  ;;  %v7580_v6 = vpop.f32.mrf.mxu1 }
 0xc32   : > { %v3623_v59 = vpop.f32.mrf.mxu0 }
 0xc34   : > { %v8189_v10 = vpop.f32.mrf.mxu0 }
 0xc35   : > { %v3703_v3 = vpack.c.bf16 %v8189_v10, %v8188_v32 }
 0xc36   : > { %v3626_v31 = vpop.f32.mrf.mxu0 }
 0xc37   : > { %v3719_v60 = vrot.slane %v3703_v3, 4  ;;  %v10327_v44 = vpack.c.bf16 %v3626_v31, %v3623_v59  ;;  %3717 = vrot.lane.b32.xlu0 %v3703_v3, %s12057_s2 }
 0xc38   : > { %v8192_v30 = vpop.f32.mrf.mxu0 }
 0xc39   : > { %3720 = vrot.lane.b32.xlu1 %v3719_v60, %s12060_s24  ;;  %v3713_v15 = vrot.slane %v10327_v44, 4 }
 0xc3a   : > { %v3639_v4 = vpop.f32.mrf.mxu0 }
 0xc3c   : > { %v8193_v13 = vpop.f32.mrf.mxu0 }
 0xc3d   : > { %v3705_v38 = vpack.c.bf16 %v8193_v13, %v8192_v30  ;;  %3714 = vrot.lane.b32.xlu1 %v3713_v15, %s12048_s22 }
 0xc3e   : > { %v3548_v0 = vpop.f32.mrf.mxu1  ;;  %v3642_v46 = vpop.f32.mrf.mxu0 }
 0xc3f   : > { %v3731_v17 = vrot.slane %v3705_v38, 4  ;;  %v3704_v2 = vpack.c.bf16 %v3642_v46, %v3639_v4  ;;  %3729 = vrot.lane.b32.xlu0 %v3705_v38, %s12044_s21  ;;  %v10342_v38 = vld [vmem:[%s11880_s16] ss:$0 sm:$0xff] }
 0xc40   : > { %v8182_v32 = vpop.f32.mrf.mxu1  ;;  %v8196_v6 = vpop.f32.mrf.mxu0 }
 0xc41   : > { %3732 = vrot.lane.b32.xlu1 %v3731_v17, %s12059_s27  ;;  %v3725_v3 = vrot.slane %v3704_v2, 4  ;;  %v7578_v17 = vadd.f32 %v7577_v53, %v7576_v24 }
 0xc42   : > { %v3551_v59 = vpop.f32.mrf.mxu1  ;;  %v3655_v10 = vpop.f32.mrf.mxu0 }
 0xc43   : > { %3723 = vrot.lane.b32.xlu0 %v3704_v2, %s12081_s5 }
 0xc44   : > { %v8183_v31 = vpop.f32.mrf.mxu1  ;;  %v8197_v60 = vpop.f32.mrf.mxu0 }
 0xc45   : > { %v3707_v30 = vpack.c.bf16 %v8197_v60, %v8196_v6  ;;  %3726 = vrot.lane.b32.xlu1 %v3725_v3, %s12082_s4  ;;  %v3429_v6 = vadd.f32 %v7556_v9, %v10342_v38  ;;  %v7600_v60 = vadd.f32 %v7599_v21, %v7598_v18 }
 0xc46   : > { %v3658_v15 = vpop.f32.mrf.mxu0 }
 0xc47   : > { %v3743_v13 = vrot.slane %v3707_v30, 4  ;;  %v3706_v14 = vpack.c.bf16 %v3658_v15, %v3655_v10  ;;  %3741 = vrot.lane.b32.xlu0 %v3707_v30, %s12083_s0  ;;  %v3469_v10 = vadd.f32 %v7578_v17, %v3429_v6 }
 0xc48   : > { %v8200_v4 = vpop.f32.mrf.mxu0 }
 0xc49   : > { %3744 = vrot.lane.b32.xlu1 %v3743_v13, %s12055_s28  ;;  %v3737_v2 = vrot.slane %v3706_v14, 4  ;;  %v3509_v15 = vadd.f32 %v7600_v60, %v3469_v10 }
 0xc4a   : > { %v3671_v46 = vpop.f32.mrf.mxu0 }
 0xc4b   : > { %3735 = vrot.lane.b32.xlu0 %v3706_v14, %s12061_s30  ;;  %v3549_v24 = vadd.f32 %v3548_v0, %v3509_v15 }
 0xc4c   : > { %v8201_v32 = vpop.f32.mrf.mxu0 }
 0xc4d   : > { %3738 = vrot.lane.b32.xlu1 %v3737_v2, %s12084_s19  ;;  %v3709_v3 = vpack.c.bf16 %v8201_v32, %v8200_v4  ;;  %8731 = vtanh.f32 %v3549_v24 }
 0xc4e   : > { %v3674_v59 = vpop.f32.mrf.mxu0 }
 0xc4f   : > { %v3708_v13 = vpack.c.bf16 %v3674_v59, %v3671_v46  ;;  %v3755_v18 = vrot.slane %v3709_v3, 4 }
 0xc50   : > { %v8204_v31 = vpop.f32.mrf.mxu0 }
 0xc51   : > { %3753 = vrot.lane.b32.xlu1 %v3709_v3, %s12085_s6  ;;  %v3749_v12 = vrot.slane %v3708_v13, 4 }
 0xc52   : > { %v3687_v30 = vpop.f32.mrf.mxu0 }
 0xc54   : > { %v8205_v5 = vpop.f32.mrf.mxu0 }
 0xc55   : > { %v3711_v53 = vpack.c.bf16 %v8205_v5, %v8204_v31  ;;  %3747 = vrot.lane.b32.xlu1 %v3708_v13, %s12047_s1 }
 0xc56   : > { %v3690_v14 = vpop.f32.mrf.mxu0 }
 0xc57   : > { %3795 = vrot.lane.b32.xlu0 %v3711_v53, %s12057_s2  ;;  %v3797_v9 = vrot.slane %v3711_v53, 4  ;;  %v3710_v17 = vpack.c.bf16 %v3690_v14, %v3687_v30  ;;  %v3554_v30 = vmul.f32 0.5, %v3549_v24 }
 0xc59   : > { %3750 = vrot.lane.b32.xlu1 %v3749_v12, %s12058_s25  ;;  %v3791_v21 = vrot.slane %v3710_v17, 4  ;;  %8733 = vtanh.f32 %v3554_v30 }
 0xc5a   : > { %v8732_v5 = vpop.eup %8731 }
 0xc5b   : > { %3798 = vrot.lane.b32.xlu0 %v3797_v9, %s12060_s24 }
 0xc5d   : > { %3756 = vrot.lane.b32.xlu1 %v3755_v18, %s12086_s29 }
 0xc5f   : > { %3792 = vrot.lane.b32.xlu0 %v3791_v21, %s12048_s22 }
 0xc61   : > { %3560 = vrot.lane.b32.xlu1 %v9856_v19, %s12087_s3 }
 0xc63   : > { %3801 = vrot.lane.b32.xlu0 %v10219_v58, %s12081_s5 }
 0xc66   : > { %v8734_v24 = vpop.eup %8733 }
 0xc67   : > { %3565 = vrot.lane.b32.xlu0 %v8732_v5, %s11963_s7  ;;  %s11965_s7 = smov 108  }
 0xca9   : > { %v3718_v12 = vpop.permute.xlu0 %3717 }
 0xcab   : > { %v3721_v0 = vpop.permute.xlu1 %3720 }
 0xcaf   : > { %v3715_v4 = vpop.permute.xlu1 %3714 }
 0xcb0   : > { %v3760_v32 = vsel %vm1377_vm8, %v10327_v44, %v3715_v4 }
 0xcb1   : > { %v3730_v46 = vpop.permute.xlu0 %3729  ;;  %v3762_v10 = vsel %vm2291_vm11, %v3760_v32, %v3718_v12 }
 0xcb2   : > { %v3764_v3 = vsel %vm2294_vm12, %v3762_v10, %v3721_v0 }
 0xcb3   : > { %v3733_v2 = vpop.permute.xlu1 %3732 }
 0xcb5   : > { %v3724_v59 = vpop.permute.xlu0 %3723 }
 0xcb6   : > { %v3766_v58 = vsel %vm2297_vm7, %v3764_v3, %v3724_v59  ;;  %v3556_v3 = vadd.f32 1.0, %v8734_v24 }
 0xcb7   : > { %v3727_v6 = vpop.permute.xlu1 %3726 }
 0xcb8   : > { %v3768_v15 = vsel %vm1603_vm6, %v3766_v58, %v3727_v6 }
 0xcb9   : > { %v3742_v31 = vpop.permute.xlu0 %3741  ;;  %v3770_v53 = vsel %vm12088_vm15, %v3768_v15, %v3730_v46  ;;  %vm12090_vm15 = vcmask 850944  }
 0xcba   : > { %v3772_v44 = vsel %vm2305_vm10, %v3770_v53, %v3733_v2  ;;  %v3557_v53 = vmul.f32 0.5, %v3556_v3 }
 0xcbb   : > { %v3745_v19 = vpop.permute.xlu1 %3744 }
 0xcbd   : > { %v3736_v14 = vpop.permute.xlu0 %3735 }
 0xcbe   : > { %v3774_v9 = vsel %vm12089_vm2, %v3772_v44, %v3736_v14  ;;  %vm12091_vm2 = vcmask 162816  }
 0xcbf   : > { %v3739_v60 = vpop.permute.xlu1 %3738 }
 0xcc0   : > { %v3776_v5 = vsel %vm2311_vm14, %v3774_v9, %v3739_v60 }
 0xcc1   : > { %v3778_v12 = vsel %vm1652_vm5, %v3776_v5, %v3742_v31 }
 0xcc2   : > { %v3780_v32 = vsel %vm2316_vm1, %v3778_v12, %v3745_v19 }
 0xcc3   : > { %v3754_v13 = vpop.permute.xlu1 %3753 }
 0xcc7   : > { %v3748_v18 = vpop.permute.xlu1 %3747 }
 0xcc8   : > { %v3782_v59 = vsel %vm2319_vm4, %v3780_v32, %v3748_v18 }
 0xcc9   : > { %v3796_v21 = vpop.permute.xlu0 %3795 }
 0xccb   : > { %v3751_v4 = vpop.permute.xlu1 %3750 }
 0xccc   : > { %v3784_v2 = vsel %vm12090_vm15, %v3782_v59, %v3751_v4  ;;  %vm12092_vm15 = vmmov %vm12091_vm2 }
 0xccd   : > { %v3799_v0 = vpop.permute.xlu0 %3798  ;;  %v3786_v31 = vsel %vm2325_vm13, %v3784_v2, %v3754_v13 }
 0xccf   : > { %v3757_v58 = vpop.permute.xlu1 %3756 }
 0xcd0   : > { %v3788_v19 = vsel %vm2328_vm9, %v3786_v31, %v3757_v58 }
 0xcd1   : > { %v3793_v6 = vpop.permute.xlu0 %3792 }
 0xcd2   : > { %v3805_v46 = vsel %vm1377_vm8, %v3710_v17, %v3793_v6 }
 0xcd3   : > { %v3807_v10 = vsel %vm2291_vm11, %v3805_v46, %v3796_v21  ;;  %v3561_v13 = vpop.permute.xlu1 %3560 }
 0xcd4   : > { %v3809_v60 = vsel %vm2294_vm12, %v3807_v10, %v3799_v0  ;;  %v3563_v44 = vmul.f32 %v3561_v13, %v3557_v53  ;;  %v10393_v0 = vld [vmem:[%s11876_s12] ss:$0 sm:$0xff] }
 0xcd5   : > { %v3802_v30 = vpop.permute.xlu0 %3801 }
 0xcd6   : > { %v3811_v15 = vsel %vm2297_vm7, %v3809_v60, %v3802_v30 }
 0xcd7   : > { %7379 = vmatprep.mubr.msk.bf16.mxu1 %vm1603_vm6, %v3811_v15 }
 0xcd8   : > { %3847 = vmatmul.mubr.bf16.vlgmr.msra.gmra.mxu1 %v3788_v19 }
 0xcd9   : > { %v3566_v17 = vpop.permute.xlu0 %3565  ;;  %8215 = vmatpush3.bf16.msra.mxu1 %v9815_v50  ;;  %8218 = vmatprep.mubr.msk.bf16.mxu1 %vm8971_vm0, %v12056_v61 }
 0xcda   : > { %v3568_v14 = vmul.f32 %v3566_v17, %v3557_v53  ;;  %8216 = vmatprep.subr.bf16.mxu1 %v12056_v61  ;;  %v10407_v17 = vld [vmem:[%s11878_s14] ss:$0 sm:$0xff] }
 0xcdc   : > { %3570 = vrot.lane.b32.xlu0 %v3568_v14, %s12087_s3 }
 0xcdd   : > { %8217 = vmatpush3.bf16.msra.mxu1 %v9821_v55 }
 0xd4e   : > { %v3571_v9 = vpop.permute.xlu0 %3570 }
 0xd4f   : > { %v10386_v18 = vadd.f32 %v3571_v9, %v3563_v44 }
 0xd51   : > { %8735 = vtanh.f32 %v10386_v18 }
 0xd5e   : > { %v8736_v21 = vpop.eup %8735 }
 0xd5f   : > { %3576 = vrot.lane.b32.xlu1 %v8736_v21, %s12087_s3 }
 0xd98   : > { %v3848_v5 = vpop.f32.mrf.mxu1 }
 0xd99   : > { %v3849_v12 = vadd.f32 %v10393_v0, %v3848_v5 }
 0xd9a   : > { %v3850_v4 = vpop.f32.mrf.mxu1 }
 0xd9b   : > { %v3855_v55 = vand.u32 2147483647, %v3849_v12  ;;  %v3854_v3 = vmax.f32 %v3849_v12, 0.0 }
 0xd9c   : > { %v3851_v24 = vpop.f32.mrf.mxu1 }
 0xd9d   : > { %v3856_v32 = vsub.f32 0.0, %v3855_v55 }
 0xd9e   : > { %v3852_v6 = vpop.f32.mrf.mxu1 }
 0xd9f   : > { %v3857_v59 = vmul.f32 1.442695, %v3856_v32 }
 0xda1   : > { %8737 = vpow2.f32 %v3857_v59  ;;  %v10416_v59 = vld [vmem:[%s11878_s14 + $0x1] ss:$0 sm:$0xff] }
 0xdae   : > { %v8738_v46 = vpop.eup %8737 }
 0xdaf   : > { %v3859_v2 = vadd.f32 1.0, %v8738_v46 }
 0xdb1   : > { %8739 = vlog2.f32 %v3859_v2 }
 0xdbe   : > { %v8740_v10 = vpop.eup %8739 }
 0xdbf   : > { %v3861_v58 = vmul.f32 0.6931472, %v8740_v10 }
 0xdc1   : > { %v3862_v60 = vadd.f32 %v3861_v58, %v3854_v3 }
 0xdc3   : > { %v3863_v30 = vpack.c.bf16 %v3862_v60, %v3862_v60 }
 0xdc5   : > { %8211 = vmatmul.mubr.msk.bf16.vlgmr.msra.gmra.mxu0 %vm12091_vm2, %v3863_v30 }
 0xdc6   : > { %8223 = vmatpush3.bf16.msra.mxu0 %v9835_v54  ;;  %8226 = vmatprep.mubr.msk.bf16.mxu0 %vm8971_vm0, %v12056_v61 }
 0xdc7   : > { %8224 = vmatprep.subr.bf16.mxu0 %v12056_v61 }
 0xdca   : > { %8225 = vmatpush3.bf16.msra.mxu0 %v9841_v33 }
 0xdcb   : > { %7641 = vmatprep.subr.bf16.mxu0 %v9887_v47 }
 0xdd1   : > { %v3577_v31 = vpop.permute.xlu1 %3576 }
 0xdd2   : > { %v3579_v15 = vmul.f32 %v3577_v31, %v3557_v53 }
 0xdd4   : > { %4023 = vrot.lane.b32.xlu0 %v3579_v15, %s11965_s7 }
 0xe85   : > { %v3901_v19 = vpop.f32.mrf.mxu0 }
 0xe86   : > { %v3902_v14 = vadd.f32 %v10407_v17, %v3901_v19 }
 0xe87   : > { %v8212_v13 = vpop.f32.mrf.mxu0 }
 0xe88   : > { %v3908_v44 = vand.u32 2147483647, %v3902_v14  ;;  %v3907_v4 = vmax.f32 %v3902_v14, 0.0 }
 0xe89   : > { %v3904_v9 = vpop.f32.mrf.mxu0 }
 0xe8a   : > { %v3909_v21 = vsub.f32 0.0, %v3908_v44 }
 0xe8b   : > { %v8213_v33 = vpop.f32.mrf.mxu0 }
 0xe8c   : > { %v3910_v5 = vmul.f32 1.442695, %v3909_v21  ;;  %v4024_v33 = vpop.permute.xlu0 %4023 }
 0xe8e   : > { %8741 = vpow2.f32 %v3910_v5 }
 0xe9b   : > { %v8742_v47 = vpop.eup %8741 }
 0xe9c   : > { %v3912_v53 = vadd.f32 1.0, %v8742_v47 }
 0xe9e   : > { %8743 = vlog2.f32 %v3912_v53 }
 0xeab   : > { %v8744_v12 = vpop.eup %8743 }
 0xeac   : > { %v3914_v55 = vmul.f32 0.6931472, %v8744_v12  ;;  %v12095_v12 = vld [vmem:[#allocation9_spill] sm:$0xff] }
 0xeae   : > { %v3915_v24 = vadd.f32 %v3914_v55, %v3907_v4  ;;  %v12096_v4 = vld [vmem:[#allocation10_spill] sm:$0xff]  ;;  %v12097_v55 = vld [vmem:[#allocation11_spill] sm:$0xff] }
 0xeb0   : > { %v3916_v32 = vpack.c.bf16 %v3915_v24, %v3915_v24  ;;  %v12098_v24 = vld [vmem:[#allocation12_spill] sm:$0xff] }
 0xeb2   : > { %8219 = vmatmul.mubr.msk.bf16.vlgmr.msra.gmra.mxu1 %vm12092_vm15, %v3916_v32  ;;  %vm12094_vm15 = vmmov %vm12091_vm2  ;;  %v12099_v32 = vld [vmem:[#allocation13_spill] sm:$0xff] }
 0xeb3   : > { %8232 = vmatprep.mubr.msk.bf16.mxu1 %vm1377_vm8, %v9449_v26 }
 0xf72   : > { %v3954_v6 = vpop.f32.mrf.mxu1 }
 0xf73   : > { %v3955_v46 = vadd.f32 %v10416_v59, %v3954_v6  ;;  %v12100_v6 = vld [vmem:[#allocation14_spill] sm:$0xff] }
 0xf74   : > { %v8220_v2 = vpop.f32.mrf.mxu1 }
 0xf75   : > { %v3961_v10 = vand.u32 2147483647, %v3955_v46  ;;  %v3960_v14 = vmax.f32 %v3955_v46, 0.0  ;;  %v12101_v46 = vld [vmem:[#allocation15_spill] sm:$0xff]  ;;  %v12102_v2 = vld [vmem:[#allocation16_spill] sm:$0xff] }
 0xf76   : > { %v3957_v3 = vpop.f32.mrf.mxu1 }
 0xf77   : > { %v3962_v58 = vsub.f32 0.0, %v3961_v10  ;;  %v12103_v10 = vld [vmem:[#allocation17_spill] sm:$0xff]  ;;  %v12104_v3 = vld [vmem:[#allocation18_spill] sm:$0xff] }
 0xf78   : > { %v8221_v60 = vpop.f32.mrf.mxu1 }
 0xf79   : > { %v3963_v30 = vmul.f32 1.442695, %v3962_v58  ;;  %v12105_v58 = vld [vmem:[#allocation19_spill] sm:$0xff]  ;;  %v12106_v60 = vld [vmem:[#allocation20_spill] sm:$0xff] }
 0xf7b   : > { %8745 = vpow2.f32 %v3963_v30  ;;  %v12107_v30 = vld [vmem:[#allocation21_spill] sm:$0xff] }
 0xf88   : > { %v8746_v31 = vpop.eup %8745 }
 0xf89   : > { %v3965_v15 = vadd.f32 1.0, %v8746_v31  ;;  %v12108_v31 = vld [vmem:[#allocation22_spill] sm:$0xff] }
 0xf8b   : > { %8747 = vlog2.f32 %v3965_v15  ;;  %v12109_v15 = vld [vmem:[#allocation23_spill] sm:$0xff] }
 0xf98   : > { %v8748_v19 = vpop.eup %8747 }
 0xf99   : > { %v3967_v13 = vmul.f32 0.6931472, %v8748_v19  ;;  %v12110_v19 = vld [vmem:[#allocation24_spill] sm:$0xff] }
 0xf9b   : > { %v3968_v44 = vadd.f32 %v3967_v13, %v3960_v14 }
 0xf9d   : > { %v3969_v9 = vpack.c.bf16 %v3968_v44, %v3968_v44 }
 0xf9f   : > { %8227 = vmatmul.mubr.msk.bf16.vlgmr.msra.gmra.mxu0 %vm12091_vm2, %v3969_v9  ;;  %vm12116_vm2 = vcmask 523264  }
 0xfa0   : > { %7642 = vmatpush3.bf16.msra.mxu0 %v9892_v36  ;;  %v12093_v36 = vld [vmem:[#allocation8_spill] sm:$0xff] }
 0xfa1   : > { %7643 = vmatprep.subr.bf16.mxu0 %v9897_v16 }
 0xfa4   : > { %7644 = vmatpush3.bf16.msra.mxu0 %v9904_v48  ;;  %v10439_v48 = vld [vmem:[%s11878_s14 + $0x2] ss:$0 sm:$0xff] }
 0xfa5   : > { %7645 = vmatprep.subr.bf16.mxu0 %v9910_v28 }
 0xfa8   : > { %7646 = vmatpush3.bf16.msra.mxu0 %v9916_v52 }
 0xfa9   : > { %7647 = vmatprep.subr.bf16.mxu0 %v9922_v56 }
 0xfac   : > { %7648 = vmatpush3.bf16.msra.mxu0 %v9928_v57 }
 0xfad   : > { %7649 = vmatprep.subr.bf16.mxu0 %v9935_v22 }
 0xfb0   : > { %7650 = vmatpush3.bf16.msra.mxu0 %v9940_v7 }
 0xfb1   : > { %7651 = vmatprep.subr.bf16.mxu0 %v9947_v34 }
 0xfb4   : > { %7652 = vmatpush3.bf16.msra.mxu0 %v9952_v11 }
 0xfb5   : > { %7653 = vmatprep.subr.bf16.mxu0 %v9959_v1 }
 0xfb8   : > { %7654 = vmatpush3.bf16.msra.mxu0 %v9964_v37 }
 0xfb9   : > { %7655 = vmatprep.subr.bf16.mxu0 %v9973_v41 }
 0xfbc   : > { %7656 = vmatpush3.bf16.msra.mxu0 %v9978_v42 }
 0xfbd   : > { %7685 = vmatprep.subr.bf16.mxu0 %v12093_v36 }
0x105f   : > { %v4007_v16 = vpop.f32.mrf.mxu0 }
0x1060   : > { %v4008_v28 = vadd.f32 %v10439_v48, %v4007_v16 }
0x1061   : > { %v8228_v52 = vpop.f32.mrf.mxu0 }
0x1062   : > { %v4014_v56 = vand.u32 2147483647, %v4008_v28  ;;  %v4013_v41 = vmax.f32 %v4008_v28, 0.0 }
0x1063   : > { %v4010_v57 = vpop.f32.mrf.mxu0 }
0x1064   : > { %v4015_v22 = vsub.f32 0.0, %v4014_v56 }
0x1065   : > { %v8229_v7 = vpop.f32.mrf.mxu0 }
0x1066   : > { %v4016_v34 = vmul.f32 1.442695, %v4015_v22 }
0x1068   : > { %8749 = vpow2.f32 %v4016_v34 }
0x1075   : > { %v8750_v11 = vpop.eup %8749 }
0x1076   : > { %v4018_v1 = vadd.f32 1.0, %v8750_v11 }
0x1078   : > { %8751 = vlog2.f32 %v4018_v1 }
0x1085   : > { %v8752_v37 = vpop.eup %8751 }
0x1086   : > { %v4020_v42 = vmul.f32 0.6931472, %v8752_v37 }
0x1088   : > { %v4021_v21 = vadd.f32 %v4020_v42, %v4013_v41 }
0x108a   : > { %v4026_v5 = vsel %vm12094_vm15, %v4021_v21, %v4024_v33  ;;  %vm12119_vm15 = vcmask 850944  }
0x108b   : > { %v10443_v47 = vpack.c.bf16 %v4026_v5, %v4026_v5 }
0x108d   : > { %8516 = vmatprep.subr.msk.bf16.mxu1 %vm1408_vm3, %v10443_v47  ;;  %v4029_v53 = vsel %vm1408_vm3, %v10443_v47, 0 }
0x108e   : > { %8231 = vmatpush3.bf16.msra.mxu1 %v4029_v53 }
0x108f   : > { %7663 = vmatprep.subr.bf16.mxu1 %v12095_v12 }
0x1091   : > { %8233 = vmatmul.mubr.msk.bf16.vlgmr.msra.gmra.mxu1 %vm1377_vm8, %v9455_v35 }
0x1092   : > { %8236 = vmatprep.mubr.msk.bf16.mxu1 %vm1377_vm8, %v9461_v51  ;;  %7664 = vmatpush3.bf16.msra.mxu1 %v12096_v4 }
0x1093   : > { %7665 = vmatprep.subr.bf16.mxu1 %v12097_v55 }
0x1096   : > { %7666 = vmatpush3.bf16.msra.mxu1 %v12098_v24 }
0x1097   : > { %7667 = vmatprep.subr.bf16.mxu1 %v12099_v32 }
0x1099   : > { %8237 = vmatmul.mubr.msk.bf16.gmra.mxu1 %vm1377_vm8, %v9468_v27 }
0x109a   : > { %8240 = vmatprep.mubr.msk.bf16.mxu1 %vm1377_vm8, %v9473_v25  ;;  %7668 = vmatpush3.bf16.msra.mxu1 %v12100_v6 }
0x109b   : > { %7669 = vmatprep.subr.bf16.mxu1 %v12101_v46 }
0x109e   : > { %7670 = vmatpush3.bf16.msra.mxu1 %v12102_v2 }
0x109f   : > { %7671 = vmatprep.subr.bf16.mxu1 %v12103_v10 }
0x10a1   : > { %8241 = vmatmul.mubr.msk.bf16.gmra.mxu1 %vm1377_vm8, %v9481_v43 }
0x10a2   : > { %8244 = vmatprep.mubr.msk.bf16.mxu1 %vm1377_vm8, %v9483_v23  ;;  %7672 = vmatpush3.bf16.msra.mxu1 %v12104_v3 }
0x10a3   : > { %7673 = vmatprep.subr.bf16.mxu1 %v12105_v58 }
0x10a6   : > { %7674 = vmatpush3.bf16.msra.mxu1 %v12106_v60 }
0x10a7   : > { %7675 = vmatprep.subr.bf16.mxu1 %v12107_v30 }
0x10a9   : > { %8245 = vmatmul.mubr.msk.bf16.gmra.mxu1 %vm1377_vm8, %v9493_v62 }
0x10aa   : > { %8248 = vmatprep.mubr.msk.bf16.mxu1 %vm1377_vm8, %v9495_v20  ;;  %7676 = vmatpush3.bf16.msra.mxu1 %v12108_v31 }
0x10ab   : > { %7677 = vmatprep.subr.bf16.mxu1 %v12109_v15 }
0x10ae   : > { %7678 = vmatpush3.bf16.msra.mxu1 %v12110_v19 }
0x10af   : > { %8252 = vmatprep.subr.bf16.mxu1 %v12056_v61 }
0x10b1   : > { %8249 = vmatmul.mubr.msk.bf16.gmra.mxu1 %vm1377_vm8, %v9503_v8 }
0x1151   : > { %v8234_v14 = vpop.f32.mrf.mxu1 }
0x1153   : > { %v4065_v13 = vpop.f32.mrf.mxu1 }
0x1155   : > { %v8235_v44 = vpop.f32.mrf.mxu1 }
0x1156   : > { %v4145_v9 = vpack.c.bf16 %v8235_v44, %v8234_v14  ;;  %v7394_v44 = vld [vmem:[%s12111_s18] ss:$0 sm:$0xff]  ;;  %s9005_s18 = smov 1  }
0x1157   : > { %v4068_v36 = vpop.f32.mrf.mxu1 }
0x1158   : > { %v4161_v16 = vrot.slane %v4145_v9, 4  ;;  %v4144_v28 = vpack.c.bf16 %v4068_v36, %v4065_v13 }
0x1159   : > { %v8238_v52 = vpop.f32.mrf.mxu1 }
0x115a   : > { %4162 = vrot.lane.b32.xlu1 %v4161_v16, %s12086_s29  ;;  %v4155_v57 = vrot.slane %v4144_v28, 4 }
0x115b   : > { %v4081_v56 = vpop.f32.mrf.mxu1 }
0x115d   : > { %v8239_v22 = vpop.f32.mrf.mxu1 }
0x115e   : > { %4156 = vrot.lane.b32.xlu1 %v4155_v57, %s12082_s4  ;;  %v4147_v34 = vpack.c.bf16 %v8239_v22, %v8238_v52 }
0x115f   : > { %v4084_v7 = vpop.f32.mrf.mxu1 }
0x1160   : > { %v4146_v11 = vpack.c.bf16 %v4084_v7, %v4081_v56  ;;  %v4173_v41 = vrot.slane %v4147_v34, 4 }
0x1161   : > { %v8242_v1 = vpop.f32.mrf.mxu1 }
0x1162   : > { %4159 = vrot.lane.b32.xlu1 %v4145_v9, %s12083_s0  ;;  %4165 = vrot.lane.b32.xlu0 %v4146_v11, %s12081_s5  ;;  %v4167_v42 = vrot.slane %v4146_v11, 4 }
0x1163   : > { %v4097_v37 = vpop.f32.mrf.mxu1 }
0x1165   : > { %v8243_v21 = vpop.f32.mrf.mxu1 }
0x1166   : > { %4174 = vrot.lane.b32.xlu1 %v4173_v41, %s12060_s24  ;;  %4168 = vrot.lane.b32.xlu0 %v4167_v42, %s12084_s19  ;;  %v4149_v55 = vpack.c.bf16 %v8243_v21, %v8242_v1  ;;  %v12112_v42 = vld [vmem:[#allocation25_spill] sm:$0xff] }
0x1167   : > { %v4100_v33 = vpop.f32.mrf.mxu1 }
0x1168   : > { %v4148_v5 = vpack.c.bf16 %v4100_v33, %v4097_v37  ;;  %v4185_v6 = vrot.slane %v4149_v55, 4  ;;  %v12113_v33 = vld [vmem:[#allocation26_spill] sm:$0xff] }
0x1169   : > { %v8246_v53 = vpop.f32.mrf.mxu1 }
0x116a   : > { %v4179_v12 = vrot.slane %v4148_v5, 4  ;;  %4171 = vrot.lane.b32.xlu0 %v4147_v34, %s12085_s6 }
0x116b   : > { %v4113_v4 = vpop.f32.mrf.mxu1 }
0x116c   : > { %4180 = vrot.lane.b32.xlu1 %v4179_v12, %s12058_s25  ;;  %v12115_v12 = vld [vmem:[#allocation28_spill] sm:$0xff] }
0x116d   : > { %v8247_v24 = vpop.f32.mrf.mxu1 }
0x116e   : > { %4183 = vrot.lane.b32.xlu0 %v4149_v55, %s12057_s2  ;;  %v4151_v30 = vpack.c.bf16 %v8247_v24, %v8246_v53 }
0x116f   : > { %v4116_v32 = vpop.f32.mrf.mxu1 }
0x1170   : > { %4177 = vrot.lane.b32.xlu1 %v4148_v5, %s12061_s30  ;;  %v4150_v10 = vpack.c.bf16 %v4116_v32, %v4113_v4  ;;  %v4197_v13 = vrot.slane %v4151_v30, 4  ;;  %v12114_v5 = vld [vmem:[#allocation27_spill] sm:$0xff] }
0x1171   : > { %v8250_v46 = vpop.f32.mrf.mxu1 }
0x1172   : > { %4186 = vrot.lane.b32.xlu0 %v4185_v6, %s12059_s27  ;;  %v4191_v19 = vrot.slane %v4150_v10, 4  ;;  %v12117_v6 = vld [vmem:[#allocation29_spill] sm:$0xff] }
0x1173   : > { %v4129_v2 = vpop.f32.mrf.mxu1 }
0x1175   : > { %v8251_v3 = vpop.f32.mrf.mxu1 }
0x1176   : > { %v4153_v58 = vpack.c.bf16 %v8251_v3, %v8250_v46  ;;  %4189 = vrot.lane.b32.xlu0 %v4150_v10, %s12047_s1  ;;  %v12118_v10 = vld [vmem:[#allocation30_spill] sm:$0xff] }
0x1177   : > { %v4132_v60 = vpop.f32.mrf.mxu1 }
0x1178   : > { %v4152_v31 = vpack.c.bf16 %v4132_v60, %v4129_v2  ;;  %4241 = vrot.lane.b32.xlu1 %v4153_v58, %s12083_s0  ;;  %v4243_v14 = vrot.slane %v4153_v58, 4  ;;  %v12120_v60 = vld [vmem:[#allocation31_spill] sm:$0xff] }
0x117a   : > { %v4237_v15 = vrot.slane %v4152_v31, 4  ;;  %4195 = vrot.lane.b32.xlu0 %v4151_v30, %s12044_s21  ;;  %v12121_v30 = vld [vmem:[#allocation32_spill] sm:$0xff] }
0x117c   : > { %4238 = vrot.lane.b32.xlu1 %v4237_v15, %s12082_s4 }
0x117e   : > { %4192 = vrot.lane.b32.xlu0 %v4191_v19, %s12048_s22 }
0x1180   : > { %4244 = vrot.lane.b32.xlu1 %v4243_v14, %s12086_s29 }
0x1182   : > { %4198 = vrot.lane.b32.xlu0 %v4197_v13, %s12055_s28  ;;  %v12122_v13 = vld [vmem:[#allocation33_spill] sm:$0xff] }
0x1184   : > { %4247 = vrot.lane.b32.xlu1 %v10443_v47, %s12081_s5 }
0x1186   : > { %4448 = vrot.lane.b32.xlu0 %v7394_v44, %s12082_s4  ;;  %v12123_v44 = vld [vmem:[#allocation34_spill] sm:$0xff] }
0x11cc   : > { %v4163_v9 = vpop.permute.xlu1 %4162 }
0x11d0   : > { %v4157_v36 = vpop.permute.xlu1 %4156 }
0x11d1   : > { %v4202_v57 = vsel %vm1603_vm6, %v4144_v28, %v4157_v36 }
0x11d4   : > { %v4160_v16 = vpop.permute.xlu1 %4159  ;;  %v4166_v52 = vpop.permute.xlu0 %4165 }
0x11d5   : > { %v4204_v7 = vsel %vm1652_vm5, %v4202_v57, %v4160_v16  ;;  %v4209_v34 = vsel %vm2297_vm7, %v4163_v9, %v4166_v52  ;;  %v12124_v52 = vld [vmem:[#allocation35_spill] sm:$0xff] }
0x11d6   : > { %v4206_v41 = vsel %vm2328_vm9, %v4204_v7, %v4163_v9 }
0x11d8   : > { %v4169_v56 = vpop.permute.xlu0 %4168  ;;  %v4175_v22 = vpop.permute.xlu1 %4174 }
0x11d9   : > { %v4211_v11 = vsel %vm2311_vm14, %v4209_v34, %v4169_v56  ;;  %v12127_v34 = vld [vmem:[#allocation38_spill] sm:$0xff] }
0x11dc   : > { %v4172_v1 = vpop.permute.xlu0 %4171 }
0x11dd   : > { %v4213_v37 = vsel %vm2325_vm13, %v4211_v11, %v4172_v1  ;;  %v4216_v4 = vsel %vm2294_vm12, %v4172_v1, %v4175_v22  ;;  %v12129_v11 = vmov 0  }
0x11de   : > { %4293 = vmatprep.mubr.bf16.mxu0 %v4213_v37  ;;  %v4181_v47 = vpop.permute.xlu1 %4180  ;;  %v10574_v37 = vld [vmem:[%s11875_s11 + $0x28] sm:$0xff]  }
0x11df   : > { %4294 = vmatmul.mubr.bf16.vlgmr.msra.gmra.mxu0 %v4206_v41  ;;  %v10588_v41 = vld [vmem:[%s11875_s11 + $0x18] sm:$0xff]  }
0x11e0   : > { %7686 = vmatpush3.bf16.msra.mxu0 %v12112_v42  ;;  %v4184_v21 = vpop.permute.xlu0 %4183  ;;  %v10595_v42 = vld [vmem:[%s11875_s11 + $0x10] sm:$0xff]  }
0x11e1   : > { %7687 = vmatprep.subr.bf16.mxu0 %v12113_v33  ;;  %v4223_v55 = vsel %vm2291_vm11, %v4181_v47, %v4184_v21  ;;  %v10602_v21 = vld [vmem:[%s11875_s11 + $0x8] sm:$0xff]   ;;  %v10609_v33 = vld [vmem:[%s11875_s11] sm:$0xff]  }
0x11e2   : > { %v4178_v28 = vpop.permute.xlu1 %4177 }
0x11e3   : > { %v4218_v24 = vsel %vm12116_vm2, %v4216_v4, %v4178_v28  ;;  %vm12128_vm2 = vcmask 392192   ;;  %v12130_v28 = vld [vmem:[#allocation6_spill] sm:$0xff] }
0x11e4   : > { %7688 = vmatpush3.bf16.msra.mxu0 %v12114_v5  ;;  %v4187_v53 = vpop.permute.xlu0 %4186  ;;  %v4220_v3 = vsel %vm12119_vm15, %v4218_v24, %v4181_v47  ;;  %v10581_v47 = vld [vmem:[%s11875_s11 + $0x20] sm:$0xff]   ;;  %v10618_v5 = vld [vmem:[%s11875_s11 + $0x48] sm:$0xff]   ;;  %vm12131_vm15 = vcmask 162816  }
0x11e5   : > { %7689 = vmatprep.subr.bf16.mxu0 %v12115_v12  ;;  %v4225_v32 = vsel %vm2305_vm10, %v4223_v55, %v4187_v53  ;;  %v10625_v53 = vld [vmem:[%s11875_s11 + $0x40] sm:$0xff]  }
0x11e8   : > { %7690 = vmatpush3.bf16.msra.mxu0 %v12117_v6  ;;  %v4190_v46 = vpop.permute.xlu0 %4189 }
0x11e9   : > { %v4227_v2 = vsel %vm2319_vm4, %v4225_v32, %v4190_v46  ;;  %7691 = vmatprep.subr.bf16.mxu0 %v12118_v10 }
0x11ea   : > { %4333 = vmatprep.mubr.bf16.mxu1 %v4227_v2  ;;  %v4242_v58 = vpop.permute.xlu1 %4241 }
0x11eb   : > { %4334 = vmatmul.mubr.bf16.vlgmr.msra.gmra.mxu1 %v4220_v3 }
0x11ec   : > { %7692 = vmatpush3.bf16.msra.mxu0 %v12120_v60  ;;  %8253 = vmatpush3.bf16.msra.mxu1 %v10240_v49  ;;  %v4196_v19 = vpop.permute.xlu0 %4195 }
0x11ed   : > { %7693 = vmatprep.subr.bf16.mxu0 %v12121_v30  ;;  %8254 = vmatprep.subr.bf16.mxu1 %v12056_v61 }
0x11ee   : > { %v4239_v15 = vpop.permute.xlu1 %4238  ;;  %8262 = vmatprep.mubr.msk.bf16.mxu1 %vm8971_vm0, %v12056_v61 }
0x11ef   : > { %v4251_v14 = vsel %vm1603_vm6, %v4152_v31, %v4239_v15  ;;  %v12125_v31 = vld [vmem:[#allocation36_spill] sm:$0xff] }
0x11f0   : > { %7694 = vmatpush3.bf16.msra.mxu0 %v12122_v13  ;;  %8255 = vmatpush3.bf16.msra.mxu1 %v10250_v29  ;;  %v4253_v36 = vsel %vm1652_vm5, %v4251_v14, %v4242_v58  ;;  %v4193_v56 = vpop.permute.xlu0 %4192  ;;  %v12126_v29 = vld [vmem:[#allocation37_spill] sm:$0xff] }
0x11f1   : > { %7695 = vmatprep.subr.bf16.mxu0 %v12123_v44  ;;  %8256 = vmatprep.subr.bf16.mxu1 %v12056_v61  ;;  %v4230_v57 = vsel %vm1377_vm8, %v4190_v46, %v4193_v56 }
0x11f2   : > { %v4245_v9 = vpop.permute.xlu1 %4244 }
0x11f3   : > { %v4255_v16 = vsel %vm2328_vm9, %v4253_v36, %v4245_v9 }
0x11f4   : > { %7696 = vmatpush3.bf16.msra.mxu0 %v12124_v52  ;;  %8257 = vmatpush3.bf16.msra.mxu1 %v10259_v63  ;;  %v4199_v22 = vpop.permute.xlu0 %4198  ;;  %v4232_v63 = vsel %vm12128_vm2, %v4230_v57, %v4196_v19  ;;  %vm12134_vm2 = vcmask 7168  }
0x11f5   : > { %4373 = vmatprep.mubr.bf16.mxu0 %v4255_v16  ;;  %7697 = vmatprep.subr.bf16.mxu0 %v12125_v31  ;;  %v4234_v1 = vsel %vm2316_vm1, %v4232_v63, %v4199_v22 }
0x11f6   : > { %8258 = vmatprep.subr.bf16.mxu1 %v12056_v61  ;;  %v4248_v7 = vpop.permute.xlu1 %4247 }
0x11f8   : > { %7698 = vmatpush3.bf16.msra.mxu0 %v12126_v29  ;;  %8259 = vmatpush3.bf16.msra.mxu1 %v10272_v39  ;;  %v4258_v39 = vsel %vm2297_vm7, %v4245_v9, %v4248_v7  ;;  %v10633_v22 = vpop.permute.xlu0 %4448 }
0x11f9   : > { %7699 = vmatprep.subr.bf16.mxu0 %v10210_v45  ;;  %8260 = vmatprep.subr.bf16.mxu1 %v12056_v61  ;;  %v10560_v45 = vld [vmem:[%s11875_s11 + $0x38] sm:$0xff]  }
0x11fc   : > { %7700 = vmatpush3.bf16.msra.mxu0 %v12127_v34  ;;  %8261 = vmatpush3.bf16.msra.mxu1 %v10281_v40  ;;  %v10567_v40 = vld [vmem:[%s11875_s11 + $0x30] sm:$0xff]  }
0x11fd   : > { %4690 = vmatprep.subr.bf16.mxu1 %v12129_v11 }
0x11ff   : > { %4374 = vmatmul.mubr.bf16.vlgmr.msra.gmra.mxu0 %v4234_v1  ;;  %8263 = vmatmul.mubr.msk.bf16.vlgmr.msra.gmra.mxu1 %vm2311_vm14, %v4258_v39  ;;  %v7258_v1 = vld [vmem:[#allocation2] ss:$0 sm:$0xff]  ;;  %v12132_v39 = vld [vmem:[#allocation5_spill] sm:$0xff] }
0x1200   : > { %8268 = vmatprep.mubr.msk.bf16.mxu0 %vm1377_vm8, %v9449_v26  ;;  %4691 = vmatpush1.bf16.msra.mxu1 %v10560_v45 }
0x1201   : > { %4692 = vmatprep.subr.bf16.mxu1 %v12129_v11 }
0x1204   : > { %4693 = vmatpush1.bf16.msra.mxu1 %v10567_v40 }
0x1205   : > { %4694 = vmatprep.subr.bf16.mxu1 %v12129_v11 }
0x1208   : > { %4695 = vmatpush1.bf16.msra.mxu1 %v10574_v37 }
0x1209   : > { %4696 = vmatprep.subr.bf16.mxu1 %v12129_v11 }
0x120c   : > { %4697 = vmatpush1.bf16.msra.mxu1 %v10581_v47 }
0x120d   : > { %4698 = vmatprep.subr.bf16.mxu1 %v12129_v11 }
0x1210   : > { %4699 = vmatpush1.bf16.msra.mxu1 %v10588_v41 }
0x1211   : > { %4700 = vmatprep.subr.bf16.mxu1 %v12129_v11 }
0x1214   : > { %4701 = vmatpush1.bf16.msra.mxu1 %v10595_v42 }
0x1215   : > { %4702 = vmatprep.subr.bf16.mxu1 %v12129_v11 }
0x1218   : > { %4703 = vmatpush1.bf16.msra.mxu1 %v10602_v21 }
0x1219   : > { %4704 = vmatprep.subr.bf16.mxu1 %v12129_v11 }
0x121c   : > { %4705 = vmatpush1.bf16.msra.mxu1 %v10609_v33 }
0x121d   : > { %4716 = vmatprep.subr.bf16.mxu1 %v12129_v11 }
0x1220   : > { %4717 = vmatpush2.bf16.msra.mxu1 %v12130_v28 }
0x1221   : > { %4718 = vmatprep.subr.bf16.mxu1 %v12129_v11 }
0x1224   : > { %4719 = vmatpush2.bf16.msra.mxu1 %v10618_v5 }
0x1225   : > { %4720 = vmatprep.subr.bf16.mxu1 %v12129_v11 }
0x1228   : > { %4721 = vmatpush2.bf16.msra.mxu1 %v10625_v53 }
0x1229   : > { %8296 = vmatprep.subr.bf16.mxu1 %v12056_v61 }
0x129f   : > { %v7657_v12 = vpop.f32.mrf.mxu0 }
0x12a1   : > { %v7658_v4 = vpop.f32.mrf.mxu0 }
0x12a2   : > { %v7659_v10 = vadd.f32 %v7658_v4, %v7657_v12  ;;  %v10642_v12 = vadd.f32 %v7258_v1, %v12132_v39 }
0x12a3   : > { %v7660_v55 = vpop.f32.mrf.mxu0 }
0x12a4   : > { %v4296_v30 = vadd.f32 %v7659_v10, %v10342_v38  ;;  %12133 = vst [vmem:[#allocation8_spill] sm:$0xff] %v10642_v12 }
0x12a5   : > { %v7661_v24 = vpop.f32.mrf.mxu0 }
0x12ab   : > { %v7679_v32 = vpop.f32.mrf.mxu1 }
0x12ad   : > { %v7680_v6 = vpop.f32.mrf.mxu1 }
0x12ae   : > { %v7681_v3 = vadd.f32 %v7680_v6, %v7679_v32 }
0x12af   : > { %v7682_v46 = vpop.f32.mrf.mxu1 }
0x12b0   : > { %v4336_v14 = vadd.f32 %v7681_v3, %v4296_v30  ;;  %v12135_v46 = vld [vmem:[#allocation7_spill] sm:$0xff] }
0x12b1   : > { %v7683_v2 = vpop.f32.mrf.mxu1 }
0x12b2   : > { %v10662_v2 = vld [vmem:[%s11877_s13] sm:$0xff]  }
0x12bf   : > { %v7701_v58 = vpop.f32.mrf.mxu0  ;;  %v4415_v60 = vpop.f32.mrf.mxu1 }
0x12c1   : > { %v7702_v15 = vpop.f32.mrf.mxu0  ;;  %v8264_v19 = vpop.f32.mrf.mxu1 }
0x12c2   : > { %v7703_v13 = vadd.f32 %v7702_v15, %v7701_v58 }
0x12c3   : > { %v7704_v44 = vpop.f32.mrf.mxu0  ;;  %v4418_v9 = vpop.f32.mrf.mxu1 }
0x12c4   : > { %v4376_v36 = vadd.f32 %v7703_v13, %v4336_v14 }
0x12c5   : > { %v7705_v16 = vpop.f32.mrf.mxu0  ;;  %v8265_v52 = vpop.f32.mrf.mxu1 }
0x12c6   : > { %v10630_v56 = vadd.f32 %v4415_v60, %v4376_v36 }
0x12c8   : > { %v4421_v31 = vmul.f32 0.5, %v10630_v56 }
0x12ca   : > { %8753 = vtanh.f32 %v4421_v31 }
0x12cb   : > { %8755 = vtanh.f32 %v10630_v56 }
0x12d7   : > { %v8754_v29 = vpop.eup %8753 }
0x12d8   : > { %v4423_v57 = vadd.f32 1.0, %v8754_v29 }
0x12da   : > { %v10635_v7 = vmul.f32 0.5, %v4423_v57 }
0x12dc   : > { %v4451_v38 = vmul.f32 %v10633_v22, %v10635_v7 }
0x12de   : > { %4453 = vrot.lane.b32.xlu1 %v4451_v38, %s12055_s28 }
0x1350   : > { %v4454_v34 = vpop.permute.xlu1 %4453 }
0x1351   : > { %v4456_v63 = vsel %vm12131_vm15, %v4454_v34, 0.0  ;;  %vm12137_vm15 = vcmask 392192  }
0x1352   : > { %4457 = vadd.xlane.f32.xlu0 %v4456_v63 }
0x13db   : > { %v4458_v4 = vpop.xlane.xlu0 %4457 }
0x13dc   : > { %v4459_v55 = vadd.f32 %v4458_v4, %v10642_v12 }
0x13de   : > { %v4460_v24 = vsel %vm12134_vm2, %v4459_v55, 0.0  ;;  %vm12138_vm2 = vcmask 523264  }
0x13df   : > { %v10646_v32 = vpack.c.bf16 %v4460_v24, %v4460_v24 }
0x13e1   : > { %8517 = vmatprep.subr.msk.bf16.mxu0 %vm1408_vm3, %v10646_v32  ;;  %v4463_v6 = vsel %vm1408_vm3, %v10646_v32, 0 }
0x13e2   : > { %8267 = vmatpush3.bf16.msra.mxu0 %v4463_v6 }
0x13e3   : > { %8288 = vmatprep.subr.bf16.mxu0 %v12056_v61 }
0x13e5   : > { %8269 = vmatmul.mubr.msk.bf16.vlgmr.msra.gmra.mxu0 %vm1377_vm8, %v9455_v35 }
0x13e6   : > { %8272 = vmatprep.mubr.msk.bf16.mxu0 %vm1377_vm8, %v9461_v51  ;;  %8289 = vmatpush3.bf16.msra.mxu0 %v12135_v46 }
0x13e7   : > { %8290 = vmatprep.subr.bf16.mxu0 %v12056_v61 }
0x13ea   : > { %8291 = vmatpush3.bf16.msra.mxu0 %v10662_v2 }
0x13eb   : > { %8304 = vmatprep.subr.bf16.mxu0 %v12056_v61 }
0x13ed   : > { %8273 = vmatmul.mubr.msk.bf16.gmra.mxu0 %vm1377_vm8, %v9468_v27 }
0x13ee   : > { %8276 = vmatprep.mubr.msk.bf16.mxu0 %vm1377_vm8, %v9473_v25 }
0x13f5   : > { %8277 = vmatmul.mubr.msk.bf16.gmra.mxu0 %vm1377_vm8, %v9481_v43 }
0x13f6   : > { %8280 = vmatprep.mubr.msk.bf16.mxu0 %vm1377_vm8, %v9483_v23 }
0x13fd   : > { %8281 = vmatmul.mubr.msk.bf16.gmra.mxu0 %vm1377_vm8, %v9493_v62 }
0x13fe   : > { %8284 = vmatprep.mubr.msk.bf16.mxu0 %vm1377_vm8, %v9495_v20 }
0x1405   : > { %8285 = vmatmul.mubr.msk.bf16.gmra.mxu0 %vm1377_vm8, %v9503_v8 }
0x1406   : > { %8292 = vmatprep.mubr.msk.bf16.mxu0 %vm8971_vm0, %v12056_v61 }
0x14a5   : > { %v8270_v10 = vpop.f32.mrf.mxu0 }
0x14a7   : > { %v4499_v3 = vpop.f32.mrf.mxu0 }
0x14a9   : > { %v8271_v58 = vpop.f32.mrf.mxu0 }
0x14aa   : > { %v4579_v60 = vpack.c.bf16 %v8271_v58, %v8270_v10 }
0x14ab   : > { %v4502_v30 = vpop.f32.mrf.mxu0 }
0x14ac   : > { %4593 = vrot.lane.b32.xlu1 %v4579_v60, %s12057_s2  ;;  %v4595_v19 = vrot.slane %v4579_v60, 4  ;;  %v10683_v14 = vpack.c.bf16 %v4502_v30, %v4499_v3 }
0x14ad   : > { %v8274_v15 = vpop.f32.mrf.mxu0 }
0x14ae   : > { %v4589_v9 = vrot.slane %v10683_v14, 4 }
0x14af   : > { %v4515_v13 = vpop.f32.mrf.mxu0 }
0x14b0   : > { %4596 = vrot.lane.b32.xlu1 %v4595_v19, %s12060_s24 }
0x14b1   : > { %v8275_v44 = vpop.f32.mrf.mxu0 }
0x14b2   : > { %v4581_v52 = vpack.c.bf16 %v8275_v44, %v8274_v15  ;;  %v8756_v44 = vpop.eup %8755 }
0x14b3   : > { %v4518_v36 = vpop.f32.mrf.mxu0 }
0x14b4   : > { %4590 = vrot.lane.b32.xlu1 %v4589_v9, %s12048_s22  ;;  %v4580_v57 = vpack.c.bf16 %v4518_v36, %v4515_v13  ;;  %v4607_v1 = vrot.slane %v4581_v52, 4 }
0x14b5   : > { %v8278_v16 = vpop.f32.mrf.mxu0 }
0x14b6   : > { %v4601_v24 = vrot.slane %v4580_v57, 4 }
0x14b7   : > { %v4531_v31 = vpop.f32.mrf.mxu0 }
0x14b8   : > { %4605 = vrot.lane.b32.xlu1 %v4581_v52, %s12044_s21 }
0x14b9   : > { %v8279_v29 = vpop.f32.mrf.mxu0 }
0x14ba   : > { %v4583_v3 = vpack.c.bf16 %v8279_v29, %v8278_v16 }
0x14bb   : > { %v4534_v38 = vpop.f32.mrf.mxu0 }
0x14bc   : > { %v4582_v34 = vpack.c.bf16 %v4534_v38, %v4531_v31  ;;  %4599 = vrot.lane.b32.xlu1 %v4580_v57, %s12081_s5  ;;  %v4619_v19 = vrot.slane %v4583_v3, 4 }
0x14bd   : > { %v8282_v63 = vpop.f32.mrf.mxu0 }
0x14be   : > { %v4613_v39 = vrot.slane %v4582_v34, 4 }
0x14bf   : > { %v4547_v4 = vpop.f32.mrf.mxu0 }
0x14c0   : > { %4608 = vrot.lane.b32.xlu1 %v4607_v1, %s12059_s27  ;;  %4614 = vrot.lane.b32.xlu0 %v4613_v39, %s12084_s19 }
0x14c1   : > { %v8283_v55 = vpop.f32.mrf.mxu0 }
0x14c2   : > { %v4585_v13 = vpack.c.bf16 %v8283_v55, %v8282_v63 }
0x14c3   : > { %v4550_v6 = vpop.f32.mrf.mxu0 }
0x14c4   : > { %4602 = vrot.lane.b32.xlu1 %v4601_v24, %s12082_s4  ;;  %v4584_v56 = vpack.c.bf16 %v4550_v6, %v4547_v4  ;;  %v4631_v31 = vrot.slane %v4585_v13, 4 }
0x14c5   : > { %v8286_v10 = vpop.f32.mrf.mxu0 }
0x14c6   : > { %v4625_v9 = vrot.slane %v4584_v56, 4 }
0x14c7   : > { %v4563_v58 = vpop.f32.mrf.mxu0 }
0x14c8   : > { %4617 = vrot.lane.b32.xlu1 %v4583_v3, %s12083_s0 }
0x14c9   : > { %v8287_v60 = vpop.f32.mrf.mxu0 }
0x14ca   : > { %v4587_v30 = vpack.c.bf16 %v8287_v60, %v8286_v10 }
0x14cb   : > { %v4566_v36 = vpop.f32.mrf.mxu0 }
0x14cc   : > { %v4673_v15 = vrot.slane %v4587_v30, 4  ;;  %4611 = vrot.lane.b32.xlu1 %v4582_v34, %s12061_s30  ;;  %v4586_v16 = vpack.c.bf16 %v4566_v36, %v4563_v58 }
0x14ce   : > { %4674 = vrot.lane.b32.xlu0 %v4673_v15, %s12060_s24  ;;  %v4667_v52 = vrot.slane %v4586_v16, 4 }
0x14d0   : > { %4620 = vrot.lane.b32.xlu1 %v4619_v19, %s12055_s28 }
0x14d2   : > { %4677 = vrot.lane.b32.xlu0 %v10646_v32, %s12081_s5 }
0x14d4   : > { %4629 = vrot.lane.b32.xlu1 %v4585_v13, %s12085_s6 }
0x14d6   : > { %4428 = vrot.lane.b32.xlu0 %v8756_v44, %s12136_s17 }
0x14d8   : > { %4623 = vrot.lane.b32.xlu1 %v4584_v56, %s12047_s1 }
0x14dc   : > { %4626 = vrot.lane.b32.xlu1 %v4625_v9, %s12058_s25 }
0x14e0   : > { %4671 = vrot.lane.b32.xlu1 %v4587_v30, %s12057_s2 }
0x14e4   : > { %4668 = vrot.lane.b32.xlu1 %v4667_v52, %s12048_s22 }
0x14e8   : > { %4632 = vrot.lane.b32.xlu1 %v4631_v31, %s12086_s29 }
0x151e   : > { %v4594_v32 = vpop.permute.xlu1 %4593 }
0x1522   : > { %v4597_v29 = vpop.permute.xlu1 %4596 }
0x1526   : > { %v4591_v57 = vpop.permute.xlu1 %4590 }
0x1527   : > { %v4636_v55 = vsel %vm1377_vm8, %v10683_v14, %v4591_v57 }
0x1528   : > { %v4638_v6 = vsel %vm2291_vm11, %v4636_v55, %v4594_v32 }
0x1529   : > { %v4640_v58 = vsel %vm2294_vm12, %v4638_v6, %v4597_v29 }
0x152a   : > { %v4606_v38 = vpop.permute.xlu1 %4605 }
0x152e   : > { %v4600_v34 = vpop.permute.xlu1 %4599 }
0x152f   : > { %v4642_v60 = vsel %vm2297_vm7, %v4640_v58, %v4600_v34 }
0x1532   : > { %v4609_v63 = vpop.permute.xlu1 %4608  ;;  %v4615_v4 = vpop.permute.xlu0 %4614 }
0x1536   : > { %v4603_v1 = vpop.permute.xlu1 %4602 }
0x1537   : > { %v4644_v15 = vsel %vm1603_vm6, %v4642_v60, %v4603_v1 }
0x1538   : > { %v4646_v13 = vsel %vm12137_vm15, %v4644_v15, %v4606_v38  ;;  %vm12139_vm15 = vcmask 850944  }
0x1539   : > { %v4648_v14 = vsel %vm2305_vm10, %v4646_v13, %v4609_v63 }
0x153a   : > { %v4618_v39 = vpop.permute.xlu1 %4617 }
0x153e   : > { %v4612_v24 = vpop.permute.xlu1 %4611 }
0x153f   : > { %v4650_v36 = vsel %vm12138_vm2, %v4648_v14, %v4612_v24  ;;  %vm12141_vm2 = vcmask 162816  }
0x1540   : > { %v4675_v10 = vpop.permute.xlu0 %4674  ;;  %v4652_v31 = vsel %vm2311_vm14, %v4650_v36, %v4615_v4 }
0x1541   : > { %v4654_v32 = vsel %vm1652_vm5, %v4652_v31, %v4618_v39 }
0x1542   : > { %v4621_v3 = vpop.permute.xlu1 %4620 }
0x1543   : > { %v4656_v57 = vsel %vm2316_vm1, %v4654_v32, %v4621_v3 }
0x1544   : > { %v4678_v30 = vpop.permute.xlu0 %4677 }
0x1546   : > { %v4630_v19 = vpop.permute.xlu1 %4629 }
0x1548   : > { %v4429_v44 = vpop.permute.xlu0 %4428 }
0x1549   : > { %v4431_v56 = vmul.f32 %v4429_v44, %v10635_v7 }
0x154a   : > { %v4624_v9 = vpop.permute.xlu1 %4623 }
0x154b   : > { %4433 = vrot.lane.b32.xlu1 %v4431_v56, %s12087_s3  ;;  %v4658_v38 = vsel %vm2319_vm4, %v4656_v57, %v4624_v9 }
0x154e   : > { %v4627_v52 = vpop.permute.xlu1 %4626 }
0x154f   : > { %v4660_v1 = vsel %vm12139_vm15, %v4658_v38, %v4627_v52  ;;  %vm12142_vm15 = vmmov %vm12141_vm2 }
0x1550   : > { %v4662_v24 = vsel %vm2325_vm13, %v4660_v1, %v4630_v19  ;;  %v10763_v1 = vld [vmem:[%s11879_s15 + $0x78] sm:$0xff]  }
0x1552   : > { %v4672_v29 = vpop.permute.xlu1 %4671 }
0x1556   : > { %v4669_v34 = vpop.permute.xlu1 %4668 }
0x1557   : > { %v4681_v55 = vsel %vm1377_vm8, %v4586_v16, %v4669_v34  ;;  %v10737_v16 = vld [vmem:[%s11877_s13 + $0xc] sm:$0xff]  }
0x1558   : > { %v4683_v63 = vsel %vm2291_vm11, %v4681_v55, %v4672_v29 }
0x1559   : > { %v4685_v6 = vsel %vm2294_vm12, %v4683_v63, %v4675_v10  ;;  %v4426_v10 = vmul.f32 %v10635_v7, %v10386_v18 }
0x155a   : > { %v4633_v58 = vpop.permute.xlu1 %4632  ;;  %v4687_v4 = vsel %vm2297_vm7, %v4685_v6, %v4678_v30 }
0x155b   : > { %v4664_v39 = vsel %vm2328_vm9, %v4662_v24, %v4633_v58  ;;  %7405 = vmatprep.mubr.msk.bf16.mxu1 %vm1603_vm6, %v4687_v4 }
0x155c   : > { %4723 = vmatmul.mubr.bf16.vlgmr.msra.gmra.mxu1 %v4664_v39 }
0x155d   : > { %8297 = vmatpush3.bf16.msra.mxu1 %v9815_v50  ;;  %8300 = vmatprep.mubr.msk.bf16.mxu1 %vm8971_vm0, %v12056_v61 }
0x155e   : > { %8298 = vmatprep.subr.bf16.mxu1 %v12056_v61 }
0x1561   : > { %8299 = vmatpush3.bf16.msra.mxu1 %v10737_v16 }
0x15bd   : > { %v4434_v3 = vpop.permute.xlu1 %4433 }
0x15be   : > { %v10742_v60 = vadd.f32 %v4434_v3, %v4426_v10 }
0x15c0   : > { %8757 = vtanh.f32 %v10742_v60 }
0x15cd   : > { %v8758_v30 = vpop.eup %8757 }
0x15ce   : > { %4439 = vrot.lane.b32.xlu0 %v8758_v30, %s12087_s3 }
0x161c   : > { %v4724_v15 = vpop.f32.mrf.mxu1 }
0x161d   : > { %v4725_v19 = vadd.f32 %v10393_v0, %v4724_v15 }
0x161e   : > { %v4726_v13 = vpop.f32.mrf.mxu1 }
0x161f   : > { %v4731_v44 = vand.u32 2147483647, %v4725_v19  ;;  %v4730_v57 = vmax.f32 %v4725_v19, 0.0 }
0x1620   : > { %v4727_v56 = vpop.f32.mrf.mxu1 }
0x1621   : > { %v4732_v9 = vsub.f32 0.0, %v4731_v44 }
0x1622   : > { %v4728_v14 = vpop.f32.mrf.mxu1 }
0x1623   : > { %v4733_v36 = vmul.f32 1.442695, %v4732_v9 }
0x1625   : > { %8759 = vpow2.f32 %v4733_v36 }
0x1632   : > { %v8760_v52 = vpop.eup %8759 }
0x1633   : > { %v4735_v18 = vadd.f32 1.0, %v8760_v52 }
0x1635   : > { %8761 = vlog2.f32 %v4735_v18 }
0x1640   : > { %v4440_v31 = vpop.permute.xlu0 %4439 }
0x1641   : > { %v4442_v32 = vmul.f32 %v4440_v31, %v10635_v7  ;;  %v10757_v7 = vld [vmem:[%s11877_s13 + $0x18] sm:$0xff]  }
0x1642   : > { %v8762_v29 = vpop.eup %8761 }
0x1643   : > { %v4737_v38 = vmul.f32 0.6931472, %v8762_v29  ;;  %4899 = vrot.lane.b32.xlu1 %v4442_v32, %s12140_s8 }
0x1645   : > { %v4738_v34 = vadd.f32 %v4737_v38, %v4730_v57 }
0x1647   : > { %v4739_v0 = vpack.c.bf16 %v4738_v34, %v4738_v34 }
0x1649   : > { %8293 = vmatmul.mubr.msk.bf16.vlgmr.msra.gmra.mxu0 %vm12141_vm2, %v4739_v0 }
0x164a   : > { %8305 = vmatpush3.bf16.msra.mxu0 %v9835_v54  ;;  %8308 = vmatprep.mubr.msk.bf16.mxu0 %vm8971_vm0, %v12056_v61 }
0x164b   : > { %8306 = vmatprep.subr.bf16.mxu0 %v12056_v61 }
0x164e   : > { %8307 = vmatpush3.bf16.msra.mxu0 %v10757_v7 }
0x164f   : > { %7744 = vmatprep.subr.bf16.mxu0 %v10763_v1 }
0x1709   : > { %v4777_v55 = vpop.f32.mrf.mxu0 }
0x170a   : > { %v4778_v63 = vadd.f32 %v10407_v17, %v4777_v55 }
0x170b   : > { %v8294_v6 = vpop.f32.mrf.mxu0 }
0x170c   : > { %v4784_v24 = vand.u32 2147483647, %v4778_v63  ;;  %v4783_v19 = vmax.f32 %v4778_v63, 0.0  ;;  %v10781_v6 = vld [vmem:[%s11879_s15 + $0x70] sm:$0xff]  }
0x170d   : > { %v4780_v58 = vpop.f32.mrf.mxu0 }
0x170e   : > { %v4785_v4 = vsub.f32 0.0, %v4784_v24  ;;  %v10787_v24 = vld [vmem:[%s11879_s15 + $0x30] sm:$0xff]   ;;  %v10793_v58 = vld [vmem:[%s11879_s15 + $0x68] sm:$0xff]  }
0x170f   : > { %v8295_v39 = vpop.f32.mrf.mxu0 }
0x1710   : > { %v4786_v10 = vmul.f32 1.442695, %v4785_v4  ;;  %v10799_v4 = vld [vmem:[%s11879_s15 + $0x28] sm:$0xff]   ;;  %v10805_v39 = vld [vmem:[%s11879_s15 + $0x60] sm:$0xff]  }
0x1712   : > { %8763 = vpow2.f32 %v4786_v10  ;;  %v10811_v10 = vld [vmem:[%s11879_s15 + $0x20] sm:$0xff]  }
0x171f   : > { %v8764_v3 = vpop.eup %8763 }
0x1720   : > { %v4788_v30 = vadd.f32 1.0, %v8764_v3  ;;  %v10817_v3 = vld [vmem:[%s11879_s15 + $0x58] sm:$0xff]  }
0x1722   : > { %8765 = vlog2.f32 %v4788_v30  ;;  %v10823_v30 = vld [vmem:[%s11879_s15 + $0x18] sm:$0xff]  }
0x172f   : > { %v8766_v15 = vpop.eup %8765 }
0x1730   : > { %v4790_v13 = vmul.f32 0.6931472, %v8766_v15  ;;  %v10829_v15 = vld [vmem:[%s11879_s15 + $0x50] sm:$0xff]  }
0x1732   : > { %v4791_v44 = vadd.f32 %v4790_v13, %v4783_v19  ;;  %v10835_v19 = vld [vmem:[%s11879_s15 + $0x10] sm:$0xff]   ;;  %v10841_v13 = vld [vmem:[%s11879_s15 + $0x48] sm:$0xff]  }
0x1734   : > { %v4792_v56 = vpack.c.bf16 %v4791_v44, %v4791_v44  ;;  %v10847_v44 = vld [vmem:[%s11879_s15 + $0x8] sm:$0xff]  }
0x1735   : > { %12143 = vst [vmem:[#allocation9_spill] sm:$0xff] %v10847_v44 }
0x1736   : > { %8301 = vmatmul.mubr.msk.bf16.vlgmr.msra.gmra.mxu1 %vm12142_vm15, %v4792_v56  ;;  %v10853_v56 = vld [vmem:[%s11879_s15 + $0x40] sm:$0xff]   ;;  %vm12147_vm15 = vmmov %vm12141_vm2 }
0x1737   : > { %8314 = vmatprep.mubr.msk.bf16.mxu1 %vm1377_vm8, %v9449_v26  ;;  %12144 = vst [vmem:[#allocation10_spill] sm:$0xff] %v10853_v56 }
0x17f6   : > { %v4830_v17 = vpop.f32.mrf.mxu1 }
0x17f7   : > { %v4831_v9 = vadd.f32 %v10416_v59, %v4830_v17  ;;  %v10775_v59 = vld [vmem:[%s11879_s15 + $0x38] sm:$0xff]   ;;  %v10859_v17 = vld [vmem:[%s11879_s15] sm:$0xff]  }
0x17f8   : > { %v8302_v14 = vpop.f32.mrf.mxu1  ;;  %12145 = vst [vmem:[#allocation11_spill] sm:$0xff] %v10859_v17 }
0x17f9   : > { %v4837_v36 = vand.u32 2147483647, %v4831_v9  ;;  %v4836_v34 = vmax.f32 %v4831_v9, 0.0  ;;  %v10865_v9 = vld [vmem:[%s11879_s15 + $0x178] sm:$0xff]  }
0x17fa   : > { %v4833_v52 = vpop.f32.mrf.mxu1  ;;  %12146 = vst [vmem:[#allocation12_spill] sm:$0xff] %v10865_v9 }
0x17fb   : > { %v4838_v18 = vsub.f32 0.0, %v4837_v36 }
0x17fc   : > { %v8303_v31 = vpop.f32.mrf.mxu1 }
0x17fd   : > { %v4839_v32 = vmul.f32 1.442695, %v4838_v18 }
0x17ff   : > { %8767 = vpow2.f32 %v4839_v32 }
0x180c   : > { %v8768_v29 = vpop.eup %8767 }
0x180d   : > { %v4841_v57 = vadd.f32 1.0, %v8768_v29 }
0x180f   : > { %8769 = vlog2.f32 %v4841_v57 }
0x181c   : > { %v8770_v38 = vpop.eup %8769 }
0x181d   : > { %v4843_v0 = vmul.f32 0.6931472, %v8770_v38 }
0x181f   : > { %v4844_v55 = vadd.f32 %v4843_v0, %v4836_v34 }
0x1821   : > { %v4845_v63 = vpack.c.bf16 %v4844_v55, %v4844_v55 }
0x1823   : > { %8309 = vmatmul.mubr.msk.bf16.vlgmr.msra.gmra.mxu0 %vm12141_vm2, %v4845_v63  ;;  %vm12164_vm2 = vcmask 523264  }
0x1824   : > { %7745 = vmatpush3.bf16.msra.mxu0 %v10775_v59 }
0x1825   : > { %7746 = vmatprep.subr.bf16.mxu0 %v10781_v6 }
0x1828   : > { %7747 = vmatpush3.bf16.msra.mxu0 %v10787_v24 }
0x1829   : > { %7748 = vmatprep.subr.bf16.mxu0 %v10793_v58 }
0x182c   : > { %7749 = vmatpush3.bf16.msra.mxu0 %v10799_v4 }
0x182d   : > { %7750 = vmatprep.subr.bf16.mxu0 %v10805_v39 }
0x1830   : > { %7751 = vmatpush3.bf16.msra.mxu0 %v10811_v10 }
0x1831   : > { %7752 = vmatprep.subr.bf16.mxu0 %v10817_v3 }
0x1834   : > { %7753 = vmatpush3.bf16.msra.mxu0 %v10823_v30 }
0x1835   : > { %7754 = vmatprep.subr.bf16.mxu0 %v10829_v15 }
0x1838   : > { %7755 = vmatpush3.bf16.msra.mxu0 %v10835_v19 }
0x1839   : > { %7756 = vmatprep.subr.bf16.mxu0 %v10841_v13 }
0x183c   : > { %7757 = vmatpush3.bf16.msra.mxu0 %v10847_v44 }
0x183d   : > { %7758 = vmatprep.subr.bf16.mxu0 %v10853_v56  ;;  %v4900_v56 = vpop.permute.xlu1 %4899 }
0x1840   : > { %7759 = vmatpush3.bf16.msra.mxu0 %v10859_v17 }
0x1841   : > { %7788 = vmatprep.subr.bf16.mxu0 %v10865_v9 }
0x18e3   : > { %v4883_v14 = vpop.f32.mrf.mxu0 }
0x18e4   : > { %v4884_v36 = vadd.f32 %v10439_v48, %v4883_v14  ;;  %v10879_v14 = vld [vmem:[%s11879_s15 + $0xf8] sm:$0xff]  }
0x18e5   : > { %v8310_v52 = vpop.f32.mrf.mxu0  ;;  %12148 = vst [vmem:[#allocation13_spill] sm:$0xff] %v10879_v14 }
0x18e6   : > { %v4890_v18 = vand.u32 2147483647, %v4884_v36  ;;  %v4889_v55 = vmax.f32 %v4884_v36, 0.0  ;;  %v10907_v36 = vld [vmem:[%s11879_s15 + $0xe8] sm:$0xff]  }
0x18e7   : > { %v4886_v31 = vpop.f32.mrf.mxu0  ;;  %12152 = vst [vmem:[#allocation17_spill] sm:$0xff] %v10907_v36  ;;  %v10917_v52 = vld [vmem:[%s11879_s15 + $0xa8] sm:$0xff]  }
0x18e8   : > { %v4891_v32 = vsub.f32 0.0, %v4890_v18  ;;  %12153 = vst [vmem:[#allocation18_spill] sm:$0xff] %v10917_v52  ;;  %v10923_v18 = vld [vmem:[%s11879_s15 + $0xe0] sm:$0xff]  }
0x18e9   : > { %v8311_v29 = vpop.f32.mrf.mxu0  ;;  %12154 = vst [vmem:[#allocation19_spill] sm:$0xff] %v10923_v18  ;;  %v10929_v31 = vld [vmem:[%s11879_s15 + $0xa0] sm:$0xff]  }
0x18ea   : > { %v4892_v57 = vmul.f32 1.442695, %v4891_v32  ;;  %12155 = vst [vmem:[#allocation20_spill] sm:$0xff] %v10929_v31  ;;  %v10935_v32 = vld [vmem:[%s11879_s15 + $0xd8] sm:$0xff]  }
0x18eb   : > { %12156 = vst [vmem:[#allocation21_spill] sm:$0xff] %v10935_v32  ;;  %v10945_v29 = vld [vmem:[%s11879_s15 + $0x98] sm:$0xff]  }
0x18ec   : > { %8771 = vpow2.f32 %v4892_v57  ;;  %12157 = vst [vmem:[#allocation22_spill] sm:$0xff] %v10945_v29  ;;  %v10951_v57 = vld [vmem:[%s11879_s15 + $0xd0] sm:$0xff]  }
0x18ed   : > { %12158 = vst [vmem:[#allocation23_spill] sm:$0xff] %v10951_v57 }
0x18f9   : > { %v8772_v38 = vpop.eup %8771 }
0x18fa   : > { %v4894_v34 = vadd.f32 1.0, %v8772_v38  ;;  %v10957_v38 = vld [vmem:[%s11879_s15 + $0x90] sm:$0xff]  }
0x18fb   : > { %12159 = vst [vmem:[#allocation24_spill] sm:$0xff] %v10957_v38 }
0x18fc   : > { %8773 = vlog2.f32 %v4894_v34  ;;  %v10963_v34 = vld [vmem:[%s11879_s15 + $0xc8] sm:$0xff]  }
0x18fd   : > { %12160 = vst [vmem:[#allocation25_spill] sm:$0xff] %v10963_v34 }
0x1909   : > { %v8774_v0 = vpop.eup %8773 }
0x190a   : > { %v4896_v63 = vmul.f32 0.6931472, %v8774_v0  ;;  %v10973_v0 = vld [vmem:[%s11879_s15 + $0x88] sm:$0xff]  }
0x190b   : > { %12161 = vst [vmem:[#allocation26_spill] sm:$0xff] %v10973_v0 }
0x190c   : > { %v4897_v17 = vadd.f32 %v4896_v63, %v4889_v55  ;;  %v10979_v55 = vld [vmem:[%s11879_s15 + $0xc0] sm:$0xff]  }
0x190d   : > { %12162 = vst [vmem:[#allocation27_spill] sm:$0xff] %v10979_v55  ;;  %v10985_v63 = vld [vmem:[%s11879_s15 + $0x80] sm:$0xff]  }
0x190e   : > { %v4902_v9 = vsel %vm12147_vm15, %v4897_v17, %v4900_v56  ;;  %v10889_v56 = vld [vmem:[%s11879_s15 + $0xb8] sm:$0xff]   ;;  %v10895_v17 = vld [vmem:[%s11879_s15 + $0xf0] sm:$0xff]   ;;  %12163 = vst [vmem:[#allocation28_spill] sm:$0xff] %v10985_v63  ;;  %vm12165_vm15 = vcmask 850944  }
0x190f   : > { %v10870_v44 = vpack.c.bf16 %v4902_v9, %v4902_v9  ;;  %12149 = vst [vmem:[#allocation14_spill] sm:$0xff] %v10889_v56  ;;  %12150 = vst [vmem:[#allocation15_spill] sm:$0xff] %v10895_v17  ;;  %v10901_v9 = vld [vmem:[%s11879_s15 + $0xb0] sm:$0xff]  }
0x1910   : > { %12151 = vst [vmem:[#allocation16_spill] sm:$0xff] %v10901_v9 }
0x1911   : > { %8518 = vmatprep.subr.msk.bf16.mxu1 %vm1408_vm3, %v10870_v44  ;;  %v4905_v48 = vsel %vm1408_vm3, %v10870_v44, 0 }
0x1912   : > { %8313 = vmatpush3.bf16.msra.mxu1 %v4905_v48 }
0x1913   : > { %7766 = vmatprep.subr.bf16.mxu1 %v10879_v14 }
0x1915   : > { %8315 = vmatmul.mubr.msk.bf16.vlgmr.msra.gmra.mxu1 %vm1377_vm8, %v9455_v35 }
0x1916   : > { %8318 = vmatprep.mubr.msk.bf16.mxu1 %vm1377_vm8, %v9461_v51  ;;  %7767 = vmatpush3.bf16.msra.mxu1 %v10889_v56 }
0x1917   : > { %7768 = vmatprep.subr.bf16.mxu1 %v10895_v17 }
0x191a   : > { %7769 = vmatpush3.bf16.msra.mxu1 %v10901_v9 }
0x191b   : > { %7770 = vmatprep.subr.bf16.mxu1 %v10907_v36 }
0x191d   : > { %8319 = vmatmul.mubr.msk.bf16.gmra.mxu1 %vm1377_vm8, %v9468_v27 }
0x191e   : > { %8322 = vmatprep.mubr.msk.bf16.mxu1 %vm1377_vm8, %v9473_v25  ;;  %7771 = vmatpush3.bf16.msra.mxu1 %v10917_v52 }
0x191f   : > { %7772 = vmatprep.subr.bf16.mxu1 %v10923_v18 }
0x1922   : > { %7773 = vmatpush3.bf16.msra.mxu1 %v10929_v31 }
0x1923   : > { %7774 = vmatprep.subr.bf16.mxu1 %v10935_v32 }
0x1925   : > { %8323 = vmatmul.mubr.msk.bf16.gmra.mxu1 %vm1377_vm8, %v9481_v43 }
0x1926   : > { %8326 = vmatprep.mubr.msk.bf16.mxu1 %vm1377_vm8, %v9483_v23  ;;  %7775 = vmatpush3.bf16.msra.mxu1 %v10945_v29 }
0x1927   : > { %7776 = vmatprep.subr.bf16.mxu1 %v10951_v57 }
0x192a   : > { %7777 = vmatpush3.bf16.msra.mxu1 %v10957_v38 }
0x192b   : > { %7778 = vmatprep.subr.bf16.mxu1 %v10963_v34 }
0x192d   : > { %8327 = vmatmul.mubr.msk.bf16.gmra.mxu1 %vm1377_vm8, %v9493_v62 }
0x192e   : > { %8330 = vmatprep.mubr.msk.bf16.mxu1 %vm1377_vm8, %v9495_v20  ;;  %7779 = vmatpush3.bf16.msra.mxu1 %v10973_v0 }
0x192f   : > { %7780 = vmatprep.subr.bf16.mxu1 %v10979_v55 }
0x1932   : > { %7781 = vmatpush3.bf16.msra.mxu1 %v10985_v63 }
0x1933   : > { %8334 = vmatprep.subr.bf16.mxu1 %v12056_v61 }
0x1935   : > { %8331 = vmatmul.mubr.msk.bf16.gmra.mxu1 %vm1377_vm8, %v9503_v8 }
0x19d5   : > { %v8316_v48 = vpop.f32.mrf.mxu1 }
0x19d7   : > { %v4941_v0 = vpop.f32.mrf.mxu1 }
0x19d9   : > { %v8317_v34 = vpop.f32.mrf.mxu1 }
0x19da   : > { %v5021_v38 = vpack.c.bf16 %v8317_v34, %v8316_v48 }
0x19db   : > { %v4944_v57 = vpop.f32.mrf.mxu1 }
0x19dc   : > { %v5037_v29 = vrot.slane %v5021_v38, 4  ;;  %v5020_v32 = vpack.c.bf16 %v4944_v57, %v4941_v0 }
0x19dd   : > { %v8320_v55 = vpop.f32.mrf.mxu1 }
0x19de   : > { %5038 = vrot.lane.b32.xlu0 %v5037_v29, %s12086_s29  ;;  %v5031_v18 = vrot.slane %v5020_v32, 4 }
0x19df   : > { %v4957_v31 = vpop.f32.mrf.mxu1 }
0x19e1   : > { %v8321_v52 = vpop.f32.mrf.mxu1 }
0x19e2   : > { %5032 = vrot.lane.b32.xlu0 %v5031_v18, %s12082_s4  ;;  %v5023_v36 = vpack.c.bf16 %v8321_v52, %v8320_v55 }
0x19e3   : > { %v4960_v63 = vpop.f32.mrf.mxu1 }
0x19e4   : > { %v5022_v9 = vpack.c.bf16 %v4960_v63, %v4957_v31  ;;  %v5049_v48 = vrot.slane %v5023_v36, 4 }
0x19e5   : > { %v8324_v17 = vpop.f32.mrf.mxu1 }
0x19e6   : > { %5035 = vrot.lane.b32.xlu0 %v5021_v38, %s12083_s0  ;;  %5041 = vrot.lane.b32.xlu1 %v5022_v9, %s12081_s5  ;;  %v5043_v56 = vrot.slane %v5022_v9, 4 }
0x19e7   : > { %v4973_v34 = vpop.f32.mrf.mxu1 }
0x19e9   : > { %v8325_v57 = vpop.f32.mrf.mxu1 }
0x19ea   : > { %5050 = vrot.lane.b32.xlu0 %v5049_v48, %s12060_s24  ;;  %5044 = vrot.lane.b32.xlu1 %v5043_v56, %s12084_s19  ;;  %v5025_v31 = vpack.c.bf16 %v8325_v57, %v8324_v17 }
0x19eb   : > { %v4976_v29 = vpop.f32.mrf.mxu1 }
0x19ec   : > { %v5024_v0 = vpack.c.bf16 %v4976_v29, %v4973_v34  ;;  %v5061_v9 = vrot.slane %v5025_v31, 4 }
0x19ed   : > { %v8328_v14 = vpop.f32.mrf.mxu1 }
0x19ee   : > { %v5055_v18 = vrot.slane %v5024_v0, 4  ;;  %5047 = vrot.lane.b32.xlu1 %v5023_v36, %s12085_s6 }
0x19ef   : > { %v4989_v52 = vpop.f32.mrf.mxu1 }
0x19f0   : > { %5056 = vrot.lane.b32.xlu0 %v5055_v18, %s12058_s25 }
0x19f1   : > { %v8329_v38 = vpop.f32.mrf.mxu1 }
0x19f2   : > { %5059 = vrot.lane.b32.xlu1 %v5025_v31, %s12057_s2  ;;  %v5027_v17 = vpack.c.bf16 %v8329_v38, %v8328_v14 }
0x19f3   : > { %v4992_v55 = vpop.f32.mrf.mxu1 }
0x19f4   : > { %5053 = vrot.lane.b32.xlu0 %v5024_v0, %s12061_s30  ;;  %v5026_v34 = vpack.c.bf16 %v4992_v55, %v4989_v52  ;;  %v5073_v52 = vrot.slane %v5027_v17, 4 }
0x19f5   : > { %v8332_v63 = vpop.f32.mrf.mxu1 }
0x19f6   : > { %5062 = vrot.lane.b32.xlu1 %v5061_v9, %s12059_s27  ;;  %v5067_v0 = vrot.slane %v5026_v34, 4 }
0x19f7   : > { %v5005_v56 = vpop.f32.mrf.mxu1 }
0x19f9   : > { %v8333_v48 = vpop.f32.mrf.mxu1 }
0x19fa   : > { %v5029_v29 = vpack.c.bf16 %v8333_v48, %v8332_v63  ;;  %5065 = vrot.lane.b32.xlu1 %v5026_v34, %s12047_s1 }
0x19fb   : > { %v5008_v36 = vpop.f32.mrf.mxu1 }
0x19fc   : > { %v11003_v57 = vpack.c.bf16 %v5008_v36, %v5005_v56  ;;  %5117 = vrot.lane.b32.xlu0 %v5029_v29, %s12083_s0  ;;  %v5119_v31 = vrot.slane %v5029_v29, 4 }
0x19fe   : > { %v5113_v18 = vrot.slane %v11003_v57, 4  ;;  %5071 = vrot.lane.b32.xlu1 %v5027_v17, %s12044_s21 }
0x1a00   : > { %5114 = vrot.lane.b32.xlu0 %v5113_v18, %s12082_s4 }
0x1a02   : > { %5068 = vrot.lane.b32.xlu1 %v5067_v0, %s12048_s22 }
0x1a04   : > { %5120 = vrot.lane.b32.xlu0 %v5119_v31, %s12086_s29  ;;  %v11023_v31 = vld [vmem:[%s11879_s15 + $0x138] sm:$0xff]  }
0x1a06   : > { %5074 = vrot.lane.b32.xlu1 %v5073_v52, %s12055_s28  ;;  %v11029_v52 = vld [vmem:[%s11879_s15 + $0x170] sm:$0xff]  }
0x1a08   : > { %5123 = vrot.lane.b32.xlu0 %v10870_v44, %s12081_s5 }
0x1a50   : > { %v5039_v14 = vpop.permute.xlu0 %5038 }
0x1a54   : > { %v5033_v38 = vpop.permute.xlu0 %5032 }
0x1a55   : > { %v5078_v56 = vsel %vm1603_vm6, %v5020_v32, %v5033_v38 }
0x1a58   : > { %v5036_v55 = vpop.permute.xlu0 %5035  ;;  %v5042_v9 = vpop.permute.xlu1 %5041 }
0x1a59   : > { %v5080_v48 = vsel %vm1652_vm5, %v5078_v56, %v5036_v55  ;;  %v5085_v29 = vsel %vm2297_vm7, %v5039_v14, %v5042_v9  ;;  %v11041_v9 = vld [vmem:[%s11879_s15 + $0x168] sm:$0xff]  }
0x1a5a   : > { %v5082_v44 = vsel %vm2328_vm9, %v5080_v48, %v5039_v14  ;;  %v11035_v14 = vld [vmem:[%s11879_s15 + $0x130] sm:$0xff]  }
0x1a5c   : > { %v5045_v63 = vpop.permute.xlu1 %5044  ;;  %v5051_v34 = vpop.permute.xlu0 %5050 }
0x1a5d   : > { %v5087_v36 = vsel %vm2311_vm14, %v5085_v29, %v5045_v63 }
0x1a60   : > { %v5048_v17 = vpop.permute.xlu1 %5047 }
0x1a61   : > { %v5089_v18 = vsel %vm2325_vm13, %v5087_v36, %v5048_v17  ;;  %v5092_v63 = vsel %vm2294_vm12, %v5048_v17, %v5051_v34  ;;  %v11051_v36 = vld [vmem:[%s11879_s15 + $0x128] sm:$0xff]   ;;  %v11058_v34 = vld [vmem:[%s11879_s15 + $0x160] sm:$0xff]  }
0x1a62   : > { %5169 = vmatprep.mubr.bf16.mxu0 %v5089_v18  ;;  %v5057_v0 = vpop.permute.xlu0 %5056 }
0x1a63   : > { %5170 = vmatmul.mubr.bf16.vlgmr.msra.gmra.mxu0 %v5082_v44 }
0x1a64   : > { %7789 = vmatpush3.bf16.msra.mxu0 %v11023_v31  ;;  %v5060_v32 = vpop.permute.xlu1 %5059 }
0x1a65   : > { %7790 = vmatprep.subr.bf16.mxu0 %v11029_v52  ;;  %v5099_v56 = vsel %vm2291_vm11, %v5057_v0, %v5060_v32 }
0x1a66   : > { %v5054_v38 = vpop.permute.xlu0 %5053 }
0x1a67   : > { %v5094_v48 = vsel %vm12164_vm2, %v5092_v63, %v5054_v38  ;;  %v11065_v38 = vld [vmem:[%s11879_s15 + $0x120] sm:$0xff]   ;;  %vm12175_vm2 = vcmask 392192  }
0x1a68   : > { %7791 = vmatpush3.bf16.msra.mxu0 %v11035_v14  ;;  %v5063_v55 = vpop.permute.xlu1 %5062  ;;  %v5096_v17 = vsel %vm12165_vm15, %v5094_v48, %v5057_v0  ;;  %v11083_v48 = vld [vmem:[%s11879_s15 + $0x118] sm:$0xff]   ;;  %vm12176_vm15 = vcmask 162816  }
0x1a69   : > { %7792 = vmatprep.subr.bf16.mxu0 %v11041_v9  ;;  %v5101_v29 = vsel %vm2305_vm10, %v5099_v56, %v5063_v55  ;;  %v11072_v55 = vld [vmem:[%s11879_s15 + $0x158] sm:$0xff]   ;;  %12166 = vst [vmem:[#allocation29_spill] sm:$0xff] %v11083_v48 }
0x1a6c   : > { %7793 = vmatpush3.bf16.msra.mxu0 %v11051_v36  ;;  %v5066_v18 = vpop.permute.xlu1 %5065 }
0x1a6d   : > { %v5103_v44 = vsel %vm2319_vm4, %v5101_v29, %v5066_v18  ;;  %7794 = vmatprep.subr.bf16.mxu0 %v11058_v34  ;;  %v11089_v29 = vld [vmem:[%s11879_s15 + $0x198] sm:$0xff]  }
0x1a6e   : > { %5209 = vmatprep.mubr.bf16.mxu1 %v5103_v44  ;;  %v5118_v32 = vpop.permute.xlu0 %5117  ;;  %12167 = vst [vmem:[#allocation30_spill] sm:$0xff] %v11089_v29  ;;  %v11095_v44 = vld [vmem:[%s11879_s15 + $0x150] sm:$0xff]  }
0x1a6f   : > { %5210 = vmatmul.mubr.bf16.vlgmr.msra.gmra.mxu1 %v5096_v17  ;;  %12168 = vst [vmem:[#allocation31_spill] sm:$0xff] %v11095_v44 }
0x1a70   : > { %7795 = vmatpush3.bf16.msra.mxu0 %v11065_v38  ;;  %8335 = vmatpush3.bf16.msra.mxu1 %v10240_v49  ;;  %v5072_v63 = vpop.permute.xlu1 %5071 }
0x1a71   : > { %7796 = vmatprep.subr.bf16.mxu0 %v11072_v55  ;;  %8336 = vmatprep.subr.bf16.mxu1 %v12056_v61 }
0x1a72   : > { %v5115_v0 = vpop.permute.xlu0 %5114  ;;  %8344 = vmatprep.mubr.msk.bf16.mxu1 %vm8971_vm0, %v12056_v61 }
0x1a73   : > { %v5127_v56 = vsel %vm1603_vm6, %v11003_v57, %v5115_v0 }
0x1a74   : > { %7797 = vmatpush3.bf16.msra.mxu0 %v11083_v48  ;;  %8337 = vmatpush3.bf16.msra.mxu1 %v11089_v29  ;;  %v5129_v17 = vsel %vm1652_vm5, %v5127_v56, %v5118_v32  ;;  %v11104_v48 = vld [vmem:[%s11879_s15 + $0x110] sm:$0xff]   ;;  %v11116_v32 = vld [vmem:[%s11879_s15 + $0x148] sm:$0xff]  }
0x1a75   : > { %7798 = vmatprep.subr.bf16.mxu0 %v11095_v44  ;;  %8338 = vmatprep.subr.bf16.mxu1 %v12056_v61  ;;  %12169 = vst [vmem:[#allocation32_spill] sm:$0xff] %v11104_v48  ;;  %v11110_v29 = vld [vmem:[%s11879_s15 + $0x190] sm:$0xff]   ;;  %v5069_v44 = vpop.permute.xlu1 %5068  ;;  %12171 = vst [vmem:[#allocation34_spill] sm:$0xff] %v11116_v32  ;;  %v11123_v56 = vld [vmem:[%s11879_s15 + $0x108] sm:$0xff]  }
0x1a76   : > { %v5121_v57 = vpop.permute.xlu0 %5120  ;;  %12170 = vst [vmem:[#allocation33_spill] sm:$0xff] %v11110_v29  ;;  %12172 = vst [vmem:[#allocation35_spill] sm:$0xff] %v11123_v56 }
0x1a77   : > { %v5131_v0 = vsel %vm2328_vm9, %v5129_v17, %v5121_v57  ;;  %v11129_v17 = vld [vmem:[%s11879_s15 + $0x188] sm:$0xff]  }
0x1a78   : > { %7799 = vmatpush3.bf16.msra.mxu0 %v11104_v48  ;;  %8339 = vmatpush3.bf16.msra.mxu1 %v11110_v29  ;;  %12173 = vst [vmem:[#allocation36_spill] sm:$0xff] %v11129_v17  ;;  %v11143_v48 = vld [vmem:[%s11879_s15 + $0x100] sm:$0xff]  }
0x1a79   : > { %5249 = vmatprep.mubr.bf16.mxu0 %v5131_v0  ;;  %7800 = vmatprep.subr.bf16.mxu0 %v11116_v32  ;;  %v11135_v0 = vld [vmem:[%s11879_s15 + $0x140] sm:$0xff]   ;;  %v5106_v32 = vsel %vm1377_vm8, %v5066_v18, %v5069_v44  ;;  %v5075_v29 = vpop.permute.xlu1 %5074 }
0x1a7a   : > { %8340 = vmatprep.subr.bf16.mxu1 %v12056_v61  ;;  %12174 = vst [vmem:[#allocation37_spill] sm:$0xff] %v11135_v0 }
0x1a7c   : > { %7801 = vmatpush3.bf16.msra.mxu0 %v11123_v56  ;;  %8341 = vmatpush3.bf16.msra.mxu1 %v11129_v17  ;;  %v5124_v56 = vpop.permute.xlu0 %5123  ;;  %v11149_v17 = vld [vmem:[%s11879_s15 + $0x180] sm:$0xff]  }
0x1a7d   : > { %7802 = vmatprep.subr.bf16.mxu0 %v11135_v0  ;;  %8342 = vmatprep.subr.bf16.mxu1 %v12056_v61  ;;  %v5108_v0 = vsel %vm12175_vm2, %v5106_v32, %v5072_v63  ;;  %v5134_v44 = vsel %vm2297_vm7, %v5121_v57, %v5124_v56  ;;  %vm12178_vm2 = vcmask 7168  }
0x1a7e   : > { %v5110_v18 = vsel %vm2316_vm1, %v5108_v0, %v5075_v29 }
0x1a80   : > { %7803 = vmatpush3.bf16.msra.mxu0 %v11143_v48  ;;  %8343 = vmatpush3.bf16.msra.mxu1 %v11149_v17 }
0x1a81   : > { %5558 = vmatprep.subr.bf16.mxu1 %v12129_v11 }
0x1a83   : > { %5250 = vmatmul.mubr.bf16.vlgmr.msra.gmra.mxu0 %v5110_v18  ;;  %8345 = vmatmul.mubr.msk.bf16.vlgmr.msra.gmra.mxu1 %vm2311_vm14, %v5134_v44 }
0x1a84   : > { %8350 = vmatprep.mubr.msk.bf16.mxu0 %vm1377_vm8, %v9449_v26  ;;  %5559 = vmatpush1.bf16.msra.mxu1 %v10560_v45 }
0x1a85   : > { %5560 = vmatprep.subr.bf16.mxu1 %v12129_v11 }
0x1a88   : > { %5561 = vmatpush1.bf16.msra.mxu1 %v10567_v40 }
0x1a89   : > { %5562 = vmatprep.subr.bf16.mxu1 %v12129_v11 }
0x1a8c   : > { %5563 = vmatpush1.bf16.msra.mxu1 %v10574_v37 }
0x1a8d   : > { %5564 = vmatprep.subr.bf16.mxu1 %v12129_v11 }
0x1a90   : > { %5565 = vmatpush1.bf16.msra.mxu1 %v10581_v47 }
0x1a91   : > { %5566 = vmatprep.subr.bf16.mxu1 %v12129_v11 }
0x1a94   : > { %5567 = vmatpush1.bf16.msra.mxu1 %v10588_v41 }
0x1a95   : > { %5568 = vmatprep.subr.bf16.mxu1 %v12129_v11 }
0x1a98   : > { %5569 = vmatpush1.bf16.msra.mxu1 %v10595_v42 }
0x1a99   : > { %5570 = vmatprep.subr.bf16.mxu1 %v12129_v11 }
0x1a9c   : > { %5571 = vmatpush1.bf16.msra.mxu1 %v10602_v21 }
0x1a9d   : > { %5572 = vmatprep.subr.bf16.mxu1 %v12129_v11 }
0x1aa0   : > { %5573 = vmatpush1.bf16.msra.mxu1 %v10609_v33 }
0x1aa1   : > { %5584 = vmatprep.subr.bf16.mxu1 %v12129_v11 }
0x1aa4   : > { %5585 = vmatpush2.bf16.msra.mxu1 %v12130_v28 }
0x1aa5   : > { %5586 = vmatprep.subr.bf16.mxu1 %v12129_v11 }
0x1aa8   : > { %5587 = vmatpush2.bf16.msra.mxu1 %v10618_v5  ;;  %v11184_v5 = vld [vmem:[%s11880_s16] ss:$0 sm:$0xff] }
0x1aa9   : > { %5588 = vmatprep.subr.bf16.mxu1 %v12129_v11 }
0x1aac   : > { %5589 = vmatpush2.bf16.msra.mxu1 %v10625_v53 }
0x1aad   : > { %8378 = vmatprep.subr.bf16.mxu1 %v12056_v61 }
0x1b23   : > { %v7760_v45 = vpop.f32.mrf.mxu0 }
0x1b25   : > { %v7761_v40 = vpop.f32.mrf.mxu0 }
0x1b26   : > { %v7762_v63 = vadd.f32 %v7761_v40, %v7760_v45 }
0x1b27   : > { %v7763_v37 = vpop.f32.mrf.mxu0 }
0x1b28   : > { %v5172_v53 = vadd.f32 %v11184_v5, %v7762_v63 }
0x1b29   : > { %v7764_v47 = vpop.f32.mrf.mxu0 }
0x1b2f   : > { %v7782_v41 = vpop.f32.mrf.mxu1 }
0x1b31   : > { %v7783_v42 = vpop.f32.mrf.mxu1 }
0x1b32   : > { %v7784_v29 = vadd.f32 %v7783_v42, %v7782_v41 }
0x1b33   : > { %v7785_v21 = vpop.f32.mrf.mxu1 }
0x1b34   : > { %v5212_v18 = vadd.f32 %v7784_v29, %v5172_v53 }
0x1b35   : > { %v7786_v33 = vpop.f32.mrf.mxu1 }
0x1b43   : > { %v7804_v57 = vpop.f32.mrf.mxu0  ;;  %v5291_v32 = vpop.f32.mrf.mxu1 }
0x1b45   : > { %v7805_v56 = vpop.f32.mrf.mxu0  ;;  %v8346_v0 = vpop.f32.mrf.mxu1 }
0x1b46   : > { %v7806_v44 = vadd.f32 %v7805_v56, %v7804_v57 }
0x1b47   : > { %v7807_v37 = vpop.f32.mrf.mxu0  ;;  %v5294_v47 = vpop.f32.mrf.mxu1 }
0x1b48   : > { %v5252_v28 = vadd.f32 %v7806_v44, %v5212_v18 }
0x1b49   : > { %v7808_v21 = vpop.f32.mrf.mxu0  ;;  %v8347_v33 = vpop.f32.mrf.mxu1 }
0x1b4a   : > { %v11187_v45 = vadd.f32 %v5291_v32, %v5252_v28 }
0x1b4c   : > { %v5297_v40 = vmul.f32 0.5, %v11187_v45 }
0x1b4e   : > { %8775 = vtanh.f32 %v5297_v40 }
0x1b4f   : > { %8777 = vtanh.f32 %v11187_v45 }
0x1b5b   : > { %v8776_v41 = vpop.eup %8775 }
0x1b5c   : > { %v5299_v42 = vadd.f32 1.0, %v8776_v41 }
0x1b5e   : > { %v11190_v11 = vmul.f32 0.5, %v5299_v42 }
0x1b60   : > { %v5319_v63 = vmul.f32 %v11190_v11, %v10633_v22 }
0x1b62   : > { %5321 = vrot.lane.b32.xlu1 %v5319_v63, %s12055_s28 }
0x1bd4   : > { %v5322_v29 = vpop.permute.xlu1 %5321 }
0x1bd5   : > { %v5324_v57 = vsel %vm12176_vm15, %v5322_v29, 0.0  ;;  %vm12179_vm15 = vcmask 392192  }
0x1bd6   : > { %5325 = vadd.xlane.f32.xlu0 %v5324_v57 }
0x1c5f   : > { %v5326_v53 = vpop.xlane.xlu0 %5325 }
0x1c60   : > { %v11197_v28 = vadd.f32 %v5326_v53, %v10642_v12 }
0x1c62   : > { %12177 = vst [vmem:[#allocation38_spill] sm:$0xff] %v11197_v28  ;;  %v5328_v32 = vsel %vm12178_vm2, %v11197_v28, 0.0  ;;  %vm12180_vm2 = vcmask 523264  }
0x1c63   : > { %v11201_v56 = vpack.c.bf16 %v5328_v32, %v5328_v32 }
0x1c65   : > { %8519 = vmatprep.subr.msk.bf16.mxu0 %vm1408_vm3, %v11201_v56  ;;  %v5331_v0 = vsel %vm1408_vm3, %v11201_v56, 0 }
0x1c66   : > { %8349 = vmatpush3.bf16.msra.mxu0 %v5331_v0 }
0x1c67   : > { %8370 = vmatprep.subr.bf16.mxu0 %v12056_v61 }
0x1c69   : > { %8351 = vmatmul.mubr.msk.bf16.vlgmr.msra.gmra.mxu0 %vm1377_vm8, %v9455_v35 }
0x1c6a   : > { %8354 = vmatprep.mubr.msk.bf16.mxu0 %vm1377_vm8, %v9461_v51  ;;  %8371 = vmatpush3.bf16.msra.mxu0 %v12135_v46 }
0x1c6b   : > { %8372 = vmatprep.subr.bf16.mxu0 %v12056_v61 }
0x1c6e   : > { %8373 = vmatpush3.bf16.msra.mxu0 %v10662_v2 }
0x1c6f   : > { %8386 = vmatprep.subr.bf16.mxu0 %v12056_v61 }
0x1c71   : > { %8355 = vmatmul.mubr.msk.bf16.gmra.mxu0 %vm1377_vm8, %v9468_v27 }
0x1c72   : > { %8358 = vmatprep.mubr.msk.bf16.mxu0 %vm1377_vm8, %v9473_v25 }
0x1c79   : > { %8359 = vmatmul.mubr.msk.bf16.gmra.mxu0 %vm1377_vm8, %v9481_v43 }
0x1c7a   : > { %8362 = vmatprep.mubr.msk.bf16.mxu0 %vm1377_vm8, %v9483_v23 }
0x1c81   : > { %8363 = vmatmul.mubr.msk.bf16.gmra.mxu0 %vm1377_vm8, %v9493_v62 }
0x1c82   : > { %8366 = vmatprep.mubr.msk.bf16.mxu0 %vm1377_vm8, %v9495_v20 }
0x1c89   : > { %8367 = vmatmul.mubr.msk.bf16.gmra.mxu0 %vm1377_vm8, %v9503_v8 }
0x1c8a   : > { %8374 = vmatprep.mubr.msk.bf16.mxu0 %vm8971_vm0, %v12056_v61 }
0x1d29   : > { %v8352_v2 = vpop.f32.mrf.mxu0 }
0x1d2b   : > { %v5367_v18 = vpop.f32.mrf.mxu0 }
0x1d2d   : > { %v8353_v44 = vpop.f32.mrf.mxu0 }
0x1d2e   : > { %v5447_v37 = vpack.c.bf16 %v8353_v44, %v8352_v2 }
0x1d2f   : > { %v5370_v47 = vpop.f32.mrf.mxu0 }
0x1d30   : > { %5461 = vrot.lane.b32.xlu1 %v5447_v37, %s12057_s2  ;;  %v5463_v33 = vrot.slane %v5447_v37, 4  ;;  %v5446_v40 = vpack.c.bf16 %v5370_v47, %v5367_v18 }
0x1d31   : > { %v8356_v21 = vpop.f32.mrf.mxu0 }
0x1d32   : > { %v5457_v63 = vrot.slane %v5446_v40, 4 }
0x1d33   : > { %v5383_v41 = vpop.f32.mrf.mxu0 }
0x1d34   : > { %5464 = vrot.lane.b32.xlu1 %v5463_v33, %s12060_s24 }
0x1d35   : > { %v8357_v42 = vpop.f32.mrf.mxu0 }
0x1d36   : > { %v5449_v53 = vpack.c.bf16 %v8357_v42, %v8356_v21 }
0x1d37   : > { %v5386_v29 = vpop.f32.mrf.mxu0 }
0x1d38   : > { %5458 = vrot.lane.b32.xlu1 %v5457_v63, %s12048_s22  ;;  %v5448_v2 = vpack.c.bf16 %v5386_v29, %v5383_v41  ;;  %v5475_v37 = vrot.slane %v5449_v53, 4 }
0x1d39   : > { %v8360_v57 = vpop.f32.mrf.mxu0 }
0x1d3a   : > { %v5469_v63 = vrot.slane %v5448_v2, 4 }
0x1d3b   : > { %v5399_v32 = vpop.f32.mrf.mxu0 }
0x1d3c   : > { %5473 = vrot.lane.b32.xlu1 %v5449_v53, %s12044_s21 }
0x1d3d   : > { %v8361_v0 = vpop.f32.mrf.mxu0 }
0x1d3e   : > { %v5451_v41 = vpack.c.bf16 %v8361_v0, %v8360_v57 }
0x1d3f   : > { %v5402_v44 = vpop.f32.mrf.mxu0 }
0x1d40   : > { %v5450_v28 = vpack.c.bf16 %v5402_v44, %v5399_v32  ;;  %5467 = vrot.lane.b32.xlu1 %v5448_v2, %s12081_s5  ;;  %v5487_v53 = vrot.slane %v5451_v41, 4 }
0x1d41   : > { %v8364_v18 = vpop.f32.mrf.mxu0 }
0x1d42   : > { %5479 = vrot.lane.b32.xlu0 %v5450_v28, %s12061_s30  ;;  %v5481_v2 = vrot.slane %v5450_v28, 4  ;;  %v8778_v28 = vpop.eup %8777 }
0x1d43   : > { %v5415_v47 = vpop.f32.mrf.mxu0 }
0x1d44   : > { %5476 = vrot.lane.b32.xlu1 %v5475_v37, %s12059_s27 }
0x1d45   : > { %v8365_v33 = vpop.f32.mrf.mxu0 }
0x1d46   : > { %v5453_v46 = vpack.c.bf16 %v8365_v33, %v8364_v18 }
0x1d47   : > { %v5418_v21 = vpop.f32.mrf.mxu0 }
0x1d48   : > { %v5452_v42 = vpack.c.bf16 %v5418_v21, %v5415_v47  ;;  %5470 = vrot.lane.b32.xlu1 %v5469_v63, %s12082_s4  ;;  %5497 = vrot.lane.b32.xlu0 %v5453_v46, %s12085_s6  ;;  %v5499_v32 = vrot.slane %v5453_v46, 4 }
0x1d49   : > { %v8368_v44 = vpop.f32.mrf.mxu0 }
0x1d4a   : > { %v5493_v29 = vrot.slane %v5452_v42, 4 }
0x1d4b   : > { %v5431_v18 = vpop.f32.mrf.mxu0 }
0x1d4c   : > { %5485 = vrot.lane.b32.xlu1 %v5451_v41, %s12083_s0  ;;  %5494 = vrot.lane.b32.xlu0 %v5493_v29, %s12058_s25 }
0x1d4d   : > { %v8369_v37 = vpop.f32.mrf.mxu0 }
0x1d4e   : > { %v5455_v57 = vpack.c.bf16 %v8369_v37, %v8368_v44 }
0x1d4f   : > { %v5434_v0 = vpop.f32.mrf.mxu0 }
0x1d50   : > { %5488 = vrot.lane.b32.xlu1 %v5487_v53, %s12055_s28  ;;  %5500 = vrot.lane.b32.xlu0 %v5499_v32, %s12086_s29  ;;  %v5541_v47 = vrot.slane %v5455_v57, 4  ;;  %v5454_v46 = vpack.c.bf16 %v5434_v0, %v5431_v18 }
0x1d52   : > { %v5535_v33 = vrot.slane %v5454_v46, 4 }
0x1d54   : > { %5482 = vrot.lane.b32.xlu1 %v5481_v2, %s12084_s19 }
0x1d58   : > { %5491 = vrot.lane.b32.xlu1 %v5452_v42, %s12047_s1 }
0x1d5c   : > { %5539 = vrot.lane.b32.xlu1 %v5455_v57, %s12057_s2 }
0x1d60   : > { %5542 = vrot.lane.b32.xlu1 %v5541_v47, %s12060_s24 }
0x1d64   : > { %5536 = vrot.lane.b32.xlu1 %v5535_v33, %s12048_s22 }
0x1d68   : > { %5545 = vrot.lane.b32.xlu1 %v11201_v56, %s12081_s5 }
0x1d6c   : > { %5304 = vrot.lane.b32.xlu1 %v8778_v28, %s12136_s17 }
0x1da2   : > { %v5462_v63 = vpop.permute.xlu1 %5461 }
0x1da6   : > { %v5465_v21 = vpop.permute.xlu1 %5464 }
0x1daa   : > { %v5459_v42 = vpop.permute.xlu1 %5458 }
0x1dab   : > { %v5504_v45 = vsel %vm1377_vm8, %v5446_v40, %v5459_v42 }
0x1dac   : > { %v5506_v44 = vsel %vm2291_vm11, %v5504_v45, %v5462_v63 }
0x1dad   : > { %v5508_v2 = vsel %vm2294_vm12, %v5506_v44, %v5465_v21 }
0x1dae   : > { %v5474_v41 = vpop.permute.xlu1 %5473 }
0x1db2   : > { %v5468_v29 = vpop.permute.xlu1 %5467 }
0x1db3   : > { %v5510_v37 = vsel %vm2297_vm7, %v5508_v2, %v5468_v29 }
0x1db4   : > { %v5480_v28 = vpop.permute.xlu0 %5479 }
0x1db6   : > { %v5477_v53 = vpop.permute.xlu1 %5476 }
0x1dba   : > { %v5471_v32 = vpop.permute.xlu1 %5470  ;;  %v5498_v45 = vpop.permute.xlu0 %5497 }
0x1dbb   : > { %v5512_v56 = vsel %vm1603_vm6, %v5510_v37, %v5471_v32 }
0x1dbc   : > { %v5514_v0 = vsel %vm12179_vm15, %v5512_v56, %v5474_v41  ;;  %vm12181_vm15 = vcmask 850944  }
0x1dbd   : > { %v5516_v47 = vsel %vm2305_vm10, %v5514_v0, %v5477_v53 }
0x1dbe   : > { %v5486_v18 = vpop.permute.xlu1 %5485  ;;  %v5518_v12 = vsel %vm12180_vm2, %v5516_v47, %v5480_v28  ;;  %v5495_v2 = vpop.permute.xlu0 %5494  ;;  %vm12182_vm2 = vcmask 162816  }
0x1dc2   : > { %v5489_v57 = vpop.permute.xlu1 %5488  ;;  %v5501_v47 = vpop.permute.xlu0 %5500 }
0x1dc6   : > { %v5483_v33 = vpop.permute.xlu1 %5482 }
0x1dc7   : > { %v5520_v40 = vsel %vm2311_vm14, %v5518_v12, %v5483_v33 }
0x1dc8   : > { %v5522_v63 = vsel %vm1652_vm5, %v5520_v40, %v5486_v18  ;;  %v5302_v40 = vmul.f32 %v11190_v11, %v10742_v60 }
0x1dc9   : > { %v5524_v29 = vsel %vm2316_vm1, %v5522_v63, %v5489_v57 }
0x1dca   : > { %v5492_v42 = vpop.permute.xlu1 %5491 }
0x1dcb   : > { %v5526_v32 = vsel %vm2319_vm4, %v5524_v29, %v5492_v42  ;;  %v11290_v29 = vld [vmem:[%s11876_s12] ss:$0 sm:$0xff] }
0x1dcc   : > { %v5528_v41 = vsel %vm12181_vm15, %v5526_v32, %v5495_v2  ;;  %vm12183_vm15 = vmmov %vm12182_vm2 }
0x1dcd   : > { %v5530_v12 = vsel %vm2325_vm13, %v5528_v41, %v5498_v45 }
0x1dce   : > { %v5540_v21 = vpop.permute.xlu1 %5539  ;;  %v5532_v57 = vsel %vm2328_vm9, %v5530_v12, %v5501_v47 }
0x1dd2   : > { %v5543_v44 = vpop.permute.xlu1 %5542 }
0x1dd6   : > { %v5537_v53 = vpop.permute.xlu1 %5536 }
0x1dd7   : > { %v5549_v37 = vsel %vm1377_vm8, %v5454_v46, %v5537_v53 }
0x1dd8   : > { %v5551_v56 = vsel %vm2291_vm11, %v5549_v37, %v5540_v21 }
0x1dd9   : > { %v5553_v0 = vsel %vm2294_vm12, %v5551_v56, %v5543_v44 }
0x1dda   : > { %v5546_v18 = vpop.permute.xlu1 %5545 }
0x1ddb   : > { %v5555_v33 = vsel %vm2297_vm7, %v5553_v0, %v5546_v18 }
0x1ddc   : > { %7430 = vmatprep.mubr.msk.bf16.mxu1 %vm1603_vm6, %v5555_v33 }
0x1ddd   : > { %5591 = vmatmul.mubr.bf16.vlgmr.msra.gmra.mxu1 %v5532_v57 }
0x1dde   : > { %v5305_v28 = vpop.permute.xlu1 %5304  ;;  %8379 = vmatpush3.bf16.msra.mxu1 %v9815_v50  ;;  %8382 = vmatprep.mubr.msk.bf16.mxu1 %vm8971_vm0, %v12056_v61 }
0x1ddf   : > { %v5307_v46 = vmul.f32 %v5305_v28, %v11190_v11  ;;  %8380 = vmatprep.subr.bf16.mxu1 %v12056_v61 }
0x1de1   : > { %5309 = vrot.lane.b32.xlu0 %v5307_v46, %s12087_s3 }
0x1de2   : > { %8381 = vmatpush3.bf16.msra.mxu1 %v10737_v16 }
0x1e53   : > { %v5310_v42 = vpop.permute.xlu0 %5309 }
0x1e54   : > { %v11283_v63 = vadd.f32 %v5310_v42, %v5302_v40  ;;  %v11305_v40 = vld [vmem:[%s11878_s14] ss:$0 sm:$0xff] }
0x1e56   : > { %8779 = vtanh.f32 %v11283_v63 }
0x1e63   : > { %v8780_v21 = vpop.eup %8779 }
0x1e64   : > { %5315 = vrot.lane.b32.xlu1 %v8780_v21, %s12087_s3 }
0x1e9d   : > { %v5592_v45 = vpop.f32.mrf.mxu1 }
0x1e9e   : > { %v5593_v44 = vadd.f32 %v11290_v29, %v5592_v45 }
0x1e9f   : > { %v5594_v16 = vpop.f32.mrf.mxu1 }
0x1ea0   : > { %v5599_v32 = vand.u32 2147483647, %v5593_v44  ;;  %v5598_v0 = vmax.f32 %v5593_v44, 0.0 }
0x1ea1   : > { %v5595_v2 = vpop.f32.mrf.mxu1 }
0x1ea2   : > { %v5600_v60 = vsub.f32 0.0, %v5599_v32 }
0x1ea3   : > { %v5596_v41 = vpop.f32.mrf.mxu1 }
0x1ea4   : > { %v5601_v53 = vmul.f32 1.442695, %v5600_v60 }
0x1ea6   : > { %8781 = vpow2.f32 %v5601_v53 }
0x1eb3   : > { %v8782_v37 = vpop.eup %8781 }
0x1eb4   : > { %v5603_v56 = vadd.f32 1.0, %v8782_v37 }
0x1eb6   : > { %8783 = vlog2.f32 %v5603_v56 }
0x1ec3   : > { %v8784_v12 = vpop.eup %8783 }
0x1ec4   : > { %v5605_v18 = vmul.f32 0.6931472, %v8784_v12  ;;  %v11314_v12 = vld [vmem:[%s11878_s14 + $0x1] ss:$0 sm:$0xff] }
0x1ec6   : > { %v5606_v47 = vadd.f32 %v5605_v18, %v5598_v0 }
0x1ec8   : > { %v5607_v33 = vpack.c.bf16 %v5606_v47, %v5606_v47 }
0x1eca   : > { %8375 = vmatmul.mubr.msk.bf16.vlgmr.msra.gmra.mxu0 %vm12182_vm2, %v5607_v33 }
0x1ecb   : > { %8387 = vmatpush3.bf16.msra.mxu0 %v9835_v54  ;;  %8390 = vmatprep.mubr.msk.bf16.mxu0 %vm8971_vm0, %v12056_v61 }
0x1ecc   : > { %8388 = vmatprep.subr.bf16.mxu0 %v12056_v61 }
0x1ecf   : > { %8389 = vmatpush3.bf16.msra.mxu0 %v10757_v7 }
0x1ed0   : > { %7847 = vmatprep.subr.bf16.mxu0 %v10763_v1 }
0x1ed6   : > { %v5316_v57 = vpop.permute.xlu1 %5315 }
0x1ed7   : > { %v5318_v28 = vmul.f32 %v5316_v57, %v11190_v11 }
0x1ed9   : > { %5767 = vrot.lane.b32.xlu0 %v5318_v28, %s12140_s8 }
0x1f8a   : > { %v5645_v46 = vpop.f32.mrf.mxu0 }
0x1f8b   : > { %v5646_v42 = vadd.f32 %v11305_v40, %v5645_v46 }
0x1f8c   : > { %v8376_v21 = vpop.f32.mrf.mxu0 }
0x1f8d   : > { %v5652_v45 = vand.u32 2147483647, %v5646_v42  ;;  %v5651_v60 = vmax.f32 %v5646_v42, 0.0 }
0x1f8e   : > { %v5648_v44 = vpop.f32.mrf.mxu0 }
0x1f8f   : > { %v5653_v16 = vsub.f32 0.0, %v5652_v45 }
0x1f90   : > { %v8377_v7 = vpop.f32.mrf.mxu0 }
0x1f91   : > { %v5654_v32 = vmul.f32 1.442695, %v5653_v16 }
0x1f93   : > { %8785 = vpow2.f32 %v5654_v32 }
0x1fa0   : > { %v8786_v1 = vpop.eup %8785 }
0x1fa1   : > { %v5656_v2 = vadd.f32 1.0, %v8786_v1 }
0x1fa3   : > { %8787 = vlog2.f32 %v5656_v2 }
0x1fb0   : > { %v8788_v11 = vpop.eup %8787 }
0x1fb1   : > { %v5658_v41 = vmul.f32 0.6931472, %v8788_v11 }
0x1fb3   : > { %v5659_v53 = vadd.f32 %v5658_v41, %v5651_v60 }
0x1fb5   : > { %v5660_v37 = vpack.c.bf16 %v5659_v53, %v5659_v53 }
0x1fb7   : > { %8383 = vmatmul.mubr.msk.bf16.vlgmr.msra.gmra.mxu1 %vm12183_vm15, %v5660_v37  ;;  %vm12188_vm15 = vmmov %vm12182_vm2 }
0x1fb8   : > { %8396 = vmatprep.mubr.msk.bf16.mxu1 %vm1377_vm8, %v9449_v26 }
0x2077   : > { %v5698_v56 = vpop.f32.mrf.mxu1 }
0x2078   : > { %v5699_v0 = vadd.f32 %v11314_v12, %v5698_v56  ;;  %v5768_v56 = vpop.permute.xlu0 %5767 }
0x2079   : > { %v8384_v18 = vpop.f32.mrf.mxu1 }
0x207a   : > { %v5705_v47 = vand.u32 2147483647, %v5699_v0  ;;  %v5704_v44 = vmax.f32 %v5699_v0, 0.0 }
0x207b   : > { %v5701_v33 = vpop.f32.mrf.mxu1 }
0x207c   : > { %v5706_v57 = vsub.f32 0.0, %v5705_v47  ;;  %v12189_v33 = vld [vmem:[#allocation13_spill] sm:$0xff] }
0x207d   : > { %v8385_v28 = vpop.f32.mrf.mxu1 }
0x207e   : > { %v5707_v46 = vmul.f32 1.442695, %v5706_v57  ;;  %v12190_v57 = vld [vmem:[#allocation14_spill] sm:$0xff]  ;;  %v12191_v28 = vld [vmem:[#allocation15_spill] sm:$0xff] }
0x2080   : > { %8789 = vpow2.f32 %v5707_v46  ;;  %v12192_v46 = vld [vmem:[#allocation16_spill] sm:$0xff] }
0x208d   : > { %v8790_v42 = vpop.eup %8789 }
0x208e   : > { %v5709_v21 = vadd.f32 1.0, %v8790_v42  ;;  %v12193_v42 = vld [vmem:[#allocation17_spill] sm:$0xff] }
0x2090   : > { %8791 = vlog2.f32 %v5709_v21  ;;  %v12194_v21 = vld [vmem:[#allocation18_spill] sm:$0xff] }
0x209d   : > { %v8792_v45 = vpop.eup %8791 }
0x209e   : > { %v5711_v16 = vmul.f32 0.6931472, %v8792_v45  ;;  %v12195_v45 = vld [vmem:[#allocation19_spill] sm:$0xff] }
0x20a0   : > { %v5712_v7 = vadd.f32 %v5711_v16, %v5704_v44  ;;  %v12196_v44 = vld [vmem:[#allocation20_spill] sm:$0xff]  ;;  %v12197_v16 = vld [vmem:[#allocation21_spill] sm:$0xff] }
0x20a2   : > { %v5713_v32 = vpack.c.bf16 %v5712_v7, %v5712_v7  ;;  %v12198_v7 = vld [vmem:[#allocation22_spill] sm:$0xff] }
0x20a4   : > { %8391 = vmatmul.mubr.msk.bf16.vlgmr.msra.gmra.mxu0 %vm12182_vm2, %v5713_v32  ;;  %v12199_v32 = vld [vmem:[#allocation23_spill] sm:$0xff]  ;;  %vm12205_vm2 = vcmask 523264  }
0x20a5   : > { %7848 = vmatpush3.bf16.msra.mxu0 %v10775_v59  ;;  %v12184_v59 = vld [vmem:[#allocation9_spill] sm:$0xff] }
0x20a6   : > { %7849 = vmatprep.subr.bf16.mxu0 %v10781_v6  ;;  %v12185_v6 = vld [vmem:[#allocation10_spill] sm:$0xff] }
0x20a9   : > { %7850 = vmatpush3.bf16.msra.mxu0 %v10787_v24  ;;  %v12186_v24 = vld [vmem:[#allocation11_spill] sm:$0xff] }
0x20aa   : > { %7851 = vmatprep.subr.bf16.mxu0 %v10793_v58  ;;  %v12187_v58 = vld [vmem:[#allocation12_spill] sm:$0xff] }
0x20ad   : > { %7852 = vmatpush3.bf16.msra.mxu0 %v10799_v4 }
0x20ae   : > { %7853 = vmatprep.subr.bf16.mxu0 %v10805_v39  ;;  %v11337_v39 = vld [vmem:[%s11878_s14 + $0x2] ss:$0 sm:$0xff] }
0x20b1   : > { %7854 = vmatpush3.bf16.msra.mxu0 %v10811_v10 }
0x20b2   : > { %7855 = vmatprep.subr.bf16.mxu0 %v10817_v3 }
0x20b5   : > { %7856 = vmatpush3.bf16.msra.mxu0 %v10823_v30 }
0x20b6   : > { %7857 = vmatprep.subr.bf16.mxu0 %v10829_v15 }
0x20b9   : > { %7858 = vmatpush3.bf16.msra.mxu0 %v10835_v19 }
0x20ba   : > { %7859 = vmatprep.subr.bf16.mxu0 %v10841_v13 }
0x20bd   : > { %7860 = vmatpush3.bf16.msra.mxu0 %v12184_v59  ;;  %v12200_v59 = vld [vmem:[#allocation24_spill] sm:$0xff] }
0x20be   : > { %7861 = vmatprep.subr.bf16.mxu0 %v12185_v6  ;;  %v12201_v6 = vld [vmem:[#allocation25_spill] sm:$0xff] }
0x20c1   : > { %7862 = vmatpush3.bf16.msra.mxu0 %v12186_v24  ;;  %v12202_v24 = vld [vmem:[#allocation26_spill] sm:$0xff] }
0x20c2   : > { %7891 = vmatprep.subr.bf16.mxu0 %v12187_v58  ;;  %v12203_v58 = vld [vmem:[#allocation27_spill] sm:$0xff] }
0x2164   : > { %v5751_v4 = vpop.f32.mrf.mxu0 }
0x2165   : > { %v5752_v10 = vadd.f32 %v11337_v39, %v5751_v4  ;;  %v12204_v4 = vld [vmem:[#allocation28_spill] sm:$0xff] }
0x2166   : > { %v8392_v3 = vpop.f32.mrf.mxu0 }
0x2167   : > { %v5758_v30 = vand.u32 2147483647, %v5752_v10  ;;  %v5757_v41 = vmax.f32 %v5752_v10, 0.0 }
0x2168   : > { %v5754_v15 = vpop.f32.mrf.mxu0 }
0x2169   : > { %v5759_v19 = vsub.f32 0.0, %v5758_v30 }
0x216a   : > { %v8393_v13 = vpop.f32.mrf.mxu0 }
0x216b   : > { %v5760_v1 = vmul.f32 1.442695, %v5759_v19 }
0x216d   : > { %8793 = vpow2.f32 %v5760_v1 }
0x217a   : > { %v8794_v2 = vpop.eup %8793 }
0x217b   : > { %v5762_v11 = vadd.f32 1.0, %v8794_v2 }
0x217d   : > { %8795 = vlog2.f32 %v5762_v11 }
0x218a   : > { %v8796_v60 = vpop.eup %8795 }
0x218b   : > { %v5764_v53 = vmul.f32 0.6931472, %v8796_v60 }
0x218d   : > { %v5765_v37 = vadd.f32 %v5764_v53, %v5757_v41 }
0x218f   : > { %v5770_v0 = vsel %vm12188_vm15, %v5765_v37, %v5768_v56  ;;  %vm12206_vm15 = vcmask 850944  }
0x2190   : > { %v11341_v18 = vpack.c.bf16 %v5770_v0, %v5770_v0 }
0x2192   : > { %8520 = vmatprep.subr.msk.bf16.mxu1 %vm1408_vm3, %v11341_v18  ;;  %v5773_v47 = vsel %vm1408_vm3, %v11341_v18, 0 }
0x2193   : > { %8395 = vmatpush3.bf16.msra.mxu1 %v5773_v47 }
0x2194   : > { %7869 = vmatprep.subr.bf16.mxu1 %v12189_v33 }
0x2196   : > { %8397 = vmatmul.mubr.msk.bf16.vlgmr.msra.gmra.mxu1 %vm1377_vm8, %v9455_v35 }
0x2197   : > { %8400 = vmatprep.mubr.msk.bf16.mxu1 %vm1377_vm8, %v9461_v51  ;;  %7870 = vmatpush3.bf16.msra.mxu1 %v12190_v57 }
0x2198   : > { %7871 = vmatprep.subr.bf16.mxu1 %v12191_v28 }
0x219b   : > { %7872 = vmatpush3.bf16.msra.mxu1 %v12192_v46 }
0x219c   : > { %7873 = vmatprep.subr.bf16.mxu1 %v12193_v42 }
0x219e   : > { %8401 = vmatmul.mubr.msk.bf16.gmra.mxu1 %vm1377_vm8, %v9468_v27 }
0x219f   : > { %8404 = vmatprep.mubr.msk.bf16.mxu1 %vm1377_vm8, %v9473_v25  ;;  %7874 = vmatpush3.bf16.msra.mxu1 %v12194_v21 }
0x21a0   : > { %7875 = vmatprep.subr.bf16.mxu1 %v12195_v45 }
0x21a3   : > { %7876 = vmatpush3.bf16.msra.mxu1 %v12196_v44 }
0x21a4   : > { %7877 = vmatprep.subr.bf16.mxu1 %v12197_v16 }
0x21a6   : > { %8405 = vmatmul.mubr.msk.bf16.gmra.mxu1 %vm1377_vm8, %v9481_v43 }
0x21a7   : > { %8408 = vmatprep.mubr.msk.bf16.mxu1 %vm1377_vm8, %v9483_v23  ;;  %7878 = vmatpush3.bf16.msra.mxu1 %v12198_v7 }
0x21a8   : > { %7879 = vmatprep.subr.bf16.mxu1 %v12199_v32 }
0x21ab   : > { %7880 = vmatpush3.bf16.msra.mxu1 %v12200_v59 }
0x21ac   : > { %7881 = vmatprep.subr.bf16.mxu1 %v12201_v6 }
0x21ae   : > { %8409 = vmatmul.mubr.msk.bf16.gmra.mxu1 %vm1377_vm8, %v9493_v62 }
0x21af   : > { %8412 = vmatprep.mubr.msk.bf16.mxu1 %vm1377_vm8, %v9495_v20  ;;  %7882 = vmatpush3.bf16.msra.mxu1 %v12202_v24 }
0x21b0   : > { %7883 = vmatprep.subr.bf16.mxu1 %v12203_v58 }
0x21b3   : > { %7884 = vmatpush3.bf16.msra.mxu1 %v12204_v4 }
0x21b4   : > { %8416 = vmatprep.subr.bf16.mxu1 %v12056_v61 }
0x21b6   : > { %8413 = vmatmul.mubr.msk.bf16.gmra.mxu1 %vm1377_vm8, %v9503_v8 }
0x2256   : > { %v8398_v10 = vpop.f32.mrf.mxu1 }
0x2258   : > { %v5809_v3 = vpop.f32.mrf.mxu1 }
0x225a   : > { %v8399_v30 = vpop.f32.mrf.mxu1 }
0x225b   : > { %v5889_v15 = vpack.c.bf16 %v8399_v30, %v8398_v10 }
0x225c   : > { %v5812_v19 = vpop.f32.mrf.mxu1 }
0x225d   : > { %v5905_v13 = vrot.slane %v5889_v15, 4  ;;  %v5888_v1 = vpack.c.bf16 %v5812_v19, %v5809_v3 }
0x225e   : > { %v8402_v2 = vpop.f32.mrf.mxu1 }
0x225f   : > { %5906 = vrot.lane.b32.xlu1 %v5905_v13, %s12086_s29  ;;  %v5899_v60 = vrot.slane %v5888_v1, 4 }
0x2260   : > { %v5825_v11 = vpop.f32.mrf.mxu1 }
0x2262   : > { %v8403_v41 = vpop.f32.mrf.mxu1 }
0x2263   : > { %5900 = vrot.lane.b32.xlu1 %v5899_v60, %s12082_s4  ;;  %v5891_v37 = vpack.c.bf16 %v8403_v41, %v8402_v2 }
0x2264   : > { %v5828_v53 = vpop.f32.mrf.mxu1 }
0x2265   : > { %v5890_v56 = vpack.c.bf16 %v5828_v53, %v5825_v11  ;;  %v5917_v33 = vrot.slane %v5891_v37, 4 }
0x2266   : > { %v8406_v0 = vpop.f32.mrf.mxu1 }
0x2267   : > { %5903 = vrot.lane.b32.xlu1 %v5889_v15, %s12083_s0  ;;  %5909 = vrot.lane.b32.xlu0 %v5890_v56, %s12081_s5  ;;  %v5911_v57 = vrot.slane %v5890_v56, 4 }
0x2268   : > { %v5841_v47 = vpop.f32.mrf.mxu1 }
0x226a   : > { %v8407_v28 = vpop.f32.mrf.mxu1 }
0x226b   : > { %5918 = vrot.lane.b32.xlu1 %v5917_v33, %s12060_s24  ;;  %5912 = vrot.lane.b32.xlu0 %v5911_v57, %s12084_s19  ;;  %v5893_v16 = vpack.c.bf16 %v8407_v28, %v8406_v0 }
0x226c   : > { %v5844_v46 = vpop.f32.mrf.mxu1 }
0x226d   : > { %v5892_v42 = vpack.c.bf16 %v5844_v46, %v5841_v47  ;;  %v5929_v59 = vrot.slane %v5893_v16, 4 }
0x226e   : > { %v8410_v21 = vpop.f32.mrf.mxu1 }
0x226f   : > { %v5923_v45 = vrot.slane %v5892_v42, 4  ;;  %5915 = vrot.lane.b32.xlu0 %v5891_v37, %s12085_s6 }
0x2270   : > { %v5857_v44 = vpop.f32.mrf.mxu1 }
0x2271   : > { %5924 = vrot.lane.b32.xlu1 %v5923_v45, %s12058_s25 }
0x2272   : > { %v8411_v7 = vpop.f32.mrf.mxu1 }
0x2273   : > { %5927 = vrot.lane.b32.xlu0 %v5893_v16, %s12057_s2  ;;  %v5895_v30 = vpack.c.bf16 %v8411_v7, %v8410_v21 }
0x2274   : > { %v5860_v32 = vpop.f32.mrf.mxu1 }
0x2275   : > { %5921 = vrot.lane.b32.xlu1 %v5892_v42, %s12061_s30  ;;  %v5894_v58 = vpack.c.bf16 %v5860_v32, %v5857_v44  ;;  %v5941_v11 = vrot.slane %v5895_v30, 4 }
0x2276   : > { %v8414_v6 = vpop.f32.mrf.mxu1 }
0x2277   : > { %5930 = vrot.lane.b32.xlu0 %v5929_v59, %s12059_s27  ;;  %v5935_v13 = vrot.slane %v5894_v58, 4 }
0x2278   : > { %v5873_v24 = vpop.f32.mrf.mxu1 }
0x227a   : > { %v8415_v4 = vpop.f32.mrf.mxu1 }
0x227b   : > { %v5897_v10 = vpack.c.bf16 %v8415_v4, %v8414_v6  ;;  %5933 = vrot.lane.b32.xlu0 %v5894_v58, %s12047_s1  ;;  %v12208_v58 = vld [vmem:[#allocation30_spill] sm:$0xff]  ;;  %v12209_v4 = vld [vmem:[#allocation31_spill] sm:$0xff] }
0x227c   : > { %v5876_v3 = vpop.f32.mrf.mxu1 }
0x227d   : > { %v5896_v15 = vpack.c.bf16 %v5876_v3, %v5873_v24  ;;  %5985 = vrot.lane.b32.xlu1 %v5897_v10, %s12083_s0  ;;  %v5987_v2 = vrot.slane %v5897_v10, 4  ;;  %v12207_v24 = vld [vmem:[#allocation29_spill] sm:$0xff]  ;;  %v12210_v3 = vld [vmem:[#allocation32_spill] sm:$0xff] }
0x227f   : > { %v5981_v19 = vrot.slane %v5896_v15, 4  ;;  %5939 = vrot.lane.b32.xlu0 %v5895_v30, %s12044_s21  ;;  %v12211_v30 = vld [vmem:[#allocation33_spill] sm:$0xff] }
0x2281   : > { %5982 = vrot.lane.b32.xlu1 %v5981_v19, %s12082_s4 }
0x2283   : > { %5936 = vrot.lane.b32.xlu0 %v5935_v13, %s12048_s22  ;;  %v12213_v13 = vld [vmem:[#allocation35_spill] sm:$0xff] }
0x2285   : > { %5988 = vrot.lane.b32.xlu1 %v5987_v2, %s12086_s29  ;;  %v12214_v2 = vld [vmem:[#allocation36_spill] sm:$0xff] }
0x2287   : > { %5942 = vrot.lane.b32.xlu0 %v5941_v11, %s12055_s28  ;;  %v12215_v11 = vld [vmem:[#allocation37_spill] sm:$0xff] }
0x2289   : > { %5991 = vrot.lane.b32.xlu1 %v11341_v18, %s12081_s5 }
0x22d1   : > { %v5907_v60 = vpop.permute.xlu1 %5906 }
0x22d5   : > { %v5901_v41 = vpop.permute.xlu1 %5900 }
0x22d6   : > { %v5946_v0 = vsel %vm1603_vm6, %v5888_v1, %v5901_v41 }
0x22d9   : > { %v5904_v53 = vpop.permute.xlu1 %5903  ;;  %v5910_v37 = vpop.permute.xlu0 %5909 }
0x22da   : > { %v5948_v33 = vsel %vm1652_vm5, %v5946_v0, %v5904_v53  ;;  %v5953_v57 = vsel %vm2297_vm7, %v5907_v60, %v5910_v37 }
0x22db   : > { %v5950_v21 = vsel %vm2328_vm9, %v5948_v33, %v5907_v60  ;;  %v8897_v33 = vld [vmem:[%s11875_s11 + $0x28] sm:$0xff]  }
0x22dd   : > { %v5913_v56 = vpop.permute.xlu0 %5912  ;;  %v5919_v47 = vpop.permute.xlu1 %5918 }
0x22de   : > { %v5955_v28 = vsel %vm2311_vm14, %v5953_v57, %v5913_v56  ;;  %v12217_v56 = vmov 0   ;;  %v8898_v57 = vld [vmem:[%s11875_s11 + $0x20] sm:$0xff]  }
0x22e1   : > { %v5916_v46 = vpop.permute.xlu0 %5915 }
0x22e2   : > { %v5957_v42 = vsel %vm2325_vm13, %v5955_v28, %v5916_v46  ;;  %v5960_v16 = vsel %vm2294_vm12, %v5916_v46, %v5919_v47  ;;  %v8899_v28 = vld [vmem:[%s11875_s11 + $0x18] sm:$0xff]   ;;  %v8900_v46 = vld [vmem:[%s11875_s11 + $0x10] sm:$0xff]  }
0x22e3   : > { %6037 = vmatprep.mubr.bf16.mxu0 %v5957_v42  ;;  %v5925_v18 = vpop.permute.xlu1 %5924  ;;  %v8901_v42 = vld [vmem:[%s11875_s11 + $0x8] sm:$0xff]  }
0x22e4   : > { %6038 = vmatmul.mubr.bf16.vlgmr.msra.gmra.mxu0 %v5950_v21  ;;  %v8902_v21 = vld [vmem:[%s11875_s11] sm:$0xff]  }
0x22e5   : > { %7892 = vmatpush3.bf16.msra.mxu0 %v11023_v31  ;;  %v5928_v45 = vpop.permute.xlu0 %5927 }
0x22e6   : > { %7893 = vmatprep.subr.bf16.mxu0 %v11029_v52  ;;  %v5967_v7 = vsel %vm2291_vm11, %v5925_v18, %v5928_v45  ;;  %v8903_v45 = vld [vmem:[%s11875_s11 + $0x48] sm:$0xff]  }
0x22e7   : > { %v5922_v1 = vpop.permute.xlu1 %5921 }
0x22e8   : > { %v5962_v32 = vsel %vm12205_vm2, %v5960_v16, %v5922_v1  ;;  %vm12216_vm2 = vcmask 392192   ;;  %v8904_v1 = vld [vmem:[%s11875_s11 + $0x40] sm:$0xff]  }
0x22e9   : > { %7894 = vmatpush3.bf16.msra.mxu0 %v11035_v14  ;;  %v5931_v44 = vpop.permute.xlu0 %5930  ;;  %v5964_v52 = vsel %vm12206_vm15, %v5962_v32, %v5925_v18  ;;  %v12218_v18 = vld [vmem:[#allocation6_spill] sm:$0xff]  ;;  %vm12219_vm15 = vcmask 162816  }
0x22ea   : > { %7895 = vmatprep.subr.bf16.mxu0 %v11041_v9  ;;  %v5969_v59 = vsel %vm2305_vm10, %v5967_v7, %v5931_v44 }
0x22ed   : > { %7896 = vmatpush3.bf16.msra.mxu0 %v11051_v36  ;;  %v5934_v31 = vpop.permute.xlu0 %5933 }
0x22ee   : > { %v5971_v6 = vsel %vm2319_vm4, %v5969_v59, %v5934_v31  ;;  %7897 = vmatprep.subr.bf16.mxu0 %v11058_v34 }
0x22ef   : > { %6077 = vmatprep.mubr.bf16.mxu1 %v5971_v6  ;;  %v5986_v14 = vpop.permute.xlu1 %5985 }
0x22f0   : > { %6078 = vmatmul.mubr.bf16.vlgmr.msra.gmra.mxu1 %v5964_v52 }
0x22f1   : > { %7898 = vmatpush3.bf16.msra.mxu0 %v11065_v38  ;;  %8417 = vmatpush3.bf16.msra.mxu1 %v10240_v49  ;;  %v5940_v36 = vpop.permute.xlu0 %5939 }
0x22f2   : > { %7899 = vmatprep.subr.bf16.mxu0 %v11072_v55  ;;  %8418 = vmatprep.subr.bf16.mxu1 %v12056_v61 }
0x22f3   : > { %v5983_v9 = vpop.permute.xlu1 %5982  ;;  %8426 = vmatprep.mubr.msk.bf16.mxu1 %vm8971_vm0, %v12056_v61 }
0x22f4   : > { %v5995_v34 = vsel %vm1603_vm6, %v5896_v15, %v5983_v9  ;;  %v12212_v15 = vld [vmem:[#allocation34_spill] sm:$0xff] }
0x22f5   : > { %7900 = vmatpush3.bf16.msra.mxu0 %v12207_v24  ;;  %8419 = vmatpush3.bf16.msra.mxu1 %v12208_v58  ;;  %v5997_v55 = vsel %vm1652_vm5, %v5995_v34, %v5986_v14  ;;  %v5937_v19 = vpop.permute.xlu0 %5936 }
0x22f6   : > { %7901 = vmatprep.subr.bf16.mxu0 %v12209_v4  ;;  %8420 = vmatprep.subr.bf16.mxu1 %v12056_v61  ;;  %v5974_v60 = vsel %vm1377_vm8, %v5934_v31, %v5937_v19 }
0x22f7   : > { %v5989_v38 = vpop.permute.xlu1 %5988  ;;  %v5976_v37 = vsel %vm12216_vm2, %v5974_v60, %v5940_v36  ;;  %vm12221_vm2 = vcmask 7168  }
0x22f8   : > { %v5999_v10 = vsel %vm2328_vm9, %v5997_v55, %v5989_v38 }
0x22f9   : > { %7902 = vmatpush3.bf16.msra.mxu0 %v12210_v3  ;;  %8421 = vmatpush3.bf16.msra.mxu1 %v12211_v30  ;;  %v5943_v41 = vpop.permute.xlu0 %5942 }
0x22fa   : > { %6117 = vmatprep.mubr.bf16.mxu0 %v5999_v10  ;;  %7903 = vmatprep.subr.bf16.mxu0 %v12212_v15  ;;  %v5978_v0 = vsel %vm2316_vm1, %v5976_v37, %v5943_v41 }
0x22fb   : > { %8422 = vmatprep.subr.bf16.mxu1 %v12056_v61  ;;  %v5992_v53 = vpop.permute.xlu1 %5991 }
0x22fc   : > { %v6002_v47 = vsel %vm2297_vm7, %v5989_v38, %v5992_v53 }
0x22fd   : > { %7904 = vmatpush3.bf16.msra.mxu0 %v12213_v13  ;;  %8423 = vmatpush3.bf16.msra.mxu1 %v12214_v2 }
0x22fe   : > { %7905 = vmatprep.subr.bf16.mxu0 %v12215_v11  ;;  %8424 = vmatprep.subr.bf16.mxu1 %v12056_v61 }
0x2301   : > { %7906 = vmatpush3.bf16.msra.mxu0 %v11143_v48  ;;  %8425 = vmatpush3.bf16.msra.mxu1 %v11149_v17  ;;  %v8895_v48 = vld [vmem:[%s11875_s11 + $0x38] sm:$0xff]   ;;  %v8896_v17 = vld [vmem:[%s11875_s11 + $0x30] sm:$0xff]  }
0x2302   : > { %6426 = vmatprep.subr.bf16.mxu1 %v12217_v56 }
0x2304   : > { %6118 = vmatmul.mubr.bf16.vlgmr.msra.gmra.mxu0 %v5978_v0  ;;  %8427 = vmatmul.mubr.msk.bf16.vlgmr.msra.gmra.mxu1 %vm2311_vm14, %v6002_v47  ;;  %v12220_v0 = vld [vmem:[#allocation8_spill] sm:$0xff] }
0x2305   : > { %8432 = vmatprep.mubr.msk.bf16.mxu0 %vm1377_vm8, %v9449_v26  ;;  %6427 = vmatpush1.bf16.msra.mxu1 %v8895_v48 }
0x2306   : > { %6428 = vmatprep.subr.bf16.mxu1 %v12217_v56 }
0x2309   : > { %6429 = vmatpush1.bf16.msra.mxu1 %v8896_v17 }
0x230a   : > { %6430 = vmatprep.subr.bf16.mxu1 %v12217_v56 }
0x230d   : > { %6431 = vmatpush1.bf16.msra.mxu1 %v8897_v33 }
0x230e   : > { %6432 = vmatprep.subr.bf16.mxu1 %v12217_v56 }
0x2311   : > { %6433 = vmatpush1.bf16.msra.mxu1 %v8898_v57  ;;  %v12222_v57 = vld [vmem:[#allocation7_spill] sm:$0xff] }
0x2312   : > { %6434 = vmatprep.subr.bf16.mxu1 %v12217_v56 }
0x2315   : > { %6435 = vmatpush1.bf16.msra.mxu1 %v8899_v28  ;;  %v8905_v28 = vld [vmem:[%s11877_s13] sm:$0xff]  }
0x2316   : > { %6436 = vmatprep.subr.bf16.mxu1 %v12217_v56 }
0x2319   : > { %6437 = vmatpush1.bf16.msra.mxu1 %v8900_v46 }
0x231a   : > { %6438 = vmatprep.subr.bf16.mxu1 %v12217_v56 }
0x231d   : > { %6439 = vmatpush1.bf16.msra.mxu1 %v8901_v42 }
0x231e   : > { %6440 = vmatprep.subr.bf16.mxu1 %v12217_v56 }
0x2321   : > { %6441 = vmatpush1.bf16.msra.mxu1 %v8902_v21 }
0x2322   : > { %6452 = vmatprep.subr.bf16.mxu1 %v12217_v56 }
0x2325   : > { %6453 = vmatpush2.bf16.msra.mxu1 %v12218_v18 }
0x2326   : > { %6454 = vmatprep.subr.bf16.mxu1 %v12217_v56 }
0x2329   : > { %6455 = vmatpush2.bf16.msra.mxu1 %v8903_v45 }
0x232a   : > { %6456 = vmatprep.subr.bf16.mxu1 %v12217_v56 }
0x232d   : > { %6457 = vmatpush2.bf16.msra.mxu1 %v8904_v1 }
0x232e   : > { %8460 = vmatprep.subr.bf16.mxu1 %v12056_v61 }
0x23a4   : > { %v7863_v44 = vpop.f32.mrf.mxu0 }
0x23a6   : > { %v7864_v16 = vpop.f32.mrf.mxu0 }
0x23a7   : > { %v7865_v14 = vadd.f32 %v7864_v16, %v7863_v44 }
0x23a8   : > { %v7866_v7 = vpop.f32.mrf.mxu0 }
0x23a9   : > { %v6040_v24 = vadd.f32 %v11184_v5, %v7865_v14 }
0x23aa   : > { %v7867_v32 = vpop.f32.mrf.mxu0 }
0x23b0   : > { %v7885_v59 = vpop.f32.mrf.mxu1 }
0x23b2   : > { %v7886_v31 = vpop.f32.mrf.mxu1 }
0x23b3   : > { %v7887_v9 = vadd.f32 %v7886_v31, %v7885_v59 }
0x23b4   : > { %v7888_v6 = vpop.f32.mrf.mxu1 }
0x23b5   : > { %v6080_v38 = vadd.f32 %v7887_v9, %v6040_v24 }
0x23b6   : > { %v7889_v52 = vpop.f32.mrf.mxu1 }
0x23c4   : > { %v7907_v36 = vpop.f32.mrf.mxu0  ;;  %v6159_v34 = vpop.f32.mrf.mxu1 }
0x23c6   : > { %v7908_v58 = vpop.f32.mrf.mxu0  ;;  %v8428_v4 = vpop.f32.mrf.mxu1 }
0x23c7   : > { %v7909_v55 = vadd.f32 %v7908_v58, %v7907_v36 }
0x23c8   : > { %v7910_v10 = vpop.f32.mrf.mxu0  ;;  %v6162_v3 = vpop.f32.mrf.mxu1 }
0x23c9   : > { %v6120_v30 = vadd.f32 %v7909_v55, %v6080_v38 }
0x23ca   : > { %v7911_v19 = vpop.f32.mrf.mxu0  ;;  %v8429_v15 = vpop.f32.mrf.mxu1 }
0x23cb   : > { %v11494_v13 = vadd.f32 %v6159_v34, %v6120_v30 }
0x23cd   : > { %v6165_v2 = vmul.f32 0.5, %v11494_v13 }
0x23cf   : > { %8797 = vtanh.f32 %v6165_v2 }
0x23d0   : > { %8799 = vtanh.f32 %v11494_v13 }
0x23dc   : > { %v8798_v11 = vpop.eup %8797 }
0x23dd   : > { %v6167_v60 = vadd.f32 1.0, %v8798_v11 }
0x23df   : > { %v11497_v41 = vmul.f32 0.5, %v6167_v60 }
0x23e1   : > { %v6187_v5 = vmul.f32 %v11497_v41, %v10633_v22 }
0x23e3   : > { %6189 = vrot.lane.b32.xlu0 %v6187_v5, %s12055_s28 }
0x2455   : > { %v6190_v53 = vpop.permute.xlu0 %6189 }
0x2456   : > { %v6192_v37 = vsel %vm12219_vm15, %v6190_v53, 0.0  ;;  %vm12223_vm15 = vcmask 392192  }
0x2457   : > { %6193 = vadd.xlane.f32.xlu1 %v6192_v37 }
0x24e0   : > { %v6194_v56 = vpop.xlane.xlu1 %6193 }
0x24e1   : > { %v11504_v47 = vadd.f32 %v6194_v56, %v12220_v0 }
0x24e3   : > { %v6196_v48 = vsel %vm12221_vm2, %v11504_v47, 0.0  ;;  %vm12224_vm2 = vcmask 523264  }
0x24e4   : > { %v11508_v17 = vpack.c.bf16 %v6196_v48, %v6196_v48 }
0x24e6   : > { %8521 = vmatprep.subr.msk.bf16.mxu0 %vm1408_vm3, %v11508_v17  ;;  %v6199_v33 = vsel %vm1408_vm3, %v11508_v17, 0 }
0x24e7   : > { %8431 = vmatpush3.bf16.msra.mxu0 %v6199_v33 }
0x24e8   : > { %8452 = vmatprep.subr.bf16.mxu0 %v12056_v61 }
0x24ea   : > { %8433 = vmatmul.mubr.msk.bf16.vlgmr.msra.gmra.mxu0 %vm1377_vm8, %v9455_v35 }
0x24eb   : > { %8436 = vmatprep.mubr.msk.bf16.mxu0 %vm1377_vm8, %v9461_v51  ;;  %8453 = vmatpush3.bf16.msra.mxu0 %v12222_v57 }
0x24ec   : > { %8454 = vmatprep.subr.bf16.mxu0 %v12056_v61 }
0x24ef   : > { %8455 = vmatpush3.bf16.msra.mxu0 %v8905_v28 }
0x24f0   : > { %8468 = vmatprep.subr.bf16.mxu0 %v12056_v61 }
0x24f2   : > { %8437 = vmatmul.mubr.msk.bf16.gmra.mxu0 %vm1377_vm8, %v9468_v27 }
0x24f3   : > { %8440 = vmatprep.mubr.msk.bf16.mxu0 %vm1377_vm8, %v9473_v25 }
0x24fa   : > { %8441 = vmatmul.mubr.msk.bf16.gmra.mxu0 %vm1377_vm8, %v9481_v43 }
0x24fb   : > { %8444 = vmatprep.mubr.msk.bf16.mxu0 %vm1377_vm8, %v9483_v23 }
0x2502   : > { %8445 = vmatmul.mubr.msk.bf16.gmra.mxu0 %vm1377_vm8, %v9493_v62 }
0x2503   : > { %8448 = vmatprep.mubr.msk.bf16.mxu0 %vm1377_vm8, %v9495_v20 }
0x250a   : > { %8449 = vmatmul.mubr.msk.bf16.gmra.mxu0 %vm1377_vm8, %v9503_v8 }
0x250b   : > { %8456 = vmatprep.mubr.msk.bf16.mxu0 %vm8971_vm0, %v12056_v61 }
0x25aa   : > { %v8434_v46 = vpop.f32.mrf.mxu0 }
0x25ac   : > { %v6235_v42 = vpop.f32.mrf.mxu0 }
0x25ae   : > { %v8435_v21 = vpop.f32.mrf.mxu0 }
0x25af   : > { %v6315_v18 = vpack.c.bf16 %v8435_v21, %v8434_v46 }
0x25b0   : > { %v6238_v45 = vpop.f32.mrf.mxu0 }
0x25b1   : > { %6329 = vrot.lane.b32.xlu0 %v6315_v18, %s12057_s2  ;;  %v6331_v44 = vrot.slane %v6315_v18, 4  ;;  %v6314_v16 = vpack.c.bf16 %v6238_v45, %v6235_v42  ;;  %v8800_v42 = vpop.eup %8799 }
0x25b2   : > { %v8438_v1 = vpop.f32.mrf.mxu0 }
0x25b3   : > { %v6325_v59 = vrot.slane %v6314_v16, 4 }
0x25b4   : > { %v6251_v7 = vpop.f32.mrf.mxu0 }
0x25b5   : > { %6332 = vrot.lane.b32.xlu0 %v6331_v44, %s12060_s24 }
0x25b6   : > { %v8439_v32 = vpop.f32.mrf.mxu0 }
0x25b7   : > { %v6317_v52 = vpack.c.bf16 %v8439_v32, %v8438_v1 }
0x25b8   : > { %v6254_v31 = vpop.f32.mrf.mxu0 }
0x25b9   : > { %6326 = vrot.lane.b32.xlu0 %v6325_v59, %s12048_s22  ;;  %v6316_v36 = vpack.c.bf16 %v6254_v31, %v6251_v7  ;;  %v6343_v4 = vrot.slane %v6317_v52, 4 }
0x25ba   : > { %v8442_v6 = vpop.f32.mrf.mxu0 }
0x25bb   : > { %v6337_v10 = vrot.slane %v6316_v36, 4 }
0x25bc   : > { %v6267_v14 = vpop.f32.mrf.mxu0 }
0x25bd   : > { %6341 = vrot.lane.b32.xlu0 %v6317_v52, %s12044_s21 }
0x25be   : > { %v8443_v9 = vpop.f32.mrf.mxu0 }
0x25bf   : > { %v6319_v34 = vpack.c.bf16 %v8443_v9, %v8442_v6 }
0x25c0   : > { %v6270_v24 = vpop.f32.mrf.mxu0 }
0x25c1   : > { %6335 = vrot.lane.b32.xlu0 %v6316_v36, %s12081_s5  ;;  %6353 = vrot.lane.b32.xlu1 %v6319_v34, %s12083_s0  ;;  %v6318_v15 = vpack.c.bf16 %v6270_v24, %v6267_v14  ;;  %v6355_v11 = vrot.slane %v6319_v34, 4 }
0x25c2   : > { %v8446_v58 = vpop.f32.mrf.mxu0 }
0x25c3   : > { %v6349_v53 = vrot.slane %v6318_v15, 4 }
0x25c4   : > { %v6283_v38 = vpop.f32.mrf.mxu0 }
0x25c5   : > { %6344 = vrot.lane.b32.xlu0 %v6343_v4, %s12059_s27 }
0x25c6   : > { %v8447_v55 = vpop.f32.mrf.mxu0 }
0x25c7   : > { %v6321_v3 = vpack.c.bf16 %v8447_v55, %v8446_v58 }
0x25c8   : > { %v6286_v30 = vpop.f32.mrf.mxu0 }
0x25c9   : > { %v6320_v19 = vpack.c.bf16 %v6286_v30, %v6283_v38  ;;  %6338 = vrot.lane.b32.xlu0 %v6337_v10, %s12082_s4  ;;  %6365 = vrot.lane.b32.xlu1 %v6321_v3, %s12085_s6  ;;  %v6367_v60 = vrot.slane %v6321_v3, 4 }
0x25ca   : > { %v8450_v5 = vpop.f32.mrf.mxu0 }
0x25cb   : > { %v6361_v2 = vrot.slane %v6320_v19, 4 }
0x25cc   : > { %v6299_v37 = vpop.f32.mrf.mxu0 }
0x25cd   : > { %6347 = vrot.lane.b32.xlu0 %v6318_v15, %s12061_s30  ;;  %6362 = vrot.lane.b32.xlu1 %v6361_v2, %s12058_s25 }
0x25ce   : > { %v8451_v56 = vpop.f32.mrf.mxu0 }
0x25cf   : > { %v6323_v48 = vpack.c.bf16 %v8451_v56, %v8450_v5 }
0x25d0   : > { %v6302_v33 = vpop.f32.mrf.mxu0 }
0x25d1   : > { %6356 = vrot.lane.b32.xlu0 %v6355_v11, %s12055_s28  ;;  %6368 = vrot.lane.b32.xlu1 %v6367_v60, %s12086_s29  ;;  %v6409_v57 = vrot.slane %v6323_v48, 4  ;;  %v6322_v28 = vpack.c.bf16 %v6302_v33, %v6299_v37 }
0x25d3   : > { %v6403_v46 = vrot.slane %v6322_v28, 4 }
0x25d5   : > { %6350 = vrot.lane.b32.xlu0 %v6349_v53, %s12084_s19 }
0x25d9   : > { %6359 = vrot.lane.b32.xlu0 %v6320_v19, %s12047_s1 }
0x25dd   : > { %6407 = vrot.lane.b32.xlu0 %v6323_v48, %s12057_s2 }
0x25e1   : > { %6410 = vrot.lane.b32.xlu0 %v6409_v57, %s12060_s24 }
0x25e5   : > { %6404 = vrot.lane.b32.xlu0 %v6403_v46, %s12048_s22 }
0x25e9   : > { %6413 = vrot.lane.b32.xlu0 %v11508_v17, %s12081_s5 }
0x25ed   : > { %6172 = vrot.lane.b32.xlu0 %v8800_v42, %s12136_s17  ;;  %v8906_v42 = vld [vmem:[%s11877_s13 + $0xc] sm:$0xff]  }
0x2623   : > { %v6330_v21 = vpop.permute.xlu0 %6329 }
0x2627   : > { %v6333_v18 = vpop.permute.xlu0 %6332 }
0x262b   : > { %v6327_v45 = vpop.permute.xlu0 %6326 }
0x262c   : > { %v6372_v13 = vsel %vm1377_vm8, %v6314_v16, %v6327_v45 }
0x262d   : > { %v6374_v59 = vsel %vm2291_vm11, %v6372_v13, %v6330_v21  ;;  %v6170_v21 = vmul.f32 %v11497_v41, %v11283_v63 }
0x262e   : > { %v6376_v31 = vsel %vm2294_vm12, %v6374_v59, %v6333_v18 }
0x262f   : > { %v6342_v1 = vpop.permute.xlu0 %6341 }
0x2633   : > { %v6336_v44 = vpop.permute.xlu0 %6335  ;;  %v6354_v4 = vpop.permute.xlu1 %6353 }
0x2634   : > { %v6378_v52 = vsel %vm2297_vm7, %v6376_v31, %v6336_v44 }
0x2637   : > { %v6345_v7 = vpop.permute.xlu0 %6344 }
0x263b   : > { %v6339_v32 = vpop.permute.xlu0 %6338  ;;  %v6366_v10 = vpop.permute.xlu1 %6365 }
0x263c   : > { %v6380_v17 = vsel %vm1603_vm6, %v6378_v52, %v6339_v32 }
0x263d   : > { %v6382_v9 = vsel %vm12223_vm15, %v6380_v17, %v6342_v1  ;;  %vm12225_vm15 = vcmask 850944  }
0x263e   : > { %v6384_v36 = vsel %vm2305_vm10, %v6382_v9, %v6345_v7 }
0x263f   : > { %v6348_v6 = vpop.permute.xlu0 %6347  ;;  %v6363_v15 = vpop.permute.xlu1 %6362 }
0x2640   : > { %v6386_v24 = vsel %vm12224_vm2, %v6384_v36, %v6348_v6  ;;  %vm12226_vm2 = vcmask 162816  }
0x2643   : > { %v6357_v14 = vpop.permute.xlu0 %6356  ;;  %v6369_v48 = vpop.permute.xlu1 %6368 }
0x2647   : > { %v6351_v34 = vpop.permute.xlu0 %6350 }
0x2648   : > { %v6388_v16 = vsel %vm2311_vm14, %v6386_v24, %v6351_v34  ;;  %v8908_v24 = vld [vmem:[%s11879_s15 + $0x78] sm:$0xff]  }
0x2649   : > { %v6390_v38 = vsel %vm1652_vm5, %v6388_v16, %v6354_v4 }
0x264a   : > { %v6392_v3 = vsel %vm2316_vm1, %v6390_v38, %v6357_v14 }
0x264b   : > { %v6360_v58 = vpop.permute.xlu0 %6359 }
0x264c   : > { %v6394_v19 = vsel %vm2319_vm4, %v6392_v3, %v6360_v58 }
0x264d   : > { %v6396_v2 = vsel %vm12225_vm15, %v6394_v19, %v6363_v15  ;;  %vm12227_vm15 = vmmov %vm12226_vm2 }
0x264e   : > { %v6398_v53 = vsel %vm2325_vm13, %v6396_v2, %v6366_v10 }
0x264f   : > { %v6408_v55 = vpop.permute.xlu0 %6407  ;;  %v6400_v57 = vsel %vm2328_vm9, %v6398_v53, %v6369_v48 }
0x2653   : > { %v6411_v30 = vpop.permute.xlu0 %6410 }
0x2657   : > { %v6405_v11 = vpop.permute.xlu0 %6404 }
0x2658   : > { %v6417_v60 = vsel %vm1377_vm8, %v6322_v28, %v6405_v11 }
0x2659   : > { %v6419_v5 = vsel %vm2291_vm11, %v6417_v60, %v6408_v55 }
0x265a   : > { %v6421_v37 = vsel %vm2294_vm12, %v6419_v5, %v6411_v30 }
0x265b   : > { %v6414_v56 = vpop.permute.xlu0 %6413 }
0x265c   : > { %v6423_v33 = vsel %vm2297_vm7, %v6421_v37, %v6414_v56 }
0x265d   : > { %7455 = vmatprep.mubr.msk.bf16.mxu1 %vm1603_vm6, %v6423_v33 }
0x265e   : > { %6459 = vmatmul.mubr.bf16.vlgmr.msra.gmra.mxu1 %v6400_v57 }
0x265f   : > { %v6173_v46 = vpop.permute.xlu0 %6172  ;;  %8461 = vmatpush3.bf16.msra.mxu1 %v9815_v50  ;;  %8464 = vmatprep.mubr.msk.bf16.mxu1 %vm8971_vm0, %v12056_v61 }
0x2660   : > { %v6175_v28 = vmul.f32 %v6173_v46, %v11497_v41  ;;  %8462 = vmatprep.subr.bf16.mxu1 %v12056_v61 }
0x2662   : > { %6177 = vrot.lane.b32.xlu1 %v6175_v28, %s12087_s3 }
0x2663   : > { %8463 = vmatpush3.bf16.msra.mxu1 %v8906_v42 }
0x26d4   : > { %v6178_v18 = vpop.permute.xlu1 %6177 }
0x26d5   : > { %v6180_v45 = vadd.f32 %v6178_v18, %v6170_v21 }
0x26d7   : > { %8801 = vtanh.f32 %v6180_v45 }
0x26e4   : > { %v8802_v50 = vpop.eup %8801 }
0x26e5   : > { %6183 = vrot.lane.b32.xlu0 %v8802_v50, %s12087_s3  ;;  %s12232_s3 = sld [smem:[#allocation4_spill]] }
0x26eb   : > { %s694_s26 = scalar_lea.vmem %s12234_s23, %s12232_s3 }
0x271e   : > { %v6460_v1 = vpop.f32.mrf.mxu1 }
0x271f   : > { %v6461_v44 = vadd.f32 %v11290_v29, %v6460_v1  ;;  %v8907_v29 = vld [vmem:[%s11877_s13 + $0x18] sm:$0xff]  }
0x2720   : > { %v6462_v7 = vpop.f32.mrf.mxu1 }
0x2721   : > { %v6467_v13 = vand.u32 2147483647, %v6461_v44  ;;  %v6466_v14 = vmax.f32 %v6461_v44, 0.0  ;;  %v8911_v7 = vld [vmem:[%s11879_s15 + $0x30] sm:$0xff]  }
0x2722   : > { %v6463_v32 = vpop.f32.mrf.mxu1 }
0x2723   : > { %v6468_v59 = vsub.f32 0.0, %v6467_v13  ;;  %v8912_v13 = vld [vmem:[%s11879_s15 + $0x68] sm:$0xff]  }
0x2724   : > { %v6464_v31 = vpop.f32.mrf.mxu1  ;;  %v8913_v32 = vld [vmem:[%s11879_s15 + $0x28] sm:$0xff]  }
0x2725   : > { %v6469_v6 = vmul.f32 1.442695, %v6468_v59  ;;  %v8914_v59 = vld [vmem:[%s11879_s15 + $0x60] sm:$0xff]  }
0x2726   : > { %v8915_v31 = vld [vmem:[%s11879_s15 + $0x20] sm:$0xff]  }
0x2727   : > { %8803 = vpow2.f32 %v6469_v6  ;;  %v8916_v6 = vld [vmem:[%s11879_s15 + $0x58] sm:$0xff]  }
0x2734   : > { %v8804_v52 = vpop.eup %8803 }
0x2735   : > { %v6471_v17 = vadd.f32 1.0, %v8804_v52  ;;  %v8917_v52 = vld [vmem:[%s11879_s15 + $0x18] sm:$0xff]  }
0x2737   : > { %8805 = vlog2.f32 %v6471_v17  ;;  %v8918_v17 = vld [vmem:[%s11879_s15 + $0x50] sm:$0xff]  }
0x2744   : > { %v8806_v63 = vpop.eup %8805 }
0x2745   : > { %v6473_v9 = vmul.f32 0.6931472, %v8806_v63  ;;  %v8919_v63 = vld [vmem:[%s11879_s15 + $0x10] sm:$0xff]  }
0x2747   : > { %v6474_v36 = vadd.f32 %v6473_v9, %v6466_v14  ;;  %v8920_v14 = vld [vmem:[%s11879_s15 + $0x48] sm:$0xff]  }
0x2748   : > { %v8921_v9 = vld [vmem:[%s11879_s15 + $0x8] sm:$0xff]  }
0x2749   : > { %v6475_v34 = vpack.c.bf16 %v6474_v36, %v6474_v36  ;;  %v8922_v36 = vld [vmem:[%s11879_s15 + $0x40] sm:$0xff]  }
0x274b   : > { %8457 = vmatmul.mubr.msk.bf16.vlgmr.msra.gmra.mxu0 %vm12226_vm2, %v6475_v34  ;;  %v8923_v34 = vld [vmem:[%s11879_s15] sm:$0xff]  }
0x274c   : > { %8469 = vmatpush3.bf16.msra.mxu0 %v9835_v54  ;;  %8472 = vmatprep.mubr.msk.bf16.mxu0 %vm8971_vm0, %v12056_v61 }
0x274d   : > { %8470 = vmatprep.subr.bf16.mxu0 %v12056_v61 }
0x2750   : > { %8471 = vmatpush3.bf16.msra.mxu0 %v8907_v29  ;;  %v8924_v29 = vld [vmem:[%s11879_s15 + $0x178] sm:$0xff]  }
0x2751   : > { %7950 = vmatprep.subr.bf16.mxu0 %v8908_v24 }
0x2757   : > { %v6184_v16 = vpop.permute.xlu0 %6183 }
0x2758   : > { %v6186_v58 = vmul.f32 %v6184_v16, %v11497_v41 }
0x275a   : > { %6635 = vrot.lane.b32.xlu1 %v6186_v58, %s12140_s8 }
0x280b   : > { %v6513_v54 = vpop.f32.mrf.mxu0 }
0x280c   : > { %v6514_v4 = vadd.f32 %v11305_v40, %v6513_v54 }
0x280d   : > { %v8458_v38 = vpop.f32.mrf.mxu0 }
0x280e   : > { %v6520_v55 = vand.u32 2147483647, %v6514_v4  ;;  %v6519_v60 = vmax.f32 %v6514_v4, 0.0 }
0x280f   : > { %v6516_v10 = vpop.f32.mrf.mxu0 }
0x2810   : > { %v6521_v3 = vsub.f32 0.0, %v6520_v55 }
0x2811   : > { %v8459_v30 = vpop.f32.mrf.mxu0 }
0x2812   : > { %v6522_v19 = vmul.f32 1.442695, %v6521_v3 }
0x2814   : > { %8807 = vpow2.f32 %v6522_v19 }
0x2821   : > { %v8808_v15 = vpop.eup %8807 }
0x2822   : > { %v6524_v2 = vadd.f32 1.0, %v8808_v15 }
0x2824   : > { %8809 = vlog2.f32 %v6524_v2 }
0x2831   : > { %v8810_v11 = vpop.eup %8809 }
0x2832   : > { %v6526_v5 = vmul.f32 0.6931472, %v8810_v11 }
0x2834   : > { %v6527_v53 = vadd.f32 %v6526_v5, %v6519_v60  ;;  %v6636_v60 = vpop.permute.xlu1 %6635 }
0x2836   : > { %v6528_v41 = vpack.c.bf16 %v6527_v53, %v6527_v53 }
0x2838   : > { %8465 = vmatmul.mubr.msk.bf16.vlgmr.msra.gmra.mxu1 %vm12227_vm15, %v6528_v41  ;;  %vm12228_vm15 = vmmov %vm12226_vm2  ;;  %v8925_v41 = vld [vmem:[%s11879_s15 + $0xf8] sm:$0xff]  }
0x2839   : > { %8478 = vmatprep.mubr.msk.bf16.mxu1 %vm1377_vm8, %v9449_v26  ;;  %v8909_v26 = vld [vmem:[%s11879_s15 + $0x38] sm:$0xff]  }
0x28f8   : > { %v6566_v40 = vpop.f32.mrf.mxu1 }
0x28f9   : > { %v6567_v37 = vadd.f32 %v11314_v12, %v6566_v40  ;;  %v8910_v12 = vld [vmem:[%s11879_s15 + $0x70] sm:$0xff]   ;;  %v8926_v40 = vld [vmem:[%s11879_s15 + $0xb8] sm:$0xff]  }
0x28fa   : > { %v8466_v56 = vpop.f32.mrf.mxu1 }
0x28fb   : > { %v6573_v48 = vand.u32 2147483647, %v6567_v37  ;;  %v6572_v45 = vmax.f32 %v6567_v37, 0.0  ;;  %v8927_v37 = vld [vmem:[%s11879_s15 + $0xf0] sm:$0xff]  }
0x28fc   : > { %v6569_v33 = vpop.f32.mrf.mxu1  ;;  %v8928_v56 = vld [vmem:[%s11879_s15 + $0xb0] sm:$0xff]  }
0x28fd   : > { %v6574_v57 = vsub.f32 0.0, %v6573_v48  ;;  %v8931_v48 = vld [vmem:[%s11879_s15 + $0xe0] sm:$0xff]  }
0x28fe   : > { %v8467_v46 = vpop.f32.mrf.mxu1  ;;  %v8932_v33 = vld [vmem:[%s11879_s15 + $0xa0] sm:$0xff]  }
0x28ff   : > { %v6575_v28 = vmul.f32 1.442695, %v6574_v57  ;;  %v8935_v57 = vld [vmem:[%s11879_s15 + $0xd0] sm:$0xff]  }
0x2900   : > { %v8936_v46 = vld [vmem:[%s11879_s15 + $0x90] sm:$0xff]  }
0x2901   : > { %8811 = vpow2.f32 %v6575_v28  ;;  %v8939_v28 = vld [vmem:[%s11879_s15 + $0xc0] sm:$0xff]  }
0x290e   : > { %v8812_v42 = vpop.eup %8811 }
0x290f   : > { %v6577_v21 = vadd.f32 1.0, %v8812_v42  ;;  %v8940_v42 = vld [vmem:[%s11879_s15 + $0x80] sm:$0xff]  }
0x2911   : > { %8813 = vlog2.f32 %v6577_v21 }
0x291e   : > { %v8814_v18 = vpop.eup %8813 }
0x291f   : > { %v6579_v50 = vmul.f32 0.6931472, %v8814_v18 }
0x2921   : > { %v6580_v1 = vadd.f32 %v6579_v50, %v6572_v45 }
0x2923   : > { %v6581_v44 = vpack.c.bf16 %v6580_v1, %v6580_v1 }
0x2925   : > { %8473 = vmatmul.mubr.msk.bf16.vlgmr.msra.gmra.mxu0 %vm12226_vm2, %v6581_v44 }
0x2926   : > { %7951 = vmatpush3.bf16.msra.mxu0 %v8909_v26 }
0x2927   : > { %7952 = vmatprep.subr.bf16.mxu0 %v8910_v12 }
0x292a   : > { %7953 = vmatpush3.bf16.msra.mxu0 %v8911_v7 }
0x292b   : > { %7954 = vmatprep.subr.bf16.mxu0 %v8912_v13 }
0x292e   : > { %7955 = vmatpush3.bf16.msra.mxu0 %v8913_v32 }
0x292f   : > { %7956 = vmatprep.subr.bf16.mxu0 %v8914_v59 }
0x2932   : > { %7957 = vmatpush3.bf16.msra.mxu0 %v8915_v31 }
0x2933   : > { %7958 = vmatprep.subr.bf16.mxu0 %v8916_v6 }
0x2936   : > { %7959 = vmatpush3.bf16.msra.mxu0 %v8917_v52 }
0x2937   : > { %7960 = vmatprep.subr.bf16.mxu0 %v8918_v17 }
0x293a   : > { %7961 = vmatpush3.bf16.msra.mxu0 %v8919_v63 }
0x293b   : > { %7962 = vmatprep.subr.bf16.mxu0 %v8920_v14 }
0x293e   : > { %7963 = vmatpush3.bf16.msra.mxu0 %v8921_v9 }
0x293f   : > { %7964 = vmatprep.subr.bf16.mxu0 %v8922_v36 }
0x2942   : > { %7965 = vmatpush3.bf16.msra.mxu0 %v8923_v34 }
0x2943   : > { %7994 = vmatprep.subr.bf16.mxu0 %v8924_v29 }
0x29e5   : > { %v6619_v24 = vpop.f32.mrf.mxu0 }
0x29e6   : > { %v6620_v16 = vadd.f32 %v11337_v39, %v6619_v24 }
0x29e7   : > { %v8474_v58 = vpop.f32.mrf.mxu0 }
0x29e8   : > { %v6626_v54 = vand.u32 2147483647, %v6620_v16  ;;  %v6625_v15 = vmax.f32 %v6620_v16, 0.0 }
0x29e9   : > { %v6622_v4 = vpop.f32.mrf.mxu0 }
0x29ea   : > { %v6627_v38 = vsub.f32 0.0, %v6626_v54 }
0x29eb   : > { %v8475_v55 = vpop.f32.mrf.mxu0 }
0x29ec   : > { %v6628_v10 = vmul.f32 1.442695, %v6627_v38 }
0x29ee   : > { %8815 = vpow2.f32 %v6628_v10 }
0x29fb   : > { %v8816_v3 = vpop.eup %8815 }
0x29fc   : > { %v6630_v30 = vadd.f32 1.0, %v8816_v3 }
0x29fe   : > { %8817 = vlog2.f32 %v6630_v30 }
0x2a0b   : > { %v8818_v19 = vpop.eup %8817 }
0x2a0c   : > { %v6632_v2 = vmul.f32 0.6931472, %v8818_v19 }
0x2a0e   : > { %v6633_v11 = vadd.f32 %v6632_v2, %v6625_v15 }
0x2a10   : > { %v6638_v5 = vsel %vm12228_vm15, %v6633_v11, %v6636_v60 }
0x2a11   : > { %v11665_v53 = vpack.c.bf16 %v6638_v5, %v6638_v5 }
0x2a13   : > { %8522 = vmatprep.subr.msk.bf16.mxu1 %vm1408_vm3, %v11665_v53  ;;  %v6641_v39 = vsel %vm1408_vm3, %v11665_v53, 0  ;;  %vm12229_vm3 = vcmask 523264  }
0x2a14   : > { %8477 = vmatpush3.bf16.msra.mxu1 %v6641_v39 }
0x2a15   : > { %7972 = vmatprep.subr.bf16.mxu1 %v8925_v41 }
0x2a17   : > { %8479 = vmatmul.mubr.msk.bf16.vlgmr.msra.gmra.mxu1 %vm1377_vm8, %v9455_v35  ;;  %v8929_v35 = vld [vmem:[%s11879_s15 + $0xe8] sm:$0xff]  }
0x2a18   : > { %8482 = vmatprep.mubr.msk.bf16.mxu1 %vm1377_vm8, %v9461_v51  ;;  %7973 = vmatpush3.bf16.msra.mxu1 %v8926_v40  ;;  %v8930_v51 = vld [vmem:[%s11879_s15 + $0xa8] sm:$0xff]  }
0x2a19   : > { %7974 = vmatprep.subr.bf16.mxu1 %v8927_v37 }
0x2a1c   : > { %7975 = vmatpush3.bf16.msra.mxu1 %v8928_v56 }
0x2a1d   : > { %7976 = vmatprep.subr.bf16.mxu1 %v8929_v35 }
0x2a1f   : > { %8483 = vmatmul.mubr.msk.bf16.gmra.mxu1 %vm1377_vm8, %v9468_v27  ;;  %v8933_v27 = vld [vmem:[%s11879_s15 + $0xd8] sm:$0xff]  }
0x2a20   : > { %8486 = vmatprep.mubr.msk.bf16.mxu1 %vm1377_vm8, %v9473_v25  ;;  %7977 = vmatpush3.bf16.msra.mxu1 %v8930_v51  ;;  %v8934_v25 = vld [vmem:[%s11879_s15 + $0x98] sm:$0xff]  }
0x2a21   : > { %7978 = vmatprep.subr.bf16.mxu1 %v8931_v48 }
0x2a24   : > { %7979 = vmatpush3.bf16.msra.mxu1 %v8932_v33 }
0x2a25   : > { %7980 = vmatprep.subr.bf16.mxu1 %v8933_v27 }
0x2a27   : > { %8487 = vmatmul.mubr.msk.bf16.gmra.mxu1 %vm1377_vm8, %v9481_v43  ;;  %v8937_v43 = vld [vmem:[%s11879_s15 + $0xc8] sm:$0xff]  }
0x2a28   : > { %8490 = vmatprep.mubr.msk.bf16.mxu1 %vm1377_vm8, %v9483_v23  ;;  %7981 = vmatpush3.bf16.msra.mxu1 %v8934_v25  ;;  %v8938_v23 = vld [vmem:[%s11879_s15 + $0x88] sm:$0xff]  }
0x2a29   : > { %7982 = vmatprep.subr.bf16.mxu1 %v8935_v57 }
0x2a2c   : > { %7983 = vmatpush3.bf16.msra.mxu1 %v8936_v46  ;;  %v8941_v46 = vld [vmem:[%s11879_s15 + $0x138] sm:$0xff]  }
0x2a2d   : > { %7984 = vmatprep.subr.bf16.mxu1 %v8937_v43 }
0x2a2f   : > { %8491 = vmatmul.mubr.msk.bf16.gmra.mxu1 %vm1377_vm8, %v9493_v62 }
0x2a30   : > { %8494 = vmatprep.mubr.msk.bf16.mxu1 %vm1377_vm8, %v9495_v20  ;;  %7985 = vmatpush3.bf16.msra.mxu1 %v8938_v23  ;;  %v8942_v23 = vld [vmem:[%s11879_s15 + $0x170] sm:$0xff]  }
0x2a31   : > { %7986 = vmatprep.subr.bf16.mxu1 %v8939_v28 }
0x2a34   : > { %7987 = vmatpush3.bf16.msra.mxu1 %v8940_v42  ;;  %v8943_v42 = vld [vmem:[%s11879_s15 + $0x130] sm:$0xff]  }
0x2a35   : > { %8498 = vmatprep.subr.bf16.mxu1 %v12056_v61 }
0x2a37   : > { %8495 = vmatmul.mubr.msk.bf16.gmra.mxu1 %vm1377_vm8, %v9503_v8 }
0x2ad7   : > { %v8480_v62 = vpop.f32.mrf.mxu1 }
0x2ad9   : > { %v6677_v20 = vpop.f32.mrf.mxu1 }
0x2adb   : > { %v8481_v21 = vpop.f32.mrf.mxu1 }
0x2adc   : > { %v6757_v18 = vpack.c.bf16 %v8481_v21, %v8480_v62 }
0x2add   : > { %v6680_v45 = vpop.f32.mrf.mxu1 }
0x2ade   : > { %v6773_v50 = vrot.slane %v6757_v18, 4  ;;  %v6756_v1 = vpack.c.bf16 %v6680_v45, %v6677_v20  ;;  %v8944_v20 = vld [vmem:[%s11879_s15 + $0x168] sm:$0xff]  }
0x2adf   : > { %v8484_v44 = vpop.f32.mrf.mxu1 }
0x2ae0   : > { %6774 = vrot.lane.b32.xlu0 %v6773_v50, %s12086_s29  ;;  %v6767_v12 = vrot.slane %v6756_v1, 4 }
0x2ae1   : > { %v6693_v26 = vpop.f32.mrf.mxu1 }
0x2ae3   : > { %v8485_v7 = vpop.f32.mrf.mxu1 }
0x2ae4   : > { %6768 = vrot.lane.b32.xlu0 %v6767_v12, %s12082_s4  ;;  %v6759_v32 = vpack.c.bf16 %v8485_v7, %v8484_v44  ;;  %v8946_v12 = vld [vmem:[%s11879_s15 + $0x160] sm:$0xff]  }
0x2ae5   : > { %v6696_v13 = vpop.f32.mrf.mxu1 }
0x2ae6   : > { %v6758_v59 = vpack.c.bf16 %v6696_v13, %v6693_v26  ;;  %v6785_v6 = vrot.slane %v6759_v32, 4 }
0x2ae7   : > { %v8488_v31 = vpop.f32.mrf.mxu1 }
0x2ae8   : > { %6771 = vrot.lane.b32.xlu0 %v6757_v18, %s12083_s0  ;;  %6777 = vrot.lane.b32.xlu1 %v6758_v59, %s12081_s5  ;;  %v6779_v52 = vrot.slane %v6758_v59, 4  ;;  %v8948_v59 = vld [vmem:[%s11879_s15 + $0x158] sm:$0xff]  }
0x2ae9   : > { %v6709_v8 = vpop.f32.mrf.mxu1 }
0x2aeb   : > { %v8489_v17 = vpop.f32.mrf.mxu1 }
0x2aec   : > { %6786 = vrot.lane.b32.xlu0 %v6785_v6, %s12060_s24  ;;  %6780 = vrot.lane.b32.xlu1 %v6779_v52, %s12084_s19  ;;  %v6761_v29 = vpack.c.bf16 %v8489_v17, %v8488_v31  ;;  %v8949_v52 = vld [vmem:[%s11879_s15 + $0x118] sm:$0xff]   ;;  %v8951_v17 = vld [vmem:[%s11879_s15 + $0x150] sm:$0xff]  }
0x2aed   : > { %v6712_v63 = vpop.f32.mrf.mxu1 }
0x2aee   : > { %v6760_v14 = vpack.c.bf16 %v6712_v63, %v6709_v8  ;;  %v6797_v58 = vrot.slane %v6761_v29, 4 }
0x2aef   : > { %v8492_v9 = vpop.f32.mrf.mxu1 }
0x2af0   : > { %v6791_v36 = vrot.slane %v6760_v14, 4  ;;  %6783 = vrot.lane.b32.xlu1 %v6759_v32, %s12085_s6  ;;  %v8947_v32 = vld [vmem:[%s11879_s15 + $0x120] sm:$0xff]  }
0x2af1   : > { %v6725_v34 = vpop.f32.mrf.mxu1 }
0x2af2   : > { %6792 = vrot.lane.b32.xlu0 %v6791_v36, %s12058_s25  ;;  %v8952_v36 = vld [vmem:[%s11879_s15 + $0x110] sm:$0xff]  }
0x2af3   : > { %v8493_v24 = vpop.f32.mrf.mxu1 }
0x2af4   : > { %6795 = vrot.lane.b32.xlu1 %v6761_v29, %s12057_s2  ;;  %v6763_v30 = vpack.c.bf16 %v8493_v24, %v8492_v9  ;;  %v8954_v24 = vld [vmem:[%s11879_s15 + $0x148] sm:$0xff]  }
0x2af5   : > { %v6728_v16 = vpop.f32.mrf.mxu1 }
0x2af6   : > { %6789 = vrot.lane.b32.xlu0 %v6760_v14, %s12061_s30  ;;  %v6762_v38 = vpack.c.bf16 %v6728_v16, %v6725_v34  ;;  %v6809_v60 = vrot.slane %v6763_v30, 4  ;;  %v8953_v34 = vld [vmem:[%s11879_s15 + $0x190] sm:$0xff]   ;;  %v8955_v16 = vld [vmem:[%s11879_s15 + $0x108] sm:$0xff]  }
0x2af7   : > { %v8496_v54 = vpop.f32.mrf.mxu1 }
0x2af8   : > { %6798 = vrot.lane.b32.xlu1 %v6797_v58, %s12059_s27  ;;  %v6803_v2 = vrot.slane %v6762_v38, 4  ;;  %v8956_v58 = vld [vmem:[%s11879_s15 + $0x188] sm:$0xff]  }
0x2af9   : > { %v6741_v4 = vpop.f32.mrf.mxu1 }
0x2afb   : > { %v8497_v55 = vpop.f32.mrf.mxu1 }
0x2afc   : > { %v6765_v10 = vpack.c.bf16 %v8497_v55, %v8496_v54  ;;  %6801 = vrot.lane.b32.xlu1 %v6762_v38, %s12047_s1  ;;  %v8957_v54 = vld [vmem:[%s11879_s15 + $0x140] sm:$0xff]  }
0x2afd   : > { %v6744_v3 = vpop.f32.mrf.mxu1 }
0x2afe   : > { %v11750_v19 = vpack.c.bf16 %v6744_v3, %v6741_v4  ;;  %6853 = vrot.lane.b32.xlu0 %v6765_v10, %s12083_s0  ;;  %v6855_v11 = vrot.slane %v6765_v10, 4  ;;  %v8958_v10 = vld [vmem:[%s11879_s15 + $0x100] sm:$0xff]  }
0x2aff   : > { %v8959_v3 = vld [vmem:[%s11879_s15 + $0x180] sm:$0xff]  }
0x2b00   : > { %v6849_v15 = vrot.slane %v11750_v19, 4  ;;  %6807 = vrot.lane.b32.xlu1 %v6763_v30, %s12044_s21 }
0x2b02   : > { %6850 = vrot.lane.b32.xlu0 %v6849_v15, %s12082_s4 }
0x2b04   : > { %6804 = vrot.lane.b32.xlu1 %v6803_v2, %s12048_s22 }
0x2b06   : > { %6856 = vrot.lane.b32.xlu0 %v6855_v11, %s12086_s29 }
0x2b08   : > { %6810 = vrot.lane.b32.xlu1 %v6809_v60, %s12055_s28 }
0x2b0a   : > { %6859 = vrot.lane.b32.xlu0 %v11665_v53, %s12081_s5 }
0x2b52   : > { %v6775_v5 = vpop.permute.xlu0 %6774 }
0x2b56   : > { %v6769_v39 = vpop.permute.xlu0 %6768 }
0x2b57   : > { %v6814_v56 = vsel %vm1603_vm6, %v6756_v1, %v6769_v39  ;;  %v8945_v1 = vld [vmem:[%s11879_s15 + $0x128] sm:$0xff]  }
0x2b5a   : > { %v6772_v41 = vpop.permute.xlu0 %6771  ;;  %v6778_v40 = vpop.permute.xlu1 %6777 }
0x2b5b   : > { %v6816_v51 = vsel %vm1652_vm5, %v6814_v56, %v6772_v41  ;;  %v6821_v48 = vsel %vm2297_vm7, %v6775_v5, %v6778_v40 }
0x2b5c   : > { %v6818_v57 = vsel %vm2328_vm9, %v6816_v51, %v6775_v5 }
0x2b5e   : > { %v6781_v37 = vpop.permute.xlu1 %6780  ;;  %v6787_v35 = vpop.permute.xlu0 %6786 }
0x2b5f   : > { %v6823_v33 = vsel %vm2311_vm14, %v6821_v48, %v6781_v37  ;;  %v8960_v48 = vld [vmem:[%s11880_s16] ss:$0 sm:$0xff] }
0x2b62   : > { %v6784_v27 = vpop.permute.xlu1 %6783 }
0x2b63   : > { %v6825_v25 = vsel %vm2325_vm13, %v6823_v33, %v6784_v27  ;;  %v6828_v21 = vsel %vm2294_vm12, %v6784_v27, %v6787_v35  ;;  %vm12230_vm12 = vcmask 850944  }
0x2b64   : > { %6905 = vmatprep.mubr.bf16.mxu0 %v6825_v25  ;;  %v6793_v53 = vpop.permute.xlu0 %6792 }
0x2b65   : > { %6906 = vmatmul.mubr.bf16.vlgmr.msra.gmra.mxu0 %v6818_v57 }
0x2b66   : > { %7995 = vmatpush3.bf16.msra.mxu0 %v8941_v46  ;;  %v6796_v43 = vpop.permute.xlu1 %6795 }
0x2b67   : > { %7996 = vmatprep.subr.bf16.mxu0 %v8942_v23  ;;  %v6835_v18 = vsel %vm2291_vm11, %v6793_v53, %v6796_v43  ;;  %vm12237_vm11 = vcmask 23552  }
0x2b68   : > { %v6790_v28 = vpop.permute.xlu0 %6789 }
0x2b69   : > { %v6830_v45 = vsel %vm12229_vm3, %v6828_v21, %v6790_v28 }
0x2b6a   : > { %7997 = vmatpush3.bf16.msra.mxu0 %v8943_v42  ;;  %v6799_v62 = vpop.permute.xlu1 %6798  ;;  %v6832_v7 = vsel %vm12230_vm12, %v6830_v45, %v6793_v53 }
0x2b6b   : > { %7998 = vmatprep.subr.bf16.mxu0 %v8944_v20  ;;  %v6837_v50 = vsel %vm2305_vm10, %v6835_v18, %v6799_v62 }
0x2b6e   : > { %7999 = vmatpush3.bf16.msra.mxu0 %v8945_v1  ;;  %v6802_v44 = vpop.permute.xlu1 %6801 }
0x2b6f   : > { %v6839_v26 = vsel %vm2319_vm4, %v6837_v50, %v6802_v44  ;;  %8000 = vmatprep.subr.bf16.mxu0 %v8946_v12 }
0x2b70   : > { %6945 = vmatprep.mubr.bf16.mxu1 %v6839_v26  ;;  %v6854_v13 = vpop.permute.xlu0 %6853 }
0x2b71   : > { %6946 = vmatmul.mubr.bf16.vlgmr.msra.gmra.mxu1 %v6832_v7 }
0x2b72   : > { %8001 = vmatpush3.bf16.msra.mxu0 %v8947_v32  ;;  %8499 = vmatpush3.bf16.msra.mxu1 %v10240_v49  ;;  %v6808_v8 = vpop.permute.xlu1 %6807  ;;  %v8950_v49 = vld [vmem:[%s11879_s15 + $0x198] sm:$0xff]  }
0x2b73   : > { %8002 = vmatprep.subr.bf16.mxu0 %v8948_v59  ;;  %8500 = vmatprep.subr.bf16.mxu1 %v12056_v61 }
0x2b74   : > { %v6851_v31 = vpop.permute.xlu0 %6850  ;;  %8508 = vmatprep.mubr.msk.bf16.mxu1 %vm8971_vm0, %v12056_v61  ;;  %vm12231_vm0 = vcmask 392192  }
0x2b75   : > { %v6863_v6 = vsel %vm1603_vm6, %v11750_v19, %v6851_v31  ;;  %vm7055_vm6 = vcmask 15360  }
0x2b76   : > { %8003 = vmatpush3.bf16.msra.mxu0 %v8949_v52  ;;  %8501 = vmatpush3.bf16.msra.mxu1 %v8950_v49  ;;  %v6865_v14 = vsel %vm1652_vm5, %v6863_v6, %v6854_v13  ;;  %v6805_v29 = vpop.permute.xlu1 %6804  ;;  %vm12236_vm5 = vcmask 7168  }
0x2b77   : > { %8004 = vmatprep.subr.bf16.mxu0 %v8951_v17  ;;  %8502 = vmatprep.subr.bf16.mxu1 %v12056_v61  ;;  %v6842_v4 = vsel %vm1377_vm8, %v6802_v44, %v6805_v29  ;;  %vm12233_vm8 = vmmov %vm12226_vm2 }
0x2b78   : > { %v6857_v63 = vpop.permute.xlu0 %6856  ;;  %v6844_v30 = vsel %vm12231_vm0, %v6842_v4, %v6808_v8 }
0x2b79   : > { %v6867_v9 = vsel %vm2328_vm9, %v6865_v14, %v6857_v63 }
0x2b7a   : > { %8005 = vmatpush3.bf16.msra.mxu0 %v8952_v36  ;;  %8503 = vmatpush3.bf16.msra.mxu1 %v8953_v34  ;;  %v6811_v38 = vpop.permute.xlu1 %6810 }
0x2b7b   : > { %6985 = vmatprep.mubr.bf16.mxu0 %v6867_v9  ;;  %8006 = vmatprep.subr.bf16.mxu0 %v8954_v24  ;;  %v6846_v19 = vsel %vm2316_vm1, %v6844_v30, %v6811_v38 }
0x2b7c   : > { %8504 = vmatprep.subr.bf16.mxu1 %v12056_v61  ;;  %v6860_v55 = vpop.permute.xlu0 %6859 }
0x2b7e   : > { %8007 = vmatpush3.bf16.msra.mxu0 %v8955_v16  ;;  %8505 = vmatpush3.bf16.msra.mxu1 %v8956_v58 }
0x2b7f   : > { %8008 = vmatprep.subr.bf16.mxu0 %v8957_v54  ;;  %8506 = vmatprep.subr.bf16.mxu1 %v12056_v61  ;;  %v6870_v61 = vsel %vm2297_vm7, %v6857_v63, %v6860_v55 }
0x2b82   : > { %8009 = vmatpush3.bf16.msra.mxu0 %v8958_v10  ;;  %8507 = vmatpush3.bf16.msra.mxu1 %v8959_v3 }
0x2b85   : > { %6986 = vmatmul.mubr.bf16.vlgmr.msra.gmra.mxu0 %v6846_v19  ;;  %8509 = vmatmul.mubr.msk.bf16.vlgmr.msra.gmra.mxu1 %vm2311_vm14, %v6870_v61 }
0x2c25   : > { %v7966_v15 = vpop.f32.mrf.mxu0 }
0x2c27   : > { %v7967_v2 = vpop.f32.mrf.mxu0 }
0x2c28   : > { %v7968_v37 = vadd.f32 %v7967_v2, %v7966_v15 }
0x2c29   : > { %v7969_v11 = vpop.f32.mrf.mxu0 }
0x2c2a   : > { %v6908_v33 = vadd.f32 %v8960_v48, %v7968_v37 }
0x2c2b   : > { %v7970_v60 = vpop.f32.mrf.mxu0 }
0x2c31   : > { %v7988_v5 = vpop.f32.mrf.mxu1 }
0x2c33   : > { %v7989_v39 = vpop.f32.mrf.mxu1 }
0x2c34   : > { %v7990_v56 = vadd.f32 %v7989_v39, %v7988_v5 }
0x2c35   : > { %v7991_v41 = vpop.f32.mrf.mxu1 }
0x2c36   : > { %v6948_v57 = vadd.f32 %v7990_v56, %v6908_v33 }
0x2c37   : > { %v7992_v40 = vpop.f32.mrf.mxu1 }
0x2c45   : > { %v8010_v35 = vpop.f32.mrf.mxu0  ;;  %v7027_v51 = vpop.f32.mrf.mxu1 }
0x2c47   : > { %v8011_v27 = vpop.f32.mrf.mxu0  ;;  %v8510_v25 = vpop.f32.mrf.mxu1 }
0x2c48   : > { %v8012_v53 = vadd.f32 %v8011_v27, %v8010_v35 }
0x2c49   : > { %v8013_v46 = vpop.f32.mrf.mxu0  ;;  %v7030_v43 = vpop.f32.mrf.mxu1 }
0x2c4a   : > { %v6988_v23 = vadd.f32 %v8012_v53, %v6948_v57 }
0x2c4b   : > { %v8014_v28 = vpop.f32.mrf.mxu0  ;;  %v8511_v42 = vpop.f32.mrf.mxu1 }
0x2c4c   : > { %v7028_v62 = vadd.f32 %v7027_v51, %v6988_v23 }
0x2c4e   : > { %v7033_v20 = vmul.f32 0.5, %v7028_v62 }
0x2c50   : > { %8819 = vtanh.f32 %v7033_v20 }
0x2c5d   : > { %v8820_v21 = vpop.eup %8819 }
0x2c5e   : > { %v7035_v18 = vadd.f32 1.0, %v8820_v21 }
0x2c60   : > { %v7036_v45 = vmul.f32 0.5, %v7035_v18 }
0x2c62   : > { %v7037_v50 = vmul.f32 %v7036_v45, %v10633_v22  ;;  %v12235_v22 = vld [vmem:[#allocation38_spill] sm:$0xff] }
0x2c64   : > { %7039 = vrot.lane.b32.xlu1 %v7037_v50, %s12055_s28 }
0x2c68   : > { %7047 = vrot.lane.b32.xlu1 %v11504_v47, %s9005_s18 }
0x2cd6   : > { %v7040_v1 = vpop.permute.xlu1 %7039 }
0x2cd7   : > { %v7042_v44 = vsel %vm12233_vm8, %v7040_v1, 0.0 }
0x2cd8   : > { %7043 = vadd.xlane.f32.xlu0 %v7042_v44 }
0x2cda   : > { %v7048_v7 = vpop.permute.xlu1 %7047 }
0x2cdb   : > { %v7054_v13 = vsel %vm12236_vm5, %v12235_v22, %v7048_v7 }
0x2d61   : > { %v7044_v26 = vpop.xlane.xlu0 %7043 }
0x2d62   : > { %v7045_v12 = vadd.f32 %v7044_v26, %v12220_v0 }
0x2d64   : > { %7051 = vrot.lane.b32.xlu1 %v7045_v12, %s9006_s9 }
0x2dd6   : > { %v7052_v32 = vpop.permute.xlu1 %7051 }
0x2dd7   : > { %v7056_v47 = vsel %vm7055_vm6, %v7054_v13, %v7052_v32 }
0x2dd8   : > { %7057 = vst.msk [vmem:[%s694_s26] sm:$0xff] %vm12237_vm11, %v7056_v47 }
0x2dd9 PF: > { %s12238_s28 = sld [smem:[#allocation3_spill]] }
0x2ddf   : > { %s32_s23 = sadd.s32 1, %s12238_s28  }
0x2de0   : > { %p29_p4 = scmp.ge.s32.totalorder %s32_s23, 4  }
0x2de2   :  { %31 = sbr.rel (!%p29_p4) target bundleno = 15 (0xf), region = 150 }

</bundles_post_ra>
